<compile_context>
chip_gen: v7x
topology: tpu7x:2x2x1
jax: 0.10.0
libtpu: 0.0.40
codegen_flags: <defaults>
</compile_context>

<pallas_src>
import functools
import math

import jax
import jax.numpy as jnp
from jax import lax
from jax.experimental import pallas as pl
from jax.experimental.pallas import tpu as pltpu


# --------------------------- XLA-side im2col prep -----------------------------
def im2col_parity_planes(x_nhwc):
    """SAME-pad 3x3 im2col split by output-column parity (for the 2x W-pool).

    x_nhwc: (B, H, W, Cin)
    returns xe, xo: (B, H, W//2, 9*Cin) bf16, tap order k = (dh*3 + dw)*Cin + c.
    xe[b, h, j] holds the taps of output column 2j, xo those of column 2j+1.
    """
    B, H, W, Cin = x_nhwc.shape
    assert W % 2 == 0
    Wh = W // 2
    xp = jnp.pad(x_nhwc, ((0, 0), (1, 1), (1, 1), (0, 0)))   # zero pad H, W

    def plane(col0):
        parts = []
        for dh in range(3):
            for dw in range(3):
                c0 = col0 + dw
                parts.append(
                    lax.slice(xp,
                              (0, dh, c0, 0),
                              (B, dh + H, c0 + 2 * (Wh - 1) + 1, Cin),
                              (1, 1, 2, 1)))
        return jnp.concatenate(parts, axis=-1).astype(jnp.bfloat16)

    return plane(0), plane(1)


# ----------------------------- conv + relu + pool -----------------------------
def _conv_relu_pool_kernel(xe_ref, xo_ref, w_ref, b_ref, o_ref, *, TH, Wh, K9, Cout):
    """3x3 SAME conv + bias + ReLU + 2x2 max-pool for one (batch, row-tile).

    xe_ref / xo_ref: (TH, Wh, 9*Cin) bf16 im2col planes (even / odd out columns)
    w_ref:           (9*Cin, Cout)   bf16
    b_ref:           (1, Cout)       f32
    o_ref:           (TH//2, Wh, Cout) bf16 pooled output rows
    """
    w = w_ref[...]
    ye = jnp.dot(xe_ref[...].reshape(TH * Wh, K9), w,
                 preferred_element_type=jnp.float32)
    yo = jnp.dot(xo_ref[...].reshape(TH * Wh, K9), w,
                 preferred_element_type=jnp.float32)
    # 2x pool along W == max over the two output-column parities; bias + ReLU
    # commute with the max, so apply them once afterwards (f32).
    y = jnp.maximum(jnp.maximum(ye, yo) + b_ref[...], 0.0)
    # 2x pool along H: split the row dim (layout-preserving since Wh % 8 == 0).
    y = y.reshape(TH // 2, 2, Wh, Cout)
    o_ref[...] = jnp.maximum(y[:, 0], y[:, 1]).astype(o_ref.dtype)


def conv_relu_pool(xe, xo, w9, b, *, row_tile=None):
    """xe/xo: (B, H, Wh, 9*Cin) bf16; w9: (9*Cin, Cout) bf16; b: (1, Cout) f32.

    Returns (B, H//2, Wh, Cout) bf16.
    """
    B, H, Wh, K9 = xe.shape
    Cout = w9.shape[-1]
    TH = H if row_tile is None else row_tile        # full image height per step
    assert TH % 2 == 0 and H % TH == 0 and Wh % 8 == 0

    kernel = functools.partial(_conv_relu_pool_kernel,
                               TH=TH, Wh=Wh, K9=K9, Cout=Cout)
    return pl.pallas_call(
        kernel,
        out_shape=jax.ShapeDtypeStruct((B, H // 2, Wh, Cout), jnp.bfloat16),
        grid_spec=pltpu.PrefetchScalarGridSpec(
            num_scalar_prefetch=0,
            grid=(B, H // TH),
            in_specs=[
                pl.BlockSpec((None, TH, Wh, K9), lambda bi, ti: (bi, ti, 0, 0)),
                pl.BlockSpec((None, TH, Wh, K9), lambda bi, ti: (bi, ti, 0, 0)),
                pl.BlockSpec((K9, Cout), lambda bi, ti: (0, 0)),
                pl.BlockSpec((1, Cout), lambda bi, ti: (0, 0)),
            ],
            out_specs=pl.BlockSpec((None, TH // 2, Wh, Cout),
                                   lambda bi, ti: (bi, ti, 0, 0)),
        ),
        compiler_params=pltpu.CompilerParams(
            dimension_semantics=("parallel", "parallel"),
            vmem_limit_bytes=32 * 1024 * 1024),
    )(xe, xo, w9, b)


# --------------------------------- MLP head -----------------------------------
def _mlp_kernel(x_ref, w1_ref, b1_ref, w2_ref, b2_ref, o_ref, h_acc):
    k = pl.program_id(0)

    @pl.when(k == 0)
    def _init():
        h_acc[...] = jnp.zeros_like(h_acc)

    h_acc[...] += jnp.dot(x_ref[...].astype(jnp.bfloat16), w1_ref[...],
                          preferred_element_type=jnp.float32)

    @pl.when(k == pl.num_programs(0) - 1)
    def _finish():
        h = jnp.maximum(h_acc[...] + b1_ref[...], 0.0)        # fc1 bias + ReLU
        o_ref[...] = jnp.dot(h.astype(jnp.bfloat16), w2_ref[...],
                             preferred_element_type=jnp.float32) + b2_ref[...]


def mlp_head(feat, w1, b1, w2, b2, *, k_tile=8192):
    B, K = feat.shape
    Hd = w1.shape[-1]
    NC = w2.shape[-1]
    k_tile = min(k_tile, K)
    assert K % k_tile == 0
    return pl.pallas_call(
        _mlp_kernel,
        out_shape=jax.ShapeDtypeStruct((B, NC), jnp.float32),
        grid_spec=pltpu.PrefetchScalarGridSpec(
            num_scalar_prefetch=0,
            grid=(K // k_tile,),
            in_specs=[
                pl.BlockSpec((B, k_tile), lambda k: (0, k)),
                pl.BlockSpec((k_tile, Hd), lambda k: (k, 0)),
                pl.BlockSpec((1, Hd), lambda k: (0, 0)),
                pl.BlockSpec((Hd, NC), lambda k: (0, 0)),
                pl.BlockSpec((1, NC), lambda k: (0, 0)),
            ],
            out_specs=pl.BlockSpec((B, NC), lambda k: (0, 0)),
            scratch_shapes=[pltpu.VMEM((B, Hd), jnp.float32)],
        ),
        compiler_params=pltpu.CompilerParams(
            dimension_semantics=("arbitrary",)),
    )(feat, w1, b1, w2, b2)


# -------------------------------- full forward --------------------------------
def asl_classifier_forward(x_nchw, kp):
    x = jnp.transpose(x_nchw, (0, 2, 3, 1)).astype(jnp.bfloat16)  # NCHW -> NHWC
    xe, xo = im2col_parity_planes(x)
    y = conv_relu_pool(xe, xo, kp["w_c1"], kp["b_c1"])            # (B, 32, 32, 16)
    xe2, xo2 = im2col_parity_planes(y)
    y = conv_relu_pool(xe2, xo2, kp["w_c2"], kp["b_c2"])          # (B, 16, 16, 32)
    feat = y.reshape(y.shape[0], -1)                              # NHWC flatten (free)
    return mlp_head(feat, kp["w_fc1"], kp["b_fc1"], kp["w_fc2"], kp["b_fc2"])


def prepare_params(tp):
    """PyTorch-layout params -> kernel layouts (done once, outside the kernels)."""
    def conv_w(w):                 # (Cout, Cin, 3, 3) -> (9*Cin, Cout), tap-major
        cout, cin = w.shape[0], w.shape[1]
        return (jnp.transpose(w, (2, 3, 1, 0))        # (dh, dw, cin, cout)
                .reshape(9 * cin, cout).astype(jnp.bfloat16))

    # Fold the PyTorch NCHW flatten into fc1's weight rows so the kernel can
    # consume conv2's NHWC output directly.
    hid = tp["fc1_w"].shape[0]
    w1 = tp["fc1_w"].reshape(hid, 32, 16, 16)                     # (out, c, h, w)
    w1 = jnp.transpose(w1, (2, 3, 1, 0)).reshape(16 * 16 * 32, hid)

    return {
        "w_c1": conv_w(tp["conv1_w"]),
        "b_c1": tp["conv1_b"].reshape(1, -1).astype(jnp.float32),
        "w_c2": conv_w(tp["conv2_w"]),
        "b_c2": tp["conv2_b"].reshape(1, -1).astype(jnp.float32),
        "w_fc1": w1.astype(jnp.bfloat16),
        "b_fc1": tp["fc1_b"].reshape(1, -1).astype(jnp.float32),
        "w_fc2": tp["fc2_w"].T.astype(jnp.bfloat16),
        "b_fc2": tp["fc2_b"].reshape(1, -1).astype(jnp.float32),
    }


# ---------------- pure-JAX reference (for correctness check only) -------------
def _pool2x2_nchw(y):
    B, C, H, W = y.shape
    y = y.reshape(B, C, H // 2, 2, W // 2, 2)
    return jnp.max(jnp.max(y, axis=5), axis=3)


def reference_forward(x_nchw, tp):
    hp = lax.Precision.HIGHEST

    def block(x, w, b):
        y = lax.conv_general_dilated(x, w, (1, 1), "SAME",
                                     dimension_numbers=("NCHW", "OIHW", "NCHW"),
                                     precision=hp)
        y = jnp.maximum(y + b[None, :, None, None], 0.0)
        return _pool2x2_nchw(y)

    y = block(x_nchw, tp["conv1_w"], tp["conv1_b"])
    y = block(y, tp["conv2_w"], tp["conv2_b"])
    feat = y.reshape(x_nchw.shape[0], -1)                         # NCHW flatten
    h = jnp.maximum(jnp.matmul(feat, tp["fc1_w"].T, precision=hp) + tp["fc1_b"], 0.0)
    return jnp.matmul(h, tp["fc2_w"].T, precision=hp) + tp["fc2_b"]


if __name__ == "__main__":
    NUM_CLASSES = 10
    B = 2
    key = jax.random.PRNGKey(0)
    ks = jax.random.split(key, 9)

    def uinit(k, shape, fan_in):
        lim = 1.0 / math.sqrt(fan_in)
        return jax.random.uniform(k, shape, jnp.float32, -lim, lim)

    torch_params = {
        "conv1_w": uinit(ks[1], (16, 3, 3, 3), 3 * 9),
        "conv1_b": uinit(ks[2], (16,), 3 * 9),
        "conv2_w": uinit(ks[3], (32, 16, 3, 3), 16 * 9),
        "conv2_b": uinit(ks[4], (32,), 16 * 9),
        "fc1_w": uinit(ks[5], (128, 32 * 16 * 16), 32 * 16 * 16),
        "fc1_b": uinit(ks[6], (128,), 32 * 16 * 16),
        "fc2_w": uinit(ks[7], (NUM_CLASSES, 128), 128),
        "fc2_b": uinit(ks[8], (NUM_CLASSES,), 128),
    }
    # The module fixes the spatial size to 64x64 (fc1 expects 32*16*16 features).
    x = jax.random.normal(ks[0], (B, 3, 64, 64), jnp.float32)

    kparams = prepare_params(torch_params)
    out = jax.block_until_ready(jax.jit(asl_classifier_forward)(x, kparams))
    assert out.shape == (B, NUM_CLASSES), out.shape

    ref = reference_forward(x, torch_params)
    err = float(jnp.max(jnp.abs(out - ref)))
    assert err < 2e-2, f"max abs err {err}"
    print("KERNEL_OK")
</pallas_src>

<mosaic_0001>
module attributes {stable_mosaic.version = 11 : i64} {
  func.func @_conv_relu_pool_kernel(%arg0: i32, %arg1: i32, %arg2: memref<1x64x32x27xbf16, #tpu.memory_space<vmem>>, %arg3: memref<1x64x32x27xbf16, #tpu.memory_space<vmem>>, %arg4: memref<27x16xbf16, #tpu.memory_space<vmem>>, %arg5: memref<1x16xf32, #tpu.memory_space<vmem>>, %arg6: memref<1x32x32x16xbf16, #tpu.memory_space<vmem>>) attributes {dimension_semantics = [#tpu.dimension_semantics<parallel>, #tpu.dimension_semantics<parallel>], iteration_bounds = array<i64: 2, 1>, scalar_prefetch = 0 : i64, scratch_operands = 0 : i64, tpu.core_type = #tpu.core_type<tc>, window_params = [{transform_indices = @transform_0, window_bounds = array<i64: 1, 64, 32, 27>}, {transform_indices = @transform_1, window_bounds = array<i64: 1, 64, 32, 27>}, {pipeline_mode = #tpu.pipeline_mode<synchronous>, transform_indices = @transform_2, window_bounds = array<i64: 27, 16>}, {pipeline_mode = #tpu.pipeline_mode<synchronous>, transform_indices = @transform_3, window_bounds = array<i64: 1, 16>}, {transform_indices = @transform_4, window_bounds = array<i64: 1, 32, 32, 16>}]} {
    %c0 = arith.constant 0 : index
    %c0_0 = arith.constant 0 : index
    %0 = vector.load %arg4[%c0, %c0_0] : memref<27x16xbf16, #tpu.memory_space<vmem>>, vector<27x16xbf16>
    %c0_1 = arith.constant 0 : index
    %c0_2 = arith.constant 0 : index
    %c0_3 = arith.constant 0 : index
    %c0_4 = arith.constant 0 : index
    %1 = vector.load %arg2[%c0_1, %c0_2, %c0_3, %c0_4] : memref<1x64x32x27xbf16, #tpu.memory_space<vmem>>, vector<1x64x32x27xbf16>
    %2 = vector.shape_cast %1 : vector<1x64x32x27xbf16> to vector<64x32x27xbf16>
    %3 = vector.shape_cast %2 : vector<64x32x27xbf16> to vector<2048x27xbf16>
    %cst = arith.constant dense<0.000000e+00> : vector<2048x16xf32>
    %4 = tpu.matmul %3, %0, %cst {dimension_numbers = #tpu.dot_dimension_numbers<[1], [0], [0], [1], [0, 0, 1, 1], [], []>} : vector<2048x27xbf16>, vector<27x16xbf16>, vector<2048x16xf32> -> vector<2048x16xf32>
    %c0_5 = arith.constant 0 : index
    %c0_6 = arith.constant 0 : index
    %c0_7 = arith.constant 0 : index
    %c0_8 = arith.constant 0 : index
    %5 = vector.load %arg3[%c0_5, %c0_6, %c0_7, %c0_8] : memref<1x64x32x27xbf16, #tpu.memory_space<vmem>>, vector<1x64x32x27xbf16>
    %6 = vector.shape_cast %5 : vector<1x64x32x27xbf16> to vector<64x32x27xbf16>
    %7 = vector.shape_cast %6 : vector<64x32x27xbf16> to vector<2048x27xbf16>
    %cst_9 = arith.constant dense<0.000000e+00> : vector<2048x16xf32>
    %8 = tpu.matmul %7, %0, %cst_9 {dimension_numbers = #tpu.dot_dimension_numbers<[1], [0], [0], [1], [0, 0, 1, 1], [], []>} : vector<2048x27xbf16>, vector<27x16xbf16>, vector<2048x16xf32> -> vector<2048x16xf32>
    %9 = arith.maximumf %4, %8 : vector<2048x16xf32>
    %c0_10 = arith.constant 0 : index
    %c0_11 = arith.constant 0 : index
    %10 = vector.load %arg5[%c0_10, %c0_11] : memref<1x16xf32, #tpu.memory_space<vmem>>, vector<1x16xf32>
    %11 = vector.broadcast %10 : vector<1x16xf32> to vector<2048x16xf32>
    %12 = arith.addf %9, %11 : vector<2048x16xf32>
    %cst_12 = arith.constant 0.000000e+00 : f32
    %13 = vector.broadcast %cst_12 : f32 to vector<2048x16xf32>
    %14 = arith.maximumf %12, %13 : vector<2048x16xf32>
    %15 = vector.shape_cast %14 : vector<2048x16xf32> to vector<32x2x32x16xf32>
    %16 = vector.extract_strided_slice %15 {offsets = [0, 0, 0, 0], sizes = [32, 1, 32, 16], strides = [1, 1, 1, 1]} : vector<32x2x32x16xf32> to vector<32x1x32x16xf32>
    %17 = vector.shape_cast %16 : vector<32x1x32x16xf32> to vector<32x32x16xf32>
    %18 = vector.extract_strided_slice %15 {offsets = [0, 1, 0, 0], sizes = [32, 1, 32, 16], strides = [1, 1, 1, 1]} : vector<32x2x32x16xf32> to vector<32x1x32x16xf32>
    %19 = vector.shape_cast %18 : vector<32x1x32x16xf32> to vector<32x32x16xf32>
    %20 = arith.maximumf %17, %19 : vector<32x32x16xf32>
    %21 = arith.truncf %20 : vector<32x32x16xf32> to vector<32x32x16xbf16>
    %c0_13 = arith.constant 0 : index
    %c0_14 = arith.constant 0 : index
    %c0_15 = arith.constant 0 : index
    %c0_16 = arith.constant 0 : index
    %22 = vector.load %arg6[%c0_13, %c0_14, %c0_15, %c0_16] : memref<1x32x32x16xbf16, #tpu.memory_space<vmem>>, vector<1x32x32x16xbf16>
    %23 = vector.shape_cast %22 : vector<1x32x32x16xbf16> to vector<32x32x16xbf16>
    %24 = vector.shape_cast %21 : vector<32x32x16xbf16> to vector<1x32x32x16xbf16>
    tpu.vector_store %arg6[%c0_13, %c0_14, %c0_15, %c0_16], %24 {strides = array<i32>} : memref<1x32x32x16xbf16, #tpu.memory_space<vmem>>, vector<1x32x32x16xbf16>,
    return
  }
  func.func @transform_0(%arg0: i32, %arg1: i32) -> (i32, i32, i32, i32) {
    %c0_i32 = arith.constant 0 : i32
    %c0_i32_0 = arith.constant 0 : i32
    %c0_i32_1 = arith.constant 0 : i32
    return %arg0, %arg1, %c0_i32, %c0_i32_0 : i32, i32, i32, i32
  }
  func.func @transform_1(%arg0: i32, %arg1: i32) -> (i32, i32, i32, i32) {
    %c0_i32 = arith.constant 0 : i32
    %c0_i32_0 = arith.constant 0 : i32
    %c0_i32_1 = arith.constant 0 : i32
    return %arg0, %arg1, %c0_i32, %c0_i32_0 : i32, i32, i32, i32
  }
  func.func @transform_2(%arg0: i32, %arg1: i32) -> (i32, i32) {
    %c0_i32 = arith.constant 0 : i32
    %c0_i32_0 = arith.constant 0 : i32
    %c0_i32_1 = arith.constant 0 : i32
    return %c0_i32, %c0_i32_0 : i32, i32
  }
  func.func @transform_3(%arg0: i32, %arg1: i32) -> (i32, i32) {
    %c0_i32 = arith.constant 0 : i32
    %c0_i32_0 = arith.constant 0 : i32
    %c0_i32_1 = arith.constant 0 : i32
    return %c0_i32, %c0_i32_0 : i32, i32
  }
  func.func @transform_4(%arg0: i32, %arg1: i32) -> (i32, i32, i32, i32) {
    %c0_i32 = arith.constant 0 : i32
    %c0_i32_0 = arith.constant 0 : i32
    %c0_i32_1 = arith.constant 0 : i32
    return %arg0, %arg1, %c0_i32, %c0_i32_0 : i32, i32, i32, i32
  }
}

module attributes {stable_mosaic.version = 11 : i64} {
  func.func @_conv_relu_pool_kernel(%arg0: i32, %arg1: i32, %arg2: memref<1x32x16x144xbf16, #tpu.memory_space<vmem>>, %arg3: memref<1x32x16x144xbf16, #tpu.memory_space<vmem>>, %arg4: memref<144x32xbf16, #tpu.memory_space<vmem>>, %arg5: memref<1x32xf32, #tpu.memory_space<vmem>>, %arg6: memref<1x16x16x32xbf16, #tpu.memory_space<vmem>>) attributes {dimension_semantics = [#tpu.dimension_semantics<parallel>, #tpu.dimension_semantics<parallel>], iteration_bounds = array<i64: 2, 1>, scalar_prefetch = 0 : i64, scratch_operands = 0 : i64, tpu.core_type = #tpu.core_type<tc>, window_params = [{transform_indices = @transform_0, window_bounds = array<i64: 1, 32, 16, 144>}, {transform_indices = @transform_1, window_bounds = array<i64: 1, 32, 16, 144>}, {pipeline_mode = #tpu.pipeline_mode<synchronous>, transform_indices = @transform_2, window_bounds = array<i64: 144, 32>}, {pipeline_mode = #tpu.pipeline_mode<synchronous>, transform_indices = @transform_3, window_bounds = array<i64: 1, 32>}, {transform_indices = @transform_4, window_bounds = array<i64: 1, 16, 16, 32>}]} {
    %c0 = arith.constant 0 : index
    %c0_0 = arith.constant 0 : index
    %0 = vector.load %arg4[%c0, %c0_0] : memref<144x32xbf16, #tpu.memory_space<vmem>>, vector<144x32xbf16>
    %c0_1 = arith.constant 0 : index
    %c0_2 = arith.constant 0 : index
    %c0_3 = arith.constant 0 : index
    %c0_4 = arith.constant 0 : index
    %1 = vector.load %arg2[%c0_1, %c0_2, %c0_3, %c0_4] : memref<1x32x16x144xbf16, #tpu.memory_space<vmem>>, vector<1x32x16x144xbf16>
    %2 = vector.shape_cast %1 : vector<1x32x16x144xbf16> to vector<32x16x144xbf16>
    %3 = vector.shape_cast %2 : vector<32x16x144xbf16> to vector<512x144xbf16>
    %cst = arith.constant dense<0.000000e+00> : vector<512x32xf32>
    %4 = tpu.matmul %3, %0, %cst {dimension_numbers = #tpu.dot_dimension_numbers<[1], [0], [0], [1], [0, 0, 1, 1], [], []>} : vector<512x144xbf16>, vector<144x32xbf16>, vector<512x32xf32> -> vector<512x32xf32>
    %c0_5 = arith.constant 0 : index
    %c0_6 = arith.constant 0 : index
    %c0_7 = arith.constant 0 : index
    %c0_8 = arith.constant 0 : index
    %5 = vector.load %arg3[%c0_5, %c0_6, %c0_7, %c0_8] : memref<1x32x16x144xbf16, #tpu.memory_space<vmem>>, vector<1x32x16x144xbf16>
    %6 = vector.shape_cast %5 : vector<1x32x16x144xbf16> to vector<32x16x144xbf16>
    %7 = vector.shape_cast %6 : vector<32x16x144xbf16> to vector<512x144xbf16>
    %cst_9 = arith.constant dense<0.000000e+00> : vector<512x32xf32>
    %8 = tpu.matmul %7, %0, %cst_9 {dimension_numbers = #tpu.dot_dimension_numbers<[1], [0], [0], [1], [0, 0, 1, 1], [], []>} : vector<512x144xbf16>, vector<144x32xbf16>, vector<512x32xf32> -> vector<512x32xf32>
    %9 = arith.maximumf %4, %8 : vector<512x32xf32>
    %c0_10 = arith.constant 0 : index
    %c0_11 = arith.constant 0 : index
    %10 = vector.load %arg5[%c0_10, %c0_11] : memref<1x32xf32, #tpu.memory_space<vmem>>, vector<1x32xf32>
    %11 = vector.broadcast %10 : vector<1x32xf32> to vector<512x32xf32>
    %12 = arith.addf %9, %11 : vector<512x32xf32>
    %cst_12 = arith.constant 0.000000e+00 : f32
    %13 = vector.broadcast %cst_12 : f32 to vector<512x32xf32>
    %14 = arith.maximumf %12, %13 : vector<512x32xf32>
    %15 = vector.shape_cast %14 : vector<512x32xf32> to vector<16x2x16x32xf32>
    %16 = vector.extract_strided_slice %15 {offsets = [0, 0, 0, 0], sizes = [16, 1, 16, 32], strides = [1, 1, 1, 1]} : vector<16x2x16x32xf32> to vector<16x1x16x32xf32>
    %17 = vector.shape_cast %16 : vector<16x1x16x32xf32> to vector<16x16x32xf32>
    %18 = vector.extract_strided_slice %15 {offsets = [0, 1, 0, 0], sizes = [16, 1, 16, 32], strides = [1, 1, 1, 1]} : vector<16x2x16x32xf32> to vector<16x1x16x32xf32>
    %19 = vector.shape_cast %18 : vector<16x1x16x32xf32> to vector<16x16x32xf32>
    %20 = arith.maximumf %17, %19 : vector<16x16x32xf32>
    %21 = arith.truncf %20 : vector<16x16x32xf32> to vector<16x16x32xbf16>
    %c0_13 = arith.constant 0 : index
    %c0_14 = arith.constant 0 : index
    %c0_15 = arith.constant 0 : index
    %c0_16 = arith.constant 0 : index
    %22 = vector.load %arg6[%c0_13, %c0_14, %c0_15, %c0_16] : memref<1x16x16x32xbf16, #tpu.memory_space<vmem>>, vector<1x16x16x32xbf16>
    %23 = vector.shape_cast %22 : vector<1x16x16x32xbf16> to vector<16x16x32xbf16>
    %24 = vector.shape_cast %21 : vector<16x16x32xbf16> to vector<1x16x16x32xbf16>
    tpu.vector_store %arg6[%c0_13, %c0_14, %c0_15, %c0_16], %24 {strides = array<i32>} : memref<1x16x16x32xbf16, #tpu.memory_space<vmem>>, vector<1x16x16x32xbf16>,
    return
  }
  func.func @transform_0(%arg0: i32, %arg1: i32) -> (i32, i32, i32, i32) {
    %c0_i32 = arith.constant 0 : i32
    %c0_i32_0 = arith.constant 0 : i32
    %c0_i32_1 = arith.constant 0 : i32
    return %arg0, %arg1, %c0_i32, %c0_i32_0 : i32, i32, i32, i32
  }
  func.func @transform_1(%arg0: i32, %arg1: i32) -> (i32, i32, i32, i32) {
    %c0_i32 = arith.constant 0 : i32
    %c0_i32_0 = arith.constant 0 : i32
    %c0_i32_1 = arith.constant 0 : i32
    return %arg0, %arg1, %c0_i32, %c0_i32_0 : i32, i32, i32, i32
  }
  func.func @transform_2(%arg0: i32, %arg1: i32) -> (i32, i32) {
    %c0_i32 = arith.constant 0 : i32
    %c0_i32_0 = arith.constant 0 : i32
    %c0_i32_1 = arith.constant 0 : i32
    return %c0_i32, %c0_i32_0 : i32, i32
  }
  func.func @transform_3(%arg0: i32, %arg1: i32) -> (i32, i32) {
    %c0_i32 = arith.constant 0 : i32
    %c0_i32_0 = arith.constant 0 : i32
    %c0_i32_1 = arith.constant 0 : i32
    return %c0_i32, %c0_i32_0 : i32, i32
  }
  func.func @transform_4(%arg0: i32, %arg1: i32) -> (i32, i32, i32, i32) {
    %c0_i32 = arith.constant 0 : i32
    %c0_i32_0 = arith.constant 0 : i32
    %c0_i32_1 = arith.constant 0 : i32
    return %arg0, %arg1, %c0_i32, %c0_i32_0 : i32, i32, i32, i32
  }
}

module attributes {stable_mosaic.version = 11 : i64} {
  func.func @_mlp_kernel(%arg0: i32, %arg1: memref<2x8192xbf16, #tpu.memory_space<vmem>>, %arg2: memref<8192x128xbf16, #tpu.memory_space<vmem>>, %arg3: memref<1x128xf32, #tpu.memory_space<vmem>>, %arg4: memref<128x10xbf16, #tpu.memory_space<vmem>>, %arg5: memref<1x10xf32, #tpu.memory_space<vmem>>, %arg6: memref<2x10xf32, #tpu.memory_space<vmem>>, %arg7: memref<2x128xf32, #tpu.memory_space<vmem>>) attributes {dimension_semantics = [#tpu.dimension_semantics<arbitrary>], iteration_bounds = array<i64: 1>, scalar_prefetch = 0 : i64, scratch_operands = 1 : i64, tpu.core_type = #tpu.core_type<tc>, window_params = [{transform_indices = @transform_0, window_bounds = array<i64: 2, 8192>}, {transform_indices = @transform_1, window_bounds = array<i64: 8192, 128>}, {pipeline_mode = #tpu.pipeline_mode<synchronous>, transform_indices = @transform_2, window_bounds = array<i64: 1, 128>}, {pipeline_mode = #tpu.pipeline_mode<synchronous>, transform_indices = @transform_3, window_bounds = array<i64: 128, 10>}, {pipeline_mode = #tpu.pipeline_mode<synchronous>, transform_indices = @transform_4, window_bounds = array<i64: 1, 10>}, {pipeline_mode = #tpu.pipeline_mode<synchronous>, transform_indices = @transform_5, window_bounds = array<i64: 2, 10>}]} {
    %c0_i32 = arith.constant 0 : i32
    %0 = arith.cmpi eq, %arg0, %c0_i32 : i32
    %1 = arith.extui %0 : i1 to i32
    %c0_i32_0 = arith.constant 0 : i32
    %2 = arith.cmpi ne, %1, %c0_i32_0 : i32
    scf.if %2 {
      %cst_10 = arith.constant 0.000000e+00 : f32
      %12 = vector.broadcast %cst_10 : f32 to vector<2x128xf32>
      %c0_11 = arith.constant 0 : index
      %c0_12 = arith.constant 0 : index
      %13 = vector.load %arg7[%c0_11, %c0_12] : memref<2x128xf32, #tpu.memory_space<vmem>>, vector<2x128xf32>
      tpu.vector_store %arg7[%c0_11, %c0_12], %12 {strides = array<i32>} : memref<2x128xf32, #tpu.memory_space<vmem>>, vector<2x128xf32>,
    } else {
    }
    %c0 = arith.constant 0 : index
    %c0_1 = arith.constant 0 : index
    %3 = vector.load %arg7[%c0, %c0_1] : memref<2x128xf32, #tpu.memory_space<vmem>>, vector<2x128xf32>
    %c0_2 = arith.constant 0 : index
    %c0_3 = arith.constant 0 : index
    %4 = vector.load %arg1[%c0_2, %c0_3] : memref<2x8192xbf16, #tpu.memory_space<vmem>>, vector<2x8192xbf16>
    %c0_4 = arith.constant 0 : index
    %c0_5 = arith.constant 0 : index
    %5 = vector.load %arg2[%c0_4, %c0_5] : memref<8192x128xbf16, #tpu.memory_space<vmem>>, vector<8192x128xbf16>
    %cst = arith.constant dense<0.000000e+00> : vector<2x128xf32>
    %6 = tpu.matmul %4, %5, %cst {dimension_numbers = #tpu.dot_dimension_numbers<[1], [0], [0], [1], [0, 0, 1, 1], [], []>} : vector<2x8192xbf16>, vector<8192x128xbf16>, vector<2x128xf32> -> vector<2x128xf32>
    %7 = arith.addf %3, %6 : vector<2x128xf32>
    %c0_6 = arith.constant 0 : index
    %c0_7 = arith.constant 0 : index
    %8 = vector.load %arg7[%c0_6, %c0_7] : memref<2x128xf32, #tpu.memory_space<vmem>>, vector<2x128xf32>
    tpu.vector_store %arg7[%c0_6, %c0_7], %7 {strides = array<i32>} : memref<2x128xf32, #tpu.memory_space<vmem>>, vector<2x128xf32>,
    %c0_i32_8 = arith.constant 0 : i32
    %9 = arith.cmpi eq, %arg0, %c0_i32_8 : i32
    %10 = arith.extui %9 : i1 to i32
    %c0_i32_9 = arith.constant 0 : i32
    %11 = arith.cmpi ne, %10, %c0_i32_9 : i32
    scf.if %11 {
      %c0_10 = arith.constant 0 : index
      %c0_11 = arith.constant 0 : index
      %12 = vector.load %arg7[%c0_10, %c0_11] : memref<2x128xf32, #tpu.memory_space<vmem>>, vector<2x128xf32>
      %c0_12 = arith.constant 0 : index
      %c0_13 = arith.constant 0 : index
      %13 = vector.load %arg3[%c0_12, %c0_13] : memref<1x128xf32, #tpu.memory_space<vmem>>, vector<1x128xf32>
      %14 = vector.broadcast %13 : vector<1x128xf32> to vector<2x128xf32>
      %15 = arith.addf %12, %14 : vector<2x128xf32>
      %cst_14 = arith.constant 0.000000e+00 : f32
      %16 = vector.broadcast %cst_14 : f32 to vector<2x128xf32>
      %17 = arith.maximumf %15, %16 : vector<2x128xf32>
      %18 = arith.truncf %17 : vector<2x128xf32> to vector<2x128xbf16>
      %c0_15 = arith.constant 0 : index
      %c0_16 = arith.constant 0 : index
      %19 = vector.load %arg4[%c0_15, %c0_16] : memref<128x10xbf16, #tpu.memory_space<vmem>>, vector<128x10xbf16>
      %cst_17 = arith.constant dense<0.000000e+00> : vector<2x10xf32>
      %20 = tpu.matmul %18, %19, %cst_17 {dimension_numbers = #tpu.dot_dimension_numbers<[1], [0], [0], [1], [0, 0, 1, 1], [], []>} : vector<2x128xbf16>, vector<128x10xbf16>, vector<2x10xf32> -> vector<2x10xf32>
      %c0_18 = arith.constant 0 : index
      %c0_19 = arith.constant 0 : index
      %21 = vector.load %arg5[%c0_18, %c0_19] : memref<1x10xf32, #tpu.memory_space<vmem>>, vector<1x10xf32>
      %22 = vector.broadcast %21 : vector<1x10xf32> to vector<2x10xf32>
      %23 = arith.addf %20, %22 : vector<2x10xf32>
      %c0_20 = arith.constant 0 : index
      %c0_21 = arith.constant 0 : index
      %24 = vector.load %arg6[%c0_20, %c0_21] : memref<2x10xf32, #tpu.memory_space<vmem>>, vector<2x10xf32>
      tpu.vector_store %arg6[%c0_20, %c0_21], %23 {strides = array<i32>} : memref<2x10xf32, #tpu.memory_space<vmem>>, vector<2x10xf32>,
    } else {
    }
    return
  }
  func.func @transform_0(%arg0: i32) -> (i32, i32) {
    %c0_i32 = arith.constant 0 : i32
    %c0_i32_0 = arith.constant 0 : i32
    return %c0_i32, %arg0 : i32, i32
  }
  func.func @transform_1(%arg0: i32) -> (i32, i32) {
    %c0_i32 = arith.constant 0 : i32
    %c0_i32_0 = arith.constant 0 : i32
    return %arg0, %c0_i32 : i32, i32
  }
  func.func @transform_2(%arg0: i32) -> (i32, i32) {
    %c0_i32 = arith.constant 0 : i32
    %c0_i32_0 = arith.constant 0 : i32
    %c0_i32_1 = arith.constant 0 : i32
    return %c0_i32, %c0_i32_0 : i32, i32
  }
  func.func @transform_3(%arg0: i32) -> (i32, i32) {
    %c0_i32 = arith.constant 0 : i32
    %c0_i32_0 = arith.constant 0 : i32
    %c0_i32_1 = arith.constant 0 : i32
    return %c0_i32, %c0_i32_0 : i32, i32
  }
  func.func @transform_4(%arg0: i32) -> (i32, i32) {
    %c0_i32 = arith.constant 0 : i32
    %c0_i32_0 = arith.constant 0 : i32
    %c0_i32_1 = arith.constant 0 : i32
    return %c0_i32, %c0_i32_0 : i32, i32
  }
  func.func @transform_5(%arg0: i32) -> (i32, i32) {
    %c0_i32 = arith.constant 0 : i32
    %c0_i32_0 = arith.constant 0 : i32
    %c0_i32_1 = arith.constant 0 : i32
    return %c0_i32, %c0_i32_0 : i32, i32
  }
}

</mosaic_0001>

<bundles_post_ra>
// kernel: asl_classifier_forward.3
= control target key start
LH: loop header
LB: loop body
LE: loop exit
PB: predicated region body
PF: predicated region fallthrough
CT: control target
= control target key end

     0   :  { %s8543_s15 = smov 0   ;;  %s8545_s16 = smov 0   ;;  %s9639_s0 = inlined_call_operand.vmem [shape: bf16[2,64,32,27], index: 0, kind: input, shape index: {}]   ;;  %s9640_s1 = inlined_call_operand.vmem [shape: bf16[2,64,32,27], index: 1, kind: input, shape index: {}]   ;;  %s9641_s2 = inlined_call_operand.vmem [shape: bf16[27,16], index: 2, kind: input, shape index: {}]   ;;  %s9642_s3 = inlined_call_operand.vmem [shape: f32[1,16], index: 3, kind: input, shape index: {}]   ;;  %s9643_s4 = inlined_call_operand.vmem [shape: bf16[2,32,32,16], index: 4, kind: output, shape index: {}]  }
   0x1   :  { %s8547_s17 = smov 0  }
   0x2 LB: > { %s26_s18 = sadd.s32 1, %s8511_s16  ;;  %p6644_p0 = scmp.ge.s32.totalorder %s8515_s17, 1  ;;  %s8515_s17 = sphi %s8547_s17, %s14_s17   ;;  %s8511_s16 = sphi %s8545_s16, %s9645_s16   ;;  %s8507_s15 = sphi %s8543_s15, %s9644_s15  }
   0x3   : > { %p28_p1 = scmp.ge.s32.totalorder %s26_s18, 2  ;;  %p202_p2 = scmp.lt.s32.totalorder %s8515_s17, 3 }
   0x5   : > { %s9647_s18 = smov (%p28_p1, %s26_s18), 0  ;;  %p203_p3 = pnand %p6644_p0, %p202_p2 }
   0x6   : > { %v8232_v0 = vld [vmem:[%s9641_s2] sm:$0xff] (!%p203_p3)   ;;  %vm1578_vm0 = vcmask (!%p203_p3), 1044480   ;;  %v8233_v1 = vld [vmem:[%s9641_s2 + $0x8] sm:$0x3f] (!%p203_p3)   ;;  %vm1579_vm1 = vcmask (!%p203_p3), 1045504   ;;  %p249_p4 = scmp.lt.s32.totalorder (!%p203_p3), %s8507_s15, 1 }
   0x7   : > { %206 = sbr.rel (%p203_p3) target bundleno = 750 (0x2ee), region = 36  ;;  %7687 = vmatprep.subr.bf16.mxu0 (!%p203_p3), %v8232_v0  ;;  %7947 = vmatprep.subr.bf16.mxu1 (!%p203_p3), %v8232_v0  ;;  %v8517_v2 = vmov (!%p203_p3), 65535   ;;  %vm1193_vm2 = vcmask (!%p203_p3), 220160   ;;  %vm6394_vm3 = vcmask (!%p203_p3), 125952  }
   0x8   : > { %7688 = vmatpush3.bf16.msra.mxu0 (!%p203_p3), %v8232_v0  ;;  %7948 = vmatpush3.bf16.msra.mxu1 (!%p203_p3), %v8232_v0  ;;  %v1580_v3 = vsel (!%p203_p3), %vm1578_vm0, 4294967295, %v8517_v2 }
   0x9   : > { %v1581_v4 = vsel (!%p203_p3), %vm1579_vm1, %v1580_v3, 0 }
   0xa   : > { %v1583_v5 = vand.u32 (!%p203_p3), %v8233_v1, %v1581_v4 }
   0xc   : > { %7689 = vmatprep.subr.bf16.mxu0 (!%p203_p3), %v1583_v5  ;;  %7949 = vmatprep.subr.bf16.mxu1 (!%p203_p3), %v1583_v5 }
   0xd   : > { %7690 = vmatpush3.bf16.msra.mxu0 (!%p203_p3), %v1583_v5  ;;  %7950 = vmatpush3.bf16.msra.mxu1 (!%p203_p3), %v1583_v5 }
   0xe   : > { %s9649_s15 = smov (!%p249_p4, %s8507_s15), 1 }
   0xf   : > { %s7296_s23 = sshll.u32 %s9649_s15, 10  ;;  %s7298_s6 = sshll.u32 %s9649_s15, 9 }
  0x10   : > { %s8573_s26 = scalar_lea.vmem %s9639_s0, %s7296_s23  ;;  %s8578_s29 = scalar_lea.vmem %s9640_s1, %s7296_s23 }
  0x11   : > { %v8234_v6 = vld [vmem:[%s8573_s26] sm:$0xff]   ;;  %v8236_v8 = vld [vmem:[%s8573_s26 + $0x8] sm:$0xff]   ;;  %v8238_v10 = vld [vmem:[%s8573_s26 + $0x10] sm:$0xff]   ;;  %s8836_s9 = scalar_lea.vmem %s9643_s4, %s7298_s6 }
  0x12   : > { %v8235_v7 = vld [vmem:[%s8578_s29] sm:$0xff]   ;;  %7691 = vmatprep.mubr.msk.bf16.mxu0 %vm1193_vm2, %v8234_v6  ;;  %v8237_v9 = vld [vmem:[%s8578_s29 + $0x8] sm:$0xff]   ;;  %v8239_v11 = vld [vmem:[%s8578_s29 + $0x10] sm:$0xff]  }
  0x13   : > { %7951 = vmatprep.mubr.msk.bf16.mxu1 %vm1193_vm2, %v8235_v7  ;;  %7692 = vmatmul.mubr.msk.bf16.vlgmr.msra.gmra.mrb[0].mxu0 %vm1193_vm2, %v8236_v8  ;;  %v8240_v12 = vld [vmem:[%s8573_s26 + $0x18] sm:$0xff]   ;;  %v8242_v14 = vld [vmem:[%s8573_s26 + $0x20] sm:$0xff]   ;;  %v8244_v16 = vld [vmem:[%s8573_s26 + $0x28] sm:$0xff]  }
  0x14   : > { %7952 = vmatmul.mubr.msk.bf16.vlgmr.msra.gmra.mrb[0].mxu1 %vm1193_vm2, %v8237_v9  ;;  %7695 = vmatprep.mubr.msk.bf16.mxu0 %vm1193_vm2, %v8238_v10  ;;  %v8241_v13 = vld [vmem:[%s8578_s29 + $0x18] sm:$0xff]   ;;  %v8243_v15 = vld [vmem:[%s8578_s29 + $0x20] sm:$0xff]   ;;  %v8245_v17 = vld [vmem:[%s8578_s29 + $0x28] sm:$0xff]  }
  0x15   : > { %7955 = vmatprep.mubr.msk.bf16.mxu1 %vm1193_vm2, %v8239_v11  ;;  %v8246_v18 = vld [vmem:[%s8573_s26 + $0x30] sm:$0xff]   ;;  %v8248_v20 = vld [vmem:[%s8573_s26 + $0x38] sm:$0xff]   ;;  %v8250_v22 = vld [vmem:[%s8573_s26 + $0x40] sm:$0xff]  }
  0x16   : > { %v8247_v19 = vld [vmem:[%s8578_s29 + $0x30] sm:$0xff]   ;;  %v8249_v21 = vld [vmem:[%s8578_s29 + $0x38] sm:$0xff]   ;;  %v8251_v23 = vld [vmem:[%s8578_s29 + $0x40] sm:$0xff]  }
  0x17   : > { %v8252_v24 = vld [vmem:[%s8573_s26 + $0x48] sm:$0xff]   ;;  %v8254_v26 = vld [vmem:[%s8573_s26 + $0x50] sm:$0xff]   ;;  %v8256_v28 = vld [vmem:[%s8573_s26 + $0x58] sm:$0xff]  }
  0x18   : > { %v8253_v25 = vld [vmem:[%s8578_s29 + $0x48] sm:$0xff]   ;;  %v8255_v27 = vld [vmem:[%s8578_s29 + $0x50] sm:$0xff]   ;;  %v8257_v29 = vld [vmem:[%s8578_s29 + $0x58] sm:$0xff]  }
  0x19   : > { %v8258_v30 = vld [vmem:[%s8573_s26 + $0x60] sm:$0xff]   ;;  %v8260_v32 = vld [vmem:[%s8573_s26 + $0x68] sm:$0xff]   ;;  %v8262_v34 = vld [vmem:[%s8573_s26 + $0x70] sm:$0xff]  }
  0x1a   : > { %v8259_v31 = vld [vmem:[%s8578_s29 + $0x60] sm:$0xff]   ;;  %v8261_v33 = vld [vmem:[%s8578_s29 + $0x68] sm:$0xff]   ;;  %v8263_v35 = vld [vmem:[%s8578_s29 + $0x70] sm:$0xff]  }
  0x1b   : > { %7696 = vmatmul.mubr.msk.bf16.gmra.mrb[4].mxu0 %vm1193_vm2, %v8240_v12  ;;  %v8264_v36 = vld [vmem:[%s8573_s26 + $0x78] sm:$0xff]   ;;  %v8266_v38 = vld [vmem:[%s8573_s26 + $0x80] sm:$0xff]   ;;  %v8268_v40 = vld [vmem:[%s8573_s26 + $0x88] sm:$0xff]  }
  0x1c   : > { %7956 = vmatmul.mubr.msk.bf16.gmra.mrb[4].mxu1 %vm1193_vm2, %v8241_v13  ;;  %7699 = vmatprep.mubr.msk.bf16.mxu0 %vm1193_vm2, %v8242_v14  ;;  %v8265_v37 = vld [vmem:[%s8578_s29 + $0x78] sm:$0xff]   ;;  %v8267_v39 = vld [vmem:[%s8578_s29 + $0x80] sm:$0xff]   ;;  %v8269_v41 = vld [vmem:[%s8578_s29 + $0x88] sm:$0xff]  }
  0x1d   : > { %7959 = vmatprep.mubr.msk.bf16.mxu1 %vm1193_vm2, %v8243_v15  ;;  %v8270_v42 = vld [vmem:[%s8573_s26 + $0x90] sm:$0xff]   ;;  %v8272_v44 = vld [vmem:[%s8573_s26 + $0x98] sm:$0xff]   ;;  %v8274_v46 = vld [vmem:[%s8573_s26 + $0xa0] sm:$0xff]  }
  0x1e   : > { %v8271_v43 = vld [vmem:[%s8578_s29 + $0x90] sm:$0xff]   ;;  %v8273_v45 = vld [vmem:[%s8578_s29 + $0x98] sm:$0xff]   ;;  %v8275_v47 = vld [vmem:[%s8578_s29 + $0xa0] sm:$0xff]  }
  0x1f   : > { %v8276_v48 = vld [vmem:[%s8573_s26 + $0xa8] sm:$0xff]   ;;  %v8278_v50 = vld [vmem:[%s8573_s26 + $0xb0] sm:$0xff]   ;;  %v8280_v52 = vld [vmem:[%s8573_s26 + $0xb8] sm:$0xff]  }
  0x20   : > { %v8277_v49 = vld [vmem:[%s8578_s29 + $0xa8] sm:$0xff]   ;;  %v8279_v51 = vld [vmem:[%s8578_s29 + $0xb0] sm:$0xff]   ;;  %v8281_v53 = vld [vmem:[%s8578_s29 + $0xb8] sm:$0xff]  }
  0x21   : > { %v8282_v54 = vld [vmem:[%s8573_s26 + $0xc0] sm:$0xff]   ;;  %v8284_v56 = vld [vmem:[%s8573_s26 + $0xc8] sm:$0xff]   ;;  %v8286_v58 = vld [vmem:[%s8573_s26 + $0xd0] sm:$0xff]  }
  0x22   : > { %v8283_v55 = vld [vmem:[%s8578_s29 + $0xc0] sm:$0xff]   ;;  %v8285_v57 = vld [vmem:[%s8578_s29 + $0xc8] sm:$0xff]   ;;  %v8287_v59 = vld [vmem:[%s8578_s29 + $0xd0] sm:$0xff]  }
  0x23   : > { %7700 = vmatmul.mubr.msk.bf16.gmra.mrb[8].mxu0 %vm1193_vm2, %v8244_v16  ;;  %v8288_v60 = vld [vmem:[%s8573_s26 + $0xd8] sm:$0xff]   ;;  %v8290_v62 = vld [vmem:[%s8573_s26 + $0xe0] sm:$0xff]   ;;  %v8292_v0 = vld [vmem:[%s8573_s26 + $0xe8] sm:$0xff]  }
  0x24   : > { %7960 = vmatmul.mubr.msk.bf16.gmra.mrb[8].mxu1 %vm1193_vm2, %v8245_v17  ;;  %7703 = vmatprep.mubr.msk.bf16.mxu0 %vm1193_vm2, %v8246_v18  ;;  %v8289_v61 = vld [vmem:[%s8578_s29 + $0xd8] sm:$0xff]   ;;  %v8291_v63 = vld [vmem:[%s8578_s29 + $0xe0] sm:$0xff]   ;;  %v8293_v1 = vld [vmem:[%s8578_s29 + $0xe8] sm:$0xff]  }
  0x25   : > { %7963 = vmatprep.mubr.msk.bf16.mxu1 %vm1193_vm2, %v8247_v19  ;;  %v8294_v2 = vld [vmem:[%s8573_s26 + $0xf0] sm:$0xff]   ;;  %v8296_v4 = vld [vmem:[%s8573_s26 + $0xf8] sm:$0xff]   ;;  %v8298_v6 = vld [vmem:[%s8573_s26 + $0x100] sm:$0xff]  }
  0x26   : > { %v8295_v3 = vld [vmem:[%s8578_s29 + $0xf0] sm:$0xff]   ;;  %v8297_v5 = vld [vmem:[%s8578_s29 + $0xf8] sm:$0xff]   ;;  %v8299_v7 = vld [vmem:[%s8578_s29 + $0x100] sm:$0xff]  }
  0x27   : > { %v8300_v8 = vld [vmem:[%s8573_s26 + $0x108] sm:$0xff]   ;;  %v8302_v10 = vld [vmem:[%s8573_s26 + $0x110] sm:$0xff]   ;;  %v8304_v12 = vld [vmem:[%s8573_s26 + $0x118] sm:$0xff]  }
  0x28   : > { %v8301_v9 = vld [vmem:[%s8578_s29 + $0x108] sm:$0xff]   ;;  %v8303_v11 = vld [vmem:[%s8578_s29 + $0x110] sm:$0xff]   ;;  %v8305_v13 = vld [vmem:[%s8578_s29 + $0x118] sm:$0xff]  }
  0x29   : > { %v8306_v14 = vld [vmem:[%s8573_s26 + $0x120] sm:$0xff]   ;;  %v8308_v16 = vld [vmem:[%s8573_s26 + $0x128] sm:$0xff]   ;;  %v8310_v18 = vld [vmem:[%s8573_s26 + $0x130] sm:$0xff]  }
  0x2a   : > { %v8307_v15 = vld [vmem:[%s8578_s29 + $0x120] sm:$0xff]   ;;  %v8309_v17 = vld [vmem:[%s8578_s29 + $0x128] sm:$0xff]   ;;  %v8311_v19 = vld [vmem:[%s8578_s29 + $0x130] sm:$0xff]  }
  0x2b   : > { %7704 = vmatmul.mubr.msk.bf16.gmra.mrb[12].mxu0 %vm1193_vm2, %v8248_v20  ;;  %v8312_v20 = vld [vmem:[%s8573_s26 + $0x138] sm:$0xff]  }
  0x2c   : > { %7964 = vmatmul.mubr.msk.bf16.gmra.mrb[12].mxu1 %vm1193_vm2, %v8249_v21  ;;  %7707 = vmatprep.mubr.msk.bf16.mxu0 %vm1193_vm2, %v8250_v22  ;;  %v8313_v21 = vld [vmem:[%s8578_s29 + $0x138] sm:$0xff]   ;;  %v8314_v22 = vld [vmem:[%s8573_s26 + $0x140] sm:$0xff]  }
  0x2d   : > { %7967 = vmatprep.mubr.msk.bf16.mxu1 %vm1193_vm2, %v8251_v23  ;;  %v8315_v23 = vld [vmem:[%s8578_s29 + $0x140] sm:$0xff]  }
  0x33   : > { %7708 = vmatmul.mubr.msk.bf16.gmra.mrb[16].mxu0 %vm1193_vm2, %v8252_v24  ;;  %v8316_v24 = vld [vmem:[%s8573_s26 + $0x148] sm:$0xff]  }
  0x34   : > { %7968 = vmatmul.mubr.msk.bf16.gmra.mrb[16].mxu1 %vm1193_vm2, %v8253_v25  ;;  %7711 = vmatprep.mubr.msk.bf16.mxu0 %vm1193_vm2, %v8254_v26  ;;  %v8317_v25 = vld [vmem:[%s8578_s29 + $0x148] sm:$0xff]   ;;  %v8318_v26 = vld [vmem:[%s8573_s26 + $0x150] sm:$0xff]  }
  0x35   : > { %7971 = vmatprep.mubr.msk.bf16.mxu1 %vm1193_vm2, %v8255_v27  ;;  %v8319_v27 = vld [vmem:[%s8578_s29 + $0x150] sm:$0xff]  }
  0x3b   : > { %7712 = vmatmul.mubr.msk.bf16.gmra.mrb[20].mxu0 %vm1193_vm2, %v8256_v28  ;;  %v8320_v28 = vld [vmem:[%s8573_s26 + $0x158] sm:$0xff]  }
  0x3c   : > { %7972 = vmatmul.mubr.msk.bf16.gmra.mrb[20].mxu1 %vm1193_vm2, %v8257_v29  ;;  %7715 = vmatprep.mubr.msk.bf16.mxu0 %vm1193_vm2, %v8258_v30  ;;  %v8321_v29 = vld [vmem:[%s8578_s29 + $0x158] sm:$0xff]   ;;  %v8322_v30 = vld [vmem:[%s8573_s26 + $0x160] sm:$0xff]  }
  0x3d   : > { %7975 = vmatprep.mubr.msk.bf16.mxu1 %vm1193_vm2, %v8259_v31  ;;  %v8323_v31 = vld [vmem:[%s8578_s29 + $0x160] sm:$0xff]  }
  0x43   : > { %7716 = vmatmul.mubr.msk.bf16.gmra.mrb[24].mxu0 %vm1193_vm2, %v8260_v32  ;;  %v8324_v32 = vld [vmem:[%s8573_s26 + $0x168] sm:$0xff]  }
  0x44   : > { %7976 = vmatmul.mubr.msk.bf16.gmra.mrb[24].mxu1 %vm1193_vm2, %v8261_v33  ;;  %7719 = vmatprep.mubr.msk.bf16.mxu0 %vm1193_vm2, %v8262_v34  ;;  %v8325_v33 = vld [vmem:[%s8578_s29 + $0x168] sm:$0xff]   ;;  %v8326_v34 = vld [vmem:[%s8573_s26 + $0x170] sm:$0xff]  }
  0x45   : > { %7979 = vmatprep.mubr.msk.bf16.mxu1 %vm1193_vm2, %v8263_v35  ;;  %v8327_v35 = vld [vmem:[%s8578_s29 + $0x170] sm:$0xff]  }
  0x4b   : > { %7720 = vmatmul.mubr.msk.bf16.gmra.mrb[28].mxu0 %vm1193_vm2, %v8264_v36  ;;  %v8328_v36 = vld [vmem:[%s8573_s26 + $0x178] sm:$0xff]  }
  0x4c   : > { %7980 = vmatmul.mubr.msk.bf16.gmra.mrb[28].mxu1 %vm1193_vm2, %v8265_v37  ;;  %7723 = vmatprep.mubr.msk.bf16.mxu0 %vm1193_vm2, %v8266_v38  ;;  %v8329_v37 = vld [vmem:[%s8578_s29 + $0x178] sm:$0xff]   ;;  %v8330_v38 = vld [vmem:[%s8573_s26 + $0x180] sm:$0xff]  }
  0x4d   : > { %7983 = vmatprep.mubr.msk.bf16.mxu1 %vm1193_vm2, %v8267_v39  ;;  %v8331_v39 = vld [vmem:[%s8578_s29 + $0x180] sm:$0xff]  }
  0x53   : > { %7724 = vmatmul.mubr.msk.bf16.gmra.mrb[32].mxu0 %vm1193_vm2, %v8268_v40  ;;  %v8332_v40 = vld [vmem:[%s8573_s26 + $0x188] sm:$0xff]  }
  0x54   : > { %7984 = vmatmul.mubr.msk.bf16.gmra.mrb[32].mxu1 %vm1193_vm2, %v8269_v41  ;;  %7727 = vmatprep.mubr.msk.bf16.mxu0 %vm1193_vm2, %v8270_v42  ;;  %v8333_v41 = vld [vmem:[%s8578_s29 + $0x188] sm:$0xff]   ;;  %v8334_v42 = vld [vmem:[%s8573_s26 + $0x190] sm:$0xff]  }
  0x55   : > { %7987 = vmatprep.mubr.msk.bf16.mxu1 %vm1193_vm2, %v8271_v43  ;;  %v8335_v43 = vld [vmem:[%s8578_s29 + $0x190] sm:$0xff]  }
  0x5b   : > { %7728 = vmatmul.mubr.msk.bf16.gmra.mrb[36].mxu0 %vm1193_vm2, %v8272_v44  ;;  %v8336_v44 = vld [vmem:[%s8573_s26 + $0x198] sm:$0xff]  }
  0x5c   : > { %7988 = vmatmul.mubr.msk.bf16.gmra.mrb[36].mxu1 %vm1193_vm2, %v8273_v45  ;;  %7731 = vmatprep.mubr.msk.bf16.mxu0 %vm1193_vm2, %v8274_v46  ;;  %v8337_v45 = vld [vmem:[%s8578_s29 + $0x198] sm:$0xff]   ;;  %v8338_v46 = vld [vmem:[%s8573_s26 + $0x1a0] sm:$0xff]  }
  0x5d   : > { %7991 = vmatprep.mubr.msk.bf16.mxu1 %vm1193_vm2, %v8275_v47  ;;  %v8339_v47 = vld [vmem:[%s8578_s29 + $0x1a0] sm:$0xff]  }
  0x63   : > { %7732 = vmatmul.mubr.msk.bf16.gmra.mrb[40].mxu0 %vm1193_vm2, %v8276_v48  ;;  %v8340_v48 = vld [vmem:[%s8573_s26 + $0x1a8] sm:$0xff]  }
  0x64   : > { %7992 = vmatmul.mubr.msk.bf16.gmra.mrb[40].mxu1 %vm1193_vm2, %v8277_v49  ;;  %7735 = vmatprep.mubr.msk.bf16.mxu0 %vm1193_vm2, %v8278_v50  ;;  %v8341_v49 = vld [vmem:[%s8578_s29 + $0x1a8] sm:$0xff]   ;;  %v8342_v50 = vld [vmem:[%s8573_s26 + $0x1b0] sm:$0xff]  }
  0x65   : > { %7995 = vmatprep.mubr.msk.bf16.mxu1 %vm1193_vm2, %v8279_v51  ;;  %v8343_v51 = vld [vmem:[%s8578_s29 + $0x1b0] sm:$0xff]  }
  0x6b   : > { %7736 = vmatmul.mubr.msk.bf16.gmra.mrb[44].mxu0 %vm1193_vm2, %v8280_v52  ;;  %v8344_v52 = vld [vmem:[%s8573_s26 + $0x1b8] sm:$0xff]  }
  0x6c   : > { %7996 = vmatmul.mubr.msk.bf16.gmra.mrb[44].mxu1 %vm1193_vm2, %v8281_v53  ;;  %7739 = vmatprep.mubr.msk.bf16.mxu0 %vm1193_vm2, %v8282_v54  ;;  %v8345_v54 = vld [vmem:[%s8578_s29 + $0x1b8] sm:$0xff]  }
  0x6d   : > { %7999 = vmatprep.mubr.msk.bf16.mxu1 %vm1193_vm2, %v8283_v55  ;;  %v8346_v55 = vld [vmem:[%s8573_s26 + $0x1c0] sm:$0xff]  }
  0x73   : > { %7740 = vmatmul.mubr.msk.bf16.gmra.mrb[48].mxu0 %vm1193_vm2, %v8284_v56 }
  0x74   : > { %8000 = vmatmul.mubr.msk.bf16.gmra.mrb[48].mxu1 %vm1193_vm2, %v8285_v57  ;;  %7743 = vmatprep.mubr.msk.bf16.mxu0 %vm1193_vm2, %v8286_v58 }
  0x75   : > { %8003 = vmatprep.mubr.msk.bf16.mxu1 %vm1193_vm2, %v8287_v59 }
  0x7b   : > { %7744 = vmatmul.mubr.msk.bf16.gmra.mrb[52].mxu0 %vm1193_vm2, %v8288_v60 }
  0x7c   : > { %8004 = vmatmul.mubr.msk.bf16.gmra.mrb[52].mxu1 %vm1193_vm2, %v8289_v61  ;;  %7747 = vmatprep.mubr.msk.bf16.mxu0 %vm1193_vm2, %v8290_v62 }
  0x7d   : > { %8007 = vmatprep.mubr.msk.bf16.mxu1 %vm1193_vm2, %v8291_v63 }
  0x83   : > { %7748 = vmatmul.mubr.msk.bf16.gmra.mrb[56].mxu0 %vm1193_vm2, %v8292_v0  ;;  %v8347_v0 = vld [vmem:[%s8578_s29 + $0x1c0] sm:$0xff]  }
  0x84   : > { %8008 = vmatmul.mubr.msk.bf16.gmra.mrb[56].mxu1 %vm1193_vm2, %v8293_v1  ;;  %7751 = vmatprep.mubr.msk.bf16.mxu0 %vm1193_vm2, %v8294_v2  ;;  %v8807_v1 = vld [vmem:[%s9642_s3] ss:$0 sm:$0xff] }
  0x85   : > { %8011 = vmatprep.mubr.msk.bf16.mxu1 %vm1193_vm2, %v8295_v3 }
  0x8b   : > { %7752 = vmatmul.mubr.msk.bf16.gmra.mrb[60].mxu0 %vm1193_vm2, %v8296_v4 }
  0x8c   : > { %8012 = vmatmul.mubr.msk.bf16.gmra.mrb[60].mxu1 %vm1193_vm2, %v8297_v5  ;;  %7755 = vmatprep.mubr.msk.bf16.mxu0 %vm1193_vm2, %v8298_v6 }
  0x8d   : > { %8015 = vmatprep.mubr.msk.bf16.mxu1 %vm1193_vm2, %v8299_v7  ;;  %v8348_v7 = vld [vmem:[%s8573_s26 + $0x1c8] sm:$0xff]  }
  0x93   : > { %7756 = vmatmul.mubr.msk.bf16.gmra.mrb[64].mxu0 %vm1193_vm2, %v8300_v8 }
  0x94   : > { %8016 = vmatmul.mubr.msk.bf16.gmra.mrb[64].mxu1 %vm1193_vm2, %v8301_v9  ;;  %7759 = vmatprep.mubr.msk.bf16.mxu0 %vm1193_vm2, %v8302_v10  ;;  %v8349_v10 = vld [vmem:[%s8578_s29 + $0x1c8] sm:$0xff]  }
  0x95   : > { %8019 = vmatprep.mubr.msk.bf16.mxu1 %vm1193_vm2, %v8303_v11  ;;  %v8350_v11 = vld [vmem:[%s8573_s26 + $0x1d0] sm:$0xff]  }
  0x9b   : > { %7760 = vmatmul.mubr.msk.bf16.gmra.mrb[68].mxu0 %vm1193_vm2, %v8304_v12 }
  0x9c   : > { %8020 = vmatmul.mubr.msk.bf16.gmra.mrb[68].mxu1 %vm1193_vm2, %v8305_v13  ;;  %7763 = vmatprep.mubr.msk.bf16.mxu0 %vm1193_vm2, %v8306_v14 }
  0x9d   : > { %8023 = vmatprep.mubr.msk.bf16.mxu1 %vm1193_vm2, %v8307_v15 }
  0xa3   : > { %7764 = vmatmul.mubr.msk.bf16.gmra.mrb[72].mxu0 %vm1193_vm2, %v8308_v16 }
  0xa4   : > { %8024 = vmatmul.mubr.msk.bf16.gmra.mrb[72].mxu1 %vm1193_vm2, %v8309_v17  ;;  %7767 = vmatprep.mubr.msk.bf16.mxu0 %vm1193_vm2, %v8310_v18 }
  0xa5   : > { %8027 = vmatprep.mubr.msk.bf16.mxu1 %vm1193_vm2, %v8311_v19 }
  0xab   : > { %7768 = vmatmul.mubr.msk.bf16.gmra.mrb[76].mxu0 %vm1193_vm2, %v8312_v20  ;;  %v8351_v20 = vld [vmem:[%s8578_s29 + $0x1d0] sm:$0xff]  }
  0xac   : > { %8028 = vmatmul.mubr.msk.bf16.gmra.mrb[76].mxu1 %vm1193_vm2, %v8313_v21  ;;  %7771 = vmatprep.mubr.msk.bf16.mxu0 %vm1193_vm2, %v8314_v22 }
  0xad   : > { %8031 = vmatprep.mubr.msk.bf16.mxu1 %vm1193_vm2, %v8315_v23 }
  0xb3   : > { %7772 = vmatmul.mubr.msk.bf16.gmra.mrb[80].mxu0 %vm1193_vm2, %v8316_v24 }
  0xb4   : > { %8032 = vmatmul.mubr.msk.bf16.gmra.mrb[80].mxu1 %vm1193_vm2, %v8317_v25  ;;  %7775 = vmatprep.mubr.msk.bf16.mxu0 %vm1193_vm2, %v8318_v26 }
  0xb5   : > { %8035 = vmatprep.mubr.msk.bf16.mxu1 %vm1193_vm2, %v8319_v27 }
  0xbb   : > { %7776 = vmatmul.mubr.msk.bf16.gmra.mrb[84].mxu0 %vm1193_vm2, %v8320_v28 }
  0xbc   : > { %8036 = vmatmul.mubr.msk.bf16.gmra.mrb[84].mxu1 %vm1193_vm2, %v8321_v29  ;;  %7779 = vmatprep.mubr.msk.bf16.mxu0 %vm1193_vm2, %v8322_v30 }
  0xbd   : > { %8039 = vmatprep.mubr.msk.bf16.mxu1 %vm1193_vm2, %v8323_v31 }
  0xc3   : > { %7780 = vmatmul.mubr.msk.bf16.gmra.mrb[88].mxu0 %vm1193_vm2, %v8324_v32 }
  0xc4   : > { %8040 = vmatmul.mubr.msk.bf16.gmra.mrb[88].mxu1 %vm1193_vm2, %v8325_v33  ;;  %7783 = vmatprep.mubr.msk.bf16.mxu0 %vm1193_vm2, %v8326_v34  ;;  %v8352_v34 = vld [vmem:[%s8573_s26 + $0x1d8] sm:$0xff]  }
  0xc5   : > { %8043 = vmatprep.mubr.msk.bf16.mxu1 %vm1193_vm2, %v8327_v35 }
  0xcb   : > { %7784 = vmatmul.mubr.msk.bf16.gmra.mrb[92].mxu0 %vm1193_vm2, %v8328_v36 }
  0xcc   : > { %8044 = vmatmul.mubr.msk.bf16.gmra.mrb[92].mxu1 %vm1193_vm2, %v8329_v37  ;;  %7787 = vmatprep.mubr.msk.bf16.mxu0 %vm1193_vm2, %v8330_v38  ;;  %v8353_v38 = vld [vmem:[%s8578_s29 + $0x1d8] sm:$0xff]  }
  0xcd   : > { %8047 = vmatprep.mubr.msk.bf16.mxu1 %vm1193_vm2, %v8331_v39  ;;  %v8354_v39 = vld [vmem:[%s8573_s26 + $0x1e0] sm:$0xff]  }
  0xd3   : > { %7788 = vmatmul.mubr.msk.bf16.gmra.mrb[96].mxu0 %vm1193_vm2, %v8332_v40 }
  0xd4   : > { %8048 = vmatmul.mubr.msk.bf16.gmra.mrb[96].mxu1 %vm1193_vm2, %v8333_v41  ;;  %7791 = vmatprep.mubr.msk.bf16.mxu0 %vm1193_vm2, %v8334_v42 }
  0xd5   : > { %8051 = vmatprep.mubr.msk.bf16.mxu1 %vm1193_vm2, %v8335_v43 }
  0xdb   : > { %7792 = vmatmul.mubr.msk.bf16.gmra.mrb[100].mxu0 %vm1193_vm2, %v8336_v44 }
  0xdc   : > { %8052 = vmatmul.mubr.msk.bf16.gmra.mrb[100].mxu1 %vm1193_vm2, %v8337_v45  ;;  %7795 = vmatprep.mubr.msk.bf16.mxu0 %vm1193_vm2, %v8338_v46 }
  0xdd   : > { %8055 = vmatprep.mubr.msk.bf16.mxu1 %vm1193_vm2, %v8339_v47 }
  0xe3   : > { %7796 = vmatmul.mubr.msk.bf16.gmra.mrb[104].mxu0 %vm1193_vm2, %v8340_v48 }
  0xe4   : > { %8056 = vmatmul.mubr.msk.bf16.gmra.mrb[104].mxu1 %vm1193_vm2, %v8341_v49  ;;  %7799 = vmatprep.mubr.msk.bf16.mxu0 %vm1193_vm2, %v8342_v50 }
  0xe5   : > { %8059 = vmatprep.mubr.msk.bf16.mxu1 %vm1193_vm2, %v8343_v51 }
  0xe6   : > { %v7693_v53 = vpop.f32.mrb[0].mxu0 }
  0xe7   : > { %v7953_v56 = vpop.f32.mrb[0].mxu1  ;;  %v1619_v57 = vpop.f32.mrb[1].mxu0 }
  0xe8   : > { %v4981_v58 = vmax.f32 %v7693_v53, %v7953_v56  ;;  %v3956_v59 = vpop.f32.mrb[1].mxu1  ;;  %v7694_v60 = vpop.f32.mrb[2].mxu0 }
  0xe9   : > { %v4979_v61 = vmax.f32 %v1619_v57, %v3956_v59  ;;  %v7954_v62 = vpop.f32.mrb[2].mxu1  ;;  %v1622_v63 = vpop.f32.mrb[3].mxu0 }
  0xea   : > { %v4982_v2 = vmax.f32 %v7694_v60, %v7954_v62  ;;  %v3959_v3 = vpop.f32.mrb[3].mxu1  ;;  %v5244_v5 = vadd.f32 %v8807_v1, %v4981_v58 }
  0xeb   : > { %v4980_v4 = vmax.f32 %v1622_v63, %v3959_v3  ;;  %7800 = vmatmul.mubr.msk.bf16.gmra.mrb[108].mxu0 %vm1193_vm2, %v8344_v52  ;;  %v5242_v12 = vadd.f32 %v8807_v1, %v4979_v61 }
  0xec   : > { %8060 = vmatmul.mubr.msk.bf16.gmra.mrb[108].mxu1 %vm1193_vm2, %v8345_v54  ;;  %7803 = vmatprep.mubr.msk.bf16.mxu0 %vm1193_vm2, %v8346_v55  ;;  %v5245_v16 = vadd.f32 %v8807_v1, %v4982_v2  ;;  %v5500_v21 = vmax.f32 %v5244_v5, 0.0  ;;  %v8355_v55 = vld [vmem:[%s8578_s29 + $0x1e0] sm:$0xff]  }
  0xed   : > { %8063 = vmatprep.mubr.msk.bf16.mxu1 %vm1193_vm2, %v8347_v0  ;;  %v5243_v25 = vadd.f32 %v8807_v1, %v4980_v4  ;;  %v5498_v28 = vmax.f32 %v5242_v12, 0.0  ;;  %v8356_v0 = vld [vmem:[%s8573_s26 + $0x1e8] sm:$0xff]   ;;  %v8359_v12 = vld [vmem:[%s8578_s29 + $0x1f0] sm:$0xff]  }
  0xee   : > { %v7697_v6 = vpop.f32.mrb[4].mxu0  ;;  %v5501_v31 = vmax.f32 %v5245_v16, 0.0 }
  0xef   : > { %v7957_v8 = vpop.f32.mrb[4].mxu1  ;;  %v1635_v9 = vpop.f32.mrb[5].mxu0  ;;  %v5499_v40 = vmax.f32 %v5243_v25, 0.0 }
  0xf0   : > { %v4985_v13 = vmax.f32 %v7697_v6, %v7957_v8  ;;  %v3972_v14 = vpop.f32.mrb[5].mxu1  ;;  %v7698_v15 = vpop.f32.mrb[6].mxu0  ;;  %v8357_v6 = vld [vmem:[%s8578_s29 + $0x1e8] sm:$0xff]  }
  0xf1   : > { %v4983_v17 = vmax.f32 %v1635_v9, %v3972_v14  ;;  %v7958_v18 = vpop.f32.mrb[6].mxu1  ;;  %v1638_v19 = vpop.f32.mrb[7].mxu0 }
  0xf2   : > { %v5248_v22 = vadd.f32 %v8807_v1, %v4985_v13  ;;  %v4986_v23 = vmax.f32 %v7698_v15, %v7958_v18  ;;  %v3975_v24 = vpop.f32.mrb[7].mxu1 }
  0xf3   : > { %v5246_v26 = vadd.f32 %v8807_v1, %v4983_v17  ;;  %v4984_v27 = vmax.f32 %v1638_v19, %v3975_v24  ;;  %7804 = vmatmul.mubr.msk.bf16.gmra.mrb[112].mxu0 %vm1193_vm2, %v8348_v7  ;;  %v8358_v7 = vld [vmem:[%s8573_s26 + $0x1f0] sm:$0xff]  }
  0xf4   : > { %v5504_v29 = vmax.f32 %v5248_v22, 0.0  ;;  %v5249_v30 = vadd.f32 %v8807_v1, %v4986_v23  ;;  %8064 = vmatmul.mubr.msk.bf16.gmra.mrb[112].mxu1 %vm1193_vm2, %v8349_v10  ;;  %7807 = vmatprep.mubr.msk.bf16.mxu0 %vm1193_vm2, %v8350_v11 }
  0xf5   : > { %v5502_v32 = vmax.f32 %v5246_v26, 0.0  ;;  %v5247_v33 = vadd.f32 %v8807_v1, %v4984_v27  ;;  %8067 = vmatprep.mubr.msk.bf16.mxu1 %vm1193_vm2, %v8351_v20 }
  0xf6   : > { %v5756_v35 = vmax.f32 %v5500_v21, %v5504_v29  ;;  %v5505_v36 = vmax.f32 %v5249_v30, 0.0  ;;  %v7701_v37 = vpop.f32.mrb[8].mxu0 }
  0xf7   : > { %v5754_v41 = vmax.f32 %v5498_v28, %v5502_v32  ;;  %v5503_v42 = vmax.f32 %v5247_v33, 0.0  ;;  %v7961_v43 = vpop.f32.mrb[8].mxu1  ;;  %v1651_v44 = vpop.f32.mrb[9].mxu0 }
  0xf8   : > { %v7301_v45 = vpack.c.bf16 %v5756_v35, %v5756_v35  ;;  %v5757_v46 = vmax.f32 %v5501_v31, %v5505_v36  ;;  %v4989_v47 = vmax.f32 %v7701_v37, %v7961_v43  ;;  %v3988_v48 = vpop.f32.mrb[9].mxu1  ;;  %v7702_v49 = vpop.f32.mrb[10].mxu0  ;;  %v8360_v35 = vld [vmem:[%s8573_s26 + $0x1f8] sm:$0xff]  }
  0xf9   : > { %v7299_v50 = vpack.c.bf16 %v5754_v41, %v5754_v41  ;;  %v5755_v51 = vmax.f32 %v5499_v40, %v5503_v42  ;;  %v4987_v52 = vmax.f32 %v1651_v44, %v3988_v48  ;;  %v7962_v53 = vpop.f32.mrb[10].mxu1  ;;  %v1654_v54 = vpop.f32.mrb[11].mxu0  ;;  %v8361_v41 = vld [vmem:[%s8578_s29 + $0x1f8] sm:$0xff]   ;;  %v8362_v42 = vld [vmem:[%s8573_s26 + $0x200] sm:$0xff]  }
  0xfa   : > { %6397 = vst.msk [vmem:[%s8836_s9 + $0x8] sm:$0xf] %vm6394_vm3, %v7301_v45  ;;  %v7302_v56 = vpack.c.bf16 %v5757_v46, %v5757_v46  ;;  %v4990_v57 = vmax.f32 %v7702_v49, %v7962_v53  ;;  %v3991_v58 = vpop.f32.mrb[11].mxu1  ;;  %v5252_v2 = vadd.f32 %v8807_v1, %v4989_v47  ;;  %v8363_v48 = vld [vmem:[%s8578_s29 + $0x200] sm:$0xff]  }
  0xfb   : > { %6395 = vst.msk [vmem:[%s8836_s9] sm:$0xf] %vm6394_vm3, %v7299_v50  ;;  %v7300_v59 = vpack.c.bf16 %v5755_v51, %v5755_v51  ;;  %v4988_v60 = vmax.f32 %v1654_v54, %v3991_v58  ;;  %7808 = vmatmul.mubr.msk.bf16.gmra.mrb[116].mxu0 %vm1193_vm2, %v8352_v34  ;;  %v5250_v8 = vadd.f32 %v8807_v1, %v4987_v52 }
  0xfc   : > { %6398 = vst.msk [vmem:[%s8836_s9 + $0xc] sm:$0xf] %vm6394_vm3, %v7302_v56  ;;  %8068 = vmatmul.mubr.msk.bf16.gmra.mrb[116].mxu1 %vm1193_vm2, %v8353_v38  ;;  %7811 = vmatprep.mubr.msk.bf16.mxu0 %vm1193_vm2, %v8354_v39  ;;  %v5253_v13 = vadd.f32 %v8807_v1, %v4990_v57  ;;  %v5508_v20 = vmax.f32 %v5252_v2, 0.0  ;;  %v8364_v57 = vld [vmem:[%s8573_s26 + $0x208] sm:$0xff]  }
  0xfd   : > { %6396 = vst.msk [vmem:[%s8836_s9 + $0x4] sm:$0xf] %vm6394_vm3, %v7300_v59  ;;  %8071 = vmatprep.mubr.msk.bf16.mxu1 %vm1193_vm2, %v8355_v55  ;;  %v5251_v17 = vadd.f32 %v8807_v1, %v4988_v60  ;;  %v5506_v23 = vmax.f32 %v5250_v8, 0.0 }
  0xfe   : > { %v7705_v61 = vpop.f32.mrb[12].mxu0  ;;  %v5509_v26 = vmax.f32 %v5253_v13, 0.0 }
  0xff   : > { %v7965_v62 = vpop.f32.mrb[12].mxu1  ;;  %v1667_v63 = vpop.f32.mrb[13].mxu0  ;;  %v5507_v30 = vmax.f32 %v5251_v17, 0.0 }
 0x100   : > { %v4993_v3 = vmax.f32 %v7705_v61, %v7965_v62  ;;  %v4004_v4 = vpop.f32.mrb[13].mxu1  ;;  %v7706_v5 = vpop.f32.mrb[14].mxu0  ;;  %v8365_v62 = vld [vmem:[%s8578_s29 + $0x208] sm:$0xff]  }
 0x101   : > { %v4991_v9 = vmax.f32 %v1667_v63, %v4004_v4  ;;  %v7966_v10 = vpop.f32.mrb[14].mxu1  ;;  %v1670_v11 = vpop.f32.mrb[15].mxu0  ;;  %v8366_v63 = vld [vmem:[%s8573_s26 + $0x210] sm:$0xff]  }
 0x102   : > { %v5256_v14 = vadd.f32 %v8807_v1, %v4993_v3  ;;  %v4994_v15 = vmax.f32 %v7706_v5, %v7966_v10  ;;  %v4007_v16 = vpop.f32.mrb[15].mxu1  ;;  %v8367_v5 = vld [vmem:[%s8578_s29 + $0x210] sm:$0xff]  }
 0x103   : > { %v5254_v18 = vadd.f32 %v8807_v1, %v4991_v9  ;;  %v4992_v19 = vmax.f32 %v1670_v11, %v4007_v16  ;;  %7812 = vmatmul.mubr.msk.bf16.gmra.mrb[120].mxu0 %vm1193_vm2, %v8356_v0 }
 0x104   : > { %v5512_v21 = vmax.f32 %v5256_v14, 0.0  ;;  %v5257_v22 = vadd.f32 %v8807_v1, %v4994_v15  ;;  %8072 = vmatmul.mubr.msk.bf16.gmra.mrb[120].mxu1 %vm1193_vm2, %v8357_v6  ;;  %7815 = vmatprep.mubr.msk.bf16.mxu0 %vm1193_vm2, %v8358_v7 }
 0x105   : > { %v5510_v24 = vmax.f32 %v5254_v18, 0.0  ;;  %v5255_v25 = vadd.f32 %v8807_v1, %v4992_v19  ;;  %8075 = vmatprep.mubr.msk.bf16.mxu1 %vm1193_vm2, %v8359_v12 }
 0x106   : > { %v5760_v27 = vmax.f32 %v5508_v20, %v5512_v21  ;;  %v5513_v28 = vmax.f32 %v5257_v22, 0.0  ;;  %v7709_v29 = vpop.f32.mrb[16].mxu0 }
 0x107   : > { %v5758_v31 = vmax.f32 %v5506_v23, %v5510_v24  ;;  %v5511_v32 = vmax.f32 %v5255_v25, 0.0  ;;  %v7969_v33 = vpop.f32.mrb[16].mxu1  ;;  %v1683_v34 = vpop.f32.mrb[17].mxu0 }
 0x108   : > { %v7305_v36 = vpack.c.bf16 %v5760_v27, %v5760_v27  ;;  %v5761_v37 = vmax.f32 %v5509_v26, %v5513_v28  ;;  %v4997_v38 = vmax.f32 %v7709_v29, %v7969_v33  ;;  %v4020_v39 = vpop.f32.mrb[17].mxu1  ;;  %v7710_v40 = vpop.f32.mrb[18].mxu0  ;;  %v8368_v28 = vld [vmem:[%s8573_s26 + $0x218] sm:$0xff]  }
 0x109   : > { %v7303_v43 = vpack.c.bf16 %v5758_v31, %v5758_v31  ;;  %v5759_v44 = vmax.f32 %v5507_v30, %v5511_v32  ;;  %v4995_v45 = vmax.f32 %v1683_v34, %v4020_v39  ;;  %v7970_v46 = vpop.f32.mrb[18].mxu1  ;;  %v1686_v47 = vpop.f32.mrb[19].mxu0  ;;  %v8369_v34 = vld [vmem:[%s8578_s29 + $0x218] sm:$0xff]  }
 0x10a   : > { %6401 = vst.msk [vmem:[%s8836_s9 + $0x18] sm:$0xf] %vm6394_vm3, %v7305_v36  ;;  %v7306_v49 = vpack.c.bf16 %v5761_v37, %v5761_v37  ;;  %v4998_v50 = vmax.f32 %v7710_v40, %v7970_v46  ;;  %v4023_v51 = vpop.f32.mrb[19].mxu1  ;;  %v5260_v58 = vadd.f32 %v8807_v1, %v4997_v38 }
 0x10b   : > { %6399 = vst.msk [vmem:[%s8836_s9 + $0x10] sm:$0xf] %vm6394_vm3, %v7303_v43  ;;  %v7304_v52 = vpack.c.bf16 %v5759_v44, %v5759_v44  ;;  %v4996_v53 = vmax.f32 %v1686_v47, %v4023_v51  ;;  %7816 = vmatmul.mubr.msk.bf16.gmra.mrb[124].mxu0 %vm1193_vm2, %v8360_v35  ;;  %v5258_v0 = vadd.f32 %v8807_v1, %v4995_v45  ;;  %v8370_v35 = vld [vmem:[%s8573_s26 + $0x220] sm:$0xff]  }
 0x10c   : > { %6402 = vst.msk [vmem:[%s8836_s9 + $0x1c] sm:$0xf] %vm6394_vm3, %v7306_v49  ;;  %8076 = vmatmul.mubr.msk.bf16.gmra.mrb[124].mxu1 %vm1193_vm2, %v8361_v41  ;;  %7819 = vmatprep.mubr.msk.bf16.mxu0 %vm1193_vm2, %v8362_v42  ;;  %v5261_v6 = vadd.f32 %v8807_v1, %v4998_v50  ;;  %v5516_v13 = vmax.f32 %v5260_v58, 0.0  ;;  %v8371_v41 = vld [vmem:[%s8578_s29 + $0x220] sm:$0xff]   ;;  %v8372_v50 = vld [vmem:[%s8573_s26 + $0x228] sm:$0xff]  }
 0x10d   : > { %6400 = vst.msk [vmem:[%s8836_s9 + $0x14] sm:$0xf] %vm6394_vm3, %v7304_v52  ;;  %8079 = vmatprep.mubr.msk.bf16.mxu1 %vm1193_vm2, %v8363_v48  ;;  %v5259_v10 = vadd.f32 %v8807_v1, %v4996_v53  ;;  %v5514_v16 = vmax.f32 %v5258_v0, 0.0 }
 0x10e   : > { %v7713_v54 = vpop.f32.mrb[20].mxu0  ;;  %v5517_v19 = vmax.f32 %v5261_v6, 0.0 }
 0x10f   : > { %v7973_v55 = vpop.f32.mrb[20].mxu1  ;;  %v1699_v56 = vpop.f32.mrb[21].mxu0  ;;  %v5515_v23 = vmax.f32 %v5259_v10, 0.0 }
 0x110   : > { %v5001_v59 = vmax.f32 %v7713_v54, %v7973_v55  ;;  %v4036_v60 = vpop.f32.mrb[21].mxu1  ;;  %v7714_v61 = vpop.f32.mrb[22].mxu0  ;;  %v8373_v55 = vld [vmem:[%s8578_s29 + $0x228] sm:$0xff]  }
 0x111   : > { %v4999_v2 = vmax.f32 %v1699_v56, %v4036_v60  ;;  %v7974_v3 = vpop.f32.mrb[22].mxu1  ;;  %v1702_v4 = vpop.f32.mrb[23].mxu0  ;;  %v8374_v56 = vld [vmem:[%s8573_s26 + $0x230] sm:$0xff]  }
 0x112   : > { %v5264_v7 = vadd.f32 %v8807_v1, %v5001_v59  ;;  %v5002_v8 = vmax.f32 %v7714_v61, %v7974_v3  ;;  %v4039_v9 = vpop.f32.mrb[23].mxu1  ;;  %v8375_v61 = vld [vmem:[%s8578_s29 + $0x230] sm:$0xff]  }
 0x113   : > { %v5262_v11 = vadd.f32 %v8807_v1, %v4999_v2  ;;  %v5000_v12 = vmax.f32 %v1702_v4, %v4039_v9  ;;  %7820 = vmatmul.mubr.msk.bf16.gmra.mrb[128].mxu0 %vm1193_vm2, %v8364_v57 }
 0x114   : > { %v5520_v14 = vmax.f32 %v5264_v7, 0.0  ;;  %v5265_v15 = vadd.f32 %v8807_v1, %v5002_v8  ;;  %8080 = vmatmul.mubr.msk.bf16.gmra.mrb[128].mxu1 %vm1193_vm2, %v8365_v62  ;;  %7823 = vmatprep.mubr.msk.bf16.mxu0 %vm1193_vm2, %v8366_v63 }
 0x115   : > { %v5518_v17 = vmax.f32 %v5262_v11, 0.0  ;;  %v5263_v18 = vadd.f32 %v8807_v1, %v5000_v12  ;;  %8083 = vmatprep.mubr.msk.bf16.mxu1 %vm1193_vm2, %v8367_v5 }
 0x116   : > { %v5764_v20 = vmax.f32 %v5516_v13, %v5520_v14  ;;  %v5521_v21 = vmax.f32 %v5265_v15, 0.0  ;;  %v7717_v22 = vpop.f32.mrb[24].mxu0 }
 0x117   : > { %v5762_v24 = vmax.f32 %v5514_v16, %v5518_v17  ;;  %v5519_v25 = vmax.f32 %v5263_v18, 0.0  ;;  %v7977_v26 = vpop.f32.mrb[24].mxu1  ;;  %v1715_v27 = vpop.f32.mrb[25].mxu0 }
 0x118   : > { %v7309_v29 = vpack.c.bf16 %v5764_v20, %v5764_v20  ;;  %v5765_v30 = vmax.f32 %v5517_v19, %v5521_v21  ;;  %v5005_v31 = vmax.f32 %v7717_v22, %v7977_v26  ;;  %v4052_v32 = vpop.f32.mrb[25].mxu1  ;;  %v7718_v33 = vpop.f32.mrb[26].mxu0  ;;  %v8376_v21 = vld [vmem:[%s8573_s26 + $0x238] sm:$0xff]  }
 0x119   : > { %v7307_v36 = vpack.c.bf16 %v5762_v24, %v5762_v24  ;;  %v5763_v37 = vmax.f32 %v5515_v23, %v5519_v25  ;;  %v5003_v38 = vmax.f32 %v1715_v27, %v4052_v32  ;;  %v7978_v39 = vpop.f32.mrb[26].mxu1  ;;  %v1718_v40 = vpop.f32.mrb[27].mxu0  ;;  %v8377_v27 = vld [vmem:[%s8578_s29 + $0x238] sm:$0xff]  }
 0x11a   : > { %6405 = vst.msk [vmem:[%s8836_s9 + $0x28] sm:$0xf] %vm6394_vm3, %v7309_v29  ;;  %v7310_v42 = vpack.c.bf16 %v5765_v30, %v5765_v30  ;;  %v5006_v43 = vmax.f32 %v7718_v33, %v7978_v39  ;;  %v4055_v44 = vpop.f32.mrb[27].mxu1  ;;  %v5268_v51 = vadd.f32 %v8807_v1, %v5005_v31 }
 0x11b   : > { %6403 = vst.msk [vmem:[%s8836_s9 + $0x20] sm:$0xf] %vm6394_vm3, %v7307_v36  ;;  %v7308_v45 = vpack.c.bf16 %v5763_v37, %v5763_v37  ;;  %v5004_v46 = vmax.f32 %v1718_v40, %v4055_v44  ;;  %7824 = vmatmul.mubr.msk.bf16.gmra.mrb[132].mxu0 %vm1193_vm2, %v8368_v28  ;;  %v5266_v57 = vadd.f32 %v8807_v1, %v5003_v38  ;;  %v8378_v28 = vld [vmem:[%s8573_s26 + $0x240] sm:$0xff]  }
 0x11c   : > { %6406 = vst.msk [vmem:[%s8836_s9 + $0x2c] sm:$0xf] %vm6394_vm3, %v7310_v42  ;;  %8084 = vmatmul.mubr.msk.bf16.gmra.mrb[132].mxu1 %vm1193_vm2, %v8369_v34  ;;  %7827 = vmatprep.mubr.msk.bf16.mxu0 %vm1193_vm2, %v8370_v35  ;;  %v5269_v62 = vadd.f32 %v8807_v1, %v5006_v43  ;;  %v5524_v6 = vmax.f32 %v5268_v51, 0.0  ;;  %v8379_v34 = vld [vmem:[%s8578_s29 + $0x240] sm:$0xff]   ;;  %v8380_v43 = vld [vmem:[%s8573_s26 + $0x248] sm:$0xff]  }
 0x11d   : > { %6404 = vst.msk [vmem:[%s8836_s9 + $0x24] sm:$0xf] %vm6394_vm3, %v7308_v45  ;;  %8087 = vmatprep.mubr.msk.bf16.mxu1 %vm1193_vm2, %v8371_v41  ;;  %v5267_v3 = vadd.f32 %v8807_v1, %v5004_v46  ;;  %v5522_v9 = vmax.f32 %v5266_v57, 0.0 }
 0x11e   : > { %v7721_v47 = vpop.f32.mrb[28].mxu0  ;;  %v5525_v12 = vmax.f32 %v5269_v62, 0.0 }
 0x11f   : > { %v7981_v48 = vpop.f32.mrb[28].mxu1  ;;  %v1731_v49 = vpop.f32.mrb[29].mxu0  ;;  %v5523_v16 = vmax.f32 %v5267_v3, 0.0 }
 0x120   : > { %v5009_v52 = vmax.f32 %v7721_v47, %v7981_v48  ;;  %v4068_v53 = vpop.f32.mrb[29].mxu1  ;;  %v7722_v54 = vpop.f32.mrb[30].mxu0  ;;  %v8381_v48 = vld [vmem:[%s8578_s29 + $0x248] sm:$0xff]  }
 0x121   : > { %v5007_v58 = vmax.f32 %v1731_v49, %v4068_v53  ;;  %v7982_v59 = vpop.f32.mrb[30].mxu1  ;;  %v1734_v60 = vpop.f32.mrb[31].mxu0  ;;  %v8382_v49 = vld [vmem:[%s8573_s26 + $0x250] sm:$0xff]  }
 0x122   : > { %v5272_v63 = vadd.f32 %v8807_v1, %v5009_v52  ;;  %v5010_v0 = vmax.f32 %v7722_v54, %v7982_v59  ;;  %v4071_v2 = vpop.f32.mrb[31].mxu1  ;;  %v8383_v54 = vld [vmem:[%s8578_s29 + $0x250] sm:$0xff]  }
 0x123   : > { %v5270_v4 = vadd.f32 %v8807_v1, %v5007_v58  ;;  %v5008_v5 = vmax.f32 %v1734_v60, %v4071_v2  ;;  %7828 = vmatmul.mubr.msk.bf16.gmra.mrb[136].mxu0 %vm1193_vm2, %v8372_v50 }
 0x124   : > { %v5528_v7 = vmax.f32 %v5272_v63, 0.0  ;;  %v5273_v8 = vadd.f32 %v8807_v1, %v5010_v0  ;;  %8088 = vmatmul.mubr.msk.bf16.gmra.mrb[136].mxu1 %vm1193_vm2, %v8373_v55  ;;  %7831 = vmatprep.mubr.msk.bf16.mxu0 %vm1193_vm2, %v8374_v56 }
 0x125   : > { %v5526_v10 = vmax.f32 %v5270_v4, 0.0  ;;  %v5271_v11 = vadd.f32 %v8807_v1, %v5008_v5  ;;  %8091 = vmatprep.mubr.msk.bf16.mxu1 %vm1193_vm2, %v8375_v61 }
 0x126   : > { %v5768_v13 = vmax.f32 %v5524_v6, %v5528_v7  ;;  %v5529_v14 = vmax.f32 %v5273_v8, 0.0  ;;  %v7725_v15 = vpop.f32.mrb[32].mxu0 }
 0x127   : > { %v5766_v17 = vmax.f32 %v5522_v9, %v5526_v10  ;;  %v5527_v18 = vmax.f32 %v5271_v11, 0.0  ;;  %v7985_v19 = vpop.f32.mrb[32].mxu1  ;;  %v1747_v20 = vpop.f32.mrb[33].mxu0 }
 0x128   : > { %v7313_v22 = vpack.c.bf16 %v5768_v13, %v5768_v13  ;;  %v5769_v23 = vmax.f32 %v5525_v12, %v5529_v14  ;;  %v5013_v24 = vmax.f32 %v7725_v15, %v7985_v19  ;;  %v4084_v25 = vpop.f32.mrb[33].mxu1  ;;  %v7726_v26 = vpop.f32.mrb[34].mxu0  ;;  %v8384_v14 = vld [vmem:[%s8573_s26 + $0x258] sm:$0xff]  }
 0x129   : > { %v7311_v29 = vpack.c.bf16 %v5766_v17, %v5766_v17  ;;  %v5767_v30 = vmax.f32 %v5523_v16, %v5527_v18  ;;  %v5011_v31 = vmax.f32 %v1747_v20, %v4084_v25  ;;  %v7986_v32 = vpop.f32.mrb[34].mxu1  ;;  %v1750_v33 = vpop.f32.mrb[35].mxu0  ;;  %v8385_v20 = vld [vmem:[%s8578_s29 + $0x258] sm:$0xff]  }
 0x12a   : > { %6409 = vst.msk [vmem:[%s8836_s9 + $0x38] sm:$0xf] %vm6394_vm3, %v7313_v22  ;;  %v7314_v35 = vpack.c.bf16 %v5769_v23, %v5769_v23  ;;  %v5014_v36 = vmax.f32 %v7726_v26, %v7986_v32  ;;  %v4087_v37 = vpop.f32.mrb[35].mxu1  ;;  %v5276_v44 = vadd.f32 %v8807_v1, %v5013_v24 }
 0x12b   : > { %6407 = vst.msk [vmem:[%s8836_s9 + $0x30] sm:$0xf] %vm6394_vm3, %v7311_v29  ;;  %v7312_v38 = vpack.c.bf16 %v5767_v30, %v5767_v30  ;;  %v5012_v39 = vmax.f32 %v1750_v33, %v4087_v37  ;;  %7832 = vmatmul.mubr.msk.bf16.gmra.mrb[140].mxu0 %vm1193_vm2, %v8376_v21  ;;  %v5274_v50 = vadd.f32 %v8807_v1, %v5011_v31  ;;  %v8386_v21 = vld [vmem:[%s8573_s26 + $0x260] sm:$0xff]  }
 0x12c   : > { %6410 = vst.msk [vmem:[%s8836_s9 + $0x3c] sm:$0xf] %vm6394_vm3, %v7314_v35  ;;  %8092 = vmatmul.mubr.msk.bf16.gmra.mrb[140].mxu1 %vm1193_vm2, %v8377_v27  ;;  %7835 = vmatprep.mubr.msk.bf16.mxu0 %vm1193_vm2, %v8378_v28  ;;  %v5277_v55 = vadd.f32 %v8807_v1, %v5014_v36  ;;  %v5532_v62 = vmax.f32 %v5276_v44, 0.0  ;;  %v8387_v27 = vld [vmem:[%s8578_s29 + $0x260] sm:$0xff]   ;;  %v8388_v36 = vld [vmem:[%s8573_s26 + $0x268] sm:$0xff]  }
 0x12d   : > { %6408 = vst.msk [vmem:[%s8836_s9 + $0x34] sm:$0xf] %vm6394_vm3, %v7312_v38  ;;  %8095 = vmatprep.mubr.msk.bf16.mxu1 %vm1193_vm2, %v8379_v34  ;;  %v5275_v59 = vadd.f32 %v8807_v1, %v5012_v39  ;;  %v5530_v2 = vmax.f32 %v5274_v50, 0.0 }
 0x12e   : > { %v7729_v40 = vpop.f32.mrb[36].mxu0  ;;  %v5533_v5 = vmax.f32 %v5277_v55, 0.0 }
 0x12f   : > { %v7989_v41 = vpop.f32.mrb[36].mxu1  ;;  %v1763_v42 = vpop.f32.mrb[37].mxu0  ;;  %v5531_v9 = vmax.f32 %v5275_v59, 0.0 }
 0x130   : > { %v5017_v45 = vmax.f32 %v7729_v40, %v7989_v41  ;;  %v4100_v46 = vpop.f32.mrb[37].mxu1  ;;  %v7730_v47 = vpop.f32.mrb[38].mxu0  ;;  %v8389_v41 = vld [vmem:[%s8578_s29 + $0x268] sm:$0xff]  }
 0x131   : > { %v5015_v51 = vmax.f32 %v1763_v42, %v4100_v46  ;;  %v7990_v52 = vpop.f32.mrb[38].mxu1  ;;  %v1766_v53 = vpop.f32.mrb[39].mxu0  ;;  %v8390_v42 = vld [vmem:[%s8573_s26 + $0x270] sm:$0xff]  }
 0x132   : > { %v5280_v56 = vadd.f32 %v8807_v1, %v5017_v45  ;;  %v5018_v57 = vmax.f32 %v7730_v47, %v7990_v52  ;;  %v4103_v58 = vpop.f32.mrb[39].mxu1  ;;  %v8391_v47 = vld [vmem:[%s8578_s29 + $0x270] sm:$0xff]  }
 0x133   : > { %v5278_v60 = vadd.f32 %v8807_v1, %v5015_v51  ;;  %v5016_v61 = vmax.f32 %v1766_v53, %v4103_v58  ;;  %7836 = vmatmul.mubr.msk.bf16.gmra.mrb[144].mxu0 %vm1193_vm2, %v8380_v43 }
 0x134   : > { %v5536_v63 = vmax.f32 %v5280_v56, 0.0  ;;  %v5281_v0 = vadd.f32 %v8807_v1, %v5018_v57  ;;  %8096 = vmatmul.mubr.msk.bf16.gmra.mrb[144].mxu1 %vm1193_vm2, %v8381_v48  ;;  %7839 = vmatprep.mubr.msk.bf16.mxu0 %vm1193_vm2, %v8382_v49 }
 0x135   : > { %v5534_v3 = vmax.f32 %v5278_v60, 0.0  ;;  %v5279_v4 = vadd.f32 %v8807_v1, %v5016_v61  ;;  %8099 = vmatprep.mubr.msk.bf16.mxu1 %vm1193_vm2, %v8383_v54 }
 0x136   : > { %v5772_v6 = vmax.f32 %v5532_v62, %v5536_v63  ;;  %v5537_v7 = vmax.f32 %v5281_v0, 0.0  ;;  %v7733_v8 = vpop.f32.mrb[40].mxu0 }
 0x137   : > { %v5770_v10 = vmax.f32 %v5530_v2, %v5534_v3  ;;  %v5535_v11 = vmax.f32 %v5279_v4, 0.0  ;;  %v7993_v12 = vpop.f32.mrb[40].mxu1  ;;  %v1779_v13 = vpop.f32.mrb[41].mxu0 }
 0x138   : > { %v7317_v15 = vpack.c.bf16 %v5772_v6, %v5772_v6  ;;  %v5773_v16 = vmax.f32 %v5533_v5, %v5537_v7  ;;  %v5021_v17 = vmax.f32 %v7733_v8, %v7993_v12  ;;  %v4116_v18 = vpop.f32.mrb[41].mxu1  ;;  %v7734_v19 = vpop.f32.mrb[42].mxu0  ;;  %v8392_v7 = vld [vmem:[%s8573_s26 + $0x278] sm:$0xff]  }
 0x139   : > { %v7315_v22 = vpack.c.bf16 %v5770_v10, %v5770_v10  ;;  %v5771_v23 = vmax.f32 %v5531_v9, %v5535_v11  ;;  %v5019_v24 = vmax.f32 %v1779_v13, %v4116_v18  ;;  %v7994_v25 = vpop.f32.mrb[42].mxu1  ;;  %v1782_v26 = vpop.f32.mrb[43].mxu0  ;;  %v8393_v13 = vld [vmem:[%s8578_s29 + $0x278] sm:$0xff]  }
 0x13a   : > { %6413 = vst.msk [vmem:[%s8836_s9 + $0x48] sm:$0xf] %vm6394_vm3, %v7317_v15  ;;  %v7318_v28 = vpack.c.bf16 %v5773_v16, %v5773_v16  ;;  %v5022_v29 = vmax.f32 %v7734_v19, %v7994_v25  ;;  %v4119_v30 = vpop.f32.mrb[43].mxu1  ;;  %v5284_v37 = vadd.f32 %v8807_v1, %v5021_v17 }
 0x13b   : > { %6411 = vst.msk [vmem:[%s8836_s9 + $0x40] sm:$0xf] %vm6394_vm3, %v7315_v22  ;;  %v7316_v31 = vpack.c.bf16 %v5771_v23, %v5771_v23  ;;  %v5020_v32 = vmax.f32 %v1782_v26, %v4119_v30  ;;  %7840 = vmatmul.mubr.msk.bf16.gmra.mrb[148].mxu0 %vm1193_vm2, %v8384_v14  ;;  %v5282_v43 = vadd.f32 %v8807_v1, %v5019_v24  ;;  %v8394_v14 = vld [vmem:[%s8573_s26 + $0x280] sm:$0xff]  }
 0x13c   : > { %6414 = vst.msk [vmem:[%s8836_s9 + $0x4c] sm:$0xf] %vm6394_vm3, %v7318_v28  ;;  %8100 = vmatmul.mubr.msk.bf16.gmra.mrb[148].mxu1 %vm1193_vm2, %v8385_v20  ;;  %7843 = vmatprep.mubr.msk.bf16.mxu0 %vm1193_vm2, %v8386_v21  ;;  %v5285_v48 = vadd.f32 %v8807_v1, %v5022_v29  ;;  %v5540_v55 = vmax.f32 %v5284_v37, 0.0  ;;  %v8395_v20 = vld [vmem:[%s8578_s29 + $0x280] sm:$0xff]   ;;  %v8396_v29 = vld [vmem:[%s8573_s26 + $0x288] sm:$0xff]  }
 0x13d   : > { %6412 = vst.msk [vmem:[%s8836_s9 + $0x44] sm:$0xf] %vm6394_vm3, %v7316_v31  ;;  %8103 = vmatprep.mubr.msk.bf16.mxu1 %vm1193_vm2, %v8387_v27  ;;  %v5283_v52 = vadd.f32 %v8807_v1, %v5020_v32  ;;  %v5538_v58 = vmax.f32 %v5282_v43, 0.0 }
 0x13e   : > { %v7737_v33 = vpop.f32.mrb[44].mxu0  ;;  %v5541_v61 = vmax.f32 %v5285_v48, 0.0 }
 0x13f   : > { %v7997_v34 = vpop.f32.mrb[44].mxu1  ;;  %v1795_v35 = vpop.f32.mrb[45].mxu0  ;;  %v5539_v2 = vmax.f32 %v5283_v52, 0.0 }
 0x140   : > { %v5025_v38 = vmax.f32 %v7737_v33, %v7997_v34  ;;  %v4132_v39 = vpop.f32.mrb[45].mxu1  ;;  %v7738_v40 = vpop.f32.mrb[46].mxu0  ;;  %v8397_v34 = vld [vmem:[%s8578_s29 + $0x288] sm:$0xff]  }
 0x141   : > { %v5023_v44 = vmax.f32 %v1795_v35, %v4132_v39  ;;  %v7998_v45 = vpop.f32.mrb[46].mxu1  ;;  %v1798_v46 = vpop.f32.mrb[47].mxu0  ;;  %v8398_v35 = vld [vmem:[%s8573_s26 + $0x290] sm:$0xff]  }
 0x142   : > { %v5288_v49 = vadd.f32 %v8807_v1, %v5025_v38  ;;  %v5026_v50 = vmax.f32 %v7738_v40, %v7998_v45  ;;  %v4135_v51 = vpop.f32.mrb[47].mxu1  ;;  %v8399_v40 = vld [vmem:[%s8578_s29 + $0x290] sm:$0xff]  }
 0x143   : > { %v5286_v53 = vadd.f32 %v8807_v1, %v5023_v44  ;;  %v5024_v54 = vmax.f32 %v1798_v46, %v4135_v51  ;;  %7844 = vmatmul.mubr.msk.bf16.gmra.mrb[152].mxu0 %vm1193_vm2, %v8388_v36 }
 0x144   : > { %v5544_v56 = vmax.f32 %v5288_v49, 0.0  ;;  %v5289_v57 = vadd.f32 %v8807_v1, %v5026_v50  ;;  %8104 = vmatmul.mubr.msk.bf16.gmra.mrb[152].mxu1 %vm1193_vm2, %v8389_v41  ;;  %7847 = vmatprep.mubr.msk.bf16.mxu0 %vm1193_vm2, %v8390_v42 }
 0x145   : > { %v5542_v59 = vmax.f32 %v5286_v53, 0.0  ;;  %v5287_v60 = vadd.f32 %v8807_v1, %v5024_v54  ;;  %8107 = vmatprep.mubr.msk.bf16.mxu1 %vm1193_vm2, %v8391_v47 }
 0x146   : > { %v5776_v62 = vmax.f32 %v5540_v55, %v5544_v56  ;;  %v5545_v63 = vmax.f32 %v5289_v57, 0.0  ;;  %v7741_v0 = vpop.f32.mrb[48].mxu0 }
 0x147   : > { %v5774_v3 = vmax.f32 %v5538_v58, %v5542_v59  ;;  %v5543_v4 = vmax.f32 %v5287_v60, 0.0  ;;  %v8001_v5 = vpop.f32.mrb[48].mxu1  ;;  %v1811_v6 = vpop.f32.mrb[49].mxu0 }
 0x148   : > { %v7321_v8 = vpack.c.bf16 %v5776_v62, %v5776_v62  ;;  %v5777_v9 = vmax.f32 %v5541_v61, %v5545_v63  ;;  %v5029_v10 = vmax.f32 %v7741_v0, %v8001_v5  ;;  %v4148_v11 = vpop.f32.mrb[49].mxu1  ;;  %v7742_v12 = vpop.f32.mrb[50].mxu0  ;;  %v8400_v63 = vld [vmem:[%s8573_s26 + $0x298] sm:$0xff]  }
 0x149   : > { %v7319_v15 = vpack.c.bf16 %v5774_v3, %v5774_v3  ;;  %v5775_v16 = vmax.f32 %v5539_v2, %v5543_v4  ;;  %v5027_v17 = vmax.f32 %v1811_v6, %v4148_v11  ;;  %v8002_v18 = vpop.f32.mrb[50].mxu1  ;;  %v1814_v19 = vpop.f32.mrb[51].mxu0  ;;  %v8401_v5 = vld [vmem:[%s8578_s29 + $0x298] sm:$0xff]   ;;  %v8402_v6 = vld [vmem:[%s8573_s26 + $0x2a0] sm:$0xff]  }
 0x14a   : > { %6417 = vst.msk [vmem:[%s8836_s9 + $0x58] sm:$0xf] %vm6394_vm3, %v7321_v8  ;;  %v7322_v21 = vpack.c.bf16 %v5777_v9, %v5777_v9  ;;  %v5030_v22 = vmax.f32 %v7742_v12, %v8002_v18  ;;  %v4151_v23 = vpop.f32.mrb[51].mxu1  ;;  %v5292_v30 = vadd.f32 %v8807_v1, %v5029_v10  ;;  %v8403_v12 = vld [vmem:[%s8578_s29 + $0x2a0] sm:$0xff]  }
 0x14b   : > { %6415 = vst.msk [vmem:[%s8836_s9 + $0x50] sm:$0xf] %vm6394_vm3, %v7319_v15  ;;  %v7320_v24 = vpack.c.bf16 %v5775_v16, %v5775_v16  ;;  %v5028_v25 = vmax.f32 %v1814_v19, %v4151_v23  ;;  %7848 = vmatmul.mubr.msk.bf16.gmra.mrb[156].mxu0 %vm1193_vm2, %v8392_v7  ;;  %v5290_v36 = vadd.f32 %v8807_v1, %v5027_v17 }
 0x14c   : > { %6418 = vst.msk [vmem:[%s8836_s9 + $0x5c] sm:$0xf] %vm6394_vm3, %v7322_v21  ;;  %8108 = vmatmul.mubr.msk.bf16.gmra.mrb[156].mxu1 %vm1193_vm2, %v8393_v13  ;;  %7851 = vmatprep.mubr.msk.bf16.mxu0 %vm1193_vm2, %v8394_v14  ;;  %v5293_v41 = vadd.f32 %v8807_v1, %v5030_v22  ;;  %v5548_v48 = vmax.f32 %v5292_v30, 0.0  ;;  %v8404_v21 = vld [vmem:[%s8573_s26 + $0x2a8] sm:$0xff]   ;;  %v9047_v22 = vld [vmem:[%s9642_s3] ss:$0 sm:$0xff] }
 0x14d   : > { %6416 = vst.msk [vmem:[%s8836_s9 + $0x54] sm:$0xf] %vm6394_vm3, %v7320_v24  ;;  %8111 = vmatprep.mubr.msk.bf16.mxu1 %vm1193_vm2, %v8395_v20  ;;  %v5291_v45 = vadd.f32 %v8807_v1, %v5028_v25  ;;  %v5546_v51 = vmax.f32 %v5290_v36, 0.0 }
 0x14e   : > { %v7745_v26 = vpop.f32.mrb[52].mxu0  ;;  %v5549_v54 = vmax.f32 %v5293_v41, 0.0 }
 0x14f   : > { %v8005_v27 = vpop.f32.mrb[52].mxu1  ;;  %v1827_v28 = vpop.f32.mrb[53].mxu0  ;;  %v5547_v58 = vmax.f32 %v5291_v45, 0.0 }
 0x150   : > { %v5033_v31 = vmax.f32 %v7745_v26, %v8005_v27  ;;  %v4164_v32 = vpop.f32.mrb[53].mxu1  ;;  %v7746_v33 = vpop.f32.mrb[54].mxu0  ;;  %v8405_v27 = vld [vmem:[%s8578_s29 + $0x2a8] sm:$0xff]  }
 0x151   : > { %v5031_v37 = vmax.f32 %v1827_v28, %v4164_v32  ;;  %v8006_v38 = vpop.f32.mrb[54].mxu1  ;;  %v1830_v39 = vpop.f32.mrb[55].mxu0  ;;  %v8406_v28 = vld [vmem:[%s8573_s26 + $0x2b0] sm:$0xff]  }
 0x152   : > { %v5296_v42 = vadd.f32 %v8807_v1, %v5033_v31  ;;  %v5034_v43 = vmax.f32 %v7746_v33, %v8006_v38  ;;  %v4167_v44 = vpop.f32.mrb[55].mxu1  ;;  %v8407_v33 = vld [vmem:[%s8578_s29 + $0x2b0] sm:$0xff]  }
 0x153   : > { %v5294_v46 = vadd.f32 %v8807_v1, %v5031_v37  ;;  %v5032_v47 = vmax.f32 %v1830_v39, %v4167_v44  ;;  %7852 = vmatmul.mubr.msk.bf16.gmra.mrb[160].mxu0 %vm1193_vm2, %v8396_v29 }
 0x154   : > { %v5552_v49 = vmax.f32 %v5296_v42, 0.0  ;;  %v5297_v50 = vadd.f32 %v8807_v1, %v5034_v43  ;;  %8112 = vmatmul.mubr.msk.bf16.gmra.mrb[160].mxu1 %vm1193_vm2, %v8397_v34  ;;  %7855 = vmatprep.mubr.msk.bf16.mxu0 %vm1193_vm2, %v8398_v35 }
 0x155   : > { %v5550_v52 = vmax.f32 %v5294_v46, 0.0  ;;  %v5295_v53 = vadd.f32 %v8807_v1, %v5032_v47  ;;  %8115 = vmatprep.mubr.msk.bf16.mxu1 %vm1193_vm2, %v8399_v40 }
 0x156   : > { %v5780_v55 = vmax.f32 %v5548_v48, %v5552_v49  ;;  %v5553_v56 = vmax.f32 %v5297_v50, 0.0  ;;  %v7749_v57 = vpop.f32.mrb[56].mxu0 }
 0x157   : > { %v5778_v59 = vmax.f32 %v5546_v51, %v5550_v52  ;;  %v5551_v60 = vmax.f32 %v5295_v53, 0.0  ;;  %v8009_v61 = vpop.f32.mrb[56].mxu1  ;;  %v1843_v62 = vpop.f32.mrb[57].mxu0 }
 0x158   : > { %v7325_v0 = vpack.c.bf16 %v5780_v55, %v5780_v55  ;;  %v5781_v2 = vmax.f32 %v5549_v54, %v5553_v56  ;;  %v5037_v1 = vmax.f32 %v7749_v57, %v8009_v61  ;;  %v4180_v3 = vpop.f32.mrb[57].mxu1  ;;  %v7750_v4 = vpop.f32.mrb[58].mxu0  ;;  %v8408_v56 = vld [vmem:[%s8573_s26 + $0x2b8] sm:$0xff]  }
 0x159   : > { %v7323_v7 = vpack.c.bf16 %v5778_v59, %v5778_v59  ;;  %v5779_v8 = vmax.f32 %v5547_v58, %v5551_v60  ;;  %v5035_v9 = vmax.f32 %v1843_v62, %v4180_v3  ;;  %v8010_v10 = vpop.f32.mrb[58].mxu1  ;;  %v1846_v11 = vpop.f32.mrb[59].mxu0  ;;  %v8409_v62 = vld [vmem:[%s8578_s29 + $0x2b8] sm:$0xff]  }
 0x15a   : > { %6421 = vst.msk [vmem:[%s8836_s9 + $0x68] sm:$0xf] %vm6394_vm3, %v7325_v0  ;;  %v7326_v13 = vpack.c.bf16 %v5781_v2, %v5781_v2  ;;  %v5038_v14 = vmax.f32 %v7750_v4, %v8010_v10  ;;  %v4183_v15 = vpop.f32.mrb[59].mxu1  ;;  %v5300_v23 = vadd.f32 %v9047_v22, %v5037_v1 }
 0x15b   : > { %6419 = vst.msk [vmem:[%s8836_s9 + $0x60] sm:$0xf] %vm6394_vm3, %v7323_v7  ;;  %v7324_v16 = vpack.c.bf16 %v5779_v8, %v5779_v8  ;;  %v5036_v17 = vmax.f32 %v1846_v11, %v4183_v15  ;;  %7856 = vmatmul.mubr.msk.bf16.gmra.mrb[164].mxu0 %vm1193_vm2, %v8400_v63  ;;  %v5298_v29 = vadd.f32 %v9047_v22, %v5035_v9  ;;  %v8410_v63 = vld [vmem:[%s8573_s26 + $0x2c0] sm:$0xff]  }
 0x15c   : > { %6422 = vst.msk [vmem:[%s8836_s9 + $0x6c] sm:$0xf] %vm6394_vm3, %v7326_v13  ;;  %8116 = vmatmul.mubr.msk.bf16.gmra.mrb[164].mxu1 %vm1193_vm2, %v8401_v5  ;;  %7859 = vmatprep.mubr.msk.bf16.mxu0 %vm1193_vm2, %v8402_v6  ;;  %v5301_v34 = vadd.f32 %v9047_v22, %v5038_v14  ;;  %v5556_v41 = vmax.f32 %v5300_v23, 0.0  ;;  %v8411_v5 = vld [vmem:[%s8578_s29 + $0x2c0] sm:$0xff]   ;;  %v8412_v14 = vld [vmem:[%s8573_s26 + $0x2c8] sm:$0xff]  }
 0x15d   : > { %6420 = vst.msk [vmem:[%s8836_s9 + $0x64] sm:$0xf] %vm6394_vm3, %v7324_v16  ;;  %8119 = vmatprep.mubr.msk.bf16.mxu1 %vm1193_vm2, %v8403_v12  ;;  %v5299_v38 = vadd.f32 %v9047_v22, %v5036_v17  ;;  %v5554_v44 = vmax.f32 %v5298_v29, 0.0 }
 0x15e   : > { %v7753_v18 = vpop.f32.mrb[60].mxu0  ;;  %v5557_v47 = vmax.f32 %v5301_v34, 0.0 }
 0x15f   : > { %v8013_v19 = vpop.f32.mrb[60].mxu1  ;;  %v1859_v20 = vpop.f32.mrb[61].mxu0  ;;  %v5555_v51 = vmax.f32 %v5299_v38, 0.0 }
 0x160   : > { %v5041_v24 = vmax.f32 %v7753_v18, %v8013_v19  ;;  %v4196_v25 = vpop.f32.mrb[61].mxu1  ;;  %v7754_v26 = vpop.f32.mrb[62].mxu0  ;;  %v8413_v19 = vld [vmem:[%s8578_s29 + $0x2c8] sm:$0xff]  }
 0x161   : > { %v5039_v30 = vmax.f32 %v1859_v20, %v4196_v25  ;;  %v8014_v31 = vpop.f32.mrb[62].mxu1  ;;  %v1862_v32 = vpop.f32.mrb[63].mxu0  ;;  %v8414_v20 = vld [vmem:[%s8573_s26 + $0x2d0] sm:$0xff]  }
 0x162   : > { %v5304_v35 = vadd.f32 %v9047_v22, %v5041_v24  ;;  %v5042_v36 = vmax.f32 %v7754_v26, %v8014_v31  ;;  %v4199_v37 = vpop.f32.mrb[63].mxu1  ;;  %v8415_v26 = vld [vmem:[%s8578_s29 + $0x2d0] sm:$0xff]  }
 0x163   : > { %v5302_v39 = vadd.f32 %v9047_v22, %v5039_v30  ;;  %v5040_v40 = vmax.f32 %v1862_v32, %v4199_v37  ;;  %7860 = vmatmul.mubr.msk.bf16.gmra.mrb[168].mxu0 %vm1193_vm2, %v8404_v21 }
 0x164   : > { %v5560_v42 = vmax.f32 %v5304_v35, 0.0  ;;  %v5305_v43 = vadd.f32 %v9047_v22, %v5042_v36  ;;  %8120 = vmatmul.mubr.msk.bf16.gmra.mrb[168].mxu1 %vm1193_vm2, %v8405_v27  ;;  %7863 = vmatprep.mubr.msk.bf16.mxu0 %vm1193_vm2, %v8406_v28 }
 0x165   : > { %v5558_v45 = vmax.f32 %v5302_v39, 0.0  ;;  %v5303_v46 = vadd.f32 %v9047_v22, %v5040_v40  ;;  %8123 = vmatprep.mubr.msk.bf16.mxu1 %vm1193_vm2, %v8407_v33 }
 0x166   : > { %v5784_v48 = vmax.f32 %v5556_v41, %v5560_v42  ;;  %v5561_v49 = vmax.f32 %v5305_v43, 0.0  ;;  %v7757_v50 = vpop.f32.mrb[64].mxu0 }
 0x167   : > { %v5782_v52 = vmax.f32 %v5554_v44, %v5558_v45  ;;  %v5559_v53 = vmax.f32 %v5303_v46, 0.0  ;;  %v8017_v54 = vpop.f32.mrb[64].mxu1  ;;  %v1875_v55 = vpop.f32.mrb[65].mxu0 }
 0x168   : > { %v7329_v57 = vpack.c.bf16 %v5784_v48, %v5784_v48  ;;  %v5785_v58 = vmax.f32 %v5557_v47, %v5561_v49  ;;  %v5045_v59 = vmax.f32 %v7757_v50, %v8017_v54  ;;  %v4212_v60 = vpop.f32.mrb[65].mxu1  ;;  %v7758_v61 = vpop.f32.mrb[66].mxu0  ;;  %v8416_v49 = vld [vmem:[%s8573_s26 + $0x2d8] sm:$0xff]  }
 0x169   : > { %v7327_v0 = vpack.c.bf16 %v5782_v52, %v5782_v52  ;;  %v5783_v2 = vmax.f32 %v5555_v51, %v5559_v53  ;;  %v5043_v1 = vmax.f32 %v1875_v55, %v4212_v60  ;;  %v8018_v3 = vpop.f32.mrb[66].mxu1  ;;  %v1878_v4 = vpop.f32.mrb[67].mxu0  ;;  %v8417_v55 = vld [vmem:[%s8578_s29 + $0x2d8] sm:$0xff]  }
 0x16a   : > { %6425 = vst.msk [vmem:[%s8836_s9 + $0x78] sm:$0xf] %vm6394_vm3, %v7329_v57  ;;  %v7330_v6 = vpack.c.bf16 %v5785_v58, %v5785_v58  ;;  %v5046_v7 = vmax.f32 %v7758_v61, %v8018_v3  ;;  %v4215_v8 = vpop.f32.mrb[67].mxu1  ;;  %v5308_v15 = vadd.f32 %v9047_v22, %v5045_v59 }
 0x16b   : > { %6423 = vst.msk [vmem:[%s8836_s9 + $0x70] sm:$0xf] %vm6394_vm3, %v7327_v0  ;;  %v7328_v9 = vpack.c.bf16 %v5783_v2, %v5783_v2  ;;  %v5044_v10 = vmax.f32 %v1878_v4, %v4215_v8  ;;  %7864 = vmatmul.mubr.msk.bf16.gmra.mrb[172].mxu0 %vm1193_vm2, %v8408_v56  ;;  %v5306_v21 = vadd.f32 %v9047_v22, %v5043_v1  ;;  %v8418_v56 = vld [vmem:[%s8573_s26 + $0x2e0] sm:$0xff]  }
 0x16c   : > { %6426 = vst.msk [vmem:[%s8836_s9 + $0x7c] sm:$0xf] %vm6394_vm3, %v7330_v6  ;;  %8124 = vmatmul.mubr.msk.bf16.gmra.mrb[172].mxu1 %vm1193_vm2, %v8409_v62  ;;  %7867 = vmatprep.mubr.msk.bf16.mxu0 %vm1193_vm2, %v8410_v63  ;;  %v5309_v27 = vadd.f32 %v9047_v22, %v5046_v7  ;;  %v5564_v34 = vmax.f32 %v5308_v15, 0.0  ;;  %v8419_v62 = vld [vmem:[%s8578_s29 + $0x2e0] sm:$0xff]   ;;  %v8420_v7 = vld [vmem:[%s8573_s26 + $0x2e8] sm:$0xff]  }
 0x16d   : > { %6424 = vst.msk [vmem:[%s8836_s9 + $0x74] sm:$0xf] %vm6394_vm3, %v7328_v9  ;;  %8127 = vmatprep.mubr.msk.bf16.mxu1 %vm1193_vm2, %v8411_v5  ;;  %v5307_v31 = vadd.f32 %v9047_v22, %v5044_v10  ;;  %v5562_v37 = vmax.f32 %v5306_v21, 0.0 }
 0x16e   : > { %v7761_v11 = vpop.f32.mrb[68].mxu0  ;;  %v5565_v40 = vmax.f32 %v5309_v27, 0.0 }
 0x16f   : > { %v8021_v12 = vpop.f32.mrb[68].mxu1  ;;  %v1891_v13 = vpop.f32.mrb[69].mxu0  ;;  %v5563_v44 = vmax.f32 %v5307_v31, 0.0 }
 0x170   : > { %v5049_v16 = vmax.f32 %v7761_v11, %v8021_v12  ;;  %v4228_v17 = vpop.f32.mrb[69].mxu1  ;;  %v7762_v18 = vpop.f32.mrb[70].mxu0  ;;  %v8421_v12 = vld [vmem:[%s8578_s29 + $0x2e8] sm:$0xff]  }
 0x171   : > { %v5047_v23 = vmax.f32 %v1891_v13, %v4228_v17  ;;  %v8022_v24 = vpop.f32.mrb[70].mxu1  ;;  %v1894_v25 = vpop.f32.mrb[71].mxu0  ;;  %v8422_v13 = vld [vmem:[%s8573_s26 + $0x2f0] sm:$0xff]  }
 0x172   : > { %v5312_v28 = vadd.f32 %v9047_v22, %v5049_v16  ;;  %v5050_v29 = vmax.f32 %v7762_v18, %v8022_v24  ;;  %v4231_v30 = vpop.f32.mrb[71].mxu1  ;;  %v8423_v18 = vld [vmem:[%s8578_s29 + $0x2f0] sm:$0xff]  }
 0x173   : > { %v5310_v32 = vadd.f32 %v9047_v22, %v5047_v23  ;;  %v5048_v33 = vmax.f32 %v1894_v25, %v4231_v30  ;;  %7868 = vmatmul.mubr.msk.bf16.gmra.mrb[176].mxu0 %vm1193_vm2, %v8412_v14 }
 0x174   : > { %v5568_v35 = vmax.f32 %v5312_v28, 0.0  ;;  %v5313_v36 = vadd.f32 %v9047_v22, %v5050_v29  ;;  %8128 = vmatmul.mubr.msk.bf16.gmra.mrb[176].mxu1 %vm1193_vm2, %v8413_v19  ;;  %7871 = vmatprep.mubr.msk.bf16.mxu0 %vm1193_vm2, %v8414_v20 }
 0x175   : > { %v5566_v38 = vmax.f32 %v5310_v32, 0.0  ;;  %v5311_v39 = vadd.f32 %v9047_v22, %v5048_v33  ;;  %8131 = vmatprep.mubr.msk.bf16.mxu1 %vm1193_vm2, %v8415_v26 }
 0x176   : > { %v5788_v41 = vmax.f32 %v5564_v34, %v5568_v35  ;;  %v5569_v42 = vmax.f32 %v5313_v36, 0.0  ;;  %v7765_v43 = vpop.f32.mrb[72].mxu0 }
 0x177   : > { %v5786_v45 = vmax.f32 %v5562_v37, %v5566_v38  ;;  %v5567_v46 = vmax.f32 %v5311_v39, 0.0  ;;  %v8025_v47 = vpop.f32.mrb[72].mxu1  ;;  %v1907_v48 = vpop.f32.mrb[73].mxu0 }
 0x178   : > { %v7333_v50 = vpack.c.bf16 %v5788_v41, %v5788_v41  ;;  %v5789_v51 = vmax.f32 %v5565_v40, %v5569_v42  ;;  %v5053_v52 = vmax.f32 %v7765_v43, %v8025_v47  ;;  %v4244_v53 = vpop.f32.mrb[73].mxu1  ;;  %v7766_v54 = vpop.f32.mrb[74].mxu0  ;;  %v8424_v42 = vld [vmem:[%s8573_s26 + $0x2f8] sm:$0xff]  }
 0x179   : > { %v7331_v57 = vpack.c.bf16 %v5786_v45, %v5786_v45  ;;  %v5787_v58 = vmax.f32 %v5563_v44, %v5567_v46  ;;  %v5051_v59 = vmax.f32 %v1907_v48, %v4244_v53  ;;  %v8026_v60 = vpop.f32.mrb[74].mxu1  ;;  %v1910_v61 = vpop.f32.mrb[75].mxu0  ;;  %v8425_v48 = vld [vmem:[%s8578_s29 + $0x2f8] sm:$0xff]  }
 0x17a   : > { %6429 = vst.msk [vmem:[%s8836_s9 + $0x88] sm:$0xf] %vm6394_vm3, %v7333_v50  ;;  %v7334_v63 = vpack.c.bf16 %v5789_v51, %v5789_v51  ;;  %v5054_v0 = vmax.f32 %v7766_v54, %v8026_v60  ;;  %v4247_v2 = vpop.f32.mrb[75].mxu1  ;;  %v5316_v8 = vadd.f32 %v9047_v22, %v5053_v52 }
 0x17b   : > { %6427 = vst.msk [vmem:[%s8836_s9 + $0x80] sm:$0xf] %vm6394_vm3, %v7331_v57  ;;  %v7332_v1 = vpack.c.bf16 %v5787_v58, %v5787_v58  ;;  %v5052_v3 = vmax.f32 %v1910_v61, %v4247_v2  ;;  %7872 = vmatmul.mubr.msk.bf16.gmra.mrb[180].mxu0 %vm1193_vm2, %v8416_v49  ;;  %v5314_v14 = vadd.f32 %v9047_v22, %v5051_v59  ;;  %v8426_v49 = vld [vmem:[%s8573_s26 + $0x300] sm:$0xff]  }
 0x17c   : > { %6430 = vst.msk [vmem:[%s8836_s9 + $0x8c] sm:$0xf] %vm6394_vm3, %v7334_v63  ;;  %8132 = vmatmul.mubr.msk.bf16.gmra.mrb[180].mxu1 %vm1193_vm2, %v8417_v55  ;;  %7875 = vmatprep.mubr.msk.bf16.mxu0 %vm1193_vm2, %v8418_v56  ;;  %v5317_v19 = vadd.f32 %v9047_v22, %v5054_v0  ;;  %v5572_v27 = vmax.f32 %v5316_v8, 0.0  ;;  %v8427_v55 = vld [vmem:[%s8578_s29 + $0x300] sm:$0xff]   ;;  %v8428_v0 = vld [vmem:[%s8573_s26 + $0x308] sm:$0xff]  }
 0x17d   : > { %6428 = vst.msk [vmem:[%s8836_s9 + $0x84] sm:$0xf] %vm6394_vm3, %v7332_v1  ;;  %8135 = vmatprep.mubr.msk.bf16.mxu1 %vm1193_vm2, %v8419_v62  ;;  %v5315_v24 = vadd.f32 %v9047_v22, %v5052_v3  ;;  %v5570_v30 = vmax.f32 %v5314_v14, 0.0 }
 0x17e   : > { %v7769_v4 = vpop.f32.mrb[76].mxu0  ;;  %v5573_v33 = vmax.f32 %v5317_v19, 0.0 }
 0x17f   : > { %v8029_v5 = vpop.f32.mrb[76].mxu1  ;;  %v1923_v6 = vpop.f32.mrb[77].mxu0  ;;  %v5571_v37 = vmax.f32 %v5315_v24, 0.0 }
 0x180   : > { %v5057_v9 = vmax.f32 %v7769_v4, %v8029_v5  ;;  %v4260_v10 = vpop.f32.mrb[77].mxu1  ;;  %v7770_v11 = vpop.f32.mrb[78].mxu0  ;;  %v8429_v5 = vld [vmem:[%s8578_s29 + $0x308] sm:$0xff]  }
 0x181   : > { %v5055_v15 = vmax.f32 %v1923_v6, %v4260_v10  ;;  %v8030_v16 = vpop.f32.mrb[78].mxu1  ;;  %v1926_v17 = vpop.f32.mrb[79].mxu0  ;;  %v8430_v6 = vld [vmem:[%s8573_s26 + $0x310] sm:$0xff]  }
 0x182   : > { %v5320_v20 = vadd.f32 %v9047_v22, %v5057_v9  ;;  %v5058_v21 = vmax.f32 %v7770_v11, %v8030_v16  ;;  %v4263_v23 = vpop.f32.mrb[79].mxu1  ;;  %v8431_v11 = vld [vmem:[%s8578_s29 + $0x310] sm:$0xff]  }
 0x183   : > { %v5318_v25 = vadd.f32 %v9047_v22, %v5055_v15  ;;  %v5056_v26 = vmax.f32 %v1926_v17, %v4263_v23  ;;  %7876 = vmatmul.mubr.msk.bf16.gmra.mrb[184].mxu0 %vm1193_vm2, %v8420_v7 }
 0x184   : > { %v5576_v28 = vmax.f32 %v5320_v20, 0.0  ;;  %v5321_v29 = vadd.f32 %v9047_v22, %v5058_v21  ;;  %8136 = vmatmul.mubr.msk.bf16.gmra.mrb[184].mxu1 %vm1193_vm2, %v8421_v12  ;;  %7879 = vmatprep.mubr.msk.bf16.mxu0 %vm1193_vm2, %v8422_v13 }
 0x185   : > { %v5574_v31 = vmax.f32 %v5318_v25, 0.0  ;;  %v5319_v32 = vadd.f32 %v9047_v22, %v5056_v26  ;;  %8139 = vmatprep.mubr.msk.bf16.mxu1 %vm1193_vm2, %v8423_v18 }
 0x186   : > { %v5792_v34 = vmax.f32 %v5572_v27, %v5576_v28  ;;  %v5577_v35 = vmax.f32 %v5321_v29, 0.0  ;;  %v7773_v36 = vpop.f32.mrb[80].mxu0 }
 0x187   : > { %v5790_v38 = vmax.f32 %v5570_v30, %v5574_v31  ;;  %v5575_v39 = vmax.f32 %v5319_v32, 0.0  ;;  %v8033_v40 = vpop.f32.mrb[80].mxu1  ;;  %v1939_v41 = vpop.f32.mrb[81].mxu0 }
 0x188   : > { %v7337_v43 = vpack.c.bf16 %v5792_v34, %v5792_v34  ;;  %v5793_v44 = vmax.f32 %v5573_v33, %v5577_v35  ;;  %v5061_v45 = vmax.f32 %v7773_v36, %v8033_v40  ;;  %v4276_v46 = vpop.f32.mrb[81].mxu1  ;;  %v7774_v47 = vpop.f32.mrb[82].mxu0  ;;  %v8432_v35 = vld [vmem:[%s8573_s26 + $0x318] sm:$0xff]  }
 0x189   : > { %v7335_v50 = vpack.c.bf16 %v5790_v38, %v5790_v38  ;;  %v5791_v51 = vmax.f32 %v5571_v37, %v5575_v39  ;;  %v5059_v52 = vmax.f32 %v1939_v41, %v4276_v46  ;;  %v8034_v53 = vpop.f32.mrb[82].mxu1  ;;  %v1942_v54 = vpop.f32.mrb[83].mxu0  ;;  %v8433_v41 = vld [vmem:[%s8578_s29 + $0x318] sm:$0xff]  }
 0x18a   : > { %6433 = vst.msk [vmem:[%s8836_s9 + $0x98] sm:$0xf] %vm6394_vm3, %v7337_v43  ;;  %v7338_v56 = vpack.c.bf16 %v5793_v44, %v5793_v44  ;;  %v5062_v57 = vmax.f32 %v7774_v47, %v8034_v53  ;;  %v4279_v58 = vpop.f32.mrb[83].mxu1  ;;  %v5324_v2 = vadd.f32 %v9047_v22, %v5061_v45 }
 0x18b   : > { %6431 = vst.msk [vmem:[%s8836_s9 + $0x90] sm:$0xf] %vm6394_vm3, %v7335_v50  ;;  %v7336_v59 = vpack.c.bf16 %v5791_v51, %v5791_v51  ;;  %v5060_v60 = vmax.f32 %v1942_v54, %v4279_v58  ;;  %7880 = vmatmul.mubr.msk.bf16.gmra.mrb[188].mxu0 %vm1193_vm2, %v8424_v42  ;;  %v5322_v7 = vadd.f32 %v9047_v22, %v5059_v52  ;;  %v8434_v42 = vld [vmem:[%s8573_s26 + $0x320] sm:$0xff]  }
 0x18c   : > { %6434 = vst.msk [vmem:[%s8836_s9 + $0x9c] sm:$0xf] %vm6394_vm3, %v7338_v56  ;;  %8140 = vmatmul.mubr.msk.bf16.gmra.mrb[188].mxu1 %vm1193_vm2, %v8425_v48  ;;  %7883 = vmatprep.mubr.msk.bf16.mxu0 %vm1193_vm2, %v8426_v49  ;;  %v5325_v12 = vadd.f32 %v9047_v22, %v5062_v57  ;;  %v5580_v19 = vmax.f32 %v5324_v2, 0.0  ;;  %v8435_v48 = vld [vmem:[%s8578_s29 + $0x320] sm:$0xff]   ;;  %v8436_v57 = vld [vmem:[%s8573_s26 + $0x328] sm:$0xff]  }
 0x18d   : > { %6432 = vst.msk [vmem:[%s8836_s9 + $0x94] sm:$0xf] %vm6394_vm3, %v7336_v59  ;;  %8143 = vmatprep.mubr.msk.bf16.mxu1 %vm1193_vm2, %v8427_v55  ;;  %v5323_v16 = vadd.f32 %v9047_v22, %v5060_v60  ;;  %v5578_v23 = vmax.f32 %v5322_v7, 0.0 }
 0x18e   : > { %v7777_v61 = vpop.f32.mrb[84].mxu0  ;;  %v5581_v26 = vmax.f32 %v5325_v12, 0.0 }
 0x18f   : > { %v8037_v62 = vpop.f32.mrb[84].mxu1  ;;  %v1955_v63 = vpop.f32.mrb[85].mxu0  ;;  %v5579_v30 = vmax.f32 %v5323_v16, 0.0 }
 0x190   : > { %v5065_v1 = vmax.f32 %v7777_v61, %v8037_v62  ;;  %v4292_v3 = vpop.f32.mrb[85].mxu1  ;;  %v7778_v4 = vpop.f32.mrb[86].mxu0  ;;  %v8437_v62 = vld [vmem:[%s8578_s29 + $0x328] sm:$0xff]  }
 0x191   : > { %v5063_v8 = vmax.f32 %v1955_v63, %v4292_v3  ;;  %v8038_v9 = vpop.f32.mrb[86].mxu1  ;;  %v1958_v10 = vpop.f32.mrb[87].mxu0  ;;  %v8438_v63 = vld [vmem:[%s8573_s26 + $0x330] sm:$0xff]  }
 0x192   : > { %v5328_v13 = vadd.f32 %v9047_v22, %v5065_v1  ;;  %v5066_v14 = vmax.f32 %v7778_v4, %v8038_v9  ;;  %v4295_v15 = vpop.f32.mrb[87].mxu1  ;;  %v8439_v4 = vld [vmem:[%s8578_s29 + $0x330] sm:$0xff]  }
 0x193   : > { %v5326_v17 = vadd.f32 %v9047_v22, %v5063_v8  ;;  %v5064_v18 = vmax.f32 %v1958_v10, %v4295_v15  ;;  %7884 = vmatmul.mubr.msk.bf16.gmra.mrb[192].mxu0 %vm1193_vm2, %v8428_v0 }
 0x194   : > { %v5584_v20 = vmax.f32 %v5328_v13, 0.0  ;;  %v5329_v21 = vadd.f32 %v9047_v22, %v5066_v14  ;;  %8144 = vmatmul.mubr.msk.bf16.gmra.mrb[192].mxu1 %vm1193_vm2, %v8429_v5  ;;  %7887 = vmatprep.mubr.msk.bf16.mxu0 %vm1193_vm2, %v8430_v6 }
 0x195   : > { %v5582_v24 = vmax.f32 %v5326_v17, 0.0  ;;  %v5327_v25 = vadd.f32 %v9047_v22, %v5064_v18  ;;  %8147 = vmatprep.mubr.msk.bf16.mxu1 %vm1193_vm2, %v8431_v11 }
 0x196   : > { %v5796_v27 = vmax.f32 %v5580_v19, %v5584_v20  ;;  %v5585_v28 = vmax.f32 %v5329_v21, 0.0  ;;  %v7781_v29 = vpop.f32.mrb[88].mxu0 }
 0x197   : > { %v5794_v31 = vmax.f32 %v5578_v23, %v5582_v24  ;;  %v5583_v32 = vmax.f32 %v5327_v25, 0.0  ;;  %v8041_v33 = vpop.f32.mrb[88].mxu1  ;;  %v1971_v34 = vpop.f32.mrb[89].mxu0 }
 0x198   : > { %v7341_v36 = vpack.c.bf16 %v5796_v27, %v5796_v27  ;;  %v5797_v37 = vmax.f32 %v5581_v26, %v5585_v28  ;;  %v5069_v38 = vmax.f32 %v7781_v29, %v8041_v33  ;;  %v4308_v39 = vpop.f32.mrb[89].mxu1  ;;  %v7782_v40 = vpop.f32.mrb[90].mxu0  ;;  %v8440_v28 = vld [vmem:[%s8573_s26 + $0x338] sm:$0xff]  }
 0x199   : > { %v7339_v43 = vpack.c.bf16 %v5794_v31, %v5794_v31  ;;  %v5795_v44 = vmax.f32 %v5579_v30, %v5583_v32  ;;  %v5067_v45 = vmax.f32 %v1971_v34, %v4308_v39  ;;  %v8042_v46 = vpop.f32.mrb[90].mxu1  ;;  %v1974_v47 = vpop.f32.mrb[91].mxu0  ;;  %v8441_v34 = vld [vmem:[%s8578_s29 + $0x338] sm:$0xff]  }
 0x19a   : > { %6437 = vst.msk [vmem:[%s8836_s9 + $0xa8] sm:$0xf] %vm6394_vm3, %v7341_v36  ;;  %v7342_v49 = vpack.c.bf16 %v5797_v37, %v5797_v37  ;;  %v5070_v50 = vmax.f32 %v7782_v40, %v8042_v46  ;;  %v4311_v51 = vpop.f32.mrb[91].mxu1  ;;  %v5332_v58 = vadd.f32 %v9047_v22, %v5069_v38 }
 0x19b   : > { %6435 = vst.msk [vmem:[%s8836_s9 + $0xa0] sm:$0xf] %vm6394_vm3, %v7339_v43  ;;  %v7340_v52 = vpack.c.bf16 %v5795_v44, %v5795_v44  ;;  %v5068_v53 = vmax.f32 %v1974_v47, %v4311_v51  ;;  %7888 = vmatmul.mubr.msk.bf16.gmra.mrb[196].mxu0 %vm1193_vm2, %v8432_v35  ;;  %v5330_v0 = vadd.f32 %v9047_v22, %v5067_v45  ;;  %v8442_v35 = vld [vmem:[%s8573_s26 + $0x340] sm:$0xff]  }
 0x19c   : > { %6438 = vst.msk [vmem:[%s8836_s9 + $0xac] sm:$0xf] %vm6394_vm3, %v7342_v49  ;;  %8148 = vmatmul.mubr.msk.bf16.gmra.mrb[196].mxu1 %vm1193_vm2, %v8433_v41  ;;  %7891 = vmatprep.mubr.msk.bf16.mxu0 %vm1193_vm2, %v8434_v42  ;;  %v5333_v5 = vadd.f32 %v9047_v22, %v5070_v50  ;;  %v5588_v12 = vmax.f32 %v5332_v58, 0.0  ;;  %v8443_v41 = vld [vmem:[%s8578_s29 + $0x340] sm:$0xff]   ;;  %v8444_v50 = vld [vmem:[%s8573_s26 + $0x348] sm:$0xff]  }
 0x19d   : > { %6436 = vst.msk [vmem:[%s8836_s9 + $0xa4] sm:$0xf] %vm6394_vm3, %v7340_v52  ;;  %8151 = vmatprep.mubr.msk.bf16.mxu1 %vm1193_vm2, %v8435_v48  ;;  %v5331_v9 = vadd.f32 %v9047_v22, %v5068_v53  ;;  %v5586_v15 = vmax.f32 %v5330_v0, 0.0 }
 0x19e   : > { %v7785_v54 = vpop.f32.mrb[92].mxu0  ;;  %v5589_v18 = vmax.f32 %v5333_v5, 0.0 }
 0x19f   : > { %v8045_v55 = vpop.f32.mrb[92].mxu1  ;;  %v1987_v56 = vpop.f32.mrb[93].mxu0  ;;  %v5587_v23 = vmax.f32 %v5331_v9, 0.0 }
 0x1a0   : > { %v5073_v59 = vmax.f32 %v7785_v54, %v8045_v55  ;;  %v4324_v60 = vpop.f32.mrb[93].mxu1  ;;  %v7786_v61 = vpop.f32.mrb[94].mxu0  ;;  %v8445_v55 = vld [vmem:[%s8578_s29 + $0x348] sm:$0xff]  }
 0x1a1   : > { %v5071_v2 = vmax.f32 %v1987_v56, %v4324_v60  ;;  %v8046_v1 = vpop.f32.mrb[94].mxu1  ;;  %v1990_v3 = vpop.f32.mrb[95].mxu0  ;;  %v8446_v56 = vld [vmem:[%s8573_s26 + $0x350] sm:$0xff]  }
 0x1a2   : > { %v5336_v6 = vadd.f32 %v9047_v22, %v5073_v59  ;;  %v5074_v7 = vmax.f32 %v7786_v61, %v8046_v1  ;;  %v4327_v8 = vpop.f32.mrb[95].mxu1  ;;  %v8447_v61 = vld [vmem:[%s8578_s29 + $0x350] sm:$0xff]  }
 0x1a3   : > { %v5334_v10 = vadd.f32 %v9047_v22, %v5071_v2  ;;  %v5072_v11 = vmax.f32 %v1990_v3, %v4327_v8  ;;  %7892 = vmatmul.mubr.msk.bf16.gmra.mrb[200].mxu0 %vm1193_vm2, %v8436_v57 }
 0x1a4   : > { %v5592_v13 = vmax.f32 %v5336_v6, 0.0  ;;  %v5337_v14 = vadd.f32 %v9047_v22, %v5074_v7  ;;  %8152 = vmatmul.mubr.msk.bf16.gmra.mrb[200].mxu1 %vm1193_vm2, %v8437_v62  ;;  %7895 = vmatprep.mubr.msk.bf16.mxu0 %vm1193_vm2, %v8438_v63 }
 0x1a5   : > { %v5590_v16 = vmax.f32 %v5334_v10, 0.0  ;;  %v5335_v17 = vadd.f32 %v9047_v22, %v5072_v11  ;;  %8155 = vmatprep.mubr.msk.bf16.mxu1 %vm1193_vm2, %v8439_v4 }
 0x1a6   : > { %v5800_v19 = vmax.f32 %v5588_v12, %v5592_v13  ;;  %v5593_v20 = vmax.f32 %v5337_v14, 0.0  ;;  %v7789_v21 = vpop.f32.mrb[96].mxu0 }
 0x1a7   : > { %v5798_v24 = vmax.f32 %v5586_v15, %v5590_v16  ;;  %v5591_v25 = vmax.f32 %v5335_v17, 0.0  ;;  %v8049_v26 = vpop.f32.mrb[96].mxu1  ;;  %v2003_v27 = vpop.f32.mrb[97].mxu0 }
 0x1a8   : > { %v7345_v29 = vpack.c.bf16 %v5800_v19, %v5800_v19  ;;  %v5801_v30 = vmax.f32 %v5589_v18, %v5593_v20  ;;  %v5077_v31 = vmax.f32 %v7789_v21, %v8049_v26  ;;  %v4340_v32 = vpop.f32.mrb[97].mxu1  ;;  %v7790_v33 = vpop.f32.mrb[98].mxu0  ;;  %v8448_v20 = vld [vmem:[%s8573_s26 + $0x358] sm:$0xff]  }
 0x1a9   : > { %v7343_v36 = vpack.c.bf16 %v5798_v24, %v5798_v24  ;;  %v5799_v37 = vmax.f32 %v5587_v23, %v5591_v25  ;;  %v5075_v38 = vmax.f32 %v2003_v27, %v4340_v32  ;;  %v8050_v39 = vpop.f32.mrb[98].mxu1  ;;  %v2006_v40 = vpop.f32.mrb[99].mxu0  ;;  %v8449_v27 = vld [vmem:[%s8578_s29 + $0x358] sm:$0xff]  }
 0x1aa   : > { %6441 = vst.msk [vmem:[%s8836_s9 + $0xb8] sm:$0xf] %vm6394_vm3, %v7345_v29  ;;  %v7346_v42 = vpack.c.bf16 %v5801_v30, %v5801_v30  ;;  %v5078_v43 = vmax.f32 %v7790_v33, %v8050_v39  ;;  %v4343_v44 = vpop.f32.mrb[99].mxu1  ;;  %v5340_v51 = vadd.f32 %v9047_v22, %v5077_v31 }
 0x1ab   : > { %6439 = vst.msk [vmem:[%s8836_s9 + $0xb0] sm:$0xf] %vm6394_vm3, %v7343_v36  ;;  %v7344_v45 = vpack.c.bf16 %v5799_v37, %v5799_v37  ;;  %v5076_v46 = vmax.f32 %v2006_v40, %v4343_v44  ;;  %7896 = vmatmul.mubr.msk.bf16.gmra.mrb[204].mxu0 %vm1193_vm2, %v8440_v28  ;;  %v5338_v57 = vadd.f32 %v9047_v22, %v5075_v38  ;;  %v8450_v28 = vld [vmem:[%s8573_s26 + $0x360] sm:$0xff]  }
 0x1ac   : > { %6442 = vst.msk [vmem:[%s8836_s9 + $0xbc] sm:$0xf] %vm6394_vm3, %v7346_v42  ;;  %8156 = vmatmul.mubr.msk.bf16.gmra.mrb[204].mxu1 %vm1193_vm2, %v8441_v34  ;;  %7899 = vmatprep.mubr.msk.bf16.mxu0 %vm1193_vm2, %v8442_v35  ;;  %v5341_v62 = vadd.f32 %v9047_v22, %v5078_v43  ;;  %v5596_v5 = vmax.f32 %v5340_v51, 0.0  ;;  %v8451_v34 = vld [vmem:[%s8578_s29 + $0x360] sm:$0xff]   ;;  %v8452_v43 = vld [vmem:[%s8573_s26 + $0x368] sm:$0xff]  }
 0x1ad   : > { %6440 = vst.msk [vmem:[%s8836_s9 + $0xb4] sm:$0xf] %vm6394_vm3, %v7344_v45  ;;  %8159 = vmatprep.mubr.msk.bf16.mxu1 %vm1193_vm2, %v8443_v41  ;;  %v5339_v1 = vadd.f32 %v9047_v22, %v5076_v46  ;;  %v5594_v8 = vmax.f32 %v5338_v57, 0.0 }
 0x1ae   : > { %v7793_v47 = vpop.f32.mrb[100].mxu0  ;;  %v5597_v11 = vmax.f32 %v5341_v62, 0.0 }
 0x1af   : > { %v8053_v48 = vpop.f32.mrb[100].mxu1  ;;  %v2019_v49 = vpop.f32.mrb[101].mxu0  ;;  %v5595_v15 = vmax.f32 %v5339_v1, 0.0 }
 0x1b0   : > { %v5081_v52 = vmax.f32 %v7793_v47, %v8053_v48  ;;  %v4356_v53 = vpop.f32.mrb[101].mxu1  ;;  %v7794_v54 = vpop.f32.mrb[102].mxu0  ;;  %v8453_v48 = vld [vmem:[%s8578_s29 + $0x368] sm:$0xff]  }
 0x1b1   : > { %v5079_v58 = vmax.f32 %v2019_v49, %v4356_v53  ;;  %v8054_v59 = vpop.f32.mrb[102].mxu1  ;;  %v2022_v60 = vpop.f32.mrb[103].mxu0  ;;  %v8454_v49 = vld [vmem:[%s8573_s26 + $0x370] sm:$0xff]  }
 0x1b2   : > { %v5344_v63 = vadd.f32 %v9047_v22, %v5081_v52  ;;  %v5082_v0 = vmax.f32 %v7794_v54, %v8054_v59  ;;  %v4359_v2 = vpop.f32.mrb[103].mxu1  ;;  %v8455_v54 = vld [vmem:[%s8578_s29 + $0x370] sm:$0xff]  }
 0x1b3   : > { %v5342_v3 = vadd.f32 %v9047_v22, %v5079_v58  ;;  %v5080_v4 = vmax.f32 %v2022_v60, %v4359_v2  ;;  %7900 = vmatmul.mubr.msk.bf16.gmra.mrb[208].mxu0 %vm1193_vm2, %v8444_v50 }
 0x1b4   : > { %v5600_v6 = vmax.f32 %v5344_v63, 0.0  ;;  %v5345_v7 = vadd.f32 %v9047_v22, %v5082_v0  ;;  %8160 = vmatmul.mubr.msk.bf16.gmra.mrb[208].mxu1 %vm1193_vm2, %v8445_v55  ;;  %7903 = vmatprep.mubr.msk.bf16.mxu0 %vm1193_vm2, %v8446_v56 }
 0x1b5   : > { %v5598_v9 = vmax.f32 %v5342_v3, 0.0  ;;  %v5343_v10 = vadd.f32 %v9047_v22, %v5080_v4  ;;  %8163 = vmatprep.mubr.msk.bf16.mxu1 %vm1193_vm2, %v8447_v61 }
 0x1b6   : > { %v5804_v12 = vmax.f32 %v5596_v5, %v5600_v6  ;;  %v5601_v13 = vmax.f32 %v5345_v7, 0.0  ;;  %v7797_v14 = vpop.f32.mrb[104].mxu0 }
 0x1b7   : > { %v5802_v16 = vmax.f32 %v5594_v8, %v5598_v9  ;;  %v5599_v17 = vmax.f32 %v5343_v10, 0.0  ;;  %v8057_v18 = vpop.f32.mrb[104].mxu1  ;;  %v2035_v19 = vpop.f32.mrb[105].mxu0 }
 0x1b8   : > { %v7349_v21 = vpack.c.bf16 %v5804_v12, %v5804_v12  ;;  %v5805_v23 = vmax.f32 %v5597_v11, %v5601_v13  ;;  %v5085_v24 = vmax.f32 %v7797_v14, %v8057_v18  ;;  %v4372_v25 = vpop.f32.mrb[105].mxu1  ;;  %v7798_v26 = vpop.f32.mrb[106].mxu0  ;;  %v8456_v13 = vld [vmem:[%s8573_s26 + $0x378] sm:$0xff]  }
 0x1b9   : > { %v7347_v29 = vpack.c.bf16 %v5802_v16, %v5802_v16  ;;  %v5803_v30 = vmax.f32 %v5595_v15, %v5599_v17  ;;  %v5083_v31 = vmax.f32 %v2035_v19, %v4372_v25  ;;  %v8058_v32 = vpop.f32.mrb[106].mxu1  ;;  %v2038_v33 = vpop.f32.mrb[107].mxu0  ;;  %v8457_v19 = vld [vmem:[%s8578_s29 + $0x378] sm:$0xff]  }
 0x1ba   : > { %6445 = vst.msk [vmem:[%s8836_s9 + $0xc8] sm:$0xf] %vm6394_vm3, %v7349_v21  ;;  %v7350_v35 = vpack.c.bf16 %v5805_v23, %v5805_v23  ;;  %v5086_v36 = vmax.f32 %v7798_v26, %v8058_v32  ;;  %v4375_v37 = vpop.f32.mrb[107].mxu1  ;;  %v5348_v44 = vadd.f32 %v9047_v22, %v5085_v24 }
 0x1bb   : > { %6443 = vst.msk [vmem:[%s8836_s9 + $0xc0] sm:$0xf] %vm6394_vm3, %v7347_v29  ;;  %v7348_v38 = vpack.c.bf16 %v5803_v30, %v5803_v30  ;;  %v5084_v39 = vmax.f32 %v2038_v33, %v4375_v37  ;;  %7904 = vmatmul.mubr.msk.bf16.gmra.mrb[212].mxu0 %vm1193_vm2, %v8448_v20  ;;  %v5346_v50 = vadd.f32 %v9047_v22, %v5083_v31  ;;  %v8458_v20 = vld [vmem:[%s8573_s26 + $0x380] sm:$0xff]  }
 0x1bc   : > { %6446 = vst.msk [vmem:[%s8836_s9 + $0xcc] sm:$0xf] %vm6394_vm3, %v7350_v35  ;;  %8164 = vmatmul.mubr.msk.bf16.gmra.mrb[212].mxu1 %vm1193_vm2, %v8449_v27  ;;  %7907 = vmatprep.mubr.msk.bf16.mxu0 %vm1193_vm2, %v8450_v28  ;;  %v5349_v55 = vadd.f32 %v9047_v22, %v5086_v36  ;;  %v5604_v62 = vmax.f32 %v5348_v44, 0.0  ;;  %v8459_v27 = vld [vmem:[%s8578_s29 + $0x380] sm:$0xff]   ;;  %v8460_v36 = vld [vmem:[%s8573_s26 + $0x388] sm:$0xff]  }
 0x1bd   : > { %6444 = vst.msk [vmem:[%s8836_s9 + $0xc4] sm:$0xf] %vm6394_vm3, %v7348_v38  ;;  %8167 = vmatprep.mubr.msk.bf16.mxu1 %vm1193_vm2, %v8451_v34  ;;  %v5347_v59 = vadd.f32 %v9047_v22, %v5084_v39  ;;  %v5602_v2 = vmax.f32 %v5346_v50, 0.0 }
 0x1be   : > { %v7801_v40 = vpop.f32.mrb[108].mxu0  ;;  %v5605_v4 = vmax.f32 %v5349_v55, 0.0 }
 0x1bf   : > { %v8061_v41 = vpop.f32.mrb[108].mxu1  ;;  %v2051_v42 = vpop.f32.mrb[109].mxu0  ;;  %v5603_v8 = vmax.f32 %v5347_v59, 0.0 }
 0x1c0   : > { %v5089_v45 = vmax.f32 %v7801_v40, %v8061_v41  ;;  %v4388_v46 = vpop.f32.mrb[109].mxu1  ;;  %v7802_v47 = vpop.f32.mrb[110].mxu0  ;;  %v8461_v41 = vld [vmem:[%s8578_s29 + $0x388] sm:$0xff]  }
 0x1c1   : > { %v5087_v51 = vmax.f32 %v2051_v42, %v4388_v46  ;;  %v8062_v52 = vpop.f32.mrb[110].mxu1  ;;  %v2054_v53 = vpop.f32.mrb[111].mxu0  ;;  %v8462_v42 = vld [vmem:[%s8573_s26 + $0x390] sm:$0xff]  }
 0x1c2   : > { %v5352_v56 = vadd.f32 %v9047_v22, %v5089_v45  ;;  %v5090_v57 = vmax.f32 %v7802_v47, %v8062_v52  ;;  %v4391_v58 = vpop.f32.mrb[111].mxu1  ;;  %v8463_v47 = vld [vmem:[%s8578_s29 + $0x390] sm:$0xff]  }
 0x1c3   : > { %v5350_v60 = vadd.f32 %v9047_v22, %v5087_v51  ;;  %v5088_v61 = vmax.f32 %v2054_v53, %v4391_v58  ;;  %7908 = vmatmul.mubr.msk.bf16.gmra.mrb[216].mxu0 %vm1193_vm2, %v8452_v43 }
 0x1c4   : > { %v5608_v63 = vmax.f32 %v5352_v56, 0.0  ;;  %v5353_v0 = vadd.f32 %v9047_v22, %v5090_v57  ;;  %8168 = vmatmul.mubr.msk.bf16.gmra.mrb[216].mxu1 %vm1193_vm2, %v8453_v48  ;;  %7911 = vmatprep.mubr.msk.bf16.mxu0 %vm1193_vm2, %v8454_v49 }
 0x1c5   : > { %v5606_v1 = vmax.f32 %v5350_v60, 0.0  ;;  %v5351_v3 = vadd.f32 %v9047_v22, %v5088_v61  ;;  %8171 = vmatprep.mubr.msk.bf16.mxu1 %vm1193_vm2, %v8455_v54 }
 0x1c6   : > { %v5808_v5 = vmax.f32 %v5604_v62, %v5608_v63  ;;  %v5609_v6 = vmax.f32 %v5353_v0, 0.0  ;;  %v7805_v7 = vpop.f32.mrb[112].mxu0 }
 0x1c7   : > { %v5806_v9 = vmax.f32 %v5602_v2, %v5606_v1  ;;  %v5607_v10 = vmax.f32 %v5351_v3, 0.0  ;;  %v8065_v11 = vpop.f32.mrb[112].mxu1  ;;  %v2067_v12 = vpop.f32.mrb[113].mxu0 }
 0x1c8   : > { %v7353_v14 = vpack.c.bf16 %v5808_v5, %v5808_v5  ;;  %v5809_v15 = vmax.f32 %v5605_v4, %v5609_v6  ;;  %v5093_v16 = vmax.f32 %v7805_v7, %v8065_v11  ;;  %v4404_v17 = vpop.f32.mrb[113].mxu1  ;;  %v7806_v18 = vpop.f32.mrb[114].mxu0  ;;  %v8464_v6 = vld [vmem:[%s8573_s26 + $0x398] sm:$0xff]  }
 0x1c9   : > { %v7351_v21 = vpack.c.bf16 %v5806_v9, %v5806_v9  ;;  %v5807_v23 = vmax.f32 %v5603_v8, %v5607_v10  ;;  %v5091_v24 = vmax.f32 %v2067_v12, %v4404_v17  ;;  %v8066_v25 = vpop.f32.mrb[114].mxu1  ;;  %v2070_v26 = vpop.f32.mrb[115].mxu0  ;;  %v8465_v11 = vld [vmem:[%s8578_s29 + $0x398] sm:$0xff]   ;;  %v8466_v12 = vld [vmem:[%s8573_s26 + $0x3a0] sm:$0xff]  }
 0x1ca   : > { %6449 = vst.msk [vmem:[%s8836_s9 + $0xd8] sm:$0xf] %vm6394_vm3, %v7353_v14  ;;  %v7354_v28 = vpack.c.bf16 %v5809_v15, %v5809_v15  ;;  %v5094_v29 = vmax.f32 %v7806_v18, %v8066_v25  ;;  %v4407_v30 = vpop.f32.mrb[115].mxu1  ;;  %v5356_v37 = vadd.f32 %v9047_v22, %v5093_v16  ;;  %v8467_v18 = vld [vmem:[%s8578_s29 + $0x3a0] sm:$0xff]  }
 0x1cb   : > { %6447 = vst.msk [vmem:[%s8836_s9 + $0xd0] sm:$0xf] %vm6394_vm3, %v7351_v21  ;;  %v7352_v31 = vpack.c.bf16 %v5807_v23, %v5807_v23  ;;  %v5092_v32 = vmax.f32 %v2070_v26, %v4407_v30  ;;  %7912 = vmatmul.mubr.msk.bf16.gmra.mrb[220].mxu0 %vm1193_vm2, %v8456_v13  ;;  %v5354_v43 = vadd.f32 %v9047_v22, %v5091_v24 }
 0x1cc   : > { %6450 = vst.msk [vmem:[%s8836_s9 + $0xdc] sm:$0xf] %vm6394_vm3, %v7354_v28  ;;  %8172 = vmatmul.mubr.msk.bf16.gmra.mrb[220].mxu1 %vm1193_vm2, %v8457_v19  ;;  %7915 = vmatprep.mubr.msk.bf16.mxu0 %vm1193_vm2, %v8458_v20  ;;  %v5357_v48 = vadd.f32 %v9047_v22, %v5094_v29  ;;  %v5612_v55 = vmax.f32 %v5356_v37, 0.0  ;;  %v8468_v28 = vld [vmem:[%s8573_s26 + $0x3a8] sm:$0xff]   ;;  %v9308_v29 = vld [vmem:[%s9642_s3] ss:$0 sm:$0xff] }
 0x1cd   : > { %6448 = vst.msk [vmem:[%s8836_s9 + $0xd4] sm:$0xf] %vm6394_vm3, %v7352_v31  ;;  %8175 = vmatprep.mubr.msk.bf16.mxu1 %vm1193_vm2, %v8459_v27  ;;  %v5355_v52 = vadd.f32 %v9047_v22, %v5092_v32  ;;  %v5610_v58 = vmax.f32 %v5354_v43, 0.0 }
 0x1ce   : > { %v7809_v33 = vpop.f32.mrb[116].mxu0  ;;  %v5613_v61 = vmax.f32 %v5357_v48, 0.0 }
 0x1cf   : > { %v8069_v34 = vpop.f32.mrb[116].mxu1  ;;  %v2083_v35 = vpop.f32.mrb[117].mxu0  ;;  %v5611_v2 = vmax.f32 %v5355_v52, 0.0 }
 0x1d0   : > { %v5097_v38 = vmax.f32 %v7809_v33, %v8069_v34  ;;  %v4420_v39 = vpop.f32.mrb[117].mxu1  ;;  %v7810_v40 = vpop.f32.mrb[118].mxu0  ;;  %v8469_v34 = vld [vmem:[%s8578_s29 + $0x3a8] sm:$0xff]  }
 0x1d1   : > { %v5095_v44 = vmax.f32 %v2083_v35, %v4420_v39  ;;  %v8070_v45 = vpop.f32.mrb[118].mxu1  ;;  %v2086_v46 = vpop.f32.mrb[119].mxu0  ;;  %v8470_v35 = vld [vmem:[%s8573_s26 + $0x3b0] sm:$0xff]  }
 0x1d2   : > { %v5360_v49 = vadd.f32 %v9047_v22, %v5097_v38  ;;  %v5098_v50 = vmax.f32 %v7810_v40, %v8070_v45  ;;  %v4423_v51 = vpop.f32.mrb[119].mxu1  ;;  %v8471_v40 = vld [vmem:[%s8578_s29 + $0x3b0] sm:$0xff]  }
 0x1d3   : > { %v5358_v53 = vadd.f32 %v9047_v22, %v5095_v44  ;;  %v5096_v54 = vmax.f32 %v2086_v46, %v4423_v51  ;;  %7916 = vmatmul.mubr.msk.bf16.gmra.mrb[224].mxu0 %vm1193_vm2, %v8460_v36 }
 0x1d4   : > { %v5616_v56 = vmax.f32 %v5360_v49, 0.0  ;;  %v5361_v57 = vadd.f32 %v9047_v22, %v5098_v50  ;;  %8176 = vmatmul.mubr.msk.bf16.gmra.mrb[224].mxu1 %vm1193_vm2, %v8461_v41  ;;  %7919 = vmatprep.mubr.msk.bf16.mxu0 %vm1193_vm2, %v8462_v42 }
 0x1d5   : > { %v5614_v59 = vmax.f32 %v5358_v53, 0.0  ;;  %v5359_v60 = vadd.f32 %v9047_v22, %v5096_v54  ;;  %8179 = vmatprep.mubr.msk.bf16.mxu1 %vm1193_vm2, %v8463_v47 }
 0x1d6   : > { %v5812_v62 = vmax.f32 %v5612_v55, %v5616_v56  ;;  %v5617_v63 = vmax.f32 %v5361_v57, 0.0  ;;  %v7813_v0 = vpop.f32.mrb[120].mxu0 }
 0x1d7   : > { %v5810_v1 = vmax.f32 %v5610_v58, %v5614_v59  ;;  %v5615_v3 = vmax.f32 %v5359_v60, 0.0  ;;  %v8073_v4 = vpop.f32.mrb[120].mxu1  ;;  %v2099_v5 = vpop.f32.mrb[121].mxu0 }
 0x1d8   : > { %v7357_v7 = vpack.c.bf16 %v5812_v62, %v5812_v62  ;;  %v5813_v8 = vmax.f32 %v5613_v61, %v5617_v63  ;;  %v5101_v22 = vmax.f32 %v7813_v0, %v8073_v4  ;;  %v4436_v9 = vpop.f32.mrb[121].mxu1  ;;  %v7814_v10 = vpop.f32.mrb[122].mxu0  ;;  %v8472_v63 = vld [vmem:[%s8573_s26 + $0x3b8] sm:$0xff]  }
 0x1d9   : > { %v7355_v13 = vpack.c.bf16 %v5810_v1, %v5810_v1  ;;  %v5811_v14 = vmax.f32 %v5611_v2, %v5615_v3  ;;  %v5099_v15 = vmax.f32 %v2099_v5, %v4436_v9  ;;  %v8074_v16 = vpop.f32.mrb[122].mxu1  ;;  %v2102_v17 = vpop.f32.mrb[123].mxu0  ;;  %v8473_v5 = vld [vmem:[%s8578_s29 + $0x3b8] sm:$0xff]  }
 0x1da   : > { %6453 = vst.msk [vmem:[%s8836_s9 + $0xe8] sm:$0xf] %vm6394_vm3, %v7357_v7  ;;  %v7358_v19 = vpack.c.bf16 %v5813_v8, %v5813_v8  ;;  %v5102_v20 = vmax.f32 %v7814_v10, %v8074_v16  ;;  %v4439_v21 = vpop.f32.mrb[123].mxu1  ;;  %v5364_v30 = vadd.f32 %v9308_v29, %v5101_v22 }
 0x1db   : > { %6451 = vst.msk [vmem:[%s8836_s9 + $0xe0] sm:$0xf] %vm6394_vm3, %v7355_v13  ;;  %v7356_v23 = vpack.c.bf16 %v5811_v14, %v5811_v14  ;;  %v5100_v24 = vmax.f32 %v2102_v17, %v4439_v21  ;;  %7920 = vmatmul.mubr.msk.bf16.gmra.mrb[228].mxu0 %vm1193_vm2, %v8464_v6  ;;  %v5362_v36 = vadd.f32 %v9308_v29, %v5099_v15  ;;  %v8474_v6 = vld [vmem:[%s8573_s26 + $0x3c0] sm:$0xff]  }
 0x1dc   : > { %6454 = vst.msk [vmem:[%s8836_s9 + $0xec] sm:$0xf] %vm6394_vm3, %v7358_v19  ;;  %8180 = vmatmul.mubr.msk.bf16.gmra.mrb[228].mxu1 %vm1193_vm2, %v8465_v11  ;;  %7923 = vmatprep.mubr.msk.bf16.mxu0 %vm1193_vm2, %v8466_v12  ;;  %v5365_v41 = vadd.f32 %v9308_v29, %v5102_v20  ;;  %v5620_v48 = vmax.f32 %v5364_v30, 0.0  ;;  %v8475_v11 = vld [vmem:[%s8578_s29 + $0x3c0] sm:$0xff]   ;;  %v8476_v20 = vld [vmem:[%s8573_s26 + $0x3c8] sm:$0xff]  }
 0x1dd   : > { %6452 = vst.msk [vmem:[%s8836_s9 + $0xe4] sm:$0xf] %vm6394_vm3, %v7356_v23  ;;  %8183 = vmatprep.mubr.msk.bf16.mxu1 %vm1193_vm2, %v8467_v18  ;;  %v5363_v45 = vadd.f32 %v9308_v29, %v5100_v24  ;;  %v5618_v51 = vmax.f32 %v5362_v36, 0.0 }
 0x1de   : > { %v7817_v25 = vpop.f32.mrb[124].mxu0  ;;  %v5621_v54 = vmax.f32 %v5365_v41, 0.0 }
 0x1df   : > { %v8077_v26 = vpop.f32.mrb[124].mxu1  ;;  %v2115_v27 = vpop.f32.mrb[125].mxu0  ;;  %v5619_v58 = vmax.f32 %v5363_v45, 0.0 }
 0x1e0   : > { %v5105_v31 = vmax.f32 %v7817_v25, %v8077_v26  ;;  %v4452_v32 = vpop.f32.mrb[125].mxu1  ;;  %v7818_v33 = vpop.f32.mrb[126].mxu0  ;;  %v8477_v26 = vld [vmem:[%s8578_s29 + $0x3c8] sm:$0xff]  }
 0x1e1   : > { %v5103_v37 = vmax.f32 %v2115_v27, %v4452_v32  ;;  %v8078_v38 = vpop.f32.mrb[126].mxu1  ;;  %v2118_v39 = vpop.f32.mrb[127].mxu0  ;;  %v8478_v27 = vld [vmem:[%s8573_s26 + $0x3d0] sm:$0xff]  }
 0x1e2   : > { %v5368_v42 = vadd.f32 %v9308_v29, %v5105_v31  ;;  %v5106_v43 = vmax.f32 %v7818_v33, %v8078_v38  ;;  %v4455_v44 = vpop.f32.mrb[127].mxu1  ;;  %v8479_v33 = vld [vmem:[%s8578_s29 + $0x3d0] sm:$0xff]  }
 0x1e3   : > { %v5366_v46 = vadd.f32 %v9308_v29, %v5103_v37  ;;  %v5104_v47 = vmax.f32 %v2118_v39, %v4455_v44  ;;  %7924 = vmatmul.mubr.msk.bf16.gmra.mrb[232].mxu0 %vm1193_vm2, %v8468_v28 }
 0x1e4   : > { %v5624_v49 = vmax.f32 %v5368_v42, 0.0  ;;  %v5369_v50 = vadd.f32 %v9308_v29, %v5106_v43  ;;  %8184 = vmatmul.mubr.msk.bf16.gmra.mrb[232].mxu1 %vm1193_vm2, %v8469_v34  ;;  %7927 = vmatprep.mubr.msk.bf16.mxu0 %vm1193_vm2, %v8470_v35 }
 0x1e5   : > { %v5622_v52 = vmax.f32 %v5366_v46, 0.0  ;;  %v5367_v53 = vadd.f32 %v9308_v29, %v5104_v47  ;;  %8187 = vmatprep.mubr.msk.bf16.mxu1 %vm1193_vm2, %v8471_v40 }
 0x1e6   : > { %v5816_v55 = vmax.f32 %v5620_v48, %v5624_v49  ;;  %v5625_v56 = vmax.f32 %v5369_v50, 0.0  ;;  %v7821_v57 = vpop.f32.mrb[128].mxu0 }
 0x1e7   : > { %v5814_v59 = vmax.f32 %v5618_v51, %v5622_v52  ;;  %v5623_v60 = vmax.f32 %v5367_v53, 0.0  ;;  %v8081_v61 = vpop.f32.mrb[128].mxu1  ;;  %v2131_v62 = vpop.f32.mrb[129].mxu0 }
 0x1e8   : > { %v7361_v0 = vpack.c.bf16 %v5816_v55, %v5816_v55  ;;  %v5817_v2 = vmax.f32 %v5621_v54, %v5625_v56  ;;  %v5109_v1 = vmax.f32 %v7821_v57, %v8081_v61  ;;  %v4468_v3 = vpop.f32.mrb[129].mxu1  ;;  %v7822_v4 = vpop.f32.mrb[130].mxu0  ;;  %v8480_v56 = vld [vmem:[%s8573_s26 + $0x3d8] sm:$0xff]  }
 0x1e9   : > { %v7359_v7 = vpack.c.bf16 %v5814_v59, %v5814_v59  ;;  %v5815_v8 = vmax.f32 %v5619_v58, %v5623_v60  ;;  %v5107_v22 = vmax.f32 %v2131_v62, %v4468_v3  ;;  %v8082_v9 = vpop.f32.mrb[130].mxu1  ;;  %v2134_v10 = vpop.f32.mrb[131].mxu0  ;;  %v8481_v62 = vld [vmem:[%s8578_s29 + $0x3d8] sm:$0xff]  }
 0x1ea   : > { %6457 = vst.msk [vmem:[%s8836_s9 + $0xf8] sm:$0xf] %vm6394_vm3, %v7361_v0  ;;  %v7362_v12 = vpack.c.bf16 %v5817_v2, %v5817_v2  ;;  %v5110_v13 = vmax.f32 %v7822_v4, %v8082_v9  ;;  %v4471_v14 = vpop.f32.mrb[131].mxu1  ;;  %v5372_v21 = vadd.f32 %v9308_v29, %v5109_v1 }
 0x1eb   : > { %6455 = vst.msk [vmem:[%s8836_s9 + $0xf0] sm:$0xf] %vm6394_vm3, %v7359_v7  ;;  %v7360_v15 = vpack.c.bf16 %v5815_v8, %v5815_v8  ;;  %v5108_v16 = vmax.f32 %v2134_v10, %v4471_v14  ;;  %7928 = vmatmul.mubr.msk.bf16.gmra.mrb[236].mxu0 %vm1193_vm2, %v8472_v63  ;;  %v5370_v28 = vadd.f32 %v9308_v29, %v5107_v22  ;;  %v8482_v63 = vld [vmem:[%s8573_s26 + $0x3e0] sm:$0xff]  }
 0x1ec   : > { %6458 = vst.msk [vmem:[%s8836_s9 + $0xfc] sm:$0xf] %vm6394_vm3, %v7362_v12  ;;  %8188 = vmatmul.mubr.msk.bf16.gmra.mrb[236].mxu1 %vm1193_vm2, %v8473_v5  ;;  %7931 = vmatprep.mubr.msk.bf16.mxu0 %vm1193_vm2, %v8474_v6  ;;  %v5373_v34 = vadd.f32 %v9308_v29, %v5110_v13  ;;  %v5628_v41 = vmax.f32 %v5372_v21, 0.0  ;;  %v8483_v5 = vld [vmem:[%s8578_s29 + $0x3e0] sm:$0xff]   ;;  %v8484_v13 = vld [vmem:[%s8573_s26 + $0x3e8] sm:$0xff]  }
 0x1ed   : > { %6456 = vst.msk [vmem:[%s8836_s9 + $0xf4] sm:$0xf] %vm6394_vm3, %v7360_v15  ;;  %8191 = vmatprep.mubr.msk.bf16.mxu1 %vm1193_vm2, %v8475_v11  ;;  %v5371_v38 = vadd.f32 %v9308_v29, %v5108_v16  ;;  %v5626_v44 = vmax.f32 %v5370_v28, 0.0 }
 0x1ee   : > { %v7825_v17 = vpop.f32.mrb[132].mxu0  ;;  %v5629_v47 = vmax.f32 %v5373_v34, 0.0 }
 0x1ef   : > { %v8085_v18 = vpop.f32.mrb[132].mxu1  ;;  %v2147_v19 = vpop.f32.mrb[133].mxu0  ;;  %v5627_v51 = vmax.f32 %v5371_v38, 0.0 }
 0x1f0   : > { %v5113_v23 = vmax.f32 %v7825_v17, %v8085_v18  ;;  %v4484_v24 = vpop.f32.mrb[133].mxu1  ;;  %v7826_v25 = vpop.f32.mrb[134].mxu0  ;;  %v8485_v18 = vld [vmem:[%s8578_s29 + $0x3e8] sm:$0xff]  }
 0x1f1   : > { %v5111_v30 = vmax.f32 %v2147_v19, %v4484_v24  ;;  %v8086_v31 = vpop.f32.mrb[134].mxu1  ;;  %v2150_v32 = vpop.f32.mrb[135].mxu0  ;;  %v8486_v19 = vld [vmem:[%s8573_s26 + $0x3f0] sm:$0xff]  }
 0x1f2   : > { %v5376_v35 = vadd.f32 %v9308_v29, %v5113_v23  ;;  %v5114_v36 = vmax.f32 %v7826_v25, %v8086_v31  ;;  %v4487_v37 = vpop.f32.mrb[135].mxu1  ;;  %v8487_v25 = vld [vmem:[%s8578_s29 + $0x3f0] sm:$0xff]  }
 0x1f3   : > { %v5374_v39 = vadd.f32 %v9308_v29, %v5111_v30  ;;  %v5112_v40 = vmax.f32 %v2150_v32, %v4487_v37  ;;  %7932 = vmatmul.mubr.msk.bf16.gmra.mrb[240].mxu0 %vm1193_vm2, %v8476_v20 }
 0x1f4   : > { %v5632_v42 = vmax.f32 %v5376_v35, 0.0  ;;  %v5377_v43 = vadd.f32 %v9308_v29, %v5114_v36  ;;  %8192 = vmatmul.mubr.msk.bf16.gmra.mrb[240].mxu1 %vm1193_vm2, %v8477_v26  ;;  %7935 = vmatprep.mubr.msk.bf16.mxu0 %vm1193_vm2, %v8478_v27 }
 0x1f5   : > { %v5630_v45 = vmax.f32 %v5374_v39, 0.0  ;;  %v5375_v46 = vadd.f32 %v9308_v29, %v5112_v40  ;;  %8195 = vmatprep.mubr.msk.bf16.mxu1 %vm1193_vm2, %v8479_v33 }
 0x1f6   : > { %v5820_v48 = vmax.f32 %v5628_v41, %v5632_v42  ;;  %v5633_v49 = vmax.f32 %v5377_v43, 0.0  ;;  %v7829_v50 = vpop.f32.mrb[136].mxu0 }
 0x1f7   : > { %v5818_v52 = vmax.f32 %v5626_v44, %v5630_v45  ;;  %v5631_v53 = vmax.f32 %v5375_v46, 0.0  ;;  %v8089_v54 = vpop.f32.mrb[136].mxu1  ;;  %v2163_v55 = vpop.f32.mrb[137].mxu0 }
 0x1f8   : > { %v7365_v57 = vpack.c.bf16 %v5820_v48, %v5820_v48  ;;  %v5821_v58 = vmax.f32 %v5629_v47, %v5633_v49  ;;  %v5117_v59 = vmax.f32 %v7829_v50, %v8089_v54  ;;  %v4500_v60 = vpop.f32.mrb[137].mxu1  ;;  %v7830_v61 = vpop.f32.mrb[138].mxu0  ;;  %v8488_v49 = vld [vmem:[%s8573_s26 + $0x3f8] sm:$0xff]  }
 0x1f9   : > { %v7363_v0 = vpack.c.bf16 %v5818_v52, %v5818_v52  ;;  %v5819_v2 = vmax.f32 %v5627_v51, %v5631_v53  ;;  %v5115_v1 = vmax.f32 %v2163_v55, %v4500_v60  ;;  %v8090_v3 = vpop.f32.mrb[138].mxu1  ;;  %v2166_v4 = vpop.f32.mrb[139].mxu0  ;;  %v8489_v55 = vld [vmem:[%s8578_s29 + $0x3f8] sm:$0xff]  }
 0x1fa   : > { %6461 = vst.msk [vmem:[%s8836_s9 + $0x108] sm:$0xf] %vm6394_vm3, %v7365_v57  ;;  %v7366_v6 = vpack.c.bf16 %v5821_v58, %v5821_v58  ;;  %v5118_v7 = vmax.f32 %v7830_v61, %v8090_v3  ;;  %v4503_v8 = vpop.f32.mrb[139].mxu1  ;;  %v5380_v14 = vadd.f32 %v9308_v29, %v5117_v59 }
 0x1fb   : > { %6459 = vst.msk [vmem:[%s8836_s9 + $0x100] sm:$0xf] %vm6394_vm3, %v7363_v0  ;;  %v7364_v22 = vpack.c.bf16 %v5819_v2, %v5819_v2  ;;  %v5116_v9 = vmax.f32 %v2166_v4, %v4503_v8  ;;  %7936 = vmatmul.mubr.msk.bf16.gmra.mrb[244].mxu0 %vm1193_vm2, %v8480_v56  ;;  %v5378_v20 = vadd.f32 %v9308_v29, %v5115_v1 }
 0x1fc   : > { %6462 = vst.msk [vmem:[%s8836_s9 + $0x10c] sm:$0xf] %vm6394_vm3, %v7366_v6  ;;  %8196 = vmatmul.mubr.msk.bf16.gmra.mrb[244].mxu1 %vm1193_vm2, %v8481_v62  ;;  %7939 = vmatprep.mubr.msk.bf16.mxu0 %vm1193_vm2, %v8482_v63  ;;  %v5381_v26 = vadd.f32 %v9308_v29, %v5118_v7  ;;  %v5636_v34 = vmax.f32 %v5380_v14, 0.0 }
 0x1fd   : > { %6460 = vst.msk [vmem:[%s8836_s9 + $0x104] sm:$0xf] %vm6394_vm3, %v7364_v22  ;;  %8199 = vmatprep.mubr.msk.bf16.mxu1 %vm1193_vm2, %v8483_v5  ;;  %v5379_v31 = vadd.f32 %v9308_v29, %v5116_v9  ;;  %v5634_v37 = vmax.f32 %v5378_v20, 0.0 }
 0x1fe   : > { %v7833_v10 = vpop.f32.mrb[140].mxu0  ;;  %v5637_v40 = vmax.f32 %v5381_v26, 0.0 }
 0x1ff   : > { %v8093_v11 = vpop.f32.mrb[140].mxu1  ;;  %v2179_v12 = vpop.f32.mrb[141].mxu0  ;;  %v5635_v44 = vmax.f32 %v5379_v31, 0.0 }
 0x200   : > { %v5121_v15 = vmax.f32 %v7833_v10, %v8093_v11  ;;  %v4516_v16 = vpop.f32.mrb[141].mxu1  ;;  %v7834_v17 = vpop.f32.mrb[142].mxu0 }
 0x201   : > { %v5119_v21 = vmax.f32 %v2179_v12, %v4516_v16  ;;  %v8094_v23 = vpop.f32.mrb[142].mxu1  ;;  %v2182_v24 = vpop.f32.mrb[143].mxu0 }
 0x202   : > { %v5384_v27 = vadd.f32 %v9308_v29, %v5121_v15  ;;  %v5122_v28 = vmax.f32 %v7834_v17, %v8094_v23  ;;  %v4519_v30 = vpop.f32.mrb[143].mxu1 }
 0x203   : > { %v5382_v32 = vadd.f32 %v9308_v29, %v5119_v21  ;;  %v5120_v33 = vmax.f32 %v2182_v24, %v4519_v30  ;;  %7940 = vmatmul.mubr.msk.bf16.gmra.mrb[248].mxu0 %vm1193_vm2, %v8484_v13 }
 0x204   : > { %v5640_v35 = vmax.f32 %v5384_v27, 0.0  ;;  %v5385_v36 = vadd.f32 %v9308_v29, %v5122_v28  ;;  %8200 = vmatmul.mubr.msk.bf16.gmra.mrb[248].mxu1 %vm1193_vm2, %v8485_v18  ;;  %7943 = vmatprep.mubr.msk.bf16.mxu0 %vm1193_vm2, %v8486_v19 }
 0x205   : > { %v5638_v38 = vmax.f32 %v5382_v32, 0.0  ;;  %v5383_v39 = vadd.f32 %v9308_v29, %v5120_v33  ;;  %8203 = vmatprep.mubr.msk.bf16.mxu1 %vm1193_vm2, %v8487_v25 }
 0x206   : > { %v5824_v41 = vmax.f32 %v5636_v34, %v5640_v35  ;;  %v5641_v42 = vmax.f32 %v5385_v36, 0.0  ;;  %v7837_v43 = vpop.f32.mrb[144].mxu0 }
 0x207   : > { %v5822_v45 = vmax.f32 %v5634_v37, %v5638_v38  ;;  %v5639_v46 = vmax.f32 %v5383_v39, 0.0  ;;  %v8097_v47 = vpop.f32.mrb[144].mxu1  ;;  %v2195_v48 = vpop.f32.mrb[145].mxu0 }
 0x208   : > { %v7369_v50 = vpack.c.bf16 %v5824_v41, %v5824_v41  ;;  %v5825_v51 = vmax.f32 %v5637_v40, %v5641_v42  ;;  %v5125_v52 = vmax.f32 %v7837_v43, %v8097_v47  ;;  %v4532_v53 = vpop.f32.mrb[145].mxu1  ;;  %v7838_v54 = vpop.f32.mrb[146].mxu0 }
 0x209   : > { %v7367_v56 = vpack.c.bf16 %v5822_v45, %v5822_v45  ;;  %v5823_v57 = vmax.f32 %v5635_v44, %v5639_v46  ;;  %v5123_v58 = vmax.f32 %v2195_v48, %v4532_v53  ;;  %v8098_v59 = vpop.f32.mrb[146].mxu1  ;;  %v2198_v60 = vpop.f32.mrb[147].mxu0 }
 0x20a   : > { %6465 = vst.msk [vmem:[%s8836_s9 + $0x118] sm:$0xf] %vm6394_vm3, %v7369_v50  ;;  %v7370_v61 = vpack.c.bf16 %v5825_v51, %v5825_v51  ;;  %v5126_v62 = vmax.f32 %v7838_v54, %v8098_v59  ;;  %v4535_v63 = vpop.f32.mrb[147].mxu1  ;;  %v5388_v5 = vadd.f32 %v9308_v29, %v5125_v52 }
 0x20b   : > { %6463 = vst.msk [vmem:[%s8836_s9 + $0x110] sm:$0xf] %vm6394_vm3, %v7367_v56  ;;  %v7368_v0 = vpack.c.bf16 %v5823_v57, %v5823_v57  ;;  %v5124_v2 = vmax.f32 %v2198_v60, %v4535_v63  ;;  %7944 = vmatmul.mubr.msk.bf16.gmra.mrb[252].mxu0 %vm1193_vm2, %v8488_v49  ;;  %v5386_v22 = vadd.f32 %v9308_v29, %v5123_v58 }
 0x20c   : > { %6466 = vst.msk [vmem:[%s8836_s9 + $0x11c] sm:$0xf] %vm6394_vm3, %v7370_v61  ;;  %8204 = vmatmul.mubr.msk.bf16.gmra.mrb[252].mxu1 %vm1193_vm2, %v8489_v55  ;;  %v5389_v12 = vadd.f32 %v9308_v29, %v5126_v62  ;;  %v5644_v19 = vmax.f32 %v5388_v5, 0.0 }
 0x20d   : > { %6464 = vst.msk [vmem:[%s8836_s9 + $0x114] sm:$0xf] %vm6394_vm3, %v7368_v0  ;;  %v5387_v16 = vadd.f32 %v9308_v29, %v5124_v2  ;;  %v5642_v23 = vmax.f32 %v5386_v22, 0.0 }
 0x20e   : > { %v7841_v1 = vpop.f32.mrb[148].mxu0  ;;  %v5645_v26 = vmax.f32 %v5389_v12, 0.0 }
 0x20f   : > { %v8101_v3 = vpop.f32.mrb[148].mxu1  ;;  %v2211_v4 = vpop.f32.mrb[149].mxu0  ;;  %v5643_v31 = vmax.f32 %v5387_v16, 0.0 }
 0x210   : > { %v5129_v6 = vmax.f32 %v7841_v1, %v8101_v3  ;;  %v4548_v7 = vpop.f32.mrb[149].mxu1  ;;  %v7842_v8 = vpop.f32.mrb[150].mxu0 }
 0x211   : > { %v5127_v9 = vmax.f32 %v2211_v4, %v4548_v7  ;;  %v8102_v10 = vpop.f32.mrb[150].mxu1  ;;  %v2214_v11 = vpop.f32.mrb[151].mxu0 }
 0x212   : > { %v5392_v13 = vadd.f32 %v9308_v29, %v5129_v6  ;;  %v5130_v14 = vmax.f32 %v7842_v8, %v8102_v10  ;;  %v4551_v15 = vpop.f32.mrb[151].mxu1 }
 0x213   : > { %v5390_v17 = vadd.f32 %v9308_v29, %v5127_v9  ;;  %v5128_v18 = vmax.f32 %v2214_v11, %v4551_v15 }
 0x214   : > { %v5648_v20 = vmax.f32 %v5392_v13, 0.0  ;;  %v5393_v21 = vadd.f32 %v9308_v29, %v5130_v14 }
 0x215   : > { %v5646_v24 = vmax.f32 %v5390_v17, 0.0  ;;  %v5391_v25 = vadd.f32 %v9308_v29, %v5128_v18 }
 0x216   : > { %v5828_v27 = vmax.f32 %v5644_v19, %v5648_v20  ;;  %v5649_v28 = vmax.f32 %v5393_v21, 0.0  ;;  %v7845_v30 = vpop.f32.mrb[152].mxu0 }
 0x217   : > { %v5826_v32 = vmax.f32 %v5642_v23, %v5646_v24  ;;  %v5647_v33 = vmax.f32 %v5391_v25, 0.0  ;;  %v8105_v34 = vpop.f32.mrb[152].mxu1  ;;  %v2227_v35 = vpop.f32.mrb[153].mxu0 }
 0x218   : > { %v7373_v36 = vpack.c.bf16 %v5828_v27, %v5828_v27  ;;  %v5829_v37 = vmax.f32 %v5645_v26, %v5649_v28  ;;  %v5133_v38 = vmax.f32 %v7845_v30, %v8105_v34  ;;  %v4564_v39 = vpop.f32.mrb[153].mxu1  ;;  %v7846_v40 = vpop.f32.mrb[154].mxu0 }
 0x219   : > { %v7371_v41 = vpack.c.bf16 %v5826_v32, %v5826_v32  ;;  %v5827_v42 = vmax.f32 %v5643_v31, %v5647_v33  ;;  %v5131_v43 = vmax.f32 %v2227_v35, %v4564_v39  ;;  %v8106_v44 = vpop.f32.mrb[154].mxu1  ;;  %v2230_v45 = vpop.f32.mrb[155].mxu0 }
 0x21a   : > { %6469 = vst.msk [vmem:[%s8836_s9 + $0x128] sm:$0xf] %vm6394_vm3, %v7373_v36  ;;  %v7374_v46 = vpack.c.bf16 %v5829_v37, %v5829_v37  ;;  %v5134_v47 = vmax.f32 %v7846_v40, %v8106_v44  ;;  %v4567_v48 = vpop.f32.mrb[155].mxu1  ;;  %v5396_v54 = vadd.f32 %v9308_v29, %v5133_v38 }
 0x21b   : > { %6467 = vst.msk [vmem:[%s8836_s9 + $0x120] sm:$0xf] %vm6394_vm3, %v7371_v41  ;;  %v7372_v49 = vpack.c.bf16 %v5827_v42, %v5827_v42  ;;  %v5132_v50 = vmax.f32 %v2230_v45, %v4567_v48  ;;  %v5394_v58 = vadd.f32 %v9308_v29, %v5131_v43 }
 0x21c   : > { %6470 = vst.msk [vmem:[%s8836_s9 + $0x12c] sm:$0xf] %vm6394_vm3, %v7374_v46  ;;  %v5397_v62 = vadd.f32 %v9308_v29, %v5134_v47  ;;  %v5652_v5 = vmax.f32 %v5396_v54, 0.0 }
 0x21d   : > { %6468 = vst.msk [vmem:[%s8836_s9 + $0x124] sm:$0xf] %vm6394_vm3, %v7372_v49  ;;  %v5395_v1 = vadd.f32 %v9308_v29, %v5132_v50  ;;  %v5650_v8 = vmax.f32 %v5394_v58, 0.0 }
 0x21e   : > { %v7849_v51 = vpop.f32.mrb[156].mxu0  ;;  %v5653_v10 = vmax.f32 %v5397_v62, 0.0 }
 0x21f   : > { %v8109_v52 = vpop.f32.mrb[156].mxu1  ;;  %v2243_v53 = vpop.f32.mrb[157].mxu0  ;;  %v5651_v14 = vmax.f32 %v5395_v1, 0.0 }
 0x220   : > { %v5137_v55 = vmax.f32 %v7849_v51, %v8109_v52  ;;  %v4580_v56 = vpop.f32.mrb[157].mxu1  ;;  %v7850_v57 = vpop.f32.mrb[158].mxu0 }
 0x221   : > { %v5135_v59 = vmax.f32 %v2243_v53, %v4580_v56  ;;  %v8110_v60 = vpop.f32.mrb[158].mxu1  ;;  %v2246_v61 = vpop.f32.mrb[159].mxu0 }
 0x222   : > { %v5400_v63 = vadd.f32 %v9308_v29, %v5137_v55  ;;  %v5138_v0 = vmax.f32 %v7850_v57, %v8110_v60  ;;  %v4583_v2 = vpop.f32.mrb[159].mxu1 }
 0x223   : > { %v5398_v3 = vadd.f32 %v9308_v29, %v5135_v59  ;;  %v5136_v4 = vmax.f32 %v2246_v61, %v4583_v2 }
 0x224   : > { %v5656_v6 = vmax.f32 %v5400_v63, 0.0  ;;  %v5401_v7 = vadd.f32 %v9308_v29, %v5138_v0 }
 0x225   : > { %v5654_v22 = vmax.f32 %v5398_v3, 0.0  ;;  %v5399_v9 = vadd.f32 %v9308_v29, %v5136_v4 }
 0x226   : > { %v5832_v11 = vmax.f32 %v5652_v5, %v5656_v6  ;;  %v5657_v12 = vmax.f32 %v5401_v7, 0.0  ;;  %v7853_v13 = vpop.f32.mrb[160].mxu0 }
 0x227   : > { %v5830_v15 = vmax.f32 %v5650_v8, %v5654_v22  ;;  %v5655_v16 = vmax.f32 %v5399_v9, 0.0  ;;  %v8113_v17 = vpop.f32.mrb[160].mxu1  ;;  %v2259_v18 = vpop.f32.mrb[161].mxu0 }
 0x228   : > { %v7377_v19 = vpack.c.bf16 %v5832_v11, %v5832_v11  ;;  %v5833_v20 = vmax.f32 %v5653_v10, %v5657_v12  ;;  %v5141_v21 = vmax.f32 %v7853_v13, %v8113_v17  ;;  %v4596_v23 = vpop.f32.mrb[161].mxu1  ;;  %v7854_v24 = vpop.f32.mrb[162].mxu0 }
 0x229   : > { %v7375_v25 = vpack.c.bf16 %v5830_v15, %v5830_v15  ;;  %v5831_v26 = vmax.f32 %v5651_v14, %v5655_v16  ;;  %v5139_v27 = vmax.f32 %v2259_v18, %v4596_v23  ;;  %v8114_v28 = vpop.f32.mrb[162].mxu1  ;;  %v2262_v30 = vpop.f32.mrb[163].mxu0 }
 0x22a   : > { %6473 = vst.msk [vmem:[%s8836_s9 + $0x138] sm:$0xf] %vm6394_vm3, %v7377_v19  ;;  %v7378_v31 = vpack.c.bf16 %v5833_v20, %v5833_v20  ;;  %v5142_v32 = vmax.f32 %v7854_v24, %v8114_v28  ;;  %v4599_v33 = vpop.f32.mrb[163].mxu1  ;;  %v5404_v39 = vadd.f32 %v9308_v29, %v5141_v21 }
 0x22b   : > { %6471 = vst.msk [vmem:[%s8836_s9 + $0x130] sm:$0xf] %vm6394_vm3, %v7375_v25  ;;  %v7376_v34 = vpack.c.bf16 %v5831_v26, %v5831_v26  ;;  %v5140_v35 = vmax.f32 %v2262_v30, %v4599_v33  ;;  %v5402_v43 = vadd.f32 %v9308_v29, %v5139_v27 }
 0x22c   : > { %6474 = vst.msk [vmem:[%s8836_s9 + $0x13c] sm:$0xf] %vm6394_vm3, %v7378_v31  ;;  %v5405_v47 = vadd.f32 %v9308_v29, %v5142_v32  ;;  %v5660_v54 = vmax.f32 %v5404_v39, 0.0 }
 0x22d   : > { %6472 = vst.msk [vmem:[%s8836_s9 + $0x134] sm:$0xf] %vm6394_vm3, %v7376_v34  ;;  %v5403_v51 = vadd.f32 %v9308_v29, %v5140_v35  ;;  %v5658_v57 = vmax.f32 %v5402_v43, 0.0 }
 0x22e   : > { %v7857_v36 = vpop.f32.mrb[164].mxu0  ;;  %v5661_v60 = vmax.f32 %v5405_v47, 0.0 }
 0x22f   : > { %v8117_v37 = vpop.f32.mrb[164].mxu1  ;;  %v2275_v38 = vpop.f32.mrb[165].mxu0  ;;  %v5659_v0 = vmax.f32 %v5403_v51, 0.0 }
 0x230   : > { %v5145_v40 = vmax.f32 %v7857_v36, %v8117_v37  ;;  %v4612_v41 = vpop.f32.mrb[165].mxu1  ;;  %v7858_v42 = vpop.f32.mrb[166].mxu0 }
 0x231   : > { %v5143_v44 = vmax.f32 %v2275_v38, %v4612_v41  ;;  %v8118_v45 = vpop.f32.mrb[166].mxu1  ;;  %v2278_v46 = vpop.f32.mrb[167].mxu0 }
 0x232   : > { %v5408_v48 = vadd.f32 %v9308_v29, %v5145_v40  ;;  %v5146_v49 = vmax.f32 %v7858_v42, %v8118_v45  ;;  %v4615_v50 = vpop.f32.mrb[167].mxu1 }
 0x233   : > { %v5406_v52 = vadd.f32 %v9308_v29, %v5143_v44  ;;  %v5144_v53 = vmax.f32 %v2278_v46, %v4615_v50 }
 0x234   : > { %v5664_v55 = vmax.f32 %v5408_v48, 0.0  ;;  %v5409_v56 = vadd.f32 %v9308_v29, %v5146_v49 }
 0x235   : > { %v5662_v58 = vmax.f32 %v5406_v52, 0.0  ;;  %v5407_v59 = vadd.f32 %v9308_v29, %v5144_v53 }
 0x236   : > { %v5836_v61 = vmax.f32 %v5660_v54, %v5664_v55  ;;  %v5665_v62 = vmax.f32 %v5409_v56, 0.0  ;;  %v7861_v63 = vpop.f32.mrb[168].mxu0 }
 0x237   : > { %v5834_v2 = vmax.f32 %v5658_v57, %v5662_v58  ;;  %v5663_v1 = vmax.f32 %v5407_v59, 0.0  ;;  %v8121_v3 = vpop.f32.mrb[168].mxu1  ;;  %v2291_v4 = vpop.f32.mrb[169].mxu0 }
 0x238   : > { %v7381_v5 = vpack.c.bf16 %v5836_v61, %v5836_v61  ;;  %v5837_v6 = vmax.f32 %v5661_v60, %v5665_v62  ;;  %v5149_v7 = vmax.f32 %v7861_v63, %v8121_v3  ;;  %v4628_v8 = vpop.f32.mrb[169].mxu1  ;;  %v7862_v22 = vpop.f32.mrb[170].mxu0 }
 0x239   : > { %v7379_v9 = vpack.c.bf16 %v5834_v2, %v5834_v2  ;;  %v5835_v10 = vmax.f32 %v5659_v0, %v5663_v1  ;;  %v5147_v11 = vmax.f32 %v2291_v4, %v4628_v8  ;;  %v8122_v12 = vpop.f32.mrb[170].mxu1  ;;  %v2294_v13 = vpop.f32.mrb[171].mxu0 }
 0x23a   : > { %6477 = vst.msk [vmem:[%s8836_s9 + $0x148] sm:$0xf] %vm6394_vm3, %v7381_v5  ;;  %v7382_v14 = vpack.c.bf16 %v5837_v6, %v5837_v6  ;;  %v5150_v15 = vmax.f32 %v7862_v22, %v8122_v12  ;;  %v4631_v16 = vpop.f32.mrb[171].mxu1  ;;  %v5412_v23 = vadd.f32 %v9308_v29, %v5149_v7 }
 0x23b   : > { %6475 = vst.msk [vmem:[%s8836_s9 + $0x140] sm:$0xf] %vm6394_vm3, %v7379_v9  ;;  %v7380_v17 = vpack.c.bf16 %v5835_v10, %v5835_v10  ;;  %v5148_v18 = vmax.f32 %v2294_v13, %v4631_v16  ;;  %v5410_v27 = vadd.f32 %v9308_v29, %v5147_v11 }
 0x23c   : > { %6478 = vst.msk [vmem:[%s8836_s9 + $0x14c] sm:$0xf] %vm6394_vm3, %v7382_v14  ;;  %v5413_v32 = vadd.f32 %v9308_v29, %v5150_v15  ;;  %v5668_v39 = vmax.f32 %v5412_v23, 0.0 }
 0x23d   : > { %6476 = vst.msk [vmem:[%s8836_s9 + $0x144] sm:$0xf] %vm6394_vm3, %v7380_v17  ;;  %v5411_v36 = vadd.f32 %v9308_v29, %v5148_v18  ;;  %v5666_v42 = vmax.f32 %v5410_v27, 0.0 }
 0x23e   : > { %v7865_v19 = vpop.f32.mrb[172].mxu0  ;;  %v5669_v45 = vmax.f32 %v5413_v32, 0.0 }
 0x23f   : > { %v8125_v20 = vpop.f32.mrb[172].mxu1  ;;  %v2307_v21 = vpop.f32.mrb[173].mxu0  ;;  %v5667_v49 = vmax.f32 %v5411_v36, 0.0 }
 0x240   : > { %v5153_v24 = vmax.f32 %v7865_v19, %v8125_v20  ;;  %v4644_v25 = vpop.f32.mrb[173].mxu1  ;;  %v7866_v26 = vpop.f32.mrb[174].mxu0 }
 0x241   : > { %v5151_v28 = vmax.f32 %v2307_v21, %v4644_v25  ;;  %v8126_v30 = vpop.f32.mrb[174].mxu1  ;;  %v2310_v31 = vpop.f32.mrb[175].mxu0 }
 0x242   : > { %v5416_v33 = vadd.f32 %v9308_v29, %v5153_v24  ;;  %v5154_v34 = vmax.f32 %v7866_v26, %v8126_v30  ;;  %v4647_v35 = vpop.f32.mrb[175].mxu1 }
 0x243   : > { %v5414_v37 = vadd.f32 %v9308_v29, %v5151_v28  ;;  %v5152_v38 = vmax.f32 %v2310_v31, %v4647_v35 }
 0x244   : > { %v5672_v40 = vmax.f32 %v5416_v33, 0.0  ;;  %v5417_v41 = vadd.f32 %v9308_v29, %v5154_v34 }
 0x245   : > { %v5670_v43 = vmax.f32 %v5414_v37, 0.0  ;;  %v5415_v44 = vadd.f32 %v9308_v29, %v5152_v38 }
 0x246   : > { %v5840_v46 = vmax.f32 %v5668_v39, %v5672_v40  ;;  %v5673_v47 = vmax.f32 %v5417_v41, 0.0  ;;  %v7869_v48 = vpop.f32.mrb[176].mxu0 }
 0x247   : > { %v5838_v50 = vmax.f32 %v5666_v42, %v5670_v43  ;;  %v5671_v51 = vmax.f32 %v5415_v44, 0.0  ;;  %v8129_v52 = vpop.f32.mrb[176].mxu1  ;;  %v2323_v53 = vpop.f32.mrb[177].mxu0 }
 0x248   : > { %v7385_v54 = vpack.c.bf16 %v5840_v46, %v5840_v46  ;;  %v5841_v55 = vmax.f32 %v5669_v45, %v5673_v47  ;;  %v5157_v56 = vmax.f32 %v7869_v48, %v8129_v52  ;;  %v4660_v57 = vpop.f32.mrb[177].mxu1  ;;  %v7870_v58 = vpop.f32.mrb[178].mxu0 }
 0x249   : > { %v7383_v59 = vpack.c.bf16 %v5838_v50, %v5838_v50  ;;  %v5839_v60 = vmax.f32 %v5667_v49, %v5671_v51  ;;  %v5155_v61 = vmax.f32 %v2323_v53, %v4660_v57  ;;  %v8130_v62 = vpop.f32.mrb[178].mxu1  ;;  %v2326_v63 = vpop.f32.mrb[179].mxu0 }
 0x24a   : > { %6481 = vst.msk [vmem:[%s8836_s9 + $0x158] sm:$0xf] %vm6394_vm3, %v7385_v54  ;;  %v7386_v0 = vpack.c.bf16 %v5841_v55, %v5841_v55  ;;  %v5158_v2 = vmax.f32 %v7870_v58, %v8130_v62  ;;  %v4663_v1 = vpop.f32.mrb[179].mxu1  ;;  %v5420_v8 = vadd.f32 %v9308_v29, %v5157_v56 }
 0x24b   : > { %6479 = vst.msk [vmem:[%s8836_s9 + $0x150] sm:$0xf] %vm6394_vm3, %v7383_v59  ;;  %v7384_v3 = vpack.c.bf16 %v5839_v60, %v5839_v60  ;;  %v5156_v4 = vmax.f32 %v2326_v63, %v4663_v1  ;;  %v5418_v11 = vadd.f32 %v9308_v29, %v5155_v61 }
 0x24c   : > { %6482 = vst.msk [vmem:[%s8836_s9 + $0x15c] sm:$0xf] %vm6394_vm3, %v7386_v0  ;;  %v5421_v15 = vadd.f32 %v9308_v29, %v5158_v2  ;;  %v5676_v23 = vmax.f32 %v5420_v8, 0.0 }
 0x24d   : > { %6480 = vst.msk [vmem:[%s8836_s9 + $0x154] sm:$0xf] %vm6394_vm3, %v7384_v3  ;;  %v5419_v19 = vadd.f32 %v9308_v29, %v5156_v4  ;;  %v5674_v26 = vmax.f32 %v5418_v11, 0.0 }
 0x24e   : > { %v7873_v5 = vpop.f32.mrb[180].mxu0  ;;  %v5677_v30 = vmax.f32 %v5421_v15, 0.0 }
 0x24f   : > { %v8133_v6 = vpop.f32.mrb[180].mxu1  ;;  %v2339_v7 = vpop.f32.mrb[181].mxu0  ;;  %v5675_v34 = vmax.f32 %v5419_v19, 0.0 }
 0x250   : > { %v5161_v22 = vmax.f32 %v7873_v5, %v8133_v6  ;;  %v4676_v9 = vpop.f32.mrb[181].mxu1  ;;  %v7874_v10 = vpop.f32.mrb[182].mxu0 }
 0x251   : > { %v5159_v12 = vmax.f32 %v2339_v7, %v4676_v9  ;;  %v8134_v13 = vpop.f32.mrb[182].mxu1  ;;  %v2342_v14 = vpop.f32.mrb[183].mxu0 }
 0x252   : > { %v5424_v16 = vadd.f32 %v9308_v29, %v5161_v22  ;;  %v5162_v17 = vmax.f32 %v7874_v10, %v8134_v13  ;;  %v4679_v18 = vpop.f32.mrb[183].mxu1 }
 0x253   : > { %v5422_v20 = vadd.f32 %v9308_v29, %v5159_v12  ;;  %v5160_v21 = vmax.f32 %v2342_v14, %v4679_v18 }
 0x254   : > { %v5680_v24 = vmax.f32 %v5424_v16, 0.0  ;;  %v5425_v25 = vadd.f32 %v9308_v29, %v5162_v17 }
 0x255   : > { %v5678_v27 = vmax.f32 %v5422_v20, 0.0  ;;  %v5423_v28 = vadd.f32 %v9308_v29, %v5160_v21 }
 0x256   : > { %v5844_v31 = vmax.f32 %v5676_v23, %v5680_v24  ;;  %v5681_v32 = vmax.f32 %v5425_v25, 0.0  ;;  %v7877_v33 = vpop.f32.mrb[184].mxu0 }
 0x257   : > { %v5842_v35 = vmax.f32 %v5674_v26, %v5678_v27  ;;  %v5679_v36 = vmax.f32 %v5423_v28, 0.0  ;;  %v8137_v37 = vpop.f32.mrb[184].mxu1  ;;  %v2355_v38 = vpop.f32.mrb[185].mxu0 }
 0x258   : > { %v7389_v39 = vpack.c.bf16 %v5844_v31, %v5844_v31  ;;  %v5845_v40 = vmax.f32 %v5677_v30, %v5681_v32  ;;  %v5165_v41 = vmax.f32 %v7877_v33, %v8137_v37  ;;  %v4692_v42 = vpop.f32.mrb[185].mxu1  ;;  %v7878_v43 = vpop.f32.mrb[186].mxu0 }
 0x259   : > { %v7387_v44 = vpack.c.bf16 %v5842_v35, %v5842_v35  ;;  %v5843_v45 = vmax.f32 %v5675_v34, %v5679_v36  ;;  %v5163_v46 = vmax.f32 %v2355_v38, %v4692_v42  ;;  %v8138_v47 = vpop.f32.mrb[186].mxu1  ;;  %v2358_v48 = vpop.f32.mrb[187].mxu0 }
 0x25a   : > { %6485 = vst.msk [vmem:[%s8836_s9 + $0x168] sm:$0xf] %vm6394_vm3, %v7389_v39  ;;  %v7390_v49 = vpack.c.bf16 %v5845_v40, %v5845_v40  ;;  %v5166_v50 = vmax.f32 %v7878_v43, %v8138_v47  ;;  %v4695_v51 = vpop.f32.mrb[187].mxu1  ;;  %v5428_v57 = vadd.f32 %v9308_v29, %v5165_v41 }
 0x25b   : > { %6483 = vst.msk [vmem:[%s8836_s9 + $0x160] sm:$0xf] %vm6394_vm3, %v7387_v44  ;;  %v7388_v52 = vpack.c.bf16 %v5843_v45, %v5843_v45  ;;  %v5164_v53 = vmax.f32 %v2358_v48, %v4695_v51  ;;  %v5426_v61 = vadd.f32 %v9308_v29, %v5163_v46  ;;  %v9501_v46 = vld [vmem:[%s9642_s3] ss:$0 sm:$0xff] }
 0x25c   : > { %6486 = vst.msk [vmem:[%s8836_s9 + $0x16c] sm:$0xf] %vm6394_vm3, %v7390_v49  ;;  %v5429_v2 = vadd.f32 %v9308_v29, %v5166_v50  ;;  %v5684_v8 = vmax.f32 %v5428_v57, 0.0 }
 0x25d   : > { %6484 = vst.msk [vmem:[%s8836_s9 + $0x164] sm:$0xf] %vm6394_vm3, %v7388_v52  ;;  %v5427_v5 = vadd.f32 %v9308_v29, %v5164_v53  ;;  %v5682_v10 = vmax.f32 %v5426_v61, 0.0 }
 0x25e   : > { %v7881_v54 = vpop.f32.mrb[188].mxu0  ;;  %v5685_v13 = vmax.f32 %v5429_v2, 0.0 }
 0x25f   : > { %v8141_v55 = vpop.f32.mrb[188].mxu1  ;;  %v2371_v56 = vpop.f32.mrb[189].mxu0  ;;  %v5683_v17 = vmax.f32 %v5427_v5, 0.0 }
 0x260   : > { %v5169_v58 = vmax.f32 %v7881_v54, %v8141_v55  ;;  %v4708_v59 = vpop.f32.mrb[189].mxu1  ;;  %v7882_v60 = vpop.f32.mrb[190].mxu0 }
 0x261   : > { %v5167_v62 = vmax.f32 %v2371_v56, %v4708_v59  ;;  %v8142_v63 = vpop.f32.mrb[190].mxu1  ;;  %v2374_v0 = vpop.f32.mrb[191].mxu0 }
 0x262   : > { %v5432_v1 = vadd.f32 %v9308_v29, %v5169_v58  ;;  %v5170_v3 = vmax.f32 %v7882_v60, %v8142_v63  ;;  %v4711_v4 = vpop.f32.mrb[191].mxu1 }
 0x263   : > { %v5430_v6 = vadd.f32 %v9308_v29, %v5167_v62  ;;  %v5168_v7 = vmax.f32 %v2374_v0, %v4711_v4 }
 0x264   : > { %v5688_v22 = vmax.f32 %v5432_v1, 0.0  ;;  %v5433_v9 = vadd.f32 %v9308_v29, %v5170_v3 }
 0x265   : > { %v5686_v11 = vmax.f32 %v5430_v6, 0.0  ;;  %v5431_v12 = vadd.f32 %v9308_v29, %v5168_v7 }
 0x266   : > { %v5848_v14 = vmax.f32 %v5684_v8, %v5688_v22  ;;  %v5689_v15 = vmax.f32 %v5433_v9, 0.0  ;;  %v7885_v16 = vpop.f32.mrb[192].mxu0 }
 0x267   : > { %v5846_v18 = vmax.f32 %v5682_v10, %v5686_v11  ;;  %v5687_v19 = vmax.f32 %v5431_v12, 0.0  ;;  %v8145_v20 = vpop.f32.mrb[192].mxu1  ;;  %v2387_v21 = vpop.f32.mrb[193].mxu0 }
 0x268   : > { %v7393_v23 = vpack.c.bf16 %v5848_v14, %v5848_v14  ;;  %v5849_v24 = vmax.f32 %v5685_v13, %v5689_v15  ;;  %v5173_v25 = vmax.f32 %v7885_v16, %v8145_v20  ;;  %v4724_v26 = vpop.f32.mrb[193].mxu1  ;;  %v7886_v27 = vpop.f32.mrb[194].mxu0 }
 0x269   : > { %v7391_v28 = vpack.c.bf16 %v5846_v18, %v5846_v18  ;;  %v5847_v30 = vmax.f32 %v5683_v17, %v5687_v19  ;;  %v5171_v31 = vmax.f32 %v2387_v21, %v4724_v26  ;;  %v8146_v32 = vpop.f32.mrb[194].mxu1  ;;  %v2390_v33 = vpop.f32.mrb[195].mxu0 }
 0x26a   : > { %6489 = vst.msk [vmem:[%s8836_s9 + $0x178] sm:$0xf] %vm6394_vm3, %v7393_v23  ;;  %v7394_v34 = vpack.c.bf16 %v5849_v24, %v5849_v24  ;;  %v5174_v35 = vmax.f32 %v7886_v27, %v8146_v32  ;;  %v4727_v36 = vpop.f32.mrb[195].mxu1  ;;  %v5436_v42 = vadd.f32 %v9308_v29, %v5173_v25 }
 0x26b   : > { %6487 = vst.msk [vmem:[%s8836_s9 + $0x170] sm:$0xf] %vm6394_vm3, %v7391_v28  ;;  %v7392_v37 = vpack.c.bf16 %v5847_v30, %v5847_v30  ;;  %v5172_v38 = vmax.f32 %v2390_v33, %v4727_v36  ;;  %v5434_v47 = vadd.f32 %v9501_v46, %v5171_v31 }
 0x26c   : > { %6490 = vst.msk [vmem:[%s8836_s9 + $0x17c] sm:$0xf] %vm6394_vm3, %v7394_v34  ;;  %v5437_v51 = vadd.f32 %v9501_v46, %v5174_v35  ;;  %v5692_v57 = vmax.f32 %v5436_v42, 0.0 }
 0x26d   : > { %6488 = vst.msk [vmem:[%s8836_s9 + $0x174] sm:$0xf] %vm6394_vm3, %v7392_v37  ;;  %v5435_v29 = vadd.f32 %v9501_v46, %v5172_v38  ;;  %v5690_v60 = vmax.f32 %v5434_v47, 0.0 }
 0x26e   : > { %v7889_v39 = vpop.f32.mrb[196].mxu0  ;;  %v5693_v63 = vmax.f32 %v5437_v51, 0.0 }
 0x26f   : > { %v8149_v40 = vpop.f32.mrb[196].mxu1  ;;  %v2403_v41 = vpop.f32.mrb[197].mxu0  ;;  %v5691_v3 = vmax.f32 %v5435_v29, 0.0 }
 0x270   : > { %v5177_v43 = vmax.f32 %v7889_v39, %v8149_v40  ;;  %v4740_v44 = vpop.f32.mrb[197].mxu1  ;;  %v7890_v45 = vpop.f32.mrb[198].mxu0 }
 0x271   : > { %v5175_v48 = vmax.f32 %v2403_v41, %v4740_v44  ;;  %v8150_v49 = vpop.f32.mrb[198].mxu1  ;;  %v2406_v50 = vpop.f32.mrb[199].mxu0 }
 0x272   : > { %v5440_v52 = vadd.f32 %v9501_v46, %v5177_v43  ;;  %v5178_v53 = vmax.f32 %v7890_v45, %v8150_v49  ;;  %v4743_v54 = vpop.f32.mrb[199].mxu1 }
 0x273   : > { %v5438_v55 = vadd.f32 %v9501_v46, %v5175_v48  ;;  %v5176_v56 = vmax.f32 %v2406_v50, %v4743_v54 }
 0x274   : > { %v5696_v58 = vmax.f32 %v5440_v52, 0.0  ;;  %v5441_v59 = vadd.f32 %v9501_v46, %v5178_v53 }
 0x275   : > { %v5694_v61 = vmax.f32 %v5438_v55, 0.0  ;;  %v5439_v62 = vadd.f32 %v9501_v46, %v5176_v56 }
 0x276   : > { %v5852_v0 = vmax.f32 %v5692_v57, %v5696_v58  ;;  %v5697_v2 = vmax.f32 %v5441_v59, 0.0  ;;  %v7893_v1 = vpop.f32.mrb[200].mxu0 }
 0x277   : > { %v5850_v4 = vmax.f32 %v5690_v60, %v5694_v61  ;;  %v5695_v5 = vmax.f32 %v5439_v62, 0.0  ;;  %v8153_v6 = vpop.f32.mrb[200].mxu1  ;;  %v2419_v7 = vpop.f32.mrb[201].mxu0 }
 0x278   : > { %v7397_v8 = vpack.c.bf16 %v5852_v0, %v5852_v0  ;;  %v5853_v22 = vmax.f32 %v5693_v63, %v5697_v2  ;;  %v5181_v9 = vmax.f32 %v7893_v1, %v8153_v6  ;;  %v4756_v10 = vpop.f32.mrb[201].mxu1  ;;  %v7894_v11 = vpop.f32.mrb[202].mxu0 }
 0x279   : > { %v7395_v12 = vpack.c.bf16 %v5850_v4, %v5850_v4  ;;  %v5851_v13 = vmax.f32 %v5691_v3, %v5695_v5  ;;  %v5179_v14 = vmax.f32 %v2419_v7, %v4756_v10  ;;  %v8154_v15 = vpop.f32.mrb[202].mxu1  ;;  %v2422_v16 = vpop.f32.mrb[203].mxu0 }
 0x27a   : > { %6493 = vst.msk [vmem:[%s8836_s9 + $0x188] sm:$0xf] %vm6394_vm3, %v7397_v8  ;;  %v7398_v17 = vpack.c.bf16 %v5853_v22, %v5853_v22  ;;  %v5182_v18 = vmax.f32 %v7894_v11, %v8154_v15  ;;  %v4759_v19 = vpop.f32.mrb[203].mxu1  ;;  %v5444_v26 = vadd.f32 %v9501_v46, %v5181_v9 }
 0x27b   : > { %6491 = vst.msk [vmem:[%s8836_s9 + $0x180] sm:$0xf] %vm6394_vm3, %v7395_v12  ;;  %v7396_v20 = vpack.c.bf16 %v5851_v13, %v5851_v13  ;;  %v5180_v21 = vmax.f32 %v2422_v16, %v4759_v19  ;;  %v5442_v31 = vadd.f32 %v9501_v46, %v5179_v14 }
 0x27c   : > { %6494 = vst.msk [vmem:[%s8836_s9 + $0x18c] sm:$0xf] %vm6394_vm3, %v7398_v17  ;;  %v5445_v35 = vadd.f32 %v9501_v46, %v5182_v18  ;;  %v5700_v42 = vmax.f32 %v5444_v26, 0.0 }
 0x27d   : > { %6492 = vst.msk [vmem:[%s8836_s9 + $0x184] sm:$0xf] %vm6394_vm3, %v7396_v20  ;;  %v5443_v39 = vadd.f32 %v9501_v46, %v5180_v21  ;;  %v5698_v45 = vmax.f32 %v5442_v31, 0.0 }
 0x27e   : > { %v7897_v23 = vpop.f32.mrb[204].mxu0  ;;  %v5701_v49 = vmax.f32 %v5445_v35, 0.0 }
 0x27f   : > { %v8157_v24 = vpop.f32.mrb[204].mxu1  ;;  %v2435_v25 = vpop.f32.mrb[205].mxu0  ;;  %v5699_v53 = vmax.f32 %v5443_v39, 0.0 }
 0x280   : > { %v5185_v27 = vmax.f32 %v7897_v23, %v8157_v24  ;;  %v4772_v28 = vpop.f32.mrb[205].mxu1  ;;  %v7898_v30 = vpop.f32.mrb[206].mxu0 }
 0x281   : > { %v5183_v32 = vmax.f32 %v2435_v25, %v4772_v28  ;;  %v8158_v33 = vpop.f32.mrb[206].mxu1  ;;  %v2438_v34 = vpop.f32.mrb[207].mxu0 }
 0x282   : > { %v5448_v36 = vadd.f32 %v9501_v46, %v5185_v27  ;;  %v5186_v37 = vmax.f32 %v7898_v30, %v8158_v33  ;;  %v4775_v38 = vpop.f32.mrb[207].mxu1 }
 0x283   : > { %v5446_v40 = vadd.f32 %v9501_v46, %v5183_v32  ;;  %v5184_v41 = vmax.f32 %v2438_v34, %v4775_v38 }
 0x284   : > { %v5704_v43 = vmax.f32 %v5448_v36, 0.0  ;;  %v5449_v44 = vadd.f32 %v9501_v46, %v5186_v37 }
 0x285   : > { %v5702_v47 = vmax.f32 %v5446_v40, 0.0  ;;  %v5447_v48 = vadd.f32 %v9501_v46, %v5184_v41 }
 0x286   : > { %v5856_v50 = vmax.f32 %v5700_v42, %v5704_v43  ;;  %v5705_v51 = vmax.f32 %v5449_v44, 0.0  ;;  %v7901_v52 = vpop.f32.mrb[208].mxu0 }
 0x287   : > { %v5854_v54 = vmax.f32 %v5698_v45, %v5702_v47  ;;  %v5703_v29 = vmax.f32 %v5447_v48, 0.0  ;;  %v8161_v55 = vpop.f32.mrb[208].mxu1  ;;  %v2451_v56 = vpop.f32.mrb[209].mxu0 }
 0x288   : > { %v7401_v57 = vpack.c.bf16 %v5856_v50, %v5856_v50  ;;  %v5857_v58 = vmax.f32 %v5701_v49, %v5705_v51  ;;  %v5189_v59 = vmax.f32 %v7901_v52, %v8161_v55  ;;  %v4788_v60 = vpop.f32.mrb[209].mxu1  ;;  %v7902_v61 = vpop.f32.mrb[210].mxu0 }
 0x289   : > { %v7399_v62 = vpack.c.bf16 %v5854_v54, %v5854_v54  ;;  %v5855_v63 = vmax.f32 %v5699_v53, %v5703_v29  ;;  %v5187_v0 = vmax.f32 %v2451_v56, %v4788_v60  ;;  %v8162_v2 = vpop.f32.mrb[210].mxu1  ;;  %v2454_v1 = vpop.f32.mrb[211].mxu0 }
 0x28a   : > { %6497 = vst.msk [vmem:[%s8836_s9 + $0x198] sm:$0xf] %vm6394_vm3, %v7401_v57  ;;  %v7402_v3 = vpack.c.bf16 %v5857_v58, %v5857_v58  ;;  %v5190_v4 = vmax.f32 %v7902_v61, %v8162_v2  ;;  %v4791_v5 = vpop.f32.mrb[211].mxu1  ;;  %v5452_v10 = vadd.f32 %v9501_v46, %v5189_v59 }
 0x28b   : > { %6495 = vst.msk [vmem:[%s8836_s9 + $0x190] sm:$0xf] %vm6394_vm3, %v7399_v62  ;;  %v7400_v6 = vpack.c.bf16 %v5855_v63, %v5855_v63  ;;  %v5188_v7 = vmax.f32 %v2454_v1, %v4791_v5  ;;  %v5450_v14 = vadd.f32 %v9501_v46, %v5187_v0 }
 0x28c   : > { %6498 = vst.msk [vmem:[%s8836_s9 + $0x19c] sm:$0xf] %vm6394_vm3, %v7402_v3  ;;  %v5453_v18 = vadd.f32 %v9501_v46, %v5190_v4  ;;  %v5708_v26 = vmax.f32 %v5452_v10, 0.0 }
 0x28d   : > { %6496 = vst.msk [vmem:[%s8836_s9 + $0x194] sm:$0xf] %vm6394_vm3, %v7400_v6  ;;  %v5451_v23 = vadd.f32 %v9501_v46, %v5188_v7  ;;  %v5706_v30 = vmax.f32 %v5450_v14, 0.0 }
 0x28e   : > { %v7905_v8 = vpop.f32.mrb[212].mxu0  ;;  %v5709_v33 = vmax.f32 %v5453_v18, 0.0 }
 0x28f   : > { %v8165_v22 = vpop.f32.mrb[212].mxu1  ;;  %v2467_v9 = vpop.f32.mrb[213].mxu0  ;;  %v5707_v37 = vmax.f32 %v5451_v23, 0.0 }
 0x290   : > { %v5193_v11 = vmax.f32 %v7905_v8, %v8165_v22  ;;  %v4804_v12 = vpop.f32.mrb[213].mxu1  ;;  %v7906_v13 = vpop.f32.mrb[214].mxu0 }
 0x291   : > { %v5191_v15 = vmax.f32 %v2467_v9, %v4804_v12  ;;  %v8166_v16 = vpop.f32.mrb[214].mxu1  ;;  %v2470_v17 = vpop.f32.mrb[215].mxu0 }
 0x292   : > { %v5456_v19 = vadd.f32 %v9501_v46, %v5193_v11  ;;  %v5194_v20 = vmax.f32 %v7906_v13, %v8166_v16  ;;  %v4807_v21 = vpop.f32.mrb[215].mxu1 }
 0x293   : > { %v5454_v24 = vadd.f32 %v9501_v46, %v5191_v15  ;;  %v5192_v25 = vmax.f32 %v2470_v17, %v4807_v21 }
 0x294   : > { %v5712_v27 = vmax.f32 %v5456_v19, 0.0  ;;  %v5457_v28 = vadd.f32 %v9501_v46, %v5194_v20 }
 0x295   : > { %v5710_v31 = vmax.f32 %v5454_v24, 0.0  ;;  %v5455_v32 = vadd.f32 %v9501_v46, %v5192_v25 }
 0x296   : > { %v5860_v34 = vmax.f32 %v5708_v26, %v5712_v27  ;;  %v5713_v35 = vmax.f32 %v5457_v28, 0.0  ;;  %v7909_v36 = vpop.f32.mrb[216].mxu0 }
 0x297   : > { %v5858_v38 = vmax.f32 %v5706_v30, %v5710_v31  ;;  %v5711_v39 = vmax.f32 %v5455_v32, 0.0  ;;  %v8169_v40 = vpop.f32.mrb[216].mxu1  ;;  %v2483_v41 = vpop.f32.mrb[217].mxu0 }
 0x298   : > { %v7405_v42 = vpack.c.bf16 %v5860_v34, %v5860_v34  ;;  %v5861_v43 = vmax.f32 %v5709_v33, %v5713_v35  ;;  %v5197_v44 = vmax.f32 %v7909_v36, %v8169_v40  ;;  %v4820_v45 = vpop.f32.mrb[217].mxu1  ;;  %v7910_v47 = vpop.f32.mrb[218].mxu0 }
 0x299   : > { %v7403_v48 = vpack.c.bf16 %v5858_v38, %v5858_v38  ;;  %v5859_v49 = vmax.f32 %v5707_v37, %v5711_v39  ;;  %v5195_v50 = vmax.f32 %v2483_v41, %v4820_v45  ;;  %v8170_v51 = vpop.f32.mrb[218].mxu1  ;;  %v2486_v52 = vpop.f32.mrb[219].mxu0 }
 0x29a   : > { %6501 = vst.msk [vmem:[%s8836_s9 + $0x1a8] sm:$0xf] %vm6394_vm3, %v7405_v42  ;;  %v7406_v53 = vpack.c.bf16 %v5861_v43, %v5861_v43  ;;  %v5198_v54 = vmax.f32 %v7910_v47, %v8170_v51  ;;  %v4823_v29 = vpop.f32.mrb[219].mxu1  ;;  %v5460_v60 = vadd.f32 %v9501_v46, %v5197_v44 }
 0x29b   : > { %6499 = vst.msk [vmem:[%s8836_s9 + $0x1a0] sm:$0xf] %vm6394_vm3, %v7403_v48  ;;  %v7404_v55 = vpack.c.bf16 %v5859_v49, %v5859_v49  ;;  %v5196_v56 = vmax.f32 %v2486_v52, %v4823_v29  ;;  %v5458_v0 = vadd.f32 %v9501_v46, %v5195_v50 }
 0x29c   : > { %6502 = vst.msk [vmem:[%s8836_s9 + $0x1ac] sm:$0xf] %vm6394_vm3, %v7406_v53  ;;  %v5461_v4 = vadd.f32 %v9501_v46, %v5198_v54  ;;  %v5716_v10 = vmax.f32 %v5460_v60, 0.0 }
 0x29d   : > { %6500 = vst.msk [vmem:[%s8836_s9 + $0x1a4] sm:$0xf] %vm6394_vm3, %v7404_v55  ;;  %v5459_v8 = vadd.f32 %v9501_v46, %v5196_v56  ;;  %v5714_v13 = vmax.f32 %v5458_v0, 0.0 }
 0x29e   : > { %v7913_v57 = vpop.f32.mrb[220].mxu0  ;;  %v5717_v16 = vmax.f32 %v5461_v4, 0.0 }
 0x29f   : > { %v8173_v58 = vpop.f32.mrb[220].mxu1  ;;  %v2499_v59 = vpop.f32.mrb[221].mxu0  ;;  %v5715_v20 = vmax.f32 %v5459_v8, 0.0 }
 0x2a0   : > { %v5201_v61 = vmax.f32 %v7913_v57, %v8173_v58  ;;  %v4836_v62 = vpop.f32.mrb[221].mxu1  ;;  %v7914_v63 = vpop.f32.mrb[222].mxu0 }
 0x2a1   : > { %v5199_v2 = vmax.f32 %v2499_v59, %v4836_v62  ;;  %v8174_v1 = vpop.f32.mrb[222].mxu1  ;;  %v2502_v3 = vpop.f32.mrb[223].mxu0 }
 0x2a2   : > { %v5464_v5 = vadd.f32 %v9501_v46, %v5201_v61  ;;  %v5202_v6 = vmax.f32 %v7914_v63, %v8174_v1  ;;  %v4839_v7 = vpop.f32.mrb[223].mxu1 }
 0x2a3   : > { %v5462_v22 = vadd.f32 %v9501_v46, %v5199_v2  ;;  %v5200_v9 = vmax.f32 %v2502_v3, %v4839_v7 }
 0x2a4   : > { %v5720_v11 = vmax.f32 %v5464_v5, 0.0  ;;  %v5465_v12 = vadd.f32 %v9501_v46, %v5202_v6 }
 0x2a5   : > { %v5718_v14 = vmax.f32 %v5462_v22, 0.0  ;;  %v5463_v15 = vadd.f32 %v9501_v46, %v5200_v9 }
 0x2a6   : > { %v5864_v17 = vmax.f32 %v5716_v10, %v5720_v11  ;;  %v5721_v18 = vmax.f32 %v5465_v12, 0.0  ;;  %v7917_v19 = vpop.f32.mrb[224].mxu0 }
 0x2a7   : > { %v5862_v21 = vmax.f32 %v5714_v13, %v5718_v14  ;;  %v5719_v23 = vmax.f32 %v5463_v15, 0.0  ;;  %v8177_v24 = vpop.f32.mrb[224].mxu1  ;;  %v2515_v25 = vpop.f32.mrb[225].mxu0 }
 0x2a8   : > { %v7409_v26 = vpack.c.bf16 %v5864_v17, %v5864_v17  ;;  %v5865_v27 = vmax.f32 %v5717_v16, %v5721_v18  ;;  %v5205_v28 = vmax.f32 %v7917_v19, %v8177_v24  ;;  %v4852_v30 = vpop.f32.mrb[225].mxu1  ;;  %v7918_v31 = vpop.f32.mrb[226].mxu0 }
 0x2a9   : > { %v7407_v32 = vpack.c.bf16 %v5862_v21, %v5862_v21  ;;  %v5863_v33 = vmax.f32 %v5715_v20, %v5719_v23  ;;  %v5203_v34 = vmax.f32 %v2515_v25, %v4852_v30  ;;  %v8178_v35 = vpop.f32.mrb[226].mxu1  ;;  %v2518_v36 = vpop.f32.mrb[227].mxu0 }
 0x2aa   : > { %6505 = vst.msk [vmem:[%s8836_s9 + $0x1b8] sm:$0xf] %vm6394_vm3, %v7409_v26  ;;  %v7410_v37 = vpack.c.bf16 %v5865_v27, %v5865_v27  ;;  %v5206_v38 = vmax.f32 %v7918_v31, %v8178_v35  ;;  %v4855_v39 = vpop.f32.mrb[227].mxu1  ;;  %v5468_v45 = vadd.f32 %v9501_v46, %v5205_v28 }
 0x2ab   : > { %6503 = vst.msk [vmem:[%s8836_s9 + $0x1b0] sm:$0xf] %vm6394_vm3, %v7407_v32  ;;  %v7408_v40 = vpack.c.bf16 %v5863_v33, %v5863_v33  ;;  %v5204_v41 = vmax.f32 %v2518_v36, %v4855_v39  ;;  %v5466_v50 = vadd.f32 %v9501_v46, %v5203_v34 }
 0x2ac   : > { %6506 = vst.msk [vmem:[%s8836_s9 + $0x1bc] sm:$0xf] %vm6394_vm3, %v7410_v37  ;;  %v5469_v54 = vadd.f32 %v9501_v46, %v5206_v38  ;;  %v5724_v60 = vmax.f32 %v5468_v45, 0.0 }
 0x2ad   : > { %6504 = vst.msk [vmem:[%s8836_s9 + $0x1b4] sm:$0xf] %vm6394_vm3, %v7408_v40  ;;  %v5467_v57 = vadd.f32 %v9501_v46, %v5204_v41  ;;  %v5722_v63 = vmax.f32 %v5466_v50, 0.0 }
 0x2ae   : > { %v7921_v42 = vpop.f32.mrb[228].mxu0  ;;  %v5725_v1 = vmax.f32 %v5469_v54, 0.0 }
 0x2af   : > { %v8181_v43 = vpop.f32.mrb[228].mxu1  ;;  %v2531_v44 = vpop.f32.mrb[229].mxu0  ;;  %v5723_v6 = vmax.f32 %v5467_v57, 0.0 }
 0x2b0   : > { %v5209_v47 = vmax.f32 %v7921_v42, %v8181_v43  ;;  %v4868_v48 = vpop.f32.mrb[229].mxu1  ;;  %v7922_v49 = vpop.f32.mrb[230].mxu0 }
 0x2b1   : > { %v5207_v51 = vmax.f32 %v2531_v44, %v4868_v48  ;;  %v8182_v52 = vpop.f32.mrb[230].mxu1  ;;  %v2534_v53 = vpop.f32.mrb[231].mxu0 }
 0x2b2   : > { %v5472_v29 = vadd.f32 %v9501_v46, %v5209_v47  ;;  %v5210_v55 = vmax.f32 %v7922_v49, %v8182_v52  ;;  %v4871_v56 = vpop.f32.mrb[231].mxu1 }
 0x2b3   : > { %v5470_v58 = vadd.f32 %v9501_v46, %v5207_v51  ;;  %v5208_v59 = vmax.f32 %v2534_v53, %v4871_v56 }
 0x2b4   : > { %v5728_v61 = vmax.f32 %v5472_v29, 0.0  ;;  %v5473_v62 = vadd.f32 %v9501_v46, %v5210_v55 }
 0x2b5   : > { %v5726_v0 = vmax.f32 %v5470_v58, 0.0  ;;  %v5471_v2 = vadd.f32 %v9501_v46, %v5208_v59 }
 0x2b6   : > { %v5868_v3 = vmax.f32 %v5724_v60, %v5728_v61  ;;  %v5729_v4 = vmax.f32 %v5473_v62, 0.0  ;;  %v7925_v5 = vpop.f32.mrb[232].mxu0 }
 0x2b7   : > { %v5866_v7 = vmax.f32 %v5722_v63, %v5726_v0  ;;  %v5727_v8 = vmax.f32 %v5471_v2, 0.0  ;;  %v8185_v22 = vpop.f32.mrb[232].mxu1  ;;  %v2547_v9 = vpop.f32.mrb[233].mxu0 }
 0x2b8   : > { %v7413_v10 = vpack.c.bf16 %v5868_v3, %v5868_v3  ;;  %v5869_v11 = vmax.f32 %v5725_v1, %v5729_v4  ;;  %v5213_v12 = vmax.f32 %v7925_v5, %v8185_v22  ;;  %v4884_v13 = vpop.f32.mrb[233].mxu1  ;;  %v7926_v14 = vpop.f32.mrb[234].mxu0 }
 0x2b9   : > { %v7411_v15 = vpack.c.bf16 %v5866_v7, %v5866_v7  ;;  %v5867_v16 = vmax.f32 %v5723_v6, %v5727_v8  ;;  %v5211_v17 = vmax.f32 %v2547_v9, %v4884_v13  ;;  %v8186_v18 = vpop.f32.mrb[234].mxu1  ;;  %v2550_v19 = vpop.f32.mrb[235].mxu0 }
 0x2ba   : > { %6509 = vst.msk [vmem:[%s8836_s9 + $0x1c8] sm:$0xf] %vm6394_vm3, %v7413_v10  ;;  %v7414_v20 = vpack.c.bf16 %v5869_v11, %v5869_v11  ;;  %v5214_v21 = vmax.f32 %v7926_v14, %v8186_v18  ;;  %v4887_v23 = vpop.f32.mrb[235].mxu1  ;;  %v5476_v30 = vadd.f32 %v9501_v46, %v5213_v12 }
 0x2bb   : > { %6507 = vst.msk [vmem:[%s8836_s9 + $0x1c0] sm:$0xf] %vm6394_vm3, %v7411_v15  ;;  %v7412_v24 = vpack.c.bf16 %v5867_v16, %v5867_v16  ;;  %v5212_v25 = vmax.f32 %v2550_v19, %v4887_v23  ;;  %v5474_v34 = vadd.f32 %v9501_v46, %v5211_v17 }
 0x2bc   : > { %6510 = vst.msk [vmem:[%s8836_s9 + $0x1cc] sm:$0xf] %vm6394_vm3, %v7414_v20  ;;  %v5477_v38 = vadd.f32 %v9501_v46, %v5214_v21  ;;  %v5732_v45 = vmax.f32 %v5476_v30, 0.0 }
 0x2bd   : > { %6508 = vst.msk [vmem:[%s8836_s9 + $0x1c4] sm:$0xf] %vm6394_vm3, %v7412_v24  ;;  %v5475_v42 = vadd.f32 %v9501_v46, %v5212_v25  ;;  %v5730_v49 = vmax.f32 %v5474_v34, 0.0 }
 0x2be   : > { %v7929_v26 = vpop.f32.mrb[236].mxu0  ;;  %v5733_v52 = vmax.f32 %v5477_v38, 0.0 }
 0x2bf   : > { %v8189_v27 = vpop.f32.mrb[236].mxu1  ;;  %v2563_v28 = vpop.f32.mrb[237].mxu0  ;;  %v5731_v55 = vmax.f32 %v5475_v42, 0.0 }
 0x2c0   : > { %v5217_v31 = vmax.f32 %v7929_v26, %v8189_v27  ;;  %v4900_v32 = vpop.f32.mrb[237].mxu1  ;;  %v7930_v33 = vpop.f32.mrb[238].mxu0 }
 0x2c1   : > { %v5215_v35 = vmax.f32 %v2563_v28, %v4900_v32  ;;  %v8190_v36 = vpop.f32.mrb[238].mxu1  ;;  %v2566_v37 = vpop.f32.mrb[239].mxu0 }
 0x2c2   : > { %v5480_v39 = vadd.f32 %v9501_v46, %v5217_v31  ;;  %v5218_v40 = vmax.f32 %v7930_v33, %v8190_v36  ;;  %v4903_v41 = vpop.f32.mrb[239].mxu1 }
 0x2c3   : > { %v5478_v43 = vadd.f32 %v9501_v46, %v5215_v35  ;;  %v5216_v44 = vmax.f32 %v2566_v37, %v4903_v41 }
 0x2c4   : > { %v5736_v47 = vmax.f32 %v5480_v39, 0.0  ;;  %v5481_v48 = vadd.f32 %v9501_v46, %v5218_v40 }
 0x2c5   : > { %v5734_v50 = vmax.f32 %v5478_v43, 0.0  ;;  %v5479_v51 = vadd.f32 %v9501_v46, %v5216_v44 }
 0x2c6   : > { %v5872_v53 = vmax.f32 %v5732_v45, %v5736_v47  ;;  %v5737_v54 = vmax.f32 %v5481_v48, 0.0  ;;  %v7933_v29 = vpop.f32.mrb[240].mxu0 }
 0x2c7   : > { %v5870_v56 = vmax.f32 %v5730_v49, %v5734_v50  ;;  %v5735_v57 = vmax.f32 %v5479_v51, 0.0  ;;  %v8193_v58 = vpop.f32.mrb[240].mxu1  ;;  %v2579_v59 = vpop.f32.mrb[241].mxu0 }
 0x2c8   : > { %v7417_v60 = vpack.c.bf16 %v5872_v53, %v5872_v53  ;;  %v5873_v61 = vmax.f32 %v5733_v52, %v5737_v54  ;;  %v5221_v62 = vmax.f32 %v7933_v29, %v8193_v58  ;;  %v4916_v63 = vpop.f32.mrb[241].mxu1  ;;  %v7934_v0 = vpop.f32.mrb[242].mxu0 }
 0x2c9   : > { %v7415_v2 = vpack.c.bf16 %v5870_v56, %v5870_v56  ;;  %v5871_v1 = vmax.f32 %v5731_v55, %v5735_v57  ;;  %v5219_v3 = vmax.f32 %v2579_v59, %v4916_v63  ;;  %v8194_v4 = vpop.f32.mrb[242].mxu1  ;;  %v2582_v5 = vpop.f32.mrb[243].mxu0 }
 0x2ca   : > { %6513 = vst.msk [vmem:[%s8836_s9 + $0x1d8] sm:$0xf] %vm6394_vm3, %v7417_v60  ;;  %v7418_v6 = vpack.c.bf16 %v5873_v61, %v5873_v61  ;;  %v5222_v7 = vmax.f32 %v7934_v0, %v8194_v4  ;;  %v4919_v8 = vpop.f32.mrb[243].mxu1  ;;  %v5484_v13 = vadd.f32 %v9501_v46, %v5221_v62 }
 0x2cb   : > { %6511 = vst.msk [vmem:[%s8836_s9 + $0x1d0] sm:$0xf] %vm6394_vm3, %v7415_v2  ;;  %v7416_v22 = vpack.c.bf16 %v5871_v1, %v5871_v1  ;;  %v5220_v9 = vmax.f32 %v2582_v5, %v4919_v8  ;;  %v5482_v17 = vadd.f32 %v9501_v46, %v5219_v3 }
 0x2cc   : > { %6514 = vst.msk [vmem:[%s8836_s9 + $0x1dc] sm:$0xf] %vm6394_vm3, %v7418_v6  ;;  %v5485_v21 = vadd.f32 %v9501_v46, %v5222_v7  ;;  %v5740_v30 = vmax.f32 %v5484_v13, 0.0 }
 0x2cd   : > { %6512 = vst.msk [vmem:[%s8836_s9 + $0x1d4] sm:$0xf] %vm6394_vm3, %v7416_v22  ;;  %v5483_v26 = vadd.f32 %v9501_v46, %v5220_v9  ;;  %v5738_v33 = vmax.f32 %v5482_v17, 0.0 }
 0x2ce   : > { %v7937_v10 = vpop.f32.mrb[244].mxu0  ;;  %v5741_v36 = vmax.f32 %v5485_v21, 0.0 }
 0x2cf   : > { %v8197_v11 = vpop.f32.mrb[244].mxu1  ;;  %v2595_v12 = vpop.f32.mrb[245].mxu0  ;;  %v5739_v40 = vmax.f32 %v5483_v26, 0.0 }
 0x2d0   : > { %v5225_v14 = vmax.f32 %v7937_v10, %v8197_v11  ;;  %v4932_v15 = vpop.f32.mrb[245].mxu1  ;;  %v7938_v16 = vpop.f32.mrb[246].mxu0 }
 0x2d1   : > { %v5223_v18 = vmax.f32 %v2595_v12, %v4932_v15  ;;  %v8198_v19 = vpop.f32.mrb[246].mxu1  ;;  %v2598_v20 = vpop.f32.mrb[247].mxu0 }
 0x2d2   : > { %v5488_v23 = vadd.f32 %v9501_v46, %v5225_v14  ;;  %v5226_v24 = vmax.f32 %v7938_v16, %v8198_v19  ;;  %v4935_v25 = vpop.f32.mrb[247].mxu1 }
 0x2d3   : > { %v5486_v27 = vadd.f32 %v9501_v46, %v5223_v18  ;;  %v5224_v28 = vmax.f32 %v2598_v20, %v4935_v25 }
 0x2d4   : > { %v5744_v31 = vmax.f32 %v5488_v23, 0.0  ;;  %v5489_v32 = vadd.f32 %v9501_v46, %v5226_v24 }
 0x2d5   : > { %v5742_v34 = vmax.f32 %v5486_v27, 0.0  ;;  %v5487_v35 = vadd.f32 %v9501_v46, %v5224_v28 }
 0x2d6   : > { %v5876_v37 = vmax.f32 %v5740_v30, %v5744_v31  ;;  %v5745_v38 = vmax.f32 %v5489_v32, 0.0  ;;  %v7941_v39 = vpop.f32.mrb[248].mxu0 }
 0x2d7   : > { %v5874_v41 = vmax.f32 %v5738_v33, %v5742_v34  ;;  %v5743_v42 = vmax.f32 %v5487_v35, 0.0  ;;  %v8201_v43 = vpop.f32.mrb[248].mxu1  ;;  %v2611_v44 = vpop.f32.mrb[249].mxu0 }
 0x2d8   : > { %v7421_v45 = vpack.c.bf16 %v5876_v37, %v5876_v37  ;;  %v5877_v47 = vmax.f32 %v5741_v36, %v5745_v38  ;;  %v5229_v48 = vmax.f32 %v7941_v39, %v8201_v43  ;;  %v4948_v49 = vpop.f32.mrb[249].mxu1  ;;  %v7942_v50 = vpop.f32.mrb[250].mxu0 }
 0x2d9   : > { %v7419_v51 = vpack.c.bf16 %v5874_v41, %v5874_v41  ;;  %v5875_v52 = vmax.f32 %v5739_v40, %v5743_v42  ;;  %v5227_v53 = vmax.f32 %v2611_v44, %v4948_v49  ;;  %v8202_v54 = vpop.f32.mrb[250].mxu1  ;;  %v2614_v29 = vpop.f32.mrb[251].mxu0 }
 0x2da   : > { %6517 = vst.msk [vmem:[%s8836_s9 + $0x1e8] sm:$0xf] %vm6394_vm3, %v7421_v45  ;;  %v7422_v55 = vpack.c.bf16 %v5877_v47, %v5877_v47  ;;  %v5230_v56 = vmax.f32 %v7942_v50, %v8202_v54  ;;  %v4951_v57 = vpop.f32.mrb[251].mxu1  ;;  %v5492_v63 = vadd.f32 %v9501_v46, %v5229_v48 }
 0x2db   : > { %6515 = vst.msk [vmem:[%s8836_s9 + $0x1e0] sm:$0xf] %vm6394_vm3, %v7419_v51  ;;  %v7420_v58 = vpack.c.bf16 %v5875_v52, %v5875_v52  ;;  %v5228_v59 = vmax.f32 %v2614_v29, %v4951_v57  ;;  %v5490_v3 = vadd.f32 %v9501_v46, %v5227_v53 }
 0x2dc   : > { %6518 = vst.msk [vmem:[%s8836_s9 + $0x1ec] sm:$0xf] %vm6394_vm3, %v7422_v55  ;;  %v5493_v7 = vadd.f32 %v9501_v46, %v5230_v56  ;;  %v5748_v13 = vmax.f32 %v5492_v63, 0.0 }
 0x2dd   : > { %6516 = vst.msk [vmem:[%s8836_s9 + $0x1e4] sm:$0xf] %vm6394_vm3, %v7420_v58  ;;  %v5491_v10 = vadd.f32 %v9501_v46, %v5228_v59  ;;  %v5746_v16 = vmax.f32 %v5490_v3, 0.0 }
 0x2de   : > { %v7945_v60 = vpop.f32.mrb[252].mxu0  ;;  %v5749_v19 = vmax.f32 %v5493_v7, 0.0 }
 0x2df   : > { %v8205_v61 = vpop.f32.mrb[252].mxu1  ;;  %v2627_v62 = vpop.f32.mrb[253].mxu0  ;;  %v5747_v23 = vmax.f32 %v5491_v10, 0.0 }
 0x2e0   : > { %v5233_v0 = vmax.f32 %v7945_v60, %v8205_v61  ;;  %v4964_v2 = vpop.f32.mrb[253].mxu1  ;;  %v7946_v1 = vpop.f32.mrb[254].mxu0 }
 0x2e1   : > { %v5231_v4 = vmax.f32 %v2627_v62, %v4964_v2  ;;  %v8206_v5 = vpop.f32.mrb[254].mxu1  ;;  %v2630_v6 = vpop.f32.mrb[255].mxu0 }
 0x2e2   : > { %v5496_v8 = vadd.f32 %v9501_v46, %v5233_v0  ;;  %v5234_v22 = vmax.f32 %v7946_v1, %v8206_v5  ;;  %v4967_v9 = vpop.f32.mrb[255].mxu1 }
 0x2e3   : > { %v5494_v11 = vadd.f32 %v9501_v46, %v5231_v4  ;;  %v5232_v12 = vmax.f32 %v2630_v6, %v4967_v9 }
 0x2e4   : > { %v5752_v14 = vmax.f32 %v5496_v8, 0.0  ;;  %v5497_v15 = vadd.f32 %v9501_v46, %v5234_v22 }
 0x2e5   : > { %v5750_v17 = vmax.f32 %v5494_v11, 0.0  ;;  %v5495_v18 = vadd.f32 %v9501_v46, %v5232_v12 }
 0x2e6   : > { %v5880_v20 = vmax.f32 %v5748_v13, %v5752_v14  ;;  %v5753_v21 = vmax.f32 %v5497_v15, 0.0 }
 0x2e7   : > { %v5878_v24 = vmax.f32 %v5746_v16, %v5750_v17  ;;  %v5751_v25 = vmax.f32 %v5495_v18, 0.0 }
 0x2e8   : > { %v7425_v26 = vpack.c.bf16 %v5880_v20, %v5880_v20  ;;  %v5881_v27 = vmax.f32 %v5749_v19, %v5753_v21 }
 0x2e9   : > { %v7423_v28 = vpack.c.bf16 %v5878_v24, %v5878_v24  ;;  %v5879_v30 = vmax.f32 %v5747_v23, %v5751_v25 }
 0x2ea   : > { %6521 = vst.msk [vmem:[%s8836_s9 + $0x1f8] sm:$0xf] %vm6394_vm3, %v7425_v26  ;;  %v7426_v31 = vpack.c.bf16 %v5881_v27, %v5881_v27 }
 0x2eb   : > { %6519 = vst.msk [vmem:[%s8836_s9 + $0x1f0] sm:$0xf] %vm6394_vm3, %v7423_v28  ;;  %v7424_v32 = vpack.c.bf16 %v5879_v30, %v5879_v30 }
 0x2ec   : > { %6522 = vst.msk [vmem:[%s8836_s9 + $0x1fc] sm:$0xf] %vm6394_vm3, %v7426_v31 }
 0x2ed   : > { %6520 = vst.msk [vmem:[%s8836_s9 + $0x1f4] sm:$0xf] %vm6394_vm3, %v7424_v32 }
 0x2ee PF: > { %s14_s17 = sadd.s32 1, %s8515_s17   ;;  %s9644_s15 = smov %s8511_s16 }
 0x2ef   : > { %p11_p5 = scmp.ge.s32.totalorder %s14_s17, 4   ;;  %s9645_s16 = smov %s9647_s18 }
 0x2f1   :  { %13 = sbr.rel (!%p11_p5) target bundleno = 2 (0x2), region = 69 }

// kernel: asl_classifier_forward.4
= control target key start
LH: loop header
LB: loop body
LE: loop exit
PB: predicated region body
PF: predicated region fallthrough
CT: control target
= control target key end

     0   :  { %s2897_s15 = smov 0   ;;  %s2899_s16 = smov 0   ;;  %s3290_s0 = inlined_call_operand.vmem [shape: bf16[2,32,16,144], index: 0, kind: input, shape index: {}]   ;;  %s3291_s1 = inlined_call_operand.vmem [shape: bf16[2,32,16,144], index: 1, kind: input, shape index: {}]   ;;  %s3292_s2 = inlined_call_operand.vmem [shape: bf16[144,32], index: 2, kind: input, shape index: {}]   ;;  %s3293_s3 = inlined_call_operand.vmem [shape: f32[1,32], index: 3, kind: input, shape index: {}]   ;;  %s3294_s4 = inlined_call_operand.vmem [shape: bf16[2,16,16,32], index: 4, kind: output, shape index: {}]  }
   0x1   :  { %s2901_s17 = smov 0  }
   0x2 LB: > { %s26_s18 = sadd.s32 1, %s2865_s16  ;;  %p2342_p0 = scmp.ge.s32.totalorder %s2869_s17, 1  ;;  %s2869_s17 = sphi %s2901_s17, %s14_s17   ;;  %s2865_s16 = sphi %s2899_s16, %s3296_s16   ;;  %s2861_s15 = sphi %s2897_s15, %s3295_s15  }
   0x3   : > { %p28_p1 = scmp.ge.s32.totalorder %s26_s18, 2  ;;  %p202_p2 = scmp.lt.s32.totalorder %s2869_s17, 3 }
   0x5   : > { %s3298_s18 = smov (%p28_p1, %s26_s18), 0  ;;  %p203_p3 = pnand %p2342_p0, %p202_p2 }
   0x6   : > { %v2645_v0 = vld [vmem:[%s3292_s2] sm:$0xff] (!%p203_p3)   ;;  %v2871_v1 = vmov (!%p203_p3), 0   ;;  %p249_p4 = scmp.lt.s32.totalorder (!%p203_p3), %s2861_s15, 1  ;;  %v2646_v2 = vld [vmem:[%s3292_s2 + $0x8] sm:$0xff] (!%p203_p3)   ;;  %v2647_v3 = vld [vmem:[%s3292_s2 + $0x10] sm:$0xff] (!%p203_p3)   ;;  %vm706_vm0 = vcmask (!%p203_p3), 130048  }
   0x7   : > { %206 = sbr.rel (%p203_p3) target bundleno = 516 (0x204), region = 36  ;;  %803 = vmatprep.subr.bf16.mxu0 (!%p203_p3), %v2871_v1  ;;  %1540 = vmatprep.subr.bf16.mxu1 (!%p203_p3), %v2871_v1  ;;  %v2648_v4 = vld [vmem:[%s3292_s2 + $0x18] sm:$0xff] (!%p203_p3)   ;;  %v2649_v7 = vld [vmem:[%s3292_s2 + $0x20] sm:$0xff] (!%p203_p3)   ;;  %v2650_v8 = vld [vmem:[%s3292_s2 + $0x28] sm:$0xff] (!%p203_p3)   ;;  %vm2188_vm1 = vcmask (!%p203_p3), 257024  }
   0x8   : > { %804 = vmatpush1.bf16.msra.mxu0 (!%p203_p3), %v2645_v0  ;;  %1541 = vmatpush1.bf16.msra.mxu1 (!%p203_p3), %v2645_v0  ;;  %v2651_v9 = vld [vmem:[%s3292_s2 + $0x30] sm:$0xff] (!%p203_p3)   ;;  %v2652_v10 = vld [vmem:[%s3292_s2 + $0x38] sm:$0xff] (!%p203_p3)   ;;  %v2653_v11 = vld [vmem:[%s3292_s2 + $0x40] sm:$0xff] (!%p203_p3)  }
   0x9   : > { %805 = vmatprep.subr.bf16.mxu0 (!%p203_p3), %v2871_v1  ;;  %1542 = vmatprep.subr.bf16.mxu1 (!%p203_p3), %v2871_v1 }
   0xc   : > { %806 = vmatpush1.bf16.msra.mxu0 (!%p203_p3), %v2646_v2  ;;  %1543 = vmatpush1.bf16.msra.mxu1 (!%p203_p3), %v2646_v2 }
   0xd   : > { %807 = vmatprep.subr.bf16.mxu0 (!%p203_p3), %v2871_v1  ;;  %1544 = vmatprep.subr.bf16.mxu1 (!%p203_p3), %v2871_v1 }
   0xe   : > { %s3300_s15 = smov (!%p249_p4, %s2861_s15), 1 }
   0xf   : > { %s2585_s23 = sshll.u32 %s3300_s15, 9  ;;  %s2587_s24 = sshll.u32 %s3300_s15, 7 }
  0x10   : > { %s2930_s28 = scalar_lea.vmem %s3290_s0, %s2585_s23  ;;  %s2935_s5 = scalar_lea.vmem %s3291_s1, %s2585_s23  ;;  %808 = vmatpush1.bf16.msra.mxu0 %v2647_v3  ;;  %1545 = vmatpush1.bf16.msra.mxu1 %v2647_v3 }
  0x11   : > { %v2656_v5 = vld [vmem:[%s2930_s28 + $0x4] ss:$8 sps:$4 sm:$0xff]   ;;  %809 = vmatprep.subr.bf16.mxu0 %v2871_v1  ;;  %1546 = vmatprep.subr.bf16.mxu1 %v2871_v1  ;;  %v2654_v12 = vld [vmem:[%s2930_s28] ss:$8 sps:$4 sm:$0xff]   ;;  %v2660_v14 = vld [vmem:[%s2930_s28 + $0x14] ss:$8 sps:$4 sm:$0xff]   ;;  %s3146_s15 = scalar_lea.vmem %s3294_s4, %s2587_s24 }
  0x12   : > { %v2659_v6 = vld [vmem:[%s2935_s5 + $0x4] ss:$8 sps:$4 sm:$0xff]   ;;  %2422 = vmatprep.mubr.msk.bf16.mxu0 %vm706_vm0, %v2656_v5  ;;  %v2657_v13 = vld [vmem:[%s2935_s5] ss:$8 sps:$4 sm:$0xff]   ;;  %v2662_v15 = vld [vmem:[%s2935_s5 + $0x14] ss:$8 sps:$4 sm:$0xff]  }
  0x13   : > { %2518 = vmatprep.mubr.msk.bf16.mxu1 %vm706_vm0, %v2659_v6  ;;  %v2664_v16 = vld [vmem:[%s2930_s28 + $0x10] ss:$8 sps:$4 sm:$0xff]   ;;  %v2666_v18 = vld [vmem:[%s2930_s28 + $0x24] ss:$8 sps:$4 sm:$0xff]   ;;  %v2670_v20 = vld [vmem:[%s2930_s28 + $0x20] ss:$8 sps:$4 sm:$0xff]  }
  0x14   : > { %810 = vmatpush1.bf16.msra.mxu0 %v2648_v4  ;;  %1547 = vmatpush1.bf16.msra.mxu1 %v2648_v4  ;;  %v2665_v17 = vld [vmem:[%s2935_s5 + $0x10] ss:$8 sps:$4 sm:$0xff]   ;;  %v2668_v19 = vld [vmem:[%s2935_s5 + $0x24] ss:$8 sps:$4 sm:$0xff]   ;;  %v2671_v21 = vld [vmem:[%s2935_s5 + $0x20] ss:$8 sps:$4 sm:$0xff]  }
  0x15   : > { %811 = vmatprep.subr.bf16.mxu0 %v2871_v1  ;;  %1548 = vmatprep.subr.bf16.mxu1 %v2871_v1  ;;  %v2672_v22 = vld [vmem:[%s2930_s28 + $0x34] ss:$8 sps:$4 sm:$0xff]   ;;  %v2676_v24 = vld [vmem:[%s2930_s28 + $0x30] ss:$8 sps:$4 sm:$0xff]   ;;  %v2678_v26 = vld [vmem:[%s2930_s28 + $0x44] ss:$8 sps:$4 sm:$0xff]  }
  0x16   : > { %v2674_v23 = vld [vmem:[%s2935_s5 + $0x34] ss:$8 sps:$4 sm:$0xff]   ;;  %v2677_v25 = vld [vmem:[%s2935_s5 + $0x30] ss:$8 sps:$4 sm:$0xff]   ;;  %v2680_v27 = vld [vmem:[%s2935_s5 + $0x44] ss:$8 sps:$4 sm:$0xff]  }
  0x17   : > { %v2682_v28 = vld [vmem:[%s2930_s28 + $0x40] ss:$8 sps:$4 sm:$0xff]   ;;  %v2684_v30 = vld [vmem:[%s2930_s28 + $0x54] ss:$8 sps:$4 sm:$0xff]   ;;  %v2688_v32 = vld [vmem:[%s2930_s28 + $0x50] ss:$8 sps:$4 sm:$0xff]  }
  0x18   : > { %812 = vmatpush1.bf16.msra.mxu0 %v2649_v7  ;;  %1549 = vmatpush1.bf16.msra.mxu1 %v2649_v7  ;;  %v2683_v29 = vld [vmem:[%s2935_s5 + $0x40] ss:$8 sps:$4 sm:$0xff]   ;;  %v2686_v31 = vld [vmem:[%s2935_s5 + $0x54] ss:$8 sps:$4 sm:$0xff]   ;;  %v2689_v33 = vld [vmem:[%s2935_s5 + $0x50] ss:$8 sps:$4 sm:$0xff]  }
  0x19   : > { %813 = vmatprep.subr.bf16.mxu0 %v2871_v1  ;;  %1550 = vmatprep.subr.bf16.mxu1 %v2871_v1  ;;  %v2690_v34 = vld [vmem:[%s2930_s28 + $0x64] ss:$8 sps:$4 sm:$0xff]   ;;  %v2694_v36 = vld [vmem:[%s2930_s28 + $0x60] ss:$8 sps:$4 sm:$0xff]   ;;  %v2696_v38 = vld [vmem:[%s2930_s28 + $0x74] ss:$8 sps:$4 sm:$0xff]  }
  0x1a   : > { %v2692_v35 = vld [vmem:[%s2935_s5 + $0x64] ss:$8 sps:$4 sm:$0xff]   ;;  %v2695_v37 = vld [vmem:[%s2935_s5 + $0x60] ss:$8 sps:$4 sm:$0xff]   ;;  %v2698_v39 = vld [vmem:[%s2935_s5 + $0x74] ss:$8 sps:$4 sm:$0xff]  }
  0x1b   : > { %v2700_v40 = vld [vmem:[%s2930_s28 + $0x70] ss:$8 sps:$4 sm:$0xff]   ;;  %v2702_v42 = vld [vmem:[%s2930_s28 + $0x84] ss:$8 sps:$4 sm:$0xff]   ;;  %v2706_v44 = vld [vmem:[%s2930_s28 + $0x80] ss:$8 sps:$4 sm:$0xff]  }
  0x1c   : > { %814 = vmatpush1.bf16.msra.mxu0 %v2650_v8  ;;  %1551 = vmatpush1.bf16.msra.mxu1 %v2650_v8  ;;  %v2701_v41 = vld [vmem:[%s2935_s5 + $0x70] ss:$8 sps:$4 sm:$0xff]   ;;  %v2704_v43 = vld [vmem:[%s2935_s5 + $0x84] ss:$8 sps:$4 sm:$0xff]   ;;  %v2707_v45 = vld [vmem:[%s2935_s5 + $0x80] ss:$8 sps:$4 sm:$0xff]  }
  0x1d   : > { %815 = vmatprep.subr.bf16.mxu0 %v2871_v1  ;;  %1552 = vmatprep.subr.bf16.mxu1 %v2871_v1  ;;  %v2708_v46 = vld [vmem:[%s2930_s28 + $0x94] ss:$8 sps:$4 sm:$0xff]   ;;  %v2712_v48 = vld [vmem:[%s2930_s28 + $0x90] ss:$8 sps:$4 sm:$0xff]   ;;  %v2714_v50 = vld [vmem:[%s2930_s28 + $0xa4] ss:$8 sps:$4 sm:$0xff]  }
  0x1e   : > { %v2710_v47 = vld [vmem:[%s2935_s5 + $0x94] ss:$8 sps:$4 sm:$0xff]   ;;  %v2713_v49 = vld [vmem:[%s2935_s5 + $0x90] ss:$8 sps:$4 sm:$0xff]   ;;  %v2716_v51 = vld [vmem:[%s2935_s5 + $0xa4] ss:$8 sps:$4 sm:$0xff]  }
  0x1f   : > { %v2718_v52 = vld [vmem:[%s2930_s28 + $0xa0] ss:$8 sps:$4 sm:$0xff]   ;;  %v2720_v54 = vld [vmem:[%s2930_s28 + $0xb4] ss:$8 sps:$4 sm:$0xff]   ;;  %v2724_v56 = vld [vmem:[%s2930_s28 + $0xb0] ss:$8 sps:$4 sm:$0xff]  }
  0x20   : > { %816 = vmatpush1.bf16.msra.mxu0 %v2651_v9  ;;  %1553 = vmatpush1.bf16.msra.mxu1 %v2651_v9  ;;  %v2719_v53 = vld [vmem:[%s2935_s5 + $0xa0] ss:$8 sps:$4 sm:$0xff]   ;;  %v2722_v55 = vld [vmem:[%s2935_s5 + $0xb4] ss:$8 sps:$4 sm:$0xff]   ;;  %v2725_v57 = vld [vmem:[%s2935_s5 + $0xb0] ss:$8 sps:$4 sm:$0xff]  }
  0x21   : > { %817 = vmatprep.subr.bf16.mxu0 %v2871_v1  ;;  %1554 = vmatprep.subr.bf16.mxu1 %v2871_v1  ;;  %v2726_v58 = vld [vmem:[%s2930_s28 + $0xc4] ss:$8 sps:$4 sm:$0xff]   ;;  %v2730_v60 = vld [vmem:[%s2930_s28 + $0xc0] ss:$8 sps:$4 sm:$0xff]   ;;  %v2732_v62 = vld [vmem:[%s2930_s28 + $0xd4] ss:$8 sps:$4 sm:$0xff]  }
  0x22   : > { %v2728_v59 = vld [vmem:[%s2935_s5 + $0xc4] ss:$8 sps:$4 sm:$0xff]   ;;  %v2731_v61 = vld [vmem:[%s2935_s5 + $0xc0] ss:$8 sps:$4 sm:$0xff]   ;;  %v2734_v63 = vld [vmem:[%s2935_s5 + $0xd4] ss:$8 sps:$4 sm:$0xff]  }
  0x23   : > { %v2736_v0 = vld [vmem:[%s2930_s28 + $0xd0] ss:$8 sps:$4 sm:$0xff]   ;;  %v2738_v2 = vld [vmem:[%s2930_s28 + $0xe4] ss:$8 sps:$4 sm:$0xff]   ;;  %v2742_v4 = vld [vmem:[%s2930_s28 + $0xe0] ss:$8 sps:$4 sm:$0xff]  }
  0x24   : > { %818 = vmatpush1.bf16.msra.mxu0 %v2652_v10  ;;  %1555 = vmatpush1.bf16.msra.mxu1 %v2652_v10  ;;  %v2740_v3 = vld [vmem:[%s2935_s5 + $0xe4] ss:$8 sps:$4 sm:$0xff]   ;;  %v2743_v5 = vld [vmem:[%s2935_s5 + $0xe0] ss:$8 sps:$4 sm:$0xff]   ;;  %v2744_v6 = vld [vmem:[%s2930_s28 + $0xf4] ss:$8 sps:$4 sm:$0xff]  }
  0x25   : > { %819 = vmatprep.subr.bf16.mxu0 %v2871_v1  ;;  %1556 = vmatprep.subr.bf16.mxu1 %v2871_v1  ;;  %v2737_v1 = vld [vmem:[%s2935_s5 + $0xd0] ss:$8 sps:$4 sm:$0xff]   ;;  %v2746_v7 = vld [vmem:[%s2935_s5 + $0xf4] ss:$8 sps:$4 sm:$0xff]   ;;  %v2750_v10 = vld [vmem:[%s2930_s28 + $0x104] ss:$8 sps:$4 sm:$0xff]  }
  0x26   : > { %v2748_v8 = vld [vmem:[%s2930_s28 + $0xf0] ss:$8 sps:$4 sm:$0xff]  }
  0x27   : > { %v2749_v9 = vld [vmem:[%s2935_s5 + $0xf0] ss:$8 sps:$4 sm:$0xff]  }
  0x28   : > { %820 = vmatpush1.bf16.msra.mxu0 %v2653_v11  ;;  %1557 = vmatpush1.bf16.msra.mxu1 %v2653_v11  ;;  %v2752_v11 = vld [vmem:[%s2935_s5 + $0x104] ss:$8 sps:$4 sm:$0xff]  }
  0x2b   : > { %836 = vmatmul.mubr.bf16.vlgmr.msra.gmra.mrb[0].mxu0 %v2654_v12  ;;  %1573 = vmatmul.mubr.bf16.vlgmr.msra.gmra.mrb[0].mxu1 %v2657_v13  ;;  %v2754_v12 = vld [vmem:[%s2930_s28 + $0x100] ss:$8 sps:$4 sm:$0xff]  }
  0x2c   : > { %2423 = vmatprep.mubr.msk.bf16.mxu0 %vm706_vm0, %v2660_v14  ;;  %2519 = vmatprep.mubr.msk.bf16.mxu1 %vm706_vm0, %v2662_v15  ;;  %v2755_v13 = vld [vmem:[%s2935_s5 + $0x100] ss:$8 sps:$4 sm:$0xff]   ;;  %v2756_v14 = vld [vmem:[%s2930_s28 + $0x114] ss:$8 sps:$4 sm:$0xff]  }
  0x2d   : > { %v2758_v15 = vld [vmem:[%s2935_s5 + $0x114] ss:$8 sps:$4 sm:$0xff]  }
  0x33   : > { %844 = vmatmul.mubr.bf16.gmra.mrb[4].mxu0 %v2664_v16  ;;  %1581 = vmatmul.mubr.bf16.gmra.mrb[4].mxu1 %v2665_v17  ;;  %v2760_v16 = vld [vmem:[%s2930_s28 + $0x110] ss:$8 sps:$4 sm:$0xff]  }
  0x34   : > { %2424 = vmatprep.mubr.msk.bf16.mxu0 %vm706_vm0, %v2666_v18  ;;  %2520 = vmatprep.mubr.msk.bf16.mxu1 %vm706_vm0, %v2668_v19  ;;  %v2761_v17 = vld [vmem:[%s2935_s5 + $0x110] ss:$8 sps:$4 sm:$0xff]   ;;  %v2762_v18 = vld [vmem:[%s2930_s28 + $0x124] ss:$8 sps:$4 sm:$0xff]  }
  0x35   : > { %v2764_v19 = vld [vmem:[%s2935_s5 + $0x124] ss:$8 sps:$4 sm:$0xff]  }
  0x3b   : > { %852 = vmatmul.mubr.bf16.gmra.mrb[8].mxu0 %v2670_v20  ;;  %1589 = vmatmul.mubr.bf16.gmra.mrb[8].mxu1 %v2671_v21  ;;  %v2766_v20 = vld [vmem:[%s2930_s28 + $0x120] ss:$8 sps:$4 sm:$0xff]  }
  0x3c   : > { %2425 = vmatprep.mubr.msk.bf16.mxu0 %vm706_vm0, %v2672_v22  ;;  %2521 = vmatprep.mubr.msk.bf16.mxu1 %vm706_vm0, %v2674_v23  ;;  %v2767_v21 = vld [vmem:[%s2935_s5 + $0x120] ss:$8 sps:$4 sm:$0xff]   ;;  %v2768_v22 = vld [vmem:[%s2930_s28 + $0x134] ss:$8 sps:$4 sm:$0xff]  }
  0x3d   : > { %v2770_v23 = vld [vmem:[%s2935_s5 + $0x134] ss:$8 sps:$4 sm:$0xff]  }
  0x43   : > { %860 = vmatmul.mubr.bf16.gmra.mrb[12].mxu0 %v2676_v24  ;;  %1597 = vmatmul.mubr.bf16.gmra.mrb[12].mxu1 %v2677_v25  ;;  %v2772_v24 = vld [vmem:[%s2930_s28 + $0x130] ss:$8 sps:$4 sm:$0xff]  }
  0x44   : > { %2426 = vmatprep.mubr.msk.bf16.mxu0 %vm706_vm0, %v2678_v26  ;;  %2522 = vmatprep.mubr.msk.bf16.mxu1 %vm706_vm0, %v2680_v27  ;;  %v2773_v25 = vld [vmem:[%s2935_s5 + $0x130] ss:$8 sps:$4 sm:$0xff]   ;;  %v2774_v26 = vld [vmem:[%s2930_s28 + $0x144] ss:$8 sps:$4 sm:$0xff]  }
  0x45   : > { %v2776_v27 = vld [vmem:[%s2935_s5 + $0x144] ss:$8 sps:$4 sm:$0xff]  }
  0x4b   : > { %868 = vmatmul.mubr.bf16.gmra.mrb[16].mxu0 %v2682_v28  ;;  %1605 = vmatmul.mubr.bf16.gmra.mrb[16].mxu1 %v2683_v29  ;;  %v2778_v28 = vld [vmem:[%s2930_s28 + $0x140] ss:$8 sps:$4 sm:$0xff]  }
  0x4c   : > { %2427 = vmatprep.mubr.msk.bf16.mxu0 %vm706_vm0, %v2684_v30  ;;  %2523 = vmatprep.mubr.msk.bf16.mxu1 %vm706_vm0, %v2686_v31  ;;  %v2779_v29 = vld [vmem:[%s2935_s5 + $0x140] ss:$8 sps:$4 sm:$0xff]   ;;  %v2780_v30 = vld [vmem:[%s2930_s28 + $0x154] ss:$8 sps:$4 sm:$0xff]  }
  0x4d   : > { %v2782_v31 = vld [vmem:[%s2935_s5 + $0x154] ss:$8 sps:$4 sm:$0xff]  }
  0x53   : > { %876 = vmatmul.mubr.bf16.gmra.mrb[20].mxu0 %v2688_v32  ;;  %1613 = vmatmul.mubr.bf16.gmra.mrb[20].mxu1 %v2689_v33  ;;  %v2784_v32 = vld [vmem:[%s2930_s28 + $0x150] ss:$8 sps:$4 sm:$0xff]  }
  0x54   : > { %2428 = vmatprep.mubr.msk.bf16.mxu0 %vm706_vm0, %v2690_v34  ;;  %2524 = vmatprep.mubr.msk.bf16.mxu1 %vm706_vm0, %v2692_v35  ;;  %v2785_v33 = vld [vmem:[%s2935_s5 + $0x150] ss:$8 sps:$4 sm:$0xff]   ;;  %v2786_v34 = vld [vmem:[%s2930_s28 + $0x164] ss:$8 sps:$4 sm:$0xff]  }
  0x55   : > { %v2788_v35 = vld [vmem:[%s2935_s5 + $0x164] ss:$8 sps:$4 sm:$0xff]  }
  0x5b   : > { %884 = vmatmul.mubr.bf16.gmra.mrb[24].mxu0 %v2694_v36  ;;  %1621 = vmatmul.mubr.bf16.gmra.mrb[24].mxu1 %v2695_v37  ;;  %v2790_v36 = vld [vmem:[%s2930_s28 + $0x160] ss:$8 sps:$4 sm:$0xff]  }
  0x5c   : > { %2429 = vmatprep.mubr.msk.bf16.mxu0 %vm706_vm0, %v2696_v38  ;;  %2525 = vmatprep.mubr.msk.bf16.mxu1 %vm706_vm0, %v2698_v39  ;;  %v2791_v37 = vld [vmem:[%s2935_s5 + $0x160] ss:$8 sps:$4 sm:$0xff]   ;;  %v2792_v38 = vld [vmem:[%s2930_s28 + $0x174] ss:$8 sps:$4 sm:$0xff]  }
  0x5d   : > { %v2794_v39 = vld [vmem:[%s2935_s5 + $0x174] ss:$8 sps:$4 sm:$0xff]  }
  0x63   : > { %892 = vmatmul.mubr.bf16.gmra.mrb[28].mxu0 %v2700_v40  ;;  %1629 = vmatmul.mubr.bf16.gmra.mrb[28].mxu1 %v2701_v41  ;;  %v2796_v40 = vld [vmem:[%s2930_s28 + $0x170] ss:$8 sps:$4 sm:$0xff]  }
  0x64   : > { %2430 = vmatprep.mubr.msk.bf16.mxu0 %vm706_vm0, %v2702_v42  ;;  %2526 = vmatprep.mubr.msk.bf16.mxu1 %vm706_vm0, %v2704_v43  ;;  %v2797_v41 = vld [vmem:[%s2935_s5 + $0x170] ss:$8 sps:$4 sm:$0xff]   ;;  %v2798_v42 = vld [vmem:[%s2930_s28 + $0x184] ss:$8 sps:$4 sm:$0xff]  }
  0x65   : > { %v2800_v43 = vld [vmem:[%s2935_s5 + $0x184] ss:$8 sps:$4 sm:$0xff]  }
  0x6b   : > { %900 = vmatmul.mubr.bf16.gmra.mrb[32].mxu0 %v2706_v44  ;;  %1637 = vmatmul.mubr.bf16.gmra.mrb[32].mxu1 %v2707_v45  ;;  %v2802_v44 = vld [vmem:[%s2930_s28 + $0x180] ss:$8 sps:$4 sm:$0xff]  }
  0x6c   : > { %2431 = vmatprep.mubr.msk.bf16.mxu0 %vm706_vm0, %v2708_v46  ;;  %2527 = vmatprep.mubr.msk.bf16.mxu1 %vm706_vm0, %v2710_v47  ;;  %v2803_v45 = vld [vmem:[%s2935_s5 + $0x180] ss:$8 sps:$4 sm:$0xff]   ;;  %v2804_v46 = vld [vmem:[%s2930_s28 + $0x194] ss:$8 sps:$4 sm:$0xff]  }
  0x6d   : > { %v2806_v47 = vld [vmem:[%s2935_s5 + $0x194] ss:$8 sps:$4 sm:$0xff]  }
  0x73   : > { %908 = vmatmul.mubr.bf16.gmra.mrb[36].mxu0 %v2712_v48  ;;  %1645 = vmatmul.mubr.bf16.gmra.mrb[36].mxu1 %v2713_v49  ;;  %v2808_v48 = vld [vmem:[%s2930_s28 + $0x190] ss:$8 sps:$4 sm:$0xff]  }
  0x74   : > { %2432 = vmatprep.mubr.msk.bf16.mxu0 %vm706_vm0, %v2714_v50  ;;  %2528 = vmatprep.mubr.msk.bf16.mxu1 %vm706_vm0, %v2716_v51  ;;  %v2809_v49 = vld [vmem:[%s2935_s5 + $0x190] ss:$8 sps:$4 sm:$0xff]   ;;  %v2810_v50 = vld [vmem:[%s2930_s28 + $0x1a4] ss:$8 sps:$4 sm:$0xff]  }
  0x75   : > { %v2812_v51 = vld [vmem:[%s2935_s5 + $0x1a4] ss:$8 sps:$4 sm:$0xff]  }
  0x7b   : > { %916 = vmatmul.mubr.bf16.gmra.mrb[40].mxu0 %v2718_v52  ;;  %1653 = vmatmul.mubr.bf16.gmra.mrb[40].mxu1 %v2719_v53  ;;  %v2814_v52 = vld [vmem:[%s2930_s28 + $0x1a0] ss:$8 sps:$4 sm:$0xff]  }
  0x7c   : > { %2433 = vmatprep.mubr.msk.bf16.mxu0 %vm706_vm0, %v2720_v54  ;;  %2529 = vmatprep.mubr.msk.bf16.mxu1 %vm706_vm0, %v2722_v55  ;;  %v2815_v53 = vld [vmem:[%s2935_s5 + $0x1a0] ss:$8 sps:$4 sm:$0xff]   ;;  %v2816_v54 = vld [vmem:[%s2930_s28 + $0x1b4] ss:$8 sps:$4 sm:$0xff]  }
  0x7d   : > { %v2818_v55 = vld [vmem:[%s2935_s5 + $0x1b4] ss:$8 sps:$4 sm:$0xff]  }
  0x83   : > { %924 = vmatmul.mubr.bf16.gmra.mrb[44].mxu0 %v2724_v56  ;;  %1661 = vmatmul.mubr.bf16.gmra.mrb[44].mxu1 %v2725_v57 }
  0x84   : > { %2434 = vmatprep.mubr.msk.bf16.mxu0 %vm706_vm0, %v2726_v58  ;;  %2530 = vmatprep.mubr.msk.bf16.mxu1 %vm706_vm0, %v2728_v59 }
  0x8b   : > { %932 = vmatmul.mubr.bf16.gmra.mrb[48].mxu0 %v2730_v60  ;;  %1669 = vmatmul.mubr.bf16.gmra.mrb[48].mxu1 %v2731_v61  ;;  %v2820_v61 = vld [vmem:[%s2930_s28 + $0x1b0] ss:$8 sps:$4 sm:$0xff]  }
  0x8c   : > { %2435 = vmatprep.mubr.msk.bf16.mxu0 %vm706_vm0, %v2732_v62  ;;  %2531 = vmatprep.mubr.msk.bf16.mxu1 %vm706_vm0, %v2734_v63  ;;  %v2821_v62 = vld [vmem:[%s2935_s5 + $0x1b0] ss:$8 sps:$4 sm:$0xff]  }
  0x93   : > { %940 = vmatmul.mubr.bf16.gmra.mrb[52].mxu0 %v2736_v0  ;;  %1677 = vmatmul.mubr.bf16.gmra.mrb[52].mxu1 %v2737_v1  ;;  %v2822_v1 = vld [vmem:[%s2930_s28 + $0x1c4] ss:$8 sps:$4 sm:$0xff]  }
  0x94   : > { %2436 = vmatprep.mubr.msk.bf16.mxu0 %vm706_vm0, %v2738_v2  ;;  %2532 = vmatprep.mubr.msk.bf16.mxu1 %vm706_vm0, %v2740_v3  ;;  %v2824_v2 = vld [vmem:[%s2935_s5 + $0x1c4] ss:$8 sps:$4 sm:$0xff]  }
  0x9b   : > { %948 = vmatmul.mubr.bf16.gmra.mrb[56].mxu0 %v2742_v4  ;;  %1685 = vmatmul.mubr.bf16.gmra.mrb[56].mxu1 %v2743_v5 }
  0x9c   : > { %2437 = vmatprep.mubr.msk.bf16.mxu0 %vm706_vm0, %v2744_v6  ;;  %2533 = vmatprep.mubr.msk.bf16.mxu1 %vm706_vm0, %v2746_v7  ;;  %v3128_v6 = vld [vmem:[%s3293_s3] ss:$0 sm:$0xff] }
  0xa3   : > { %956 = vmatmul.mubr.bf16.gmra.mrb[60].mxu0 %v2748_v8  ;;  %1693 = vmatmul.mubr.bf16.gmra.mrb[60].mxu1 %v2749_v9 }
  0xa4   : > { %2438 = vmatprep.mubr.msk.bf16.mxu0 %vm706_vm0, %v2750_v10  ;;  %2534 = vmatprep.mubr.msk.bf16.mxu1 %vm706_vm0, %v2752_v11 }
  0xab   : > { %964 = vmatmul.mubr.bf16.gmra.mrb[64].mxu0 %v2754_v12  ;;  %1701 = vmatmul.mubr.bf16.gmra.mrb[64].mxu1 %v2755_v13  ;;  %v2826_v13 = vld [vmem:[%s2930_s28 + $0x1c0] ss:$8 sps:$4 sm:$0xff]  }
  0xac   : > { %2439 = vmatprep.mubr.msk.bf16.mxu0 %vm706_vm0, %v2756_v14  ;;  %2535 = vmatprep.mubr.msk.bf16.mxu1 %vm706_vm0, %v2758_v15  ;;  %v2827_v14 = vld [vmem:[%s2935_s5 + $0x1c0] ss:$8 sps:$4 sm:$0xff]  }
  0xb3   : > { %972 = vmatmul.mubr.bf16.gmra.mrb[68].mxu0 %v2760_v16  ;;  %1709 = vmatmul.mubr.bf16.gmra.mrb[68].mxu1 %v2761_v17  ;;  %v2828_v17 = vld [vmem:[%s2930_s28 + $0x1d4] ss:$8 sps:$4 sm:$0xff]  }
  0xb4   : > { %2440 = vmatprep.mubr.msk.bf16.mxu0 %vm706_vm0, %v2762_v18  ;;  %2536 = vmatprep.mubr.msk.bf16.mxu1 %vm706_vm0, %v2764_v19  ;;  %v2830_v18 = vld [vmem:[%s2935_s5 + $0x1d4] ss:$8 sps:$4 sm:$0xff]  }
  0xbb   : > { %980 = vmatmul.mubr.bf16.gmra.mrb[72].mxu0 %v2766_v20  ;;  %1717 = vmatmul.mubr.bf16.gmra.mrb[72].mxu1 %v2767_v21 }
  0xbc   : > { %2441 = vmatprep.mubr.msk.bf16.mxu0 %vm706_vm0, %v2768_v22  ;;  %2537 = vmatprep.mubr.msk.bf16.mxu1 %vm706_vm0, %v2770_v23 }
  0xc3   : > { %988 = vmatmul.mubr.bf16.gmra.mrb[76].mxu0 %v2772_v24  ;;  %1725 = vmatmul.mubr.bf16.gmra.mrb[76].mxu1 %v2773_v25 }
  0xc4   : > { %2442 = vmatprep.mubr.msk.bf16.mxu0 %vm706_vm0, %v2774_v26  ;;  %2538 = vmatprep.mubr.msk.bf16.mxu1 %vm706_vm0, %v2776_v27 }
  0xcb   : > { %996 = vmatmul.mubr.bf16.gmra.mrb[80].mxu0 %v2778_v28  ;;  %1733 = vmatmul.mubr.bf16.gmra.mrb[80].mxu1 %v2779_v29 }
  0xcc   : > { %2443 = vmatprep.mubr.msk.bf16.mxu0 %vm706_vm0, %v2780_v30  ;;  %2539 = vmatprep.mubr.msk.bf16.mxu1 %vm706_vm0, %v2782_v31 }
  0xd3   : > { %1004 = vmatmul.mubr.bf16.gmra.mrb[84].mxu0 %v2784_v32  ;;  %1741 = vmatmul.mubr.bf16.gmra.mrb[84].mxu1 %v2785_v33 }
  0xd4   : > { %2444 = vmatprep.mubr.msk.bf16.mxu0 %vm706_vm0, %v2786_v34  ;;  %2540 = vmatprep.mubr.msk.bf16.mxu1 %vm706_vm0, %v2788_v35 }
  0xdb   : > { %1012 = vmatmul.mubr.bf16.gmra.mrb[88].mxu0 %v2790_v36  ;;  %1749 = vmatmul.mubr.bf16.gmra.mrb[88].mxu1 %v2791_v37  ;;  %v2832_v37 = vld [vmem:[%s2930_s28 + $0x1d0] ss:$8 sps:$4 sm:$0xff]  }
  0xdc   : > { %2445 = vmatprep.mubr.msk.bf16.mxu0 %vm706_vm0, %v2792_v38  ;;  %2541 = vmatprep.mubr.msk.bf16.mxu1 %vm706_vm0, %v2794_v39  ;;  %v2833_v38 = vld [vmem:[%s2935_s5 + $0x1d0] ss:$8 sps:$4 sm:$0xff]  }
  0xe3   : > { %1020 = vmatmul.mubr.bf16.gmra.mrb[92].mxu0 %v2796_v40  ;;  %1757 = vmatmul.mubr.bf16.gmra.mrb[92].mxu1 %v2797_v41  ;;  %v2834_v41 = vld [vmem:[%s2930_s28 + $0x1e4] ss:$8 sps:$4 sm:$0xff]  }
  0xe4   : > { %2446 = vmatprep.mubr.msk.bf16.mxu0 %vm706_vm0, %v2798_v42  ;;  %2542 = vmatprep.mubr.msk.bf16.mxu1 %vm706_vm0, %v2800_v43  ;;  %v2836_v42 = vld [vmem:[%s2935_s5 + $0x1e4] ss:$8 sps:$4 sm:$0xff]  }
  0xeb   : > { %1028 = vmatmul.mubr.bf16.gmra.mrb[96].mxu0 %v2802_v44  ;;  %1765 = vmatmul.mubr.bf16.gmra.mrb[96].mxu1 %v2803_v45 }
  0xec   : > { %2447 = vmatprep.mubr.msk.bf16.mxu0 %vm706_vm0, %v2804_v46  ;;  %2543 = vmatprep.mubr.msk.bf16.mxu1 %vm706_vm0, %v2806_v47 }
  0xf3   : > { %1036 = vmatmul.mubr.bf16.gmra.mrb[100].mxu0 %v2808_v48  ;;  %1773 = vmatmul.mubr.bf16.gmra.mrb[100].mxu1 %v2809_v49 }
  0xf4   : > { %2448 = vmatprep.mubr.msk.bf16.mxu0 %vm706_vm0, %v2810_v50  ;;  %2544 = vmatprep.mubr.msk.bf16.mxu1 %vm706_vm0, %v2812_v51 }
  0xfb   : > { %1044 = vmatmul.mubr.bf16.gmra.mrb[104].mxu0 %v2814_v52  ;;  %1781 = vmatmul.mubr.bf16.gmra.mrb[104].mxu1 %v2815_v53  ;;  %v2838_v53 = vld [vmem:[%s2930_s28 + $0x1e0] ss:$8 sps:$4 sm:$0xff]  }
  0xfc   : > { %2449 = vmatprep.mubr.msk.bf16.mxu0 %vm706_vm0, %v2816_v54  ;;  %2545 = vmatprep.mubr.msk.bf16.mxu1 %vm706_vm0, %v2818_v55  ;;  %v2839_v54 = vld [vmem:[%s2935_s5 + $0x1e0] ss:$8 sps:$4 sm:$0xff]  }
  0xfe   : > { %v837_v56 = vpop.f32.mrb[0].mxu0  ;;  %v1574_v57 = vpop.f32.mrb[0].mxu1 }
  0xff   : > { %v1829_v58 = vmax.f32 %v837_v56, %v1574_v57  ;;  %v839_v59 = vpop.f32.mrb[1].mxu0  ;;  %v1576_v60 = vpop.f32.mrb[1].mxu1  ;;  %v2840_v57 = vld [vmem:[%s2930_s28 + $0x1f4] ss:$8 sps:$4 sm:$0xff]  }
 0x100   : > { %v840_v63 = vpop.f32.mrb[2].mxu0  ;;  %v1577_v0 = vpop.f32.mrb[2].mxu1 }
 0x101   : > { %v1830_v3 = vmax.f32 %v840_v63, %v1577_v0  ;;  %v842_v4 = vpop.f32.mrb[3].mxu0  ;;  %v1579_v5 = vpop.f32.mrb[3].mxu1  ;;  %v1900_v9 = vadd.f32 %v3128_v6, %v1829_v58  ;;  %v2842_v58 = vld [vmem:[%s2935_s5 + $0x1f4] ss:$8 sps:$4 sm:$0xff]  }
 0x103   : > { %1052 = vmatmul.mubr.bf16.gmra.mrb[108].mxu0 %v2820_v61  ;;  %1789 = vmatmul.mubr.bf16.gmra.mrb[108].mxu1 %v2821_v62  ;;  %v1901_v19 = vadd.f32 %v3128_v6, %v1830_v3  ;;  %v1964_v24 = vmax.f32 %v1900_v9, 0.0 }
 0x104   : > { %2450 = vmatprep.mubr.msk.bf16.mxu0 %vm706_vm0, %v2822_v1  ;;  %2546 = vmatprep.mubr.msk.bf16.mxu1 %vm706_vm0, %v2824_v2 }
 0x105   : > { %v1965_v27 = vmax.f32 %v1901_v19, 0.0 }
 0x106   : > { %v845_v7 = vpop.f32.mrb[4].mxu0  ;;  %v1582_v8 = vpop.f32.mrb[4].mxu1 }
 0x107   : > { %v1831_v10 = vmax.f32 %v845_v7, %v1582_v8  ;;  %v847_v11 = vpop.f32.mrb[5].mxu0  ;;  %v1584_v12 = vpop.f32.mrb[5].mxu1 }
 0x108   : > { %v848_v15 = vpop.f32.mrb[6].mxu0  ;;  %v1585_v16 = vpop.f32.mrb[6].mxu1 }
 0x109   : > { %v1902_v20 = vadd.f32 %v3128_v6, %v1831_v10  ;;  %v1832_v21 = vmax.f32 %v848_v15, %v1585_v16  ;;  %v850_v22 = vpop.f32.mrb[7].mxu0  ;;  %v1587_v23 = vpop.f32.mrb[7].mxu1  ;;  %v2845_v15 = vld [vmem:[%s2935_s5 + $0x1f0] ss:$8 sps:$4 sm:$0xff]  }
 0x10b   : > { %v1966_v25 = vmax.f32 %v1902_v20, 0.0  ;;  %v1903_v26 = vadd.f32 %v3128_v6, %v1832_v21  ;;  %1060 = vmatmul.mubr.bf16.gmra.mrb[112].mxu0 %v2826_v13  ;;  %1797 = vmatmul.mubr.bf16.gmra.mrb[112].mxu1 %v2827_v14  ;;  %v2844_v14 = vld [vmem:[%s2930_s28 + $0x1f0] ss:$8 sps:$4 sm:$0xff]  }
 0x10c   : > { %2451 = vmatprep.mubr.msk.bf16.mxu0 %vm706_vm0, %v2828_v17  ;;  %2547 = vmatprep.mubr.msk.bf16.mxu1 %vm706_vm0, %v2830_v18 }
 0x10d   : > { %v2028_v28 = vmax.f32 %v1964_v24, %v1966_v25  ;;  %v1967_v29 = vmax.f32 %v1903_v26, 0.0 }
 0x10e   : > { %v853_v30 = vpop.f32.mrb[8].mxu0  ;;  %v1590_v31 = vpop.f32.mrb[8].mxu1 }
 0x10f   : > { %v2588_v32 = vpack.c.bf16 %v2028_v28, %v2028_v28  ;;  %v2029_v33 = vmax.f32 %v1965_v27, %v1967_v29  ;;  %v1833_v34 = vmax.f32 %v853_v30, %v1590_v31  ;;  %v855_v35 = vpop.f32.mrb[9].mxu0  ;;  %v1592_v36 = vpop.f32.mrb[9].mxu1 }
 0x110   : > { %v856_v39 = vpop.f32.mrb[10].mxu0  ;;  %v1593_v40 = vpop.f32.mrb[10].mxu1 }
 0x111   : > { %2189 = vst.msk [vmem:[%s3146_s15] sm:$0xf] %vm2188_vm1, %v2588_v32  ;;  %v2589_v43 = vpack.c.bf16 %v2029_v33, %v2029_v33  ;;  %v1834_v44 = vmax.f32 %v856_v39, %v1593_v40  ;;  %v858_v45 = vpop.f32.mrb[11].mxu0  ;;  %v1595_v46 = vpop.f32.mrb[11].mxu1  ;;  %v1904_v49 = vadd.f32 %v3128_v6, %v1833_v34 }
 0x113   : > { %2190 = vst.msk [vmem:[%s3146_s15 + $0x4] sm:$0xf] %vm2188_vm1, %v2589_v43  ;;  %1068 = vmatmul.mubr.bf16.gmra.mrb[116].mxu0 %v2832_v37  ;;  %1805 = vmatmul.mubr.bf16.gmra.mrb[116].mxu1 %v2833_v38  ;;  %v1905_v59 = vadd.f32 %v3128_v6, %v1834_v44  ;;  %v1968_v0 = vmax.f32 %v1904_v49, 0.0 }
 0x114   : > { %2452 = vmatprep.mubr.msk.bf16.mxu0 %vm706_vm0, %v2834_v41  ;;  %2548 = vmatprep.mubr.msk.bf16.mxu1 %vm706_vm0, %v2836_v42 }
 0x115   : > { %v1969_v3 = vmax.f32 %v1905_v59, 0.0 }
 0x116   : > { %v861_v47 = vpop.f32.mrb[12].mxu0  ;;  %v1598_v48 = vpop.f32.mrb[12].mxu1 }
 0x117   : > { %v1835_v50 = vmax.f32 %v861_v47, %v1598_v48  ;;  %v863_v51 = vpop.f32.mrb[13].mxu0  ;;  %v1600_v52 = vpop.f32.mrb[13].mxu1 }
 0x118   : > { %v864_v55 = vpop.f32.mrb[14].mxu0  ;;  %v1601_v56 = vpop.f32.mrb[14].mxu1 }
 0x119   : > { %v1906_v60 = vadd.f32 %v3128_v6, %v1835_v50  ;;  %v1836_v61 = vmax.f32 %v864_v55, %v1601_v56  ;;  %v866_v62 = vpop.f32.mrb[15].mxu0  ;;  %v1603_v63 = vpop.f32.mrb[15].mxu1 }
 0x11b   : > { %v1970_v1 = vmax.f32 %v1906_v60, 0.0  ;;  %v1907_v2 = vadd.f32 %v3128_v6, %v1836_v61  ;;  %1076 = vmatmul.mubr.bf16.gmra.mrb[120].mxu0 %v2838_v53  ;;  %1813 = vmatmul.mubr.bf16.gmra.mrb[120].mxu1 %v2839_v54 }
 0x11c   : > { %2453 = vmatprep.mubr.msk.bf16.mxu0 %vm706_vm0, %v2840_v57  ;;  %2549 = vmatprep.mubr.msk.bf16.mxu1 %vm706_vm0, %v2842_v58 }
 0x11d   : > { %v2030_v4 = vmax.f32 %v1968_v0, %v1970_v1  ;;  %v1971_v5 = vmax.f32 %v1907_v2, 0.0 }
 0x11e   : > { %v869_v7 = vpop.f32.mrb[16].mxu0  ;;  %v1606_v8 = vpop.f32.mrb[16].mxu1 }
 0x11f   : > { %v2590_v9 = vpack.c.bf16 %v2030_v4, %v2030_v4  ;;  %v2031_v10 = vmax.f32 %v1969_v3, %v1971_v5  ;;  %v1837_v11 = vmax.f32 %v869_v7, %v1606_v8  ;;  %v871_v12 = vpop.f32.mrb[17].mxu0  ;;  %v1608_v13 = vpop.f32.mrb[17].mxu1 }
 0x120   : > { %v872_v16 = vpop.f32.mrb[18].mxu0  ;;  %v1609_v17 = vpop.f32.mrb[18].mxu1 }
 0x121   : > { %2191 = vst.msk [vmem:[%s3146_s15 + $0x8] sm:$0xf] %vm2188_vm1, %v2590_v9  ;;  %v2591_v18 = vpack.c.bf16 %v2031_v10, %v2031_v10  ;;  %v1838_v19 = vmax.f32 %v872_v16, %v1609_v17  ;;  %v874_v20 = vpop.f32.mrb[19].mxu0  ;;  %v1611_v21 = vpop.f32.mrb[19].mxu1  ;;  %v1908_v24 = vadd.f32 %v3128_v6, %v1837_v11 }
 0x123   : > { %2192 = vst.msk [vmem:[%s3146_s15 + $0xc] sm:$0xf] %vm2188_vm1, %v2591_v18  ;;  %1084 = vmatmul.mubr.bf16.gmra.mrb[124].mxu0 %v2844_v14  ;;  %1821 = vmatmul.mubr.bf16.gmra.mrb[124].mxu1 %v2845_v15  ;;  %v1909_v30 = vadd.f32 %v3128_v6, %v1838_v19  ;;  %v1972_v35 = vmax.f32 %v1908_v24, 0.0 }
 0x125   : > { %v1973_v38 = vmax.f32 %v1909_v30, 0.0 }
 0x126   : > { %v877_v22 = vpop.f32.mrb[20].mxu0  ;;  %v1614_v23 = vpop.f32.mrb[20].mxu1 }
 0x127   : > { %v1839_v25 = vmax.f32 %v877_v22, %v1614_v23  ;;  %v879_v26 = vpop.f32.mrb[21].mxu0  ;;  %v1616_v27 = vpop.f32.mrb[21].mxu1 }
 0x128   : > { %v880_v28 = vpop.f32.mrb[22].mxu0  ;;  %v1617_v29 = vpop.f32.mrb[22].mxu1 }
 0x129   : > { %v1910_v31 = vadd.f32 %v3128_v6, %v1839_v25  ;;  %v1840_v32 = vmax.f32 %v880_v28, %v1617_v29  ;;  %v882_v33 = vpop.f32.mrb[23].mxu0  ;;  %v1619_v34 = vpop.f32.mrb[23].mxu1 }
 0x12b   : > { %v1974_v36 = vmax.f32 %v1910_v31, 0.0  ;;  %v1911_v37 = vadd.f32 %v3128_v6, %v1840_v32 }
 0x12d   : > { %v2032_v39 = vmax.f32 %v1972_v35, %v1974_v36  ;;  %v1975_v40 = vmax.f32 %v1911_v37, 0.0 }
 0x12e   : > { %v885_v41 = vpop.f32.mrb[24].mxu0  ;;  %v1622_v42 = vpop.f32.mrb[24].mxu1 }
 0x12f   : > { %v2592_v43 = vpack.c.bf16 %v2032_v39, %v2032_v39  ;;  %v2033_v44 = vmax.f32 %v1973_v38, %v1975_v40  ;;  %v1841_v45 = vmax.f32 %v885_v41, %v1622_v42  ;;  %v887_v46 = vpop.f32.mrb[25].mxu0  ;;  %v1624_v47 = vpop.f32.mrb[25].mxu1 }
 0x130   : > { %v888_v48 = vpop.f32.mrb[26].mxu0  ;;  %v1625_v49 = vpop.f32.mrb[26].mxu1 }
 0x131   : > { %2193 = vst.msk [vmem:[%s3146_s15 + $0x10] sm:$0xf] %vm2188_vm1, %v2592_v43  ;;  %v2593_v50 = vpack.c.bf16 %v2033_v44, %v2033_v44  ;;  %v1842_v51 = vmax.f32 %v888_v48, %v1625_v49  ;;  %v890_v52 = vpop.f32.mrb[27].mxu0  ;;  %v1627_v53 = vpop.f32.mrb[27].mxu1  ;;  %v1912_v56 = vadd.f32 %v3128_v6, %v1841_v45 }
 0x133   : > { %2194 = vst.msk [vmem:[%s3146_s15 + $0x14] sm:$0xf] %vm2188_vm1, %v2593_v50  ;;  %v1913_v62 = vadd.f32 %v3128_v6, %v1842_v51  ;;  %v1976_v3 = vmax.f32 %v1912_v56, 0.0 }
 0x135   : > { %v1977_v7 = vmax.f32 %v1913_v62, 0.0 }
 0x136   : > { %v893_v54 = vpop.f32.mrb[28].mxu0  ;;  %v1630_v55 = vpop.f32.mrb[28].mxu1 }
 0x137   : > { %v1843_v57 = vmax.f32 %v893_v54, %v1630_v55  ;;  %v895_v58 = vpop.f32.mrb[29].mxu0  ;;  %v1632_v59 = vpop.f32.mrb[29].mxu1 }
 0x138   : > { %v896_v60 = vpop.f32.mrb[30].mxu0  ;;  %v1633_v61 = vpop.f32.mrb[30].mxu1 }
 0x139   : > { %v1914_v63 = vadd.f32 %v3128_v6, %v1843_v57  ;;  %v1844_v0 = vmax.f32 %v896_v60, %v1633_v61  ;;  %v898_v1 = vpop.f32.mrb[31].mxu0  ;;  %v1635_v2 = vpop.f32.mrb[31].mxu1 }
 0x13b   : > { %v1978_v4 = vmax.f32 %v1914_v63, 0.0  ;;  %v1915_v5 = vadd.f32 %v3128_v6, %v1844_v0 }
 0x13d   : > { %v2034_v8 = vmax.f32 %v1976_v3, %v1978_v4  ;;  %v1979_v9 = vmax.f32 %v1915_v5, 0.0 }
 0x13e   : > { %v901_v10 = vpop.f32.mrb[32].mxu0  ;;  %v1638_v11 = vpop.f32.mrb[32].mxu1 }
 0x13f   : > { %v2594_v12 = vpack.c.bf16 %v2034_v8, %v2034_v8  ;;  %v2035_v13 = vmax.f32 %v1977_v7, %v1979_v9  ;;  %v1845_v14 = vmax.f32 %v901_v10, %v1638_v11  ;;  %v903_v15 = vpop.f32.mrb[33].mxu0  ;;  %v1640_v16 = vpop.f32.mrb[33].mxu1 }
 0x140   : > { %v904_v17 = vpop.f32.mrb[34].mxu0  ;;  %v1641_v18 = vpop.f32.mrb[34].mxu1 }
 0x141   : > { %2195 = vst.msk [vmem:[%s3146_s15 + $0x18] sm:$0xf] %vm2188_vm1, %v2594_v12  ;;  %v2595_v19 = vpack.c.bf16 %v2035_v13, %v2035_v13  ;;  %v1846_v20 = vmax.f32 %v904_v17, %v1641_v18  ;;  %v906_v21 = vpop.f32.mrb[35].mxu0  ;;  %v1643_v22 = vpop.f32.mrb[35].mxu1  ;;  %v1916_v25 = vadd.f32 %v3128_v6, %v1845_v14 }
 0x143   : > { %2196 = vst.msk [vmem:[%s3146_s15 + $0x1c] sm:$0xf] %vm2188_vm1, %v2595_v19  ;;  %v1917_v31 = vadd.f32 %v3128_v6, %v1846_v20  ;;  %v1980_v36 = vmax.f32 %v1916_v25, 0.0 }
 0x145   : > { %v1981_v39 = vmax.f32 %v1917_v31, 0.0 }
 0x146   : > { %v909_v23 = vpop.f32.mrb[36].mxu0  ;;  %v1646_v24 = vpop.f32.mrb[36].mxu1 }
 0x147   : > { %v1847_v26 = vmax.f32 %v909_v23, %v1646_v24  ;;  %v911_v27 = vpop.f32.mrb[37].mxu0  ;;  %v1648_v28 = vpop.f32.mrb[37].mxu1 }
 0x148   : > { %v912_v29 = vpop.f32.mrb[38].mxu0  ;;  %v1649_v30 = vpop.f32.mrb[38].mxu1 }
 0x149   : > { %v1918_v32 = vadd.f32 %v3128_v6, %v1847_v26  ;;  %v1848_v33 = vmax.f32 %v912_v29, %v1649_v30  ;;  %v914_v34 = vpop.f32.mrb[39].mxu0  ;;  %v1651_v35 = vpop.f32.mrb[39].mxu1 }
 0x14b   : > { %v1982_v37 = vmax.f32 %v1918_v32, 0.0  ;;  %v1919_v38 = vadd.f32 %v3128_v6, %v1848_v33 }
 0x14d   : > { %v2036_v40 = vmax.f32 %v1980_v36, %v1982_v37  ;;  %v1983_v41 = vmax.f32 %v1919_v38, 0.0 }
 0x14e   : > { %v917_v42 = vpop.f32.mrb[40].mxu0  ;;  %v1654_v43 = vpop.f32.mrb[40].mxu1 }
 0x14f   : > { %v2596_v44 = vpack.c.bf16 %v2036_v40, %v2036_v40  ;;  %v2037_v45 = vmax.f32 %v1981_v39, %v1983_v41  ;;  %v1849_v46 = vmax.f32 %v917_v42, %v1654_v43  ;;  %v919_v47 = vpop.f32.mrb[41].mxu0  ;;  %v1656_v48 = vpop.f32.mrb[41].mxu1 }
 0x150   : > { %v920_v49 = vpop.f32.mrb[42].mxu0  ;;  %v1657_v50 = vpop.f32.mrb[42].mxu1 }
 0x151   : > { %2197 = vst.msk [vmem:[%s3146_s15 + $0x20] sm:$0xf] %vm2188_vm1, %v2596_v44  ;;  %v2597_v51 = vpack.c.bf16 %v2037_v45, %v2037_v45  ;;  %v1850_v52 = vmax.f32 %v920_v49, %v1657_v50  ;;  %v922_v53 = vpop.f32.mrb[43].mxu0  ;;  %v1659_v54 = vpop.f32.mrb[43].mxu1  ;;  %v1920_v57 = vadd.f32 %v3128_v6, %v1849_v46 }
 0x153   : > { %2198 = vst.msk [vmem:[%s3146_s15 + $0x24] sm:$0xf] %vm2188_vm1, %v2597_v51  ;;  %v1921_v63 = vadd.f32 %v3128_v6, %v1850_v52  ;;  %v1984_v4 = vmax.f32 %v1920_v57, 0.0 }
 0x155   : > { %v1985_v8 = vmax.f32 %v1921_v63, 0.0 }
 0x156   : > { %v925_v55 = vpop.f32.mrb[44].mxu0  ;;  %v1662_v56 = vpop.f32.mrb[44].mxu1 }
 0x157   : > { %v1851_v58 = vmax.f32 %v925_v55, %v1662_v56  ;;  %v927_v59 = vpop.f32.mrb[45].mxu0  ;;  %v1664_v60 = vpop.f32.mrb[45].mxu1 }
 0x158   : > { %v928_v61 = vpop.f32.mrb[46].mxu0  ;;  %v1665_v62 = vpop.f32.mrb[46].mxu1 }
 0x159   : > { %v1922_v0 = vadd.f32 %v3128_v6, %v1851_v58  ;;  %v1852_v1 = vmax.f32 %v928_v61, %v1665_v62  ;;  %v930_v2 = vpop.f32.mrb[47].mxu0  ;;  %v1667_v3 = vpop.f32.mrb[47].mxu1 }
 0x15b   : > { %v1986_v5 = vmax.f32 %v1922_v0, 0.0  ;;  %v1923_v7 = vadd.f32 %v3128_v6, %v1852_v1 }
 0x15d   : > { %v2038_v9 = vmax.f32 %v1984_v4, %v1986_v5  ;;  %v1987_v10 = vmax.f32 %v1923_v7, 0.0 }
 0x15e   : > { %v933_v11 = vpop.f32.mrb[48].mxu0  ;;  %v1670_v12 = vpop.f32.mrb[48].mxu1 }
 0x15f   : > { %v2598_v13 = vpack.c.bf16 %v2038_v9, %v2038_v9  ;;  %v2039_v14 = vmax.f32 %v1985_v8, %v1987_v10  ;;  %v1853_v15 = vmax.f32 %v933_v11, %v1670_v12  ;;  %v935_v16 = vpop.f32.mrb[49].mxu0  ;;  %v1672_v17 = vpop.f32.mrb[49].mxu1 }
 0x160   : > { %v936_v18 = vpop.f32.mrb[50].mxu0  ;;  %v1673_v19 = vpop.f32.mrb[50].mxu1 }
 0x161   : > { %2199 = vst.msk [vmem:[%s3146_s15 + $0x28] sm:$0xf] %vm2188_vm1, %v2598_v13  ;;  %v2599_v20 = vpack.c.bf16 %v2039_v14, %v2039_v14  ;;  %v1854_v21 = vmax.f32 %v936_v18, %v1673_v19  ;;  %v938_v22 = vpop.f32.mrb[51].mxu0  ;;  %v1675_v23 = vpop.f32.mrb[51].mxu1  ;;  %v1924_v26 = vadd.f32 %v3128_v6, %v1853_v15 }
 0x163   : > { %2200 = vst.msk [vmem:[%s3146_s15 + $0x2c] sm:$0xf] %vm2188_vm1, %v2599_v20  ;;  %v1925_v32 = vadd.f32 %v3128_v6, %v1854_v21  ;;  %v1988_v37 = vmax.f32 %v1924_v26, 0.0 }
 0x165   : > { %v1989_v40 = vmax.f32 %v1925_v32, 0.0 }
 0x166   : > { %v941_v24 = vpop.f32.mrb[52].mxu0  ;;  %v1678_v25 = vpop.f32.mrb[52].mxu1 }
 0x167   : > { %v1855_v27 = vmax.f32 %v941_v24, %v1678_v25  ;;  %v943_v28 = vpop.f32.mrb[53].mxu0  ;;  %v1680_v29 = vpop.f32.mrb[53].mxu1 }
 0x168   : > { %v944_v30 = vpop.f32.mrb[54].mxu0  ;;  %v1681_v31 = vpop.f32.mrb[54].mxu1 }
 0x169   : > { %v1926_v33 = vadd.f32 %v3128_v6, %v1855_v27  ;;  %v1856_v34 = vmax.f32 %v944_v30, %v1681_v31  ;;  %v946_v35 = vpop.f32.mrb[55].mxu0  ;;  %v1683_v36 = vpop.f32.mrb[55].mxu1 }
 0x16b   : > { %v1990_v38 = vmax.f32 %v1926_v33, 0.0  ;;  %v1927_v39 = vadd.f32 %v3128_v6, %v1856_v34 }
 0x16d   : > { %v2040_v41 = vmax.f32 %v1988_v37, %v1990_v38  ;;  %v1991_v42 = vmax.f32 %v1927_v39, 0.0 }
 0x16e   : > { %v949_v43 = vpop.f32.mrb[56].mxu0  ;;  %v1686_v44 = vpop.f32.mrb[56].mxu1 }
 0x16f   : > { %v2600_v45 = vpack.c.bf16 %v2040_v41, %v2040_v41  ;;  %v2041_v46 = vmax.f32 %v1989_v40, %v1991_v42  ;;  %v1857_v47 = vmax.f32 %v949_v43, %v1686_v44  ;;  %v951_v48 = vpop.f32.mrb[57].mxu0  ;;  %v1688_v49 = vpop.f32.mrb[57].mxu1 }
 0x170   : > { %v952_v50 = vpop.f32.mrb[58].mxu0  ;;  %v1689_v51 = vpop.f32.mrb[58].mxu1 }
 0x171   : > { %2201 = vst.msk [vmem:[%s3146_s15 + $0x30] sm:$0xf] %vm2188_vm1, %v2600_v45  ;;  %v2601_v52 = vpack.c.bf16 %v2041_v46, %v2041_v46  ;;  %v1858_v53 = vmax.f32 %v952_v50, %v1689_v51  ;;  %v954_v54 = vpop.f32.mrb[59].mxu0  ;;  %v1691_v55 = vpop.f32.mrb[59].mxu1  ;;  %v1928_v58 = vadd.f32 %v3128_v6, %v1857_v47 }
 0x173   : > { %2202 = vst.msk [vmem:[%s3146_s15 + $0x34] sm:$0xf] %vm2188_vm1, %v2601_v52  ;;  %v1929_v0 = vadd.f32 %v3128_v6, %v1858_v53  ;;  %v1992_v5 = vmax.f32 %v1928_v58, 0.0 }
 0x175   : > { %v1993_v9 = vmax.f32 %v1929_v0, 0.0 }
 0x176   : > { %v957_v56 = vpop.f32.mrb[60].mxu0  ;;  %v1694_v57 = vpop.f32.mrb[60].mxu1 }
 0x177   : > { %v1859_v59 = vmax.f32 %v957_v56, %v1694_v57  ;;  %v959_v60 = vpop.f32.mrb[61].mxu0  ;;  %v1696_v61 = vpop.f32.mrb[61].mxu1 }
 0x178   : > { %v960_v62 = vpop.f32.mrb[62].mxu0  ;;  %v1697_v63 = vpop.f32.mrb[62].mxu1 }
 0x179   : > { %v1930_v1 = vadd.f32 %v3128_v6, %v1859_v59  ;;  %v1860_v2 = vmax.f32 %v960_v62, %v1697_v63  ;;  %v962_v3 = vpop.f32.mrb[63].mxu0  ;;  %v1699_v4 = vpop.f32.mrb[63].mxu1 }
 0x17b   : > { %v1994_v7 = vmax.f32 %v1930_v1, 0.0  ;;  %v1931_v8 = vadd.f32 %v3128_v6, %v1860_v2 }
 0x17d   : > { %v2042_v10 = vmax.f32 %v1992_v5, %v1994_v7  ;;  %v1995_v11 = vmax.f32 %v1931_v8, 0.0 }
 0x17e   : > { %v965_v12 = vpop.f32.mrb[64].mxu0  ;;  %v1702_v13 = vpop.f32.mrb[64].mxu1 }
 0x17f   : > { %v2602_v14 = vpack.c.bf16 %v2042_v10, %v2042_v10  ;;  %v2043_v15 = vmax.f32 %v1993_v9, %v1995_v11  ;;  %v1861_v16 = vmax.f32 %v965_v12, %v1702_v13  ;;  %v967_v17 = vpop.f32.mrb[65].mxu0  ;;  %v1704_v18 = vpop.f32.mrb[65].mxu1 }
 0x180   : > { %v968_v19 = vpop.f32.mrb[66].mxu0  ;;  %v1705_v20 = vpop.f32.mrb[66].mxu1 }
 0x181   : > { %2203 = vst.msk [vmem:[%s3146_s15 + $0x38] sm:$0xf] %vm2188_vm1, %v2602_v14  ;;  %v2603_v21 = vpack.c.bf16 %v2043_v15, %v2043_v15  ;;  %v1862_v22 = vmax.f32 %v968_v19, %v1705_v20  ;;  %v970_v23 = vpop.f32.mrb[67].mxu0  ;;  %v1707_v24 = vpop.f32.mrb[67].mxu1  ;;  %v1932_v27 = vadd.f32 %v3128_v6, %v1861_v16 }
 0x183   : > { %2204 = vst.msk [vmem:[%s3146_s15 + $0x3c] sm:$0xf] %vm2188_vm1, %v2603_v21  ;;  %v1933_v33 = vadd.f32 %v3128_v6, %v1862_v22  ;;  %v1996_v38 = vmax.f32 %v1932_v27, 0.0 }
 0x185   : > { %v1997_v41 = vmax.f32 %v1933_v33, 0.0 }
 0x186   : > { %v973_v25 = vpop.f32.mrb[68].mxu0  ;;  %v1710_v26 = vpop.f32.mrb[68].mxu1 }
 0x187   : > { %v1863_v28 = vmax.f32 %v973_v25, %v1710_v26  ;;  %v975_v29 = vpop.f32.mrb[69].mxu0  ;;  %v1712_v30 = vpop.f32.mrb[69].mxu1 }
 0x188   : > { %v976_v31 = vpop.f32.mrb[70].mxu0  ;;  %v1713_v32 = vpop.f32.mrb[70].mxu1 }
 0x189   : > { %v1934_v34 = vadd.f32 %v3128_v6, %v1863_v28  ;;  %v1864_v35 = vmax.f32 %v976_v31, %v1713_v32  ;;  %v978_v36 = vpop.f32.mrb[71].mxu0  ;;  %v1715_v37 = vpop.f32.mrb[71].mxu1 }
 0x18b   : > { %v1998_v39 = vmax.f32 %v1934_v34, 0.0  ;;  %v1935_v40 = vadd.f32 %v3128_v6, %v1864_v35 }
 0x18d   : > { %v2044_v42 = vmax.f32 %v1996_v38, %v1998_v39  ;;  %v1999_v43 = vmax.f32 %v1935_v40, 0.0 }
 0x18e   : > { %v981_v44 = vpop.f32.mrb[72].mxu0  ;;  %v1718_v45 = vpop.f32.mrb[72].mxu1 }
 0x18f   : > { %v2604_v46 = vpack.c.bf16 %v2044_v42, %v2044_v42  ;;  %v2045_v47 = vmax.f32 %v1997_v41, %v1999_v43  ;;  %v1865_v48 = vmax.f32 %v981_v44, %v1718_v45  ;;  %v983_v49 = vpop.f32.mrb[73].mxu0  ;;  %v1720_v50 = vpop.f32.mrb[73].mxu1 }
 0x190   : > { %v984_v51 = vpop.f32.mrb[74].mxu0  ;;  %v1721_v52 = vpop.f32.mrb[74].mxu1 }
 0x191   : > { %2205 = vst.msk [vmem:[%s3146_s15 + $0x40] sm:$0xf] %vm2188_vm1, %v2604_v46  ;;  %v2605_v53 = vpack.c.bf16 %v2045_v47, %v2045_v47  ;;  %v1866_v54 = vmax.f32 %v984_v51, %v1721_v52  ;;  %v986_v55 = vpop.f32.mrb[75].mxu0  ;;  %v1723_v56 = vpop.f32.mrb[75].mxu1  ;;  %v1936_v59 = vadd.f32 %v3128_v6, %v1865_v48 }
 0x193   : > { %2206 = vst.msk [vmem:[%s3146_s15 + $0x44] sm:$0xf] %vm2188_vm1, %v2605_v53  ;;  %v1937_v1 = vadd.f32 %v3128_v6, %v1866_v54  ;;  %v2000_v7 = vmax.f32 %v1936_v59, 0.0 }
 0x195   : > { %v2001_v10 = vmax.f32 %v1937_v1, 0.0 }
 0x196   : > { %v989_v57 = vpop.f32.mrb[76].mxu0  ;;  %v1726_v58 = vpop.f32.mrb[76].mxu1 }
 0x197   : > { %v1867_v60 = vmax.f32 %v989_v57, %v1726_v58  ;;  %v991_v61 = vpop.f32.mrb[77].mxu0  ;;  %v1728_v62 = vpop.f32.mrb[77].mxu1 }
 0x198   : > { %v992_v63 = vpop.f32.mrb[78].mxu0  ;;  %v1729_v0 = vpop.f32.mrb[78].mxu1 }
 0x199   : > { %v1938_v2 = vadd.f32 %v3128_v6, %v1867_v60  ;;  %v1868_v3 = vmax.f32 %v992_v63, %v1729_v0  ;;  %v994_v4 = vpop.f32.mrb[79].mxu0  ;;  %v1731_v5 = vpop.f32.mrb[79].mxu1 }
 0x19b   : > { %v2002_v8 = vmax.f32 %v1938_v2, 0.0  ;;  %v1939_v9 = vadd.f32 %v3128_v6, %v1868_v3 }
 0x19d   : > { %v2046_v11 = vmax.f32 %v2000_v7, %v2002_v8  ;;  %v2003_v12 = vmax.f32 %v1939_v9, 0.0 }
 0x19e   : > { %v997_v13 = vpop.f32.mrb[80].mxu0  ;;  %v1734_v14 = vpop.f32.mrb[80].mxu1 }
 0x19f   : > { %v2606_v15 = vpack.c.bf16 %v2046_v11, %v2046_v11  ;;  %v2047_v16 = vmax.f32 %v2001_v10, %v2003_v12  ;;  %v1869_v17 = vmax.f32 %v997_v13, %v1734_v14  ;;  %v999_v18 = vpop.f32.mrb[81].mxu0  ;;  %v1736_v19 = vpop.f32.mrb[81].mxu1 }
 0x1a0   : > { %v1000_v20 = vpop.f32.mrb[82].mxu0  ;;  %v1737_v21 = vpop.f32.mrb[82].mxu1 }
 0x1a1   : > { %2207 = vst.msk [vmem:[%s3146_s15 + $0x48] sm:$0xf] %vm2188_vm1, %v2606_v15  ;;  %v2607_v22 = vpack.c.bf16 %v2047_v16, %v2047_v16  ;;  %v1870_v23 = vmax.f32 %v1000_v20, %v1737_v21  ;;  %v1002_v24 = vpop.f32.mrb[83].mxu0  ;;  %v1739_v25 = vpop.f32.mrb[83].mxu1  ;;  %v1940_v28 = vadd.f32 %v3128_v6, %v1869_v17 }
 0x1a3   : > { %2208 = vst.msk [vmem:[%s3146_s15 + $0x4c] sm:$0xf] %vm2188_vm1, %v2607_v22  ;;  %v1941_v34 = vadd.f32 %v3128_v6, %v1870_v23  ;;  %v2004_v39 = vmax.f32 %v1940_v28, 0.0 }
 0x1a5   : > { %v2005_v42 = vmax.f32 %v1941_v34, 0.0 }
 0x1a6   : > { %v1005_v26 = vpop.f32.mrb[84].mxu0  ;;  %v1742_v27 = vpop.f32.mrb[84].mxu1 }
 0x1a7   : > { %v1871_v29 = vmax.f32 %v1005_v26, %v1742_v27  ;;  %v1007_v30 = vpop.f32.mrb[85].mxu0  ;;  %v1744_v31 = vpop.f32.mrb[85].mxu1 }
 0x1a8   : > { %v1008_v32 = vpop.f32.mrb[86].mxu0  ;;  %v1745_v33 = vpop.f32.mrb[86].mxu1 }
 0x1a9   : > { %v1942_v35 = vadd.f32 %v3128_v6, %v1871_v29  ;;  %v1872_v36 = vmax.f32 %v1008_v32, %v1745_v33  ;;  %v1010_v37 = vpop.f32.mrb[87].mxu0  ;;  %v1747_v38 = vpop.f32.mrb[87].mxu1 }
 0x1ab   : > { %v2006_v40 = vmax.f32 %v1942_v35, 0.0  ;;  %v1943_v41 = vadd.f32 %v3128_v6, %v1872_v36 }
 0x1ad   : > { %v2048_v43 = vmax.f32 %v2004_v39, %v2006_v40  ;;  %v2007_v44 = vmax.f32 %v1943_v41, 0.0 }
 0x1ae   : > { %v1013_v45 = vpop.f32.mrb[88].mxu0  ;;  %v1750_v46 = vpop.f32.mrb[88].mxu1 }
 0x1af   : > { %v2608_v47 = vpack.c.bf16 %v2048_v43, %v2048_v43  ;;  %v2049_v48 = vmax.f32 %v2005_v42, %v2007_v44  ;;  %v1873_v49 = vmax.f32 %v1013_v45, %v1750_v46  ;;  %v1015_v50 = vpop.f32.mrb[89].mxu0  ;;  %v1752_v51 = vpop.f32.mrb[89].mxu1 }
 0x1b0   : > { %v1016_v52 = vpop.f32.mrb[90].mxu0  ;;  %v1753_v53 = vpop.f32.mrb[90].mxu1 }
 0x1b1   : > { %2209 = vst.msk [vmem:[%s3146_s15 + $0x50] sm:$0xf] %vm2188_vm1, %v2608_v47  ;;  %v2609_v54 = vpack.c.bf16 %v2049_v48, %v2049_v48  ;;  %v1874_v55 = vmax.f32 %v1016_v52, %v1753_v53  ;;  %v1018_v56 = vpop.f32.mrb[91].mxu0  ;;  %v1755_v57 = vpop.f32.mrb[91].mxu1  ;;  %v1944_v60 = vadd.f32 %v3128_v6, %v1873_v49 }
 0x1b3   : > { %2210 = vst.msk [vmem:[%s3146_s15 + $0x54] sm:$0xf] %vm2188_vm1, %v2609_v54  ;;  %v1945_v2 = vadd.f32 %v3128_v6, %v1874_v55  ;;  %v2008_v8 = vmax.f32 %v1944_v60, 0.0 }
 0x1b5   : > { %v2009_v11 = vmax.f32 %v1945_v2, 0.0 }
 0x1b6   : > { %v1021_v58 = vpop.f32.mrb[92].mxu0  ;;  %v1758_v59 = vpop.f32.mrb[92].mxu1 }
 0x1b7   : > { %v1875_v61 = vmax.f32 %v1021_v58, %v1758_v59  ;;  %v1023_v62 = vpop.f32.mrb[93].mxu0  ;;  %v1760_v63 = vpop.f32.mrb[93].mxu1 }
 0x1b8   : > { %v1024_v0 = vpop.f32.mrb[94].mxu0  ;;  %v1761_v1 = vpop.f32.mrb[94].mxu1 }
 0x1b9   : > { %v1946_v3 = vadd.f32 %v3128_v6, %v1875_v61  ;;  %v1876_v4 = vmax.f32 %v1024_v0, %v1761_v1  ;;  %v1026_v5 = vpop.f32.mrb[95].mxu0  ;;  %v1763_v7 = vpop.f32.mrb[95].mxu1 }
 0x1bb   : > { %v2010_v9 = vmax.f32 %v1946_v3, 0.0  ;;  %v1947_v10 = vadd.f32 %v3128_v6, %v1876_v4 }
 0x1bd   : > { %v2050_v12 = vmax.f32 %v2008_v8, %v2010_v9  ;;  %v2011_v13 = vmax.f32 %v1947_v10, 0.0 }
 0x1be   : > { %v1029_v14 = vpop.f32.mrb[96].mxu0  ;;  %v1766_v15 = vpop.f32.mrb[96].mxu1 }
 0x1bf   : > { %v2610_v16 = vpack.c.bf16 %v2050_v12, %v2050_v12  ;;  %v2051_v17 = vmax.f32 %v2009_v11, %v2011_v13  ;;  %v1877_v18 = vmax.f32 %v1029_v14, %v1766_v15  ;;  %v1031_v19 = vpop.f32.mrb[97].mxu0  ;;  %v1768_v20 = vpop.f32.mrb[97].mxu1 }
 0x1c0   : > { %v1032_v21 = vpop.f32.mrb[98].mxu0  ;;  %v1769_v22 = vpop.f32.mrb[98].mxu1 }
 0x1c1   : > { %2211 = vst.msk [vmem:[%s3146_s15 + $0x58] sm:$0xf] %vm2188_vm1, %v2610_v16  ;;  %v2611_v23 = vpack.c.bf16 %v2051_v17, %v2051_v17  ;;  %v1878_v24 = vmax.f32 %v1032_v21, %v1769_v22  ;;  %v1034_v25 = vpop.f32.mrb[99].mxu0  ;;  %v1771_v26 = vpop.f32.mrb[99].mxu1  ;;  %v1948_v29 = vadd.f32 %v3128_v6, %v1877_v18 }
 0x1c3   : > { %2212 = vst.msk [vmem:[%s3146_s15 + $0x5c] sm:$0xf] %vm2188_vm1, %v2611_v23  ;;  %v1949_v35 = vadd.f32 %v3128_v6, %v1878_v24  ;;  %v2012_v40 = vmax.f32 %v1948_v29, 0.0  ;;  %v2846_v29 = vld [vmem:[%s3293_s3] ss:$0 sm:$0xff] }
 0x1c5   : > { %v2013_v43 = vmax.f32 %v1949_v35, 0.0 }
 0x1c6   : > { %v1037_v27 = vpop.f32.mrb[100].mxu0  ;;  %v1774_v28 = vpop.f32.mrb[100].mxu1 }
 0x1c7   : > { %v1879_v30 = vmax.f32 %v1037_v27, %v1774_v28  ;;  %v1039_v31 = vpop.f32.mrb[101].mxu0  ;;  %v1776_v32 = vpop.f32.mrb[101].mxu1 }
 0x1c8   : > { %v1040_v33 = vpop.f32.mrb[102].mxu0  ;;  %v1777_v34 = vpop.f32.mrb[102].mxu1 }
 0x1c9   : > { %v1950_v36 = vadd.f32 %v3128_v6, %v1879_v30  ;;  %v1880_v37 = vmax.f32 %v1040_v33, %v1777_v34  ;;  %v1042_v38 = vpop.f32.mrb[103].mxu0  ;;  %v1779_v39 = vpop.f32.mrb[103].mxu1 }
 0x1cb   : > { %v2014_v41 = vmax.f32 %v1950_v36, 0.0  ;;  %v1951_v42 = vadd.f32 %v3128_v6, %v1880_v37 }
 0x1cd   : > { %v2052_v44 = vmax.f32 %v2012_v40, %v2014_v41  ;;  %v2015_v45 = vmax.f32 %v1951_v42, 0.0 }
 0x1ce   : > { %v1045_v46 = vpop.f32.mrb[104].mxu0  ;;  %v1782_v47 = vpop.f32.mrb[104].mxu1 }
 0x1cf   : > { %v2612_v48 = vpack.c.bf16 %v2052_v44, %v2052_v44  ;;  %v2053_v49 = vmax.f32 %v2013_v43, %v2015_v45  ;;  %v1881_v50 = vmax.f32 %v1045_v46, %v1782_v47  ;;  %v1047_v51 = vpop.f32.mrb[105].mxu0  ;;  %v1784_v52 = vpop.f32.mrb[105].mxu1 }
 0x1d0   : > { %v1048_v53 = vpop.f32.mrb[106].mxu0  ;;  %v1785_v54 = vpop.f32.mrb[106].mxu1 }
 0x1d1   : > { %2213 = vst.msk [vmem:[%s3146_s15 + $0x60] sm:$0xf] %vm2188_vm1, %v2612_v48  ;;  %v2613_v55 = vpack.c.bf16 %v2053_v49, %v2053_v49  ;;  %v1882_v56 = vmax.f32 %v1048_v53, %v1785_v54  ;;  %v1050_v57 = vpop.f32.mrb[107].mxu0  ;;  %v1787_v58 = vpop.f32.mrb[107].mxu1  ;;  %v1952_v61 = vadd.f32 %v3128_v6, %v1881_v50 }
 0x1d3   : > { %2214 = vst.msk [vmem:[%s3146_s15 + $0x64] sm:$0xf] %vm2188_vm1, %v2613_v55  ;;  %v1953_v3 = vadd.f32 %v3128_v6, %v1882_v56  ;;  %v2016_v9 = vmax.f32 %v1952_v61, 0.0 }
 0x1d5   : > { %v2017_v12 = vmax.f32 %v1953_v3, 0.0 }
 0x1d6   : > { %v1053_v59 = vpop.f32.mrb[108].mxu0  ;;  %v1790_v60 = vpop.f32.mrb[108].mxu1 }
 0x1d7   : > { %v1883_v62 = vmax.f32 %v1053_v59, %v1790_v60  ;;  %v1055_v63 = vpop.f32.mrb[109].mxu0  ;;  %v1792_v0 = vpop.f32.mrb[109].mxu1 }
 0x1d8   : > { %v1056_v1 = vpop.f32.mrb[110].mxu0  ;;  %v1793_v2 = vpop.f32.mrb[110].mxu1 }
 0x1d9   : > { %v1954_v4 = vadd.f32 %v3128_v6, %v1883_v62  ;;  %v1884_v5 = vmax.f32 %v1056_v1, %v1793_v2  ;;  %v1058_v7 = vpop.f32.mrb[111].mxu0  ;;  %v1795_v8 = vpop.f32.mrb[111].mxu1 }
 0x1db   : > { %v2018_v10 = vmax.f32 %v1954_v4, 0.0  ;;  %v1955_v11 = vadd.f32 %v3128_v6, %v1884_v5 }
 0x1dd   : > { %v2054_v13 = vmax.f32 %v2016_v9, %v2018_v10  ;;  %v2019_v14 = vmax.f32 %v1955_v11, 0.0 }
 0x1de   : > { %v1061_v15 = vpop.f32.mrb[112].mxu0  ;;  %v1798_v16 = vpop.f32.mrb[112].mxu1 }
 0x1df   : > { %v2614_v17 = vpack.c.bf16 %v2054_v13, %v2054_v13  ;;  %v2055_v18 = vmax.f32 %v2017_v12, %v2019_v14  ;;  %v1885_v19 = vmax.f32 %v1061_v15, %v1798_v16  ;;  %v1063_v20 = vpop.f32.mrb[113].mxu0  ;;  %v1800_v21 = vpop.f32.mrb[113].mxu1 }
 0x1e0   : > { %v1064_v22 = vpop.f32.mrb[114].mxu0  ;;  %v1801_v23 = vpop.f32.mrb[114].mxu1 }
 0x1e1   : > { %2215 = vst.msk [vmem:[%s3146_s15 + $0x68] sm:$0xf] %vm2188_vm1, %v2614_v17  ;;  %v2615_v24 = vpack.c.bf16 %v2055_v18, %v2055_v18  ;;  %v1886_v25 = vmax.f32 %v1064_v22, %v1801_v23  ;;  %v1066_v26 = vpop.f32.mrb[115].mxu0  ;;  %v1803_v27 = vpop.f32.mrb[115].mxu1  ;;  %v1956_v30 = vadd.f32 %v2846_v29, %v1885_v19 }
 0x1e3   : > { %2216 = vst.msk [vmem:[%s3146_s15 + $0x6c] sm:$0xf] %vm2188_vm1, %v2615_v24  ;;  %v1957_v36 = vadd.f32 %v2846_v29, %v1886_v25  ;;  %v2020_v41 = vmax.f32 %v1956_v30, 0.0 }
 0x1e5   : > { %v2021_v44 = vmax.f32 %v1957_v36, 0.0 }
 0x1e6   : > { %v1069_v6 = vpop.f32.mrb[116].mxu0  ;;  %v1806_v28 = vpop.f32.mrb[116].mxu1 }
 0x1e7   : > { %v1887_v31 = vmax.f32 %v1069_v6, %v1806_v28  ;;  %v1071_v32 = vpop.f32.mrb[117].mxu0  ;;  %v1808_v33 = vpop.f32.mrb[117].mxu1 }
 0x1e8   : > { %v1072_v34 = vpop.f32.mrb[118].mxu0  ;;  %v1809_v35 = vpop.f32.mrb[118].mxu1 }
 0x1e9   : > { %v1958_v37 = vadd.f32 %v2846_v29, %v1887_v31  ;;  %v1888_v38 = vmax.f32 %v1072_v34, %v1809_v35  ;;  %v1074_v39 = vpop.f32.mrb[119].mxu0  ;;  %v1811_v40 = vpop.f32.mrb[119].mxu1 }
 0x1eb   : > { %v2022_v42 = vmax.f32 %v1958_v37, 0.0  ;;  %v1959_v43 = vadd.f32 %v2846_v29, %v1888_v38 }
 0x1ed   : > { %v2056_v45 = vmax.f32 %v2020_v41, %v2022_v42  ;;  %v2023_v46 = vmax.f32 %v1959_v43, 0.0 }
 0x1ee   : > { %v1077_v47 = vpop.f32.mrb[120].mxu0  ;;  %v1814_v48 = vpop.f32.mrb[120].mxu1 }
 0x1ef   : > { %v2616_v49 = vpack.c.bf16 %v2056_v45, %v2056_v45  ;;  %v2057_v50 = vmax.f32 %v2021_v44, %v2023_v46  ;;  %v1889_v51 = vmax.f32 %v1077_v47, %v1814_v48  ;;  %v1079_v52 = vpop.f32.mrb[121].mxu0  ;;  %v1816_v53 = vpop.f32.mrb[121].mxu1 }
 0x1f0   : > { %v1080_v54 = vpop.f32.mrb[122].mxu0  ;;  %v1817_v55 = vpop.f32.mrb[122].mxu1 }
 0x1f1   : > { %2217 = vst.msk [vmem:[%s3146_s15 + $0x70] sm:$0xf] %vm2188_vm1, %v2616_v49  ;;  %v2617_v56 = vpack.c.bf16 %v2057_v50, %v2057_v50  ;;  %v1890_v57 = vmax.f32 %v1080_v54, %v1817_v55  ;;  %v1082_v58 = vpop.f32.mrb[123].mxu0  ;;  %v1819_v59 = vpop.f32.mrb[123].mxu1  ;;  %v1960_v62 = vadd.f32 %v2846_v29, %v1889_v51 }
 0x1f3   : > { %2218 = vst.msk [vmem:[%s3146_s15 + $0x74] sm:$0xf] %vm2188_vm1, %v2617_v56  ;;  %v1961_v4 = vadd.f32 %v2846_v29, %v1890_v57  ;;  %v2024_v10 = vmax.f32 %v1960_v62, 0.0 }
 0x1f5   : > { %v2025_v13 = vmax.f32 %v1961_v4, 0.0 }
 0x1f6   : > { %v1085_v60 = vpop.f32.mrb[124].mxu0  ;;  %v1822_v61 = vpop.f32.mrb[124].mxu1 }
 0x1f7   : > { %v1891_v63 = vmax.f32 %v1085_v60, %v1822_v61  ;;  %v1087_v0 = vpop.f32.mrb[125].mxu0  ;;  %v1824_v1 = vpop.f32.mrb[125].mxu1 }
 0x1f8   : > { %v1088_v2 = vpop.f32.mrb[126].mxu0  ;;  %v1825_v3 = vpop.f32.mrb[126].mxu1 }
 0x1f9   : > { %v1962_v5 = vadd.f32 %v2846_v29, %v1891_v63  ;;  %v1892_v7 = vmax.f32 %v1088_v2, %v1825_v3  ;;  %v1090_v8 = vpop.f32.mrb[127].mxu0  ;;  %v1827_v9 = vpop.f32.mrb[127].mxu1 }
 0x1fb   : > { %v2026_v11 = vmax.f32 %v1962_v5, 0.0  ;;  %v1963_v12 = vadd.f32 %v2846_v29, %v1892_v7 }
 0x1fd   : > { %v2058_v14 = vmax.f32 %v2024_v10, %v2026_v11  ;;  %v2027_v15 = vmax.f32 %v1963_v12, 0.0 }
 0x1ff   : > { %v2618_v16 = vpack.c.bf16 %v2058_v14, %v2058_v14  ;;  %v2059_v17 = vmax.f32 %v2025_v13, %v2027_v15 }
 0x201   : > { %2219 = vst.msk [vmem:[%s3146_s15 + $0x78] sm:$0xf] %vm2188_vm1, %v2618_v16  ;;  %v2619_v18 = vpack.c.bf16 %v2059_v17, %v2059_v17 }
 0x203   : > { %2220 = vst.msk [vmem:[%s3146_s15 + $0x7c] sm:$0xf] %vm2188_vm1, %v2619_v18 }
 0x204 PF: > { %s14_s17 = sadd.s32 1, %s2869_s17   ;;  %s3295_s15 = smov %s2865_s16 }
 0x205   : > { %p11_p5 = scmp.ge.s32.totalorder %s14_s17, 4   ;;  %s3296_s16 = smov %s3298_s18 }
 0x207   :  { %13 = sbr.rel (!%p11_p5) target bundleno = 2 (0x2), region = 69 }

// kernel: asl_classifier_forward.5
= control target key start
LH: loop header
LB: loop body
LE: loop exit
PB: predicated region body
PF: predicated region fallthrough
CT: control target
= control target key end

     0   :  { %v1072_v28 = vlaneseq  ;;  %v7830_v36 = vmov 1966171168   ;;  %s9580_s0 = inlined_call_operand.vmem [shape: bf16[2,8192], index: 0, kind: input, shape index: {}]   ;;  %s9581_s1 = inlined_call_operand.vmem [shape: bf16[8192,128], index: 1, kind: input, shape index: {}]   ;;  %s9582_s2 = inlined_call_operand.vmem [shape: f32[1,128], index: 2, kind: input, shape index: {}]   ;;  %s9583_s3 = inlined_call_operand.vmem [shape: bf16[128,10], index: 3, kind: input, shape index: {}]   ;;  %s9584_s4 = inlined_call_operand.vmem [shape: f32[1,10], index: 4, kind: input, shape index: {}]   ;;  %s9585_s5 = inlined_call_operand.hbm [shape: f32[2,10], index: 5, kind: output, shape index: {}]  }
   0x1   :  { %v7278_v0 = vld [vmem:[%s9581_s1 + $0x40] sm:$0xff]   ;;  %v7282_v4 = vld [vmem:[%s9581_s1 + $0x48] sm:$0xff]   ;;  %v7286_v8 = vld [vmem:[%s9581_s1 + $0x50] sm:$0xff]   ;;  %v1070_v37 = vunpack.c.l.s4 %v7830_v36 }
   0x2   :  { %v7279_v1 = vld [vmem:[%s9581_s1 + $0xc0] sm:$0xff]   ;;  %6541 = vmatprep.subr.bf16.mxu0 %v7278_v0  ;;  %v7283_v5 = vld [vmem:[%s9581_s1 + $0xc8] sm:$0xff]   ;;  %v7287_v9 = vld [vmem:[%s9581_s1 + $0xd0] sm:$0xff]   ;;  %v1073_v33 = vshrl.u32 %v1072_v28, 7 }
   0x3   :  { %v7280_v2 = vld [vmem:[%s9581_s1] sm:$0xff]   ;;  %6563 = vmatprep.subr.bf16.mxu1 %v7279_v1  ;;  %v7284_v6 = vld [vmem:[%s9581_s1 + $0x8] sm:$0xff]   ;;  %v7288_v10 = vld [vmem:[%s9581_s1 + $0x10] sm:$0xff]   ;;  %v1071_v40 = vunpack.c.0.s8 %v1070_v37 }
   0x4   :  { %v7281_v3 = vld [vmem:[%s9581_s1 + $0x80] sm:$0xff]   ;;  %6542 = vmatpush3.bf16.msra.mxu0 %v7280_v2  ;;  %v7285_v7 = vld [vmem:[%s9581_s1 + $0x88] sm:$0xff]   ;;  %v7289_v11 = vld [vmem:[%s9581_s1 + $0x90] sm:$0xff]  }
   0x5   :  { %6564 = vmatpush3.bf16.msra.mxu1 %v7281_v3  ;;  %6543 = vmatprep.subr.bf16.mxu0 %v7282_v4  ;;  %v7290_v12 = vld [vmem:[%s9581_s1 + $0x58] sm:$0xff]   ;;  %v7294_v16 = vld [vmem:[%s9581_s1 + $0x60] sm:$0xff]   ;;  %v7298_v20 = vld [vmem:[%s9581_s1 + $0x68] sm:$0xff]   ;;  %v7969_v41 = vsub.s32 %v1071_v40, %v1073_v33 }
   0x6   :  { %6565 = vmatprep.subr.bf16.mxu1 %v7283_v5  ;;  %v7291_v13 = vld [vmem:[%s9581_s1 + $0xd8] sm:$0xff]   ;;  %v7295_v17 = vld [vmem:[%s9581_s1 + $0xe0] sm:$0xff]   ;;  %v7299_v21 = vld [vmem:[%s9581_s1 + $0xe8] sm:$0xff]  }
   0x7   :  { %v7292_v14 = vld [vmem:[%s9581_s1 + $0x18] sm:$0xff]   ;;  %v7296_v18 = vld [vmem:[%s9581_s1 + $0x20] sm:$0xff]   ;;  %v7300_v22 = vld [vmem:[%s9581_s1 + $0x28] sm:$0xff]  }
   0x8   :  { %6544 = vmatpush3.bf16.msra.mxu0 %v7284_v6  ;;  %v7293_v15 = vld [vmem:[%s9581_s1 + $0x98] sm:$0xff]   ;;  %v7297_v19 = vld [vmem:[%s9581_s1 + $0xa0] sm:$0xff]   ;;  %v7301_v23 = vld [vmem:[%s9581_s1 + $0xa8] sm:$0xff]  }
   0x9   :  { %6566 = vmatpush3.bf16.msra.mxu1 %v7285_v7  ;;  %6545 = vmatprep.subr.bf16.mxu0 %v7286_v8  ;;  %v7302_v24 = vld [vmem:[%s9581_s1 + $0x70] sm:$0xff]   ;;  %v7306_v29 = vld [vmem:[%s9581_s1 + $0x78] sm:$0xff]   ;;  %v28_v34 = vld [vmem:[%s9580_s0] sm:$0xff] }
   0xa   :  { %6567 = vmatprep.subr.bf16.mxu1 %v7287_v9  ;;  %v7303_v25 = vld [vmem:[%s9581_s1 + $0xf0] sm:$0xff]   ;;  %v7307_v30 = vld [vmem:[%s9581_s1 + $0xf8] sm:$0xff]   ;;  %v7311_v35 = vld [vmem:[%s9581_s1 + $0x140] sm:$0xff]   ;;  %v1068_v39 = vcombine.high %v28_v34, %v28_v34  ;;  %v1075_v42 = vrot.slane %v28_v34, %v7969_v41 }
   0xb   :  { %v7304_v26 = vld [vmem:[%s9581_s1 + $0x30] sm:$0xff]   ;;  %v7308_v31 = vld [vmem:[%s9581_s1 + $0x38] sm:$0xff]   ;;  %v7312_v38 = vld [vmem:[%s9581_s1 + $0x1c0] sm:$0xff]  }
   0xc   :  { %6546 = vmatpush3.bf16.msra.mxu0 %v7288_v10  ;;  %v7305_v27 = vld [vmem:[%s9581_s1 + $0xb0] sm:$0xff]   ;;  %v7309_v32 = vld [vmem:[%s9581_s1 + $0xb8] sm:$0xff]   ;;  %v7973_v43 = vrot.slane %v1068_v39, %v7969_v41  ;;  %v1083_v44 = vcombine.high %v1075_v42, %v1075_v42  ;;  %v1091_v45 = vrot.slane %v1075_v42, %v7969_v41  ;;  %v7313_v47 = vld [vmem:[%s9581_s1 + $0x100] sm:$0xff]  }
   0xd   :  { %6568 = vmatpush3.bf16.msra.mxu1 %v7289_v11  ;;  %6547 = vmatprep.subr.bf16.mxu0 %v7290_v12  ;;  %v7314_v49 = vld [vmem:[%s9581_s1 + $0x180] sm:$0xff]   ;;  %v7315_v52 = vld [vmem:[%s9581_s1 + $0x148] sm:$0xff]   ;;  %v7319_v58 = vld [vmem:[%s9581_s1 + $0x150] sm:$0xff]  }
   0xe   :  { %6569 = vmatprep.subr.bf16.mxu1 %v7291_v13  ;;  %v1084_v46 = vcombine.high %v7973_v43, %v7973_v43  ;;  %v1105_v48 = vrot.slane %v1083_v44, %v7969_v41  ;;  %v1113_v51 = vcombine.high %v1091_v45, %v1091_v45  ;;  %v7316_v54 = vld [vmem:[%s9581_s1 + $0x1c8] sm:$0xff]   ;;  %v7320_v59 = vld [vmem:[%s9581_s1 + $0x1d0] sm:$0xff]   ;;  %v7323_v62 = vld [vmem:[%s9581_s1 + $0x158] sm:$0xff]  }
   0xf   :  { %v7317_v55 = vld [vmem:[%s9581_s1 + $0x108] sm:$0xff]   ;;  %v7321_v60 = vld [vmem:[%s9581_s1 + $0x110] sm:$0xff]   ;;  %v7324_v63 = vld [vmem:[%s9581_s1 + $0x1d8] sm:$0xff]  }
  0x10   :  { %6548 = vmatpush3.bf16.msra.mxu0 %v7292_v14  ;;  %v1112_v50 = vrot.slane %v1084_v46, %v7969_v41  ;;  %4628 = vmatprep.mubr.bf16.mxu0 %v1105_v48  ;;  %v1115_v53 = vcombine.high %v1105_v48, %v1105_v48  ;;  %v7318_v57 = vld [vmem:[%s9581_s1 + $0x188] sm:$0xff]   ;;  %v7322_v61 = vld [vmem:[%s9581_s1 + $0x190] sm:$0xff]   ;;  %v7325_v0 = vld [vmem:[%s9581_s1 + $0x118] sm:$0xff]  }
  0x11   :  { %6570 = vmatpush3.bf16.msra.mxu1 %v7293_v15  ;;  %6549 = vmatprep.subr.bf16.mxu0 %v7294_v16  ;;  %v7326_v1 = vld [vmem:[%s9581_s1 + $0x198] sm:$0xff]   ;;  %v7327_v2 = vld [vmem:[%s9581_s1 + $0x160] sm:$0xff]   ;;  %v7331_v6 = vld [vmem:[%s9581_s1 + $0x168] sm:$0xff]  }
  0x12   :  { %6571 = vmatprep.subr.bf16.mxu1 %v7295_v17  ;;  %v1116_v56 = vcombine.high %v1112_v50, %v1112_v50  ;;  %4668 = vmatprep.mubr.bf16.mxu1 %v1115_v53  ;;  %v7328_v3 = vld [vmem:[%s9581_s1 + $0x1e0] sm:$0xff]   ;;  %v7332_v7 = vld [vmem:[%s9581_s1 + $0x1e8] sm:$0xff]   ;;  %v7335_v10 = vld [vmem:[%s9581_s1 + $0x170] sm:$0xff]  }
  0x13   :  { %v7329_v4 = vld [vmem:[%s9581_s1 + $0x120] sm:$0xff]   ;;  %v7333_v8 = vld [vmem:[%s9581_s1 + $0x128] sm:$0xff]   ;;  %v7336_v11 = vld [vmem:[%s9581_s1 + $0x1f0] sm:$0xff]  }
  0x14   :  { %6550 = vmatpush3.bf16.msra.mxu0 %v7296_v18  ;;  %v7330_v5 = vld [vmem:[%s9581_s1 + $0x1a0] sm:$0xff]   ;;  %v7334_v9 = vld [vmem:[%s9581_s1 + $0x1a8] sm:$0xff]   ;;  %v7337_v12 = vld [vmem:[%s9581_s1 + $0x130] sm:$0xff]   ;;  %v1098_v18 = vrot.slane %v7973_v43, %v7969_v41 }
  0x15   :  { %6572 = vmatpush3.bf16.msra.mxu1 %v7297_v19  ;;  %6551 = vmatprep.subr.bf16.mxu0 %v7298_v20  ;;  %v7338_v13 = vld [vmem:[%s9581_s1 + $0x1b0] sm:$0xff]   ;;  %v7339_v14 = vld [vmem:[%s9581_s1 + $0x178] sm:$0xff]   ;;  %v7343_v19 = vld [vmem:[%s9581_s1 + $0x240] sm:$0xff]  }
  0x16   :  { %6573 = vmatprep.subr.bf16.mxu1 %v7299_v21  ;;  %v7340_v15 = vld [vmem:[%s9581_s1 + $0x1f8] sm:$0xff]   ;;  %v7344_v20 = vld [vmem:[%s9581_s1 + $0x2c0] sm:$0xff]   ;;  %v7351_v28 = vld [vmem:[%s9581_s1 + $0x250] sm:$0xff]  }
  0x17   :  { %v7341_v16 = vld [vmem:[%s9581_s1 + $0x138] sm:$0xff]   ;;  %v7345_v21 = vld [vmem:[%s9581_s1 + $0x200] sm:$0xff]   ;;  %v7363_v40 = vld [vmem:[%s9581_s1 + $0x268] sm:$0xff]  }
  0x18   :  { %6552 = vmatpush3.bf16.msra.mxu0 %v7300_v22  ;;  %v7342_v17 = vld [vmem:[%s9581_s1 + $0x1b8] sm:$0xff]   ;;  %v7346_v22 = vld [vmem:[%s9581_s1 + $0x280] sm:$0xff]   ;;  %v7364_v42 = vld [vmem:[%s9581_s1 + $0x2e8] sm:$0xff]  }
  0x19   :  { %6574 = vmatpush3.bf16.msra.mxu1 %v7301_v23  ;;  %6553 = vmatprep.subr.bf16.mxu0 %v7302_v24  ;;  %v1114_v23 = vcombine.high %v1098_v18, %v1098_v18  ;;  %v7347_v24 = vld [vmem:[%s9581_s1 + $0x248] sm:$0xff]   ;;  %v7356_v33 = vld [vmem:[%s9581_s1 + $0x2d8] sm:$0xff]   ;;  %v7359_v36 = vld [vmem:[%s9581_s1 + $0x260] sm:$0xff]  }
  0x1a   :  { %6575 = vmatprep.subr.bf16.mxu1 %v7303_v25  ;;  %v7348_v25 = vld [vmem:[%s9581_s1 + $0x2c8] sm:$0xff]   ;;  %v7357_v34 = vld [vmem:[%s9581_s1 + $0x218] sm:$0xff]   ;;  %v7360_v37 = vld [vmem:[%s9581_s1 + $0x2e0] sm:$0xff]  }
  0x1b   :  { %v7362_v39 = vld [vmem:[%s9581_s1 + $0x2a0] sm:$0xff]   ;;  %v7365_v43 = vld [vmem:[%s9581_s1 + $0x228] sm:$0xff]  }
  0x1c   :  { %6554 = vmatpush3.bf16.msra.mxu0 %v7304_v26  ;;  %v7349_v26 = vld [vmem:[%s9581_s1 + $0x208] sm:$0xff]  }
  0x1d   :  { %6576 = vmatpush3.bf16.msra.mxu1 %v7305_v27  ;;  %6555 = vmatprep.subr.bf16.mxu0 %v7306_v29  ;;  %v7350_v27 = vld [vmem:[%s9581_s1 + $0x288] sm:$0xff]   ;;  %v7352_v29 = vld [vmem:[%s9581_s1 + $0x2d0] sm:$0xff]  }
  0x1e   :  { %6577 = vmatprep.subr.bf16.mxu1 %v7307_v30  ;;  %v7353_v30 = vld [vmem:[%s9581_s1 + $0x210] sm:$0xff]   ;;  %v7366_v44 = vld [vmem:[%s9581_s1 + $0x2a8] sm:$0xff]  }
  0x1f   :  { %v29_v46 = vld [vmem:[%s9580_s0 + $0x8] sm:$0xff] }
  0x20   :  { %6556 = vmatpush3.bf16.msra.mxu0 %v7308_v31  ;;  %v7354_v31 = vld [vmem:[%s9581_s1 + $0x290] sm:$0xff]   ;;  %v1124_v48 = vrot.slane %v29_v46, %v7969_v41 }
  0x21   :  { %6578 = vmatpush3.bf16.msra.mxu1 %v7309_v32  ;;  %6585 = vmatprep.subr.bf16.mxu0 %v7311_v35  ;;  %v7355_v32 = vld [vmem:[%s9581_s1 + $0x258] sm:$0xff]  }
  0x22   :  { %6607 = vmatprep.subr.bf16.mxu1 %v7312_v38  ;;  %v7358_v35 = vld [vmem:[%s9581_s1 + $0x298] sm:$0xff]   ;;  %v7361_v38 = vld [vmem:[%s9581_s1 + $0x220] sm:$0xff]  }
  0x23   :  { %4629 = vmatmul.mubr.bf16.vlgmr.msra.gmra.mrb[0].mxu0 %v1091_v45  ;;  %v7367_v45 = vld [vmem:[%s9581_s1 + $0x270] sm:$0xff]  }
  0x24   :  { %6586 = vmatpush3.bf16.msra.mxu0 %v7313_v47  ;;  %4669 = vmatmul.mubr.bf16.vlgmr.msra.gmra.mrb[0].mxu1 %v1113_v51  ;;  %v7368_v47 = vld [vmem:[%s9581_s1 + $0x2f0] sm:$0xff]  }
  0x25   :  { %6587 = vmatprep.subr.bf16.mxu0 %v7315_v52  ;;  %6608 = vmatpush3.bf16.msra.mxu1 %v7314_v49  ;;  %v1117_v49 = vcombine.high %v29_v46, %v29_v46  ;;  %v7370_v51 = vld [vmem:[%s9581_s1 + $0x2b0] sm:$0xff]   ;;  %v1132_v52 = vcombine.high %v1124_v48, %v1124_v48 }
  0x26   :  { %4708 = vmatprep.mubr.bf16.mxu0 %v1112_v50  ;;  %6609 = vmatprep.subr.bf16.mxu1 %v7316_v54  ;;  %v7369_v50 = vld [vmem:[%s9581_s1 + $0x230] sm:$0xff]   ;;  %v7371_v54 = vld [vmem:[%s9581_s1 + $0x278] sm:$0xff]  }
  0x27   :  { %4748 = vmatprep.mubr.bf16.mxu1 %v1116_v56  ;;  %v8161_v53 = vrot.slane %v1117_v49, %v7969_v41  ;;  %v1154_v56 = vrot.slane %v1132_v52, %v7969_v41  ;;  %v7418_v46 = vld [vmem:[%s9581_s1 + $0x410] sm:$0xff]   ;;  %v7421_v49 = vld [vmem:[%s9581_s1 + $0x4d8] sm:$0xff]   ;;  %v7424_v52 = vld [vmem:[%s9581_s1 + $0x460] sm:$0xff]  }
  0x28   :  { %6588 = vmatpush3.bf16.msra.mxu0 %v7317_v55  ;;  %v7372_v55 = vld [vmem:[%s9581_s1 + $0x2f8] sm:$0xff]  }
  0x29   :  { %6589 = vmatprep.subr.bf16.mxu0 %v7319_v58  ;;  %6610 = vmatpush3.bf16.msra.mxu1 %v7318_v57  ;;  %v1133_v57 = vcombine.high %v8161_v53, %v8161_v53  ;;  %v7373_v58 = vld [vmem:[%s9581_s1 + $0x238] sm:$0xff]  }
  0x2a   :  { %6611 = vmatprep.subr.bf16.mxu1 %v7320_v59  ;;  %v7374_v59 = vld [vmem:[%s9581_s1 + $0x2b8] sm:$0xff]  }
  0x2c   :  { %6590 = vmatpush3.bf16.msra.mxu0 %v7321_v60  ;;  %v1164_v60 = vcombine.high %v1154_v56, %v1154_v56 }
  0x2d   :  { %6591 = vmatprep.subr.bf16.mxu0 %v7323_v62  ;;  %6612 = vmatpush3.bf16.msra.mxu1 %v7322_v61  ;;  %v1140_v61 = vrot.slane %v1124_v48, %v7969_v41  ;;  %v7375_v62 = vld [vmem:[%s9581_s1 + $0x340] sm:$0xff]   ;;  %v7420_v48 = vld [vmem:[%s9581_s1 + $0x458] sm:$0xff]  }
  0x2e   :  { %6613 = vmatprep.subr.bf16.mxu1 %v7324_v63  ;;  %v7376_v63 = vld [vmem:[%s9581_s1 + $0x3c0] sm:$0xff]  }
  0x30   :  { %6592 = vmatpush3.bf16.msra.mxu0 %v7325_v0  ;;  %v1161_v0 = vrot.slane %v1133_v57, %v7969_v41  ;;  %v7429_v57 = vld [vmem:[%s9581_s1 + $0x4e8] sm:$0xff]  }
  0x31   :  { %6593 = vmatprep.subr.bf16.mxu0 %v7327_v2  ;;  %6614 = vmatpush3.bf16.msra.mxu1 %v7326_v1  ;;  %v7377_v1 = vld [vmem:[%s9581_s1 + $0x300] sm:$0xff]  }
  0x32   :  { %6615 = vmatprep.subr.bf16.mxu1 %v7328_v3  ;;  %v7378_v2 = vld [vmem:[%s9581_s1 + $0x380] sm:$0xff]   ;;  %v1162_v3 = vcombine.high %v1140_v61, %v1140_v61 }
  0x34   :  { %6594 = vmatpush3.bf16.msra.mxu0 %v7329_v4  ;;  %v7379_v4 = vld [vmem:[%s9581_s1 + $0x348] sm:$0xff]  }
  0x35   :  { %6595 = vmatprep.subr.bf16.mxu0 %v7331_v6  ;;  %6616 = vmatpush3.bf16.msra.mxu1 %v7330_v5  ;;  %v7380_v5 = vld [vmem:[%s9581_s1 + $0x3c8] sm:$0xff]   ;;  %v1165_v6 = vcombine.high %v1161_v0, %v1161_v0 }
  0x36   :  { %6617 = vmatprep.subr.bf16.mxu1 %v7332_v7  ;;  %v7381_v7 = vld [vmem:[%s9581_s1 + $0x308] sm:$0xff]  }
  0x38   :  { %6596 = vmatpush3.bf16.msra.mxu0 %v7333_v8  ;;  %v7382_v8 = vld [vmem:[%s9581_s1 + $0x388] sm:$0xff]  }
  0x39   :  { %6597 = vmatprep.subr.bf16.mxu0 %v7335_v10  ;;  %6618 = vmatpush3.bf16.msra.mxu1 %v7334_v9  ;;  %v7383_v9 = vld [vmem:[%s9581_s1 + $0x350] sm:$0xff]  }
  0x3a   :  { %6619 = vmatprep.subr.bf16.mxu1 %v7336_v11  ;;  %v7384_v10 = vld [vmem:[%s9581_s1 + $0x3d0] sm:$0xff]  }
  0x3b   :  { %v7385_v11 = vld [vmem:[%s9581_s1 + $0x310] sm:$0xff]  }
  0x3c   :  { %6598 = vmatpush3.bf16.msra.mxu0 %v7337_v12  ;;  %v7386_v12 = vld [vmem:[%s9581_s1 + $0x390] sm:$0xff]  }
  0x3d   :  { %6599 = vmatprep.subr.bf16.mxu0 %v7339_v14  ;;  %6620 = vmatpush3.bf16.msra.mxu1 %v7338_v13  ;;  %v7387_v13 = vld [vmem:[%s9581_s1 + $0x358] sm:$0xff]  }
  0x3e   :  { %6621 = vmatprep.subr.bf16.mxu1 %v7340_v15  ;;  %v7388_v14 = vld [vmem:[%s9581_s1 + $0x3d8] sm:$0xff]  }
  0x3f   :  { %v7389_v15 = vld [vmem:[%s9581_s1 + $0x318] sm:$0xff]  }
  0x40   :  { %6600 = vmatpush3.bf16.msra.mxu0 %v7341_v16  ;;  %v7390_v16 = vld [vmem:[%s9581_s1 + $0x398] sm:$0xff]  }
  0x41   :  { %6629 = vmatprep.subr.bf16.mxu0 %v7343_v19  ;;  %6622 = vmatpush3.bf16.msra.mxu1 %v7342_v17  ;;  %v7391_v17 = vld [vmem:[%s9581_s1 + $0x360] sm:$0xff]  }
  0x42   :  { %6651 = vmatprep.subr.bf16.mxu1 %v7344_v20  ;;  %v7393_v19 = vld [vmem:[%s9581_s1 + $0x320] sm:$0xff]  }
  0x43   :  { %4709 = vmatmul.mubr.bf16.vlgmr.msra.gmra.mrb[4].mxu0 %v1098_v18  ;;  %v7392_v18 = vld [vmem:[%s9581_s1 + $0x3e0] sm:$0xff]  }
  0x44   :  { %6630 = vmatpush3.bf16.msra.mxu0 %v7345_v21  ;;  %4749 = vmatmul.mubr.bf16.vlgmr.msra.gmra.mrb[4].mxu1 %v1114_v23  ;;  %v7394_v20 = vld [vmem:[%s9581_s1 + $0x3a0] sm:$0xff]   ;;  %v7395_v21 = vld [vmem:[%s9581_s1 + $0x368] sm:$0xff]  }
  0x45   :  { %6631 = vmatprep.subr.bf16.mxu0 %v7347_v24  ;;  %6652 = vmatpush3.bf16.msra.mxu1 %v7346_v22  ;;  %v7396_v22 = vld [vmem:[%s9581_s1 + $0x3e8] sm:$0xff]  }
  0x46   :  { %6653 = vmatprep.subr.bf16.mxu1 %v7348_v25  ;;  %4788 = vmatprep.mubr.bf16.mxu0 %v1154_v56  ;;  %v7397_v23 = vld [vmem:[%s9581_s1 + $0x328] sm:$0xff]   ;;  %v7399_v25 = vld [vmem:[%s9581_s1 + $0x370] sm:$0xff]  }
  0x47   :  { %4828 = vmatprep.mubr.bf16.mxu1 %v1164_v60  ;;  %v7398_v24 = vld [vmem:[%s9581_s1 + $0x3a8] sm:$0xff]   ;;  %v7432_v60 = vld [vmem:[%s9581_s1 + $0x470] sm:$0xff]  }
  0x48   :  { %6632 = vmatpush3.bf16.msra.mxu0 %v7349_v26  ;;  %v7400_v26 = vld [vmem:[%s9581_s1 + $0x3f0] sm:$0xff]   ;;  %v7428_v56 = vld [vmem:[%s9581_s1 + $0x468] sm:$0xff]  }
  0x49   :  { %6633 = vmatprep.subr.bf16.mxu0 %v7351_v28  ;;  %6654 = vmatpush3.bf16.msra.mxu1 %v7350_v27  ;;  %v7401_v27 = vld [vmem:[%s9581_s1 + $0x330] sm:$0xff]  }
  0x4a   :  { %6655 = vmatprep.subr.bf16.mxu1 %v7352_v29  ;;  %v7402_v28 = vld [vmem:[%s9581_s1 + $0x3b0] sm:$0xff]   ;;  %v7403_v29 = vld [vmem:[%s9581_s1 + $0x378] sm:$0xff]  }
  0x4c   :  { %6634 = vmatpush3.bf16.msra.mxu0 %v7353_v30  ;;  %v7404_v30 = vld [vmem:[%s9581_s1 + $0x3f8] sm:$0xff]  }
  0x4d   :  { %6635 = vmatprep.subr.bf16.mxu0 %v7355_v32  ;;  %6656 = vmatpush3.bf16.msra.mxu1 %v7354_v31  ;;  %v7405_v31 = vld [vmem:[%s9581_s1 + $0x338] sm:$0xff]  }
  0x4e   :  { %6657 = vmatprep.subr.bf16.mxu1 %v7356_v33  ;;  %v7406_v32 = vld [vmem:[%s9581_s1 + $0x3b8] sm:$0xff]   ;;  %v1147_v33 = vrot.slane %v8161_v53, %v7969_v41  ;;  %v7425_v53 = vld [vmem:[%s9581_s1 + $0x4e0] sm:$0xff]  }
  0x50   :  { %6636 = vmatpush3.bf16.msra.mxu0 %v7357_v34  ;;  %v7408_v34 = vld [vmem:[%s9581_s1 + $0x440] sm:$0xff]  }
  0x51   :  { %6637 = vmatprep.subr.bf16.mxu0 %v7359_v36  ;;  %6658 = vmatpush3.bf16.msra.mxu1 %v7358_v35  ;;  %v7409_v35 = vld [vmem:[%s9581_s1 + $0x4c0] sm:$0xff]  }
  0x52   :  { %6659 = vmatprep.subr.bf16.mxu1 %v7360_v37  ;;  %v7410_v36 = vld [vmem:[%s9581_s1 + $0x400] sm:$0xff]  }
  0x53   :  { %v7411_v37 = vld [vmem:[%s9581_s1 + $0x480] sm:$0xff]  }
  0x54   :  { %6638 = vmatpush3.bf16.msra.mxu0 %v7361_v38  ;;  %v1163_v38 = vcombine.high %v1147_v33, %v1147_v33 }
  0x55   :  { %6639 = vmatprep.subr.bf16.mxu0 %v7363_v40  ;;  %6660 = vmatpush3.bf16.msra.mxu1 %v7362_v39  ;;  %v7412_v39 = vld [vmem:[%s9581_s1 + $0x448] sm:$0xff]  }
  0x56   :  { %6661 = vmatprep.subr.bf16.mxu1 %v7364_v42  ;;  %v7413_v40 = vld [vmem:[%s9581_s1 + $0x4c8] sm:$0xff]  }
  0x57   :  { %v7414_v42 = vld [vmem:[%s9581_s1 + $0x408] sm:$0xff]  }
  0x58   :  { %6640 = vmatpush3.bf16.msra.mxu0 %v7365_v43  ;;  %v7415_v43 = vld [vmem:[%s9581_s1 + $0x488] sm:$0xff]  }
  0x59   :  { %6641 = vmatprep.subr.bf16.mxu0 %v7367_v45  ;;  %6662 = vmatpush3.bf16.msra.mxu1 %v7366_v44  ;;  %v7416_v44 = vld [vmem:[%s9581_s1 + $0x450] sm:$0xff]  }
  0x5a   :  { %6663 = vmatprep.subr.bf16.mxu1 %v7368_v47  ;;  %v7417_v45 = vld [vmem:[%s9581_s1 + $0x4d0] sm:$0xff]  }
  0x5b   :  { %v7419_v47 = vld [vmem:[%s9581_s1 + $0x490] sm:$0xff]  }
  0x5c   :  { %6642 = vmatpush3.bf16.msra.mxu0 %v7369_v50  ;;  %v7422_v50 = vld [vmem:[%s9581_s1 + $0x418] sm:$0xff]  }
  0x5d   :  { %6643 = vmatprep.subr.bf16.mxu0 %v7371_v54  ;;  %6664 = vmatpush3.bf16.msra.mxu1 %v7370_v51  ;;  %v7423_v51 = vld [vmem:[%s9581_s1 + $0x498] sm:$0xff]   ;;  %v7426_v54 = vld [vmem:[%s9581_s1 + $0x420] sm:$0xff]  }
  0x5e   :  { %6665 = vmatprep.subr.bf16.mxu1 %v7372_v55  ;;  %v7427_v55 = vld [vmem:[%s9581_s1 + $0x4a0] sm:$0xff]  }
  0x60   :  { %6644 = vmatpush3.bf16.msra.mxu0 %v7373_v58  ;;  %v7430_v58 = vld [vmem:[%s9581_s1 + $0x428] sm:$0xff]  }
  0x61   :  { %6673 = vmatprep.subr.bf16.mxu0 %v7375_v62  ;;  %6666 = vmatpush3.bf16.msra.mxu1 %v7374_v59  ;;  %v7431_v59 = vld [vmem:[%s9581_s1 + $0x4a8] sm:$0xff]   ;;  %v7433_v62 = vld [vmem:[%s9581_s1 + $0x4f0] sm:$0xff]  }
  0x62   :  { %6695 = vmatprep.subr.bf16.mxu1 %v7376_v63 }
  0x63   :  { %4789 = vmatmul.mubr.bf16.vlgmr.msra.gmra.mrb[8].mxu0 %v1140_v61  ;;  %v30_v61 = vld [vmem:[%s9580_s0 + $0x10] sm:$0xff] }
  0x64   :  { %6674 = vmatpush3.bf16.msra.mxu0 %v7377_v1  ;;  %4868 = vmatprep.mubr.bf16.mxu0 %v1161_v0  ;;  %v1173_v63 = vrot.slane %v30_v61, %v7969_v41  ;;  %v1166_v0 = vcombine.high %v30_v61, %v30_v61  ;;  %v7434_v1 = vld [vmem:[%s9581_s1 + $0x430] sm:$0xff]  }
  0x65   :  { %4829 = vmatmul.mubr.bf16.vlgmr.msra.gmra.mrb[8].mxu1 %v1162_v3  ;;  %6675 = vmatprep.subr.bf16.mxu0 %v7379_v4  ;;  %v7483_v61 = vld [vmem:[%s9581_s1 + $0x610] sm:$0xff]  }
  0x66   :  { %6696 = vmatpush3.bf16.msra.mxu1 %v7378_v2  ;;  %4908 = vmatprep.mubr.bf16.mxu1 %v1165_v6  ;;  %v7435_v2 = vld [vmem:[%s9581_s1 + $0x4b0] sm:$0xff]   ;;  %v1181_v3 = vcombine.high %v1173_v63, %v1173_v63  ;;  %v8367_v4 = vrot.slane %v1166_v0, %v7969_v41  ;;  %v7437_v6 = vld [vmem:[%s9581_s1 + $0x4f8] sm:$0xff]  }
  0x67   :  { %6697 = vmatprep.subr.bf16.mxu1 %v7380_v5  ;;  %v7436_v5 = vld [vmem:[%s9581_s1 + $0x478] sm:$0xff]  }
  0x68   :  { %6676 = vmatpush3.bf16.msra.mxu0 %v7381_v7  ;;  %v1203_v7 = vrot.slane %v1181_v3, %v7969_v41  ;;  %v7486_v0 = vld [vmem:[%s9581_s1 + $0x6d8] sm:$0xff]   ;;  %v7489_v3 = vld [vmem:[%s9581_s1 + $0x660] sm:$0xff]  }
  0x69   :  { %6677 = vmatprep.subr.bf16.mxu0 %v7383_v9  ;;  %v7438_v9 = vld [vmem:[%s9581_s1 + $0x438] sm:$0xff]  }
  0x6a   :  { %6698 = vmatpush3.bf16.msra.mxu1 %v7382_v8  ;;  %v1182_v8 = vcombine.high %v8367_v4, %v8367_v4 }
  0x6b   :  { %6699 = vmatprep.subr.bf16.mxu1 %v7384_v10  ;;  %v7439_v10 = vld [vmem:[%s9581_s1 + $0x4b8] sm:$0xff]  }
  0x6c   :  { %6678 = vmatpush3.bf16.msra.mxu0 %v7385_v11  ;;  %v1213_v11 = vcombine.high %v1203_v7, %v1203_v7 }
  0x6d   :  { %6679 = vmatprep.subr.bf16.mxu0 %v7387_v13  ;;  %v7440_v13 = vld [vmem:[%s9581_s1 + $0x540] sm:$0xff]  }
  0x6e   :  { %6700 = vmatpush3.bf16.msra.mxu1 %v7386_v12  ;;  %v1189_v12 = vrot.slane %v1173_v63, %v7969_v41  ;;  %v7485_v63 = vld [vmem:[%s9581_s1 + $0x658] sm:$0xff]  }
  0x6f   :  { %6701 = vmatprep.subr.bf16.mxu1 %v7388_v14  ;;  %v7441_v14 = vld [vmem:[%s9581_s1 + $0x5c0] sm:$0xff]  }
  0x70   :  { %6680 = vmatpush3.bf16.msra.mxu0 %v7389_v15  ;;  %v1210_v15 = vrot.slane %v1182_v8, %v7969_v41  ;;  %v7494_v8 = vld [vmem:[%s9581_s1 + $0x6e8] sm:$0xff]  }
  0x71   :  { %6681 = vmatprep.subr.bf16.mxu0 %v7391_v17  ;;  %v7443_v17 = vld [vmem:[%s9581_s1 + $0x580] sm:$0xff]  }
  0x72   :  { %6702 = vmatpush3.bf16.msra.mxu1 %v7390_v16  ;;  %v7442_v16 = vld [vmem:[%s9581_s1 + $0x500] sm:$0xff]  }
  0x73   :  { %6703 = vmatprep.subr.bf16.mxu1 %v7392_v18  ;;  %v1211_v18 = vcombine.high %v1189_v12, %v1189_v12 }
  0x74   :  { %6682 = vmatpush3.bf16.msra.mxu0 %v7393_v19  ;;  %v7444_v19 = vld [vmem:[%s9581_s1 + $0x548] sm:$0xff]  }
  0x75   :  { %6683 = vmatprep.subr.bf16.mxu0 %v7395_v21  ;;  %v1214_v21 = vcombine.high %v1210_v15, %v1210_v15 }
  0x76   :  { %6704 = vmatpush3.bf16.msra.mxu1 %v7394_v20  ;;  %v7445_v20 = vld [vmem:[%s9581_s1 + $0x5c8] sm:$0xff]  }
  0x77   :  { %6705 = vmatprep.subr.bf16.mxu1 %v7396_v22  ;;  %v7446_v22 = vld [vmem:[%s9581_s1 + $0x508] sm:$0xff]  }
  0x78   :  { %6684 = vmatpush3.bf16.msra.mxu0 %v7397_v23  ;;  %v7447_v23 = vld [vmem:[%s9581_s1 + $0x588] sm:$0xff]  }
  0x79   :  { %6685 = vmatprep.subr.bf16.mxu0 %v7399_v25  ;;  %v7449_v25 = vld [vmem:[%s9581_s1 + $0x5d0] sm:$0xff]  }
  0x7a   :  { %6706 = vmatpush3.bf16.msra.mxu1 %v7398_v24  ;;  %v7448_v24 = vld [vmem:[%s9581_s1 + $0x550] sm:$0xff]  }
  0x7b   :  { %6707 = vmatprep.subr.bf16.mxu1 %v7400_v26  ;;  %v7450_v26 = vld [vmem:[%s9581_s1 + $0x510] sm:$0xff]  }
  0x7c   :  { %6686 = vmatpush3.bf16.msra.mxu0 %v7401_v27  ;;  %v7451_v27 = vld [vmem:[%s9581_s1 + $0x590] sm:$0xff]  }
  0x7d   :  { %6687 = vmatprep.subr.bf16.mxu0 %v7403_v29  ;;  %v7453_v29 = vld [vmem:[%s9581_s1 + $0x5d8] sm:$0xff]  }
  0x7e   :  { %6708 = vmatpush3.bf16.msra.mxu1 %v7402_v28  ;;  %v7452_v28 = vld [vmem:[%s9581_s1 + $0x558] sm:$0xff]  }
  0x7f   :  { %6709 = vmatprep.subr.bf16.mxu1 %v7404_v30  ;;  %v7454_v30 = vld [vmem:[%s9581_s1 + $0x518] sm:$0xff]  }
  0x80   :  { %6688 = vmatpush3.bf16.msra.mxu0 %v7405_v31  ;;  %v7455_v31 = vld [vmem:[%s9581_s1 + $0x598] sm:$0xff]  }
  0x81   :  { %6717 = vmatprep.subr.bf16.mxu0 %v7408_v34  ;;  %v7458_v34 = vld [vmem:[%s9581_s1 + $0x520] sm:$0xff]  }
  0x82   :  { %6710 = vmatpush3.bf16.msra.mxu1 %v7406_v32  ;;  %v7456_v32 = vld [vmem:[%s9581_s1 + $0x560] sm:$0xff]  }
  0x83   :  { %4869 = vmatmul.mubr.bf16.vlgmr.msra.gmra.mrb[12].mxu0 %v1147_v33  ;;  %6739 = vmatprep.subr.bf16.mxu1 %v7409_v35  ;;  %v7457_v33 = vld [vmem:[%s9581_s1 + $0x5e0] sm:$0xff]  }
  0x84   :  { %6718 = vmatpush3.bf16.msra.mxu0 %v7410_v36  ;;  %4948 = vmatprep.mubr.bf16.mxu0 %v1203_v7  ;;  %v7459_v35 = vld [vmem:[%s9581_s1 + $0x5a0] sm:$0xff]   ;;  %v7460_v36 = vld [vmem:[%s9581_s1 + $0x568] sm:$0xff]  }
  0x85   :  { %4909 = vmatmul.mubr.bf16.vlgmr.msra.gmra.mrb[12].mxu1 %v1163_v38  ;;  %6719 = vmatprep.subr.bf16.mxu0 %v7412_v39  ;;  %v7462_v38 = vld [vmem:[%s9581_s1 + $0x528] sm:$0xff]  }
  0x86   :  { %6740 = vmatpush3.bf16.msra.mxu1 %v7411_v37  ;;  %4988 = vmatprep.mubr.bf16.mxu1 %v1213_v11  ;;  %v7461_v37 = vld [vmem:[%s9581_s1 + $0x5e8] sm:$0xff]   ;;  %v7497_v11 = vld [vmem:[%s9581_s1 + $0x670] sm:$0xff]  }
  0x87   :  { %6741 = vmatprep.subr.bf16.mxu1 %v7413_v40  ;;  %v7463_v39 = vld [vmem:[%s9581_s1 + $0x5a8] sm:$0xff]   ;;  %v7464_v40 = vld [vmem:[%s9581_s1 + $0x570] sm:$0xff]  }
  0x88   :  { %6720 = vmatpush3.bf16.msra.mxu0 %v7414_v42  ;;  %v7465_v42 = vld [vmem:[%s9581_s1 + $0x5f0] sm:$0xff]   ;;  %v7493_v7 = vld [vmem:[%s9581_s1 + $0x668] sm:$0xff]  }
  0x89   :  { %6721 = vmatprep.subr.bf16.mxu0 %v7416_v44  ;;  %v7467_v44 = vld [vmem:[%s9581_s1 + $0x5b0] sm:$0xff]  }
  0x8a   :  { %6742 = vmatpush3.bf16.msra.mxu1 %v7415_v43  ;;  %v7466_v43 = vld [vmem:[%s9581_s1 + $0x530] sm:$0xff]  }
  0x8b   :  { %6743 = vmatprep.subr.bf16.mxu1 %v7417_v45  ;;  %v7468_v45 = vld [vmem:[%s9581_s1 + $0x578] sm:$0xff]  }
  0x8c   :  { %6722 = vmatpush3.bf16.msra.mxu0 %v7418_v46  ;;  %v7469_v46 = vld [vmem:[%s9581_s1 + $0x5f8] sm:$0xff]  }
  0x8d   :  { %6723 = vmatprep.subr.bf16.mxu0 %v7420_v48  ;;  %v7471_v48 = vld [vmem:[%s9581_s1 + $0x5b8] sm:$0xff]  }
  0x8e   :  { %6744 = vmatpush3.bf16.msra.mxu1 %v7419_v47  ;;  %v7470_v47 = vld [vmem:[%s9581_s1 + $0x538] sm:$0xff]  }
  0x8f   :  { %6745 = vmatprep.subr.bf16.mxu1 %v7421_v49  ;;  %v1196_v49 = vrot.slane %v8367_v4, %v7969_v41  ;;  %v7490_v4 = vld [vmem:[%s9581_s1 + $0x6e0] sm:$0xff]  }
  0x90   :  { %6724 = vmatpush3.bf16.msra.mxu0 %v7422_v50  ;;  %v7473_v50 = vld [vmem:[%s9581_s1 + $0x640] sm:$0xff]  }
  0x91   :  { %6725 = vmatprep.subr.bf16.mxu0 %v7424_v52  ;;  %v7475_v52 = vld [vmem:[%s9581_s1 + $0x600] sm:$0xff]  }
  0x92   :  { %6746 = vmatpush3.bf16.msra.mxu1 %v7423_v51  ;;  %v7474_v51 = vld [vmem:[%s9581_s1 + $0x6c0] sm:$0xff]  }
  0x93   :  { %6747 = vmatprep.subr.bf16.mxu1 %v7425_v53  ;;  %v7476_v53 = vld [vmem:[%s9581_s1 + $0x680] sm:$0xff]  }
  0x94   :  { %6726 = vmatpush3.bf16.msra.mxu0 %v7426_v54  ;;  %v1212_v54 = vcombine.high %v1196_v49, %v1196_v49 }
  0x95   :  { %6727 = vmatprep.subr.bf16.mxu0 %v7428_v56  ;;  %v7478_v56 = vld [vmem:[%s9581_s1 + $0x6c8] sm:$0xff]  }
  0x96   :  { %6748 = vmatpush3.bf16.msra.mxu1 %v7427_v55  ;;  %v7477_v55 = vld [vmem:[%s9581_s1 + $0x648] sm:$0xff]  }
  0x97   :  { %6749 = vmatprep.subr.bf16.mxu1 %v7429_v57  ;;  %v7479_v57 = vld [vmem:[%s9581_s1 + $0x608] sm:$0xff]  }
  0x98   :  { %6728 = vmatpush3.bf16.msra.mxu0 %v7430_v58  ;;  %v7480_v58 = vld [vmem:[%s9581_s1 + $0x688] sm:$0xff]  }
  0x99   :  { %6729 = vmatprep.subr.bf16.mxu0 %v7432_v60  ;;  %v7482_v60 = vld [vmem:[%s9581_s1 + $0x6d0] sm:$0xff]  }
  0x9a   :  { %6750 = vmatpush3.bf16.msra.mxu1 %v7431_v59  ;;  %v7481_v59 = vld [vmem:[%s9581_s1 + $0x650] sm:$0xff]  }
  0x9b   :  { %6751 = vmatprep.subr.bf16.mxu1 %v7433_v62  ;;  %v7484_v62 = vld [vmem:[%s9581_s1 + $0x690] sm:$0xff]  }
  0x9c   :  { %6730 = vmatpush3.bf16.msra.mxu0 %v7434_v1  ;;  %v7487_v1 = vld [vmem:[%s9581_s1 + $0x618] sm:$0xff]  }
  0x9d   :  { %6731 = vmatprep.subr.bf16.mxu0 %v7436_v5  ;;  %v7491_v5 = vld [vmem:[%s9581_s1 + $0x620] sm:$0xff]  }
  0x9e   :  { %6752 = vmatpush3.bf16.msra.mxu1 %v7435_v2  ;;  %v7488_v2 = vld [vmem:[%s9581_s1 + $0x698] sm:$0xff]  }
  0x9f   :  { %6753 = vmatprep.subr.bf16.mxu1 %v7437_v6  ;;  %v7492_v6 = vld [vmem:[%s9581_s1 + $0x6a0] sm:$0xff]  }
  0xa0   :  { %6732 = vmatpush3.bf16.msra.mxu0 %v7438_v9  ;;  %v7495_v9 = vld [vmem:[%s9581_s1 + $0x628] sm:$0xff]  }
  0xa1   :  { %6761 = vmatprep.subr.bf16.mxu0 %v7440_v13  ;;  %v31_v13 = vld [vmem:[%s9580_s0 + $0x18] sm:$0xff] }
  0xa2   :  { %6754 = vmatpush3.bf16.msra.mxu1 %v7439_v10  ;;  %v7496_v10 = vld [vmem:[%s9581_s1 + $0x6a8] sm:$0xff]  }
  0xa3   :  { %4949 = vmatmul.mubr.bf16.vlgmr.msra.gmra.mrb[16].mxu0 %v1189_v12  ;;  %6783 = vmatprep.subr.bf16.mxu1 %v7441_v14  ;;  %v7498_v12 = vld [vmem:[%s9581_s1 + $0x6f0] sm:$0xff]  }
  0xa4   :  { %6762 = vmatpush3.bf16.msra.mxu0 %v7442_v16  ;;  %5028 = vmatprep.mubr.bf16.mxu0 %v1210_v15  ;;  %v7499_v14 = vld [vmem:[%s9581_s1 + $0x630] sm:$0xff]   ;;  %v1222_v15 = vrot.slane %v31_v13, %v7969_v41  ;;  %v1215_v16 = vcombine.high %v31_v13, %v31_v13  ;;  %v7539_v13 = vld [vmem:[%s9581_s1 + $0x8c0] sm:$0xff]  }
  0xa5   :  { %4989 = vmatmul.mubr.bf16.vlgmr.msra.gmra.mrb[16].mxu1 %v1211_v18  ;;  %6763 = vmatprep.subr.bf16.mxu0 %v7444_v19  ;;  %v7501_v18 = vld [vmem:[%s9581_s1 + $0x678] sm:$0xff]  }
  0xa6   :  { %6784 = vmatpush3.bf16.msra.mxu1 %v7443_v17  ;;  %5068 = vmatprep.mubr.bf16.mxu1 %v1214_v21  ;;  %v7500_v17 = vld [vmem:[%s9581_s1 + $0x6b0] sm:$0xff]   ;;  %v1230_v19 = vcombine.high %v1222_v15, %v1222_v15  ;;  %v7502_v21 = vld [vmem:[%s9581_s1 + $0x6f8] sm:$0xff]  }
  0xa7   :  { %6785 = vmatprep.subr.bf16.mxu1 %v7445_v20  ;;  %v8576_v20 = vrot.slane %v1215_v16, %v7969_v41 }
  0xa8   :  { %6764 = vmatpush3.bf16.msra.mxu0 %v7446_v22  ;;  %v7503_v22 = vld [vmem:[%s9581_s1 + $0x638] sm:$0xff]  }
  0xa9   :  { %6765 = vmatprep.subr.bf16.mxu0 %v7448_v24  ;;  %v1231_v24 = vcombine.high %v8576_v20, %v8576_v20 }
  0xaa   :  { %6786 = vmatpush3.bf16.msra.mxu1 %v7447_v23  ;;  %v1252_v23 = vrot.slane %v1230_v19, %v7969_v41  ;;  %v7544_v19 = vld [vmem:[%s9581_s1 + $0x808] sm:$0xff]  }
  0xab   :  { %6787 = vmatprep.subr.bf16.mxu1 %v7449_v25  ;;  %v7504_v25 = vld [vmem:[%s9581_s1 + $0x6b8] sm:$0xff]  }
  0xac   :  { %6766 = vmatpush3.bf16.msra.mxu0 %v7450_v26  ;;  %v1262_v26 = vcombine.high %v1252_v23, %v1252_v23 }
  0xad   :  { %6767 = vmatprep.subr.bf16.mxu0 %v7452_v28  ;;  %v7505_v28 = vld [vmem:[%s9581_s1 + $0x740] sm:$0xff]  }
  0xae   :  { %6788 = vmatpush3.bf16.msra.mxu1 %v7451_v27  ;;  %v1238_v27 = vrot.slane %v1222_v15, %v7969_v41  ;;  %v7541_v15 = vld [vmem:[%s9581_s1 + $0x880] sm:$0xff]  }
  0xaf   :  { %6789 = vmatprep.subr.bf16.mxu1 %v7453_v29  ;;  %v7506_v29 = vld [vmem:[%s9581_s1 + $0x7c0] sm:$0xff]  }
  0xb0   :  { %6768 = vmatpush3.bf16.msra.mxu0 %v7454_v30  ;;  %v1259_v30 = vrot.slane %v1231_v24, %v7969_v41  ;;  %v7549_v24 = vld [vmem:[%s9581_s1 + $0x890] sm:$0xff]  }
  0xb1   :  { %6769 = vmatprep.subr.bf16.mxu0 %v7456_v32  ;;  %v7508_v32 = vld [vmem:[%s9581_s1 + $0x780] sm:$0xff]  }
  0xb2   :  { %6790 = vmatpush3.bf16.msra.mxu1 %v7455_v31  ;;  %v7507_v31 = vld [vmem:[%s9581_s1 + $0x700] sm:$0xff]  }
  0xb3   :  { %6791 = vmatprep.subr.bf16.mxu1 %v7457_v33  ;;  %v1260_v33 = vcombine.high %v1238_v27, %v1238_v27 }
  0xb4   :  { %6770 = vmatpush3.bf16.msra.mxu0 %v7458_v34  ;;  %v7509_v34 = vld [vmem:[%s9581_s1 + $0x748] sm:$0xff]  }
  0xb5   :  { %6771 = vmatprep.subr.bf16.mxu0 %v7460_v36  ;;  %v1263_v36 = vcombine.high %v1259_v30, %v1259_v30 }
  0xb6   :  { %6792 = vmatpush3.bf16.msra.mxu1 %v7459_v35  ;;  %v7510_v35 = vld [vmem:[%s9581_s1 + $0x7c8] sm:$0xff]  }
  0xb7   :  { %6793 = vmatprep.subr.bf16.mxu1 %v7461_v37  ;;  %v7511_v37 = vld [vmem:[%s9581_s1 + $0x708] sm:$0xff]  }
  0xb8   :  { %6772 = vmatpush3.bf16.msra.mxu0 %v7462_v38  ;;  %v7512_v38 = vld [vmem:[%s9581_s1 + $0x788] sm:$0xff]  }
  0xb9   :  { %6773 = vmatprep.subr.bf16.mxu0 %v7464_v40  ;;  %v7514_v40 = vld [vmem:[%s9581_s1 + $0x7d0] sm:$0xff]  }
  0xba   :  { %6794 = vmatpush3.bf16.msra.mxu1 %v7463_v39  ;;  %v7513_v39 = vld [vmem:[%s9581_s1 + $0x750] sm:$0xff]  }
  0xbb   :  { %6795 = vmatprep.subr.bf16.mxu1 %v7465_v42  ;;  %v7515_v42 = vld [vmem:[%s9581_s1 + $0x710] sm:$0xff]  }
  0xbc   :  { %6774 = vmatpush3.bf16.msra.mxu0 %v7466_v43  ;;  %v7516_v43 = vld [vmem:[%s9581_s1 + $0x790] sm:$0xff]  }
  0xbd   :  { %6775 = vmatprep.subr.bf16.mxu0 %v7468_v45  ;;  %v7518_v45 = vld [vmem:[%s9581_s1 + $0x7d8] sm:$0xff]  }
  0xbe   :  { %6796 = vmatpush3.bf16.msra.mxu1 %v7467_v44  ;;  %v7517_v44 = vld [vmem:[%s9581_s1 + $0x758] sm:$0xff]  }
  0xbf   :  { %6797 = vmatprep.subr.bf16.mxu1 %v7469_v46  ;;  %v7519_v46 = vld [vmem:[%s9581_s1 + $0x718] sm:$0xff]  }
  0xc0   :  { %6776 = vmatpush3.bf16.msra.mxu0 %v7470_v47  ;;  %v7520_v47 = vld [vmem:[%s9581_s1 + $0x798] sm:$0xff]  }
  0xc1   :  { %6805 = vmatprep.subr.bf16.mxu0 %v7473_v50  ;;  %v7523_v50 = vld [vmem:[%s9581_s1 + $0x720] sm:$0xff]  }
  0xc2   :  { %6798 = vmatpush3.bf16.msra.mxu1 %v7471_v48  ;;  %v7521_v48 = vld [vmem:[%s9581_s1 + $0x760] sm:$0xff]  }
  0xc3   :  { %5029 = vmatmul.mubr.bf16.vlgmr.msra.gmra.mrb[20].mxu0 %v1196_v49  ;;  %6827 = vmatprep.subr.bf16.mxu1 %v7474_v51  ;;  %v7522_v49 = vld [vmem:[%s9581_s1 + $0x7e0] sm:$0xff]  }
  0xc4   :  { %6806 = vmatpush3.bf16.msra.mxu0 %v7475_v52  ;;  %5108 = vmatprep.mubr.bf16.mxu0 %v1252_v23  ;;  %v7524_v51 = vld [vmem:[%s9581_s1 + $0x7a0] sm:$0xff]   ;;  %v7525_v52 = vld [vmem:[%s9581_s1 + $0x768] sm:$0xff]   ;;  %v7548_v23 = vld [vmem:[%s9581_s1 + $0x810] sm:$0xff]  }
  0xc5   :  { %5069 = vmatmul.mubr.bf16.vlgmr.msra.gmra.mrb[20].mxu1 %v1212_v54  ;;  %6807 = vmatprep.subr.bf16.mxu0 %v7477_v55  ;;  %v7527_v54 = vld [vmem:[%s9581_s1 + $0x728] sm:$0xff]  }
  0xc6   :  { %6828 = vmatpush3.bf16.msra.mxu1 %v7476_v53  ;;  %5148 = vmatprep.mubr.bf16.mxu1 %v1262_v26  ;;  %v7526_v53 = vld [vmem:[%s9581_s1 + $0x7e8] sm:$0xff]   ;;  %v7551_v26 = vld [vmem:[%s9581_s1 + $0x8d8] sm:$0xff]  }
  0xc7   :  { %6829 = vmatprep.subr.bf16.mxu1 %v7478_v56  ;;  %v7528_v55 = vld [vmem:[%s9581_s1 + $0x7a8] sm:$0xff]   ;;  %v7529_v56 = vld [vmem:[%s9581_s1 + $0x770] sm:$0xff]  }
  0xc8   :  { %6808 = vmatpush3.bf16.msra.mxu0 %v7479_v57 }
  0xc9   :  { %6809 = vmatprep.subr.bf16.mxu0 %v7481_v59 }
  0xca   :  { %6830 = vmatpush3.bf16.msra.mxu1 %v7480_v58  ;;  %v7530_v58 = vld [vmem:[%s9581_s1 + $0x7f0] sm:$0xff]  }
  0xcb   :  { %6831 = vmatprep.subr.bf16.mxu1 %v7482_v60  ;;  %v7531_v60 = vld [vmem:[%s9581_s1 + $0x730] sm:$0xff]  }
  0xcc   :  { %6810 = vmatpush3.bf16.msra.mxu0 %v7483_v61 }
  0xcd   :  { %6811 = vmatprep.subr.bf16.mxu0 %v7485_v63 }
  0xce   :  { %6832 = vmatpush3.bf16.msra.mxu1 %v7484_v62 }
  0xcf   :  { %6833 = vmatprep.subr.bf16.mxu1 %v7486_v0  ;;  %v7532_v0 = vld [vmem:[%s9581_s1 + $0x7b0] sm:$0xff]  }
  0xd0   :  { %6812 = vmatpush3.bf16.msra.mxu0 %v7487_v1  ;;  %v7533_v1 = vld [vmem:[%s9581_s1 + $0x778] sm:$0xff]  }
  0xd1   :  { %6813 = vmatprep.subr.bf16.mxu0 %v7489_v3 }
  0xd2   :  { %6834 = vmatpush3.bf16.msra.mxu1 %v7488_v2 }
  0xd3   :  { %6835 = vmatprep.subr.bf16.mxu1 %v7490_v4 }
  0xd4   :  { %6814 = vmatpush3.bf16.msra.mxu0 %v7491_v5 }
  0xd5   :  { %6815 = vmatprep.subr.bf16.mxu0 %v7493_v7 }
  0xd6   :  { %6836 = vmatpush3.bf16.msra.mxu1 %v7492_v6  ;;  %v7534_v6 = vld [vmem:[%s9581_s1 + $0x7f8] sm:$0xff]  }
  0xd7   :  { %6837 = vmatprep.subr.bf16.mxu1 %v7494_v8  ;;  %v7535_v8 = vld [vmem:[%s9581_s1 + $0x738] sm:$0xff]  }
  0xd8   :  { %6816 = vmatpush3.bf16.msra.mxu0 %v7495_v9 }
  0xd9   :  { %6817 = vmatprep.subr.bf16.mxu0 %v7497_v11  ;;  %v1245_v11 = vrot.slane %v8576_v20, %v7969_v41  ;;  %v7545_v20 = vld [vmem:[%s9581_s1 + $0x888] sm:$0xff]  }
  0xda   :  { %6838 = vmatpush3.bf16.msra.mxu1 %v7496_v10  ;;  %v7536_v10 = vld [vmem:[%s9581_s1 + $0x7b8] sm:$0xff]  }
  0xdb   :  { %6839 = vmatprep.subr.bf16.mxu1 %v7498_v12  ;;  %v7538_v12 = vld [vmem:[%s9581_s1 + $0x840] sm:$0xff]   ;;  %v1261_v16 = vcombine.high %v1245_v11, %v1245_v11 }
  0xdc   :  { %6818 = vmatpush3.bf16.msra.mxu0 %v7499_v14  ;;  %v7540_v14 = vld [vmem:[%s9581_s1 + $0x800] sm:$0xff]  }
  0xdd   :  { %6819 = vmatprep.subr.bf16.mxu0 %v7501_v18  ;;  %v7543_v18 = vld [vmem:[%s9581_s1 + $0x8c8] sm:$0xff]  }
  0xde   :  { %6840 = vmatpush3.bf16.msra.mxu1 %v7500_v17  ;;  %v7542_v17 = vld [vmem:[%s9581_s1 + $0x848] sm:$0xff]  }
  0xdf   :  { %6841 = vmatprep.subr.bf16.mxu1 %v7502_v21  ;;  %v7546_v21 = vld [vmem:[%s9581_s1 + $0x850] sm:$0xff]  }
  0xe0   :  { %6820 = vmatpush3.bf16.msra.mxu0 %v7503_v22  ;;  %v7547_v22 = vld [vmem:[%s9581_s1 + $0x8d0] sm:$0xff]  }
  0xe1   :  { %6849 = vmatprep.subr.bf16.mxu0 %v7505_v28  ;;  %v7553_v28 = vld [vmem:[%s9581_s1 + $0x898] sm:$0xff]  }
  0xe2   :  { %6842 = vmatpush3.bf16.msra.mxu1 %v7504_v25  ;;  %v7550_v25 = vld [vmem:[%s9581_s1 + $0x858] sm:$0xff]  }
  0xe3   :  { %5109 = vmatmul.mubr.bf16.vlgmr.msra.gmra.mrb[24].mxu0 %v1238_v27  ;;  %6871 = vmatprep.subr.bf16.mxu1 %v7506_v29  ;;  %v7552_v27 = vld [vmem:[%s9581_s1 + $0x818] sm:$0xff]   ;;  %v7554_v29 = vld [vmem:[%s9581_s1 + $0x860] sm:$0xff]  }
  0xe4   :  { %6850 = vmatpush3.bf16.msra.mxu0 %v7507_v31  ;;  %5188 = vmatprep.mubr.bf16.mxu0 %v1259_v30  ;;  %v7555_v30 = vld [vmem:[%s9581_s1 + $0x8e0] sm:$0xff]  }
  0xe5   :  { %5149 = vmatmul.mubr.bf16.vlgmr.msra.gmra.mrb[24].mxu1 %v1260_v33  ;;  %6851 = vmatprep.subr.bf16.mxu0 %v7509_v34  ;;  %v7556_v31 = vld [vmem:[%s9581_s1 + $0x820] sm:$0xff]   ;;  %v7558_v33 = vld [vmem:[%s9581_s1 + $0x868] sm:$0xff]  }
  0xe6   :  { %6872 = vmatpush3.bf16.msra.mxu1 %v7508_v32  ;;  %5228 = vmatprep.mubr.bf16.mxu1 %v1263_v36  ;;  %v7557_v32 = vld [vmem:[%s9581_s1 + $0x8a0] sm:$0xff]   ;;  %v7559_v34 = vld [vmem:[%s9581_s1 + $0x8e8] sm:$0xff]  }
  0xe7   :  { %6873 = vmatprep.subr.bf16.mxu1 %v7510_v35  ;;  %v7560_v35 = vld [vmem:[%s9581_s1 + $0x828] sm:$0xff]  }
  0xe8   :  { %6852 = vmatpush3.bf16.msra.mxu0 %v7511_v37  ;;  %v7561_v36 = vld [vmem:[%s9581_s1 + $0x8a8] sm:$0xff]   ;;  %v7562_v37 = vld [vmem:[%s9581_s1 + $0x870] sm:$0xff]  }
  0xe9   :  { %6853 = vmatprep.subr.bf16.mxu0 %v7513_v39  ;;  %v7563_v39 = vld [vmem:[%s9581_s1 + $0x8f0] sm:$0xff]  }
  0xea   :  { %6874 = vmatpush3.bf16.msra.mxu1 %v7512_v38 }
  0xeb   :  { %6875 = vmatprep.subr.bf16.mxu1 %v7514_v40  ;;  %v32_v40 = vld [vmem:[%s9580_s0 + $0x20] sm:$0xff] }
  0xec   :  { %6854 = vmatpush3.bf16.msra.mxu0 %v7515_v42 }
  0xed   :  { %6855 = vmatprep.subr.bf16.mxu0 %v7517_v44  ;;  %v1271_v44 = vrot.slane %v32_v40, %v7969_v41 }
  0xee   :  { %6876 = vmatpush3.bf16.msra.mxu1 %v7516_v43  ;;  %v7564_v43 = vld [vmem:[%s9581_s1 + $0x830] sm:$0xff]  }
  0xef   :  { %6877 = vmatprep.subr.bf16.mxu1 %v7518_v45  ;;  %v1264_v45 = vcombine.high %v32_v40, %v32_v40 }
  0xf0   :  { %6856 = vmatpush3.bf16.msra.mxu0 %v7519_v46 }
  0xf1   :  { %6857 = vmatprep.subr.bf16.mxu0 %v7521_v48 }
  0xf2   :  { %6878 = vmatpush3.bf16.msra.mxu1 %v7520_v47 }
  0xf3   :  { %6879 = vmatprep.subr.bf16.mxu1 %v7522_v49 }
  0xf4   :  { %6858 = vmatpush3.bf16.msra.mxu0 %v7523_v50 }
  0xf5   :  { %6859 = vmatprep.subr.bf16.mxu0 %v7525_v52  ;;  %v7566_v52 = vld [vmem:[%s9581_s1 + $0x878] sm:$0xff]  }
  0xf6   :  { %6880 = vmatpush3.bf16.msra.mxu1 %v7524_v51  ;;  %v6557_v57 = vpop.f32.mrb[0].mxu0  ;;  %v7565_v51 = vld [vmem:[%s9581_s1 + $0x8b0] sm:$0xff]  }
  0xf7   :  { %v6558_v59 = vpop.f32.mrb[1].mxu0  ;;  %6881 = vmatprep.subr.bf16.mxu1 %v7526_v53  ;;  %v6579_v61 = vpop.f32.mrb[0].mxu1  ;;  %v1279_v53 = vcombine.high %v1271_v44, %v1271_v44 }
  0xf8   :  { %v6559_v62 = vadd.f32 %v6558_v59, %v6557_v57  ;;  %v6560_v63 = vpop.f32.mrb[2].mxu0  ;;  %6860 = vmatpush3.bf16.msra.mxu0 %v7527_v54  ;;  %v6580_v2 = vpop.f32.mrb[1].mxu1  ;;  %v8784_v54 = vrot.slane %v1264_v45, %v7969_v41 }
  0xf9   :  { %v6561_v3 = vpop.f32.mrb[3].mxu0  ;;  %6861 = vmatprep.subr.bf16.mxu0 %v7529_v56  ;;  %v6581_v4 = vadd.f32 %v6580_v2, %v6579_v61  ;;  %v6582_v5 = vpop.f32.mrb[2].mxu1  ;;  %v1301_v61 = vrot.slane %v1279_v53, %v7969_v41  ;;  %v1287_v2 = vrot.slane %v1271_v44, %v7969_v41  ;;  %v7604_v53 = vld [vmem:[%s9581_s1 + $0xac0] sm:$0xff]  }
  0xfa   :  { %6882 = vmatpush3.bf16.msra.mxu1 %v7528_v55  ;;  %v6583_v7 = vpop.f32.mrb[3].mxu1  ;;  %v7570_v3 = vld [vmem:[%s9581_s1 + $0x940] sm:$0xff]  }
  0xfb   :  { %6883 = vmatprep.subr.bf16.mxu1 %v7530_v58  ;;  %v8685_v9 = vadd.f32 %v6581_v4, %v6559_v62  ;;  %v7567_v58 = vld [vmem:[%s9581_s1 + $0x8f8] sm:$0xff]   ;;  %v1280_v62 = vcombine.high %v8784_v54, %v8784_v54  ;;  %v7571_v4 = vld [vmem:[%s9581_s1 + $0x9c0] sm:$0xff]  }
  0xfc   :  { %6862 = vmatpush3.bf16.msra.mxu0 %v7531_v60  ;;  %v7568_v60 = vld [vmem:[%s9581_s1 + $0x838] sm:$0xff]   ;;  %v7573_v7 = vld [vmem:[%s9581_s1 + $0x980] sm:$0xff]  }
  0xfd   :  { %6863 = vmatprep.subr.bf16.mxu0 %v7533_v1  ;;  %v1311_v1 = vcombine.high %v1301_v61, %v1301_v61  ;;  %v1308_v5 = vrot.slane %v1280_v62, %v7969_v41  ;;  %v7612_v62 = vld [vmem:[%s9581_s1 + $0xad0] sm:$0xff]  }
  0xfe   :  { %6884 = vmatpush3.bf16.msra.mxu1 %v7532_v0  ;;  %v7569_v0 = vld [vmem:[%s9581_s1 + $0x8b8] sm:$0xff]  }
  0xff   :  { %6885 = vmatprep.subr.bf16.mxu1 %v7534_v6  ;;  %v7572_v6 = vld [vmem:[%s9581_s1 + $0x900] sm:$0xff]  }
 0x100   :  { %6864 = vmatpush3.bf16.msra.mxu0 %v7535_v8  ;;  %v1309_v8 = vcombine.high %v1287_v2, %v1287_v2 }
 0x101   :  { %6893 = vmatprep.subr.bf16.mxu0 %v7538_v12  ;;  %v7576_v12 = vld [vmem:[%s9581_s1 + $0x908] sm:$0xff]  }
 0x102   :  { %6886 = vmatpush3.bf16.msra.mxu1 %v7536_v10  ;;  %v7575_v10 = vld [vmem:[%s9581_s1 + $0x9c8] sm:$0xff]  }
 0x103   :  { %5189 = vmatmul.mubr.bf16.vlgmr.msra.gmra.mrb[28].mxu0 %v1245_v11  ;;  %6915 = vmatprep.subr.bf16.mxu1 %v7539_v13  ;;  %v1312_v11 = vcombine.high %v1308_v5, %v1308_v5  ;;  %v7577_v13 = vld [vmem:[%s9581_s1 + $0x988] sm:$0xff]  }
 0x104   :  { %6894 = vmatpush3.bf16.msra.mxu0 %v7540_v14  ;;  %5268 = vmatprep.mubr.bf16.mxu0 %v1301_v61  ;;  %v7578_v14 = vld [vmem:[%s9581_s1 + $0x950] sm:$0xff]  }
 0x105   :  { %5229 = vmatmul.mubr.bf16.vlgmr.msra.gmra.mrb[28].mxu1 %v1261_v16  ;;  %6895 = vmatprep.subr.bf16.mxu0 %v7542_v17  ;;  %v7580_v16 = vld [vmem:[%s9581_s1 + $0x910] sm:$0xff]  }
 0x106   :  { %6916 = vmatpush3.bf16.msra.mxu1 %v7541_v15  ;;  %5308 = vmatprep.mubr.bf16.mxu1 %v1311_v1  ;;  %v7579_v15 = vld [vmem:[%s9581_s1 + $0x9d0] sm:$0xff]   ;;  %v7615_v1 = vld [vmem:[%s9581_s1 + $0xa58] sm:$0xff]  }
 0x107   :  { %6917 = vmatprep.subr.bf16.mxu1 %v7543_v18  ;;  %v7581_v17 = vld [vmem:[%s9581_s1 + $0x990] sm:$0xff]   ;;  %v7582_v18 = vld [vmem:[%s9581_s1 + $0x958] sm:$0xff]  }
 0x108   :  { %6896 = vmatpush3.bf16.msra.mxu0 %v7544_v19  ;;  %v7583_v19 = vld [vmem:[%s9581_s1 + $0x9d8] sm:$0xff]   ;;  %v7611_v61 = vld [vmem:[%s9581_s1 + $0xa50] sm:$0xff]  }
 0x109   :  { %6897 = vmatprep.subr.bf16.mxu0 %v7546_v21  ;;  %v7585_v21 = vld [vmem:[%s9581_s1 + $0x998] sm:$0xff]  }
 0x10a   :  { %6918 = vmatpush3.bf16.msra.mxu1 %v7545_v20  ;;  %v7584_v20 = vld [vmem:[%s9581_s1 + $0x918] sm:$0xff]  }
 0x10b   :  { %6919 = vmatprep.subr.bf16.mxu1 %v7547_v22  ;;  %v7586_v22 = vld [vmem:[%s9581_s1 + $0x960] sm:$0xff]  }
 0x10c   :  { %6898 = vmatpush3.bf16.msra.mxu0 %v7548_v23  ;;  %v7587_v23 = vld [vmem:[%s9581_s1 + $0x9e0] sm:$0xff]  }
 0x10d   :  { %6899 = vmatprep.subr.bf16.mxu0 %v7550_v25  ;;  %v7589_v25 = vld [vmem:[%s9581_s1 + $0x9a0] sm:$0xff]  }
 0x10e   :  { %6920 = vmatpush3.bf16.msra.mxu1 %v7549_v24  ;;  %v7588_v24 = vld [vmem:[%s9581_s1 + $0x920] sm:$0xff]  }
 0x10f   :  { %6921 = vmatprep.subr.bf16.mxu1 %v7551_v26  ;;  %v7590_v26 = vld [vmem:[%s9581_s1 + $0x968] sm:$0xff]  }
 0x110   :  { %6900 = vmatpush3.bf16.msra.mxu0 %v7552_v27  ;;  %v7591_v27 = vld [vmem:[%s9581_s1 + $0x9e8] sm:$0xff]  }
 0x111   :  { %6901 = vmatprep.subr.bf16.mxu0 %v7554_v29  ;;  %v7593_v29 = vld [vmem:[%s9581_s1 + $0x9a8] sm:$0xff]  }
 0x112   :  { %6922 = vmatpush3.bf16.msra.mxu1 %v7553_v28  ;;  %v7592_v28 = vld [vmem:[%s9581_s1 + $0x928] sm:$0xff]  }
 0x113   :  { %6923 = vmatprep.subr.bf16.mxu1 %v7555_v30  ;;  %v7594_v30 = vld [vmem:[%s9581_s1 + $0x970] sm:$0xff]  }
 0x114   :  { %6902 = vmatpush3.bf16.msra.mxu0 %v7556_v31 }
 0x115   :  { %6903 = vmatprep.subr.bf16.mxu0 %v7558_v33 }
 0x116   :  { %6924 = vmatpush3.bf16.msra.mxu1 %v7557_v32  ;;  %v6601_v38 = vpop.f32.mrb[4].mxu0  ;;  %v7595_v32 = vld [vmem:[%s9581_s1 + $0x9f0] sm:$0xff]  }
 0x117   :  { %v6602_v42 = vpop.f32.mrb[5].mxu0  ;;  %6925 = vmatprep.subr.bf16.mxu1 %v7559_v34  ;;  %v6623_v46 = vpop.f32.mrb[4].mxu1  ;;  %v7596_v34 = vld [vmem:[%s9581_s1 + $0x930] sm:$0xff]  }
 0x118   :  { %v6603_v47 = vadd.f32 %v6602_v42, %v6601_v38  ;;  %v6604_v48 = vpop.f32.mrb[6].mxu0  ;;  %6904 = vmatpush3.bf16.msra.mxu0 %v7560_v35  ;;  %v6624_v49 = vpop.f32.mrb[5].mxu1  ;;  %v7597_v38 = vld [vmem:[%s9581_s1 + $0x9b0] sm:$0xff]  }
 0x119   :  { %v6605_v50 = vpop.f32.mrb[7].mxu0  ;;  %6905 = vmatprep.subr.bf16.mxu0 %v7562_v37  ;;  %v6625_v56 = vadd.f32 %v6624_v49, %v6623_v46  ;;  %v6626_v57 = vpop.f32.mrb[6].mxu1  ;;  %v7599_v46 = vld [vmem:[%s9581_s1 + $0x9f8] sm:$0xff]  }
 0x11a   :  { %v4711_v55 = vadd.f32 %v6603_v47, %v8685_v9  ;;  %6926 = vmatpush3.bf16.msra.mxu1 %v7561_v36  ;;  %v6627_v59 = vpop.f32.mrb[7].mxu1  ;;  %v7574_v9 = vld [vmem:[%s9581_s1 + $0x948] sm:$0xff]   ;;  %v7600_v48 = vld [vmem:[%s9581_s1 + $0x938] sm:$0xff]  }
 0x11b   :  { %6927 = vmatprep.subr.bf16.mxu1 %v7563_v39  ;;  %v7598_v39 = vld [vmem:[%s9581_s1 + $0x978] sm:$0xff]   ;;  %v7607_v57 = vld [vmem:[%s9581_s1 + $0xa48] sm:$0xff]  }
 0x11c   :  { %v8796_v63 = vadd.f32 %v6625_v56, %v4711_v55  ;;  %6906 = vmatpush3.bf16.msra.mxu0 %v7564_v43  ;;  %v7601_v50 = vld [vmem:[%s9581_s1 + $0x9b8] sm:$0xff]   ;;  %v7605_v55 = vld [vmem:[%s9581_s1 + $0xa00] sm:$0xff]   ;;  %v7609_v59 = vld [vmem:[%s9581_s1 + $0xa08] sm:$0xff]  }
 0x11d   :  { %6907 = vmatprep.subr.bf16.mxu0 %v7566_v52  ;;  %v7603_v52 = vld [vmem:[%s9581_s1 + $0xa40] sm:$0xff]  }
 0x11e   :  { %6928 = vmatpush3.bf16.msra.mxu1 %v7565_v51  ;;  %v1294_v51 = vrot.slane %v8784_v54, %v7969_v41  ;;  %v7606_v56 = vld [vmem:[%s9581_s1 + $0xa80] sm:$0xff]  }
 0x11f   :  { %6929 = vmatprep.subr.bf16.mxu1 %v7567_v58  ;;  %v7608_v58 = vld [vmem:[%s9581_s1 + $0xac8] sm:$0xff]  }
 0x120   :  { %6908 = vmatpush3.bf16.msra.mxu0 %v7568_v60  ;;  %v1310_v54 = vcombine.high %v1294_v51, %v1294_v51  ;;  %v7610_v60 = vld [vmem:[%s9581_s1 + $0xa88] sm:$0xff]  }
 0x121   :  { %6937 = vmatprep.subr.bf16.mxu0 %v7570_v3  ;;  %v7617_v3 = vld [vmem:[%s9581_s1 + $0xa18] sm:$0xff]  }
 0x122   :  { %6930 = vmatpush3.bf16.msra.mxu1 %v7569_v0  ;;  %v7614_v0 = vld [vmem:[%s9581_s1 + $0xa90] sm:$0xff]  }
 0x123   :  { %5269 = vmatmul.mubr.bf16.vlgmr.msra.gmra.mrb[32].mxu0 %v1287_v2  ;;  %6959 = vmatprep.subr.bf16.mxu1 %v7571_v4  ;;  %v7616_v2 = vld [vmem:[%s9581_s1 + $0xad8] sm:$0xff]  }
 0x124   :  { %6938 = vmatpush3.bf16.msra.mxu0 %v7572_v6  ;;  %5348 = vmatprep.mubr.bf16.mxu0 %v1308_v5  ;;  %v7618_v4 = vld [vmem:[%s9581_s1 + $0xa98] sm:$0xff]   ;;  %v7619_v5 = vld [vmem:[%s9581_s1 + $0xa60] sm:$0xff]  }
 0x125   :  { %5309 = vmatmul.mubr.bf16.vlgmr.msra.gmra.mrb[32].mxu1 %v1309_v8  ;;  %6939 = vmatprep.subr.bf16.mxu0 %v7574_v9  ;;  %v7620_v6 = vld [vmem:[%s9581_s1 + $0xae0] sm:$0xff]   ;;  %v7623_v9 = vld [vmem:[%s9581_s1 + $0xa68] sm:$0xff]  }
 0x126   :  { %6960 = vmatpush3.bf16.msra.mxu1 %v7573_v7  ;;  %5388 = vmatprep.mubr.bf16.mxu1 %v1312_v11  ;;  %v7621_v7 = vld [vmem:[%s9581_s1 + $0xa20] sm:$0xff]   ;;  %v7625_v11 = vld [vmem:[%s9581_s1 + $0xa28] sm:$0xff]  }
 0x127   :  { %6961 = vmatprep.subr.bf16.mxu1 %v7575_v10  ;;  %v7622_v8 = vld [vmem:[%s9581_s1 + $0xaa0] sm:$0xff]   ;;  %v7624_v10 = vld [vmem:[%s9581_s1 + $0xae8] sm:$0xff]  }
 0x128   :  { %6940 = vmatpush3.bf16.msra.mxu0 %v7576_v12  ;;  %v7626_v12 = vld [vmem:[%s9581_s1 + $0xaa8] sm:$0xff]  }
 0x129   :  { %6941 = vmatprep.subr.bf16.mxu0 %v7578_v14 }
 0x12a   :  { %6962 = vmatpush3.bf16.msra.mxu1 %v7577_v13  ;;  %v7627_v13 = vld [vmem:[%s9581_s1 + $0xa70] sm:$0xff]  }
 0x12b   :  { %6963 = vmatprep.subr.bf16.mxu1 %v7579_v15  ;;  %v7628_v15 = vld [vmem:[%s9581_s1 + $0xaf0] sm:$0xff]  }
 0x12c   :  { %6942 = vmatpush3.bf16.msra.mxu0 %v7580_v16 }
 0x12d   :  { %6943 = vmatprep.subr.bf16.mxu0 %v7582_v18  ;;  %v33_v18 = vld [vmem:[%s9580_s0 + $0x28] sm:$0xff] }
 0x12e   :  { %6964 = vmatpush3.bf16.msra.mxu1 %v7581_v17  ;;  %v7629_v17 = vld [vmem:[%s9581_s1 + $0xa30] sm:$0xff]  }
 0x12f   :  { %6965 = vmatprep.subr.bf16.mxu1 %v7583_v19 }
 0x130   :  { %6944 = vmatpush3.bf16.msra.mxu0 %v7584_v20 }
 0x131   :  { %6945 = vmatprep.subr.bf16.mxu0 %v7586_v22  ;;  %v1320_v22 = vrot.slane %v33_v18, %v7969_v41 }
 0x132   :  { %6966 = vmatpush3.bf16.msra.mxu1 %v7585_v21 }
 0x133   :  { %6967 = vmatprep.subr.bf16.mxu1 %v7587_v23  ;;  %v1313_v23 = vcombine.high %v33_v18, %v33_v18 }
 0x134   :  { %6946 = vmatpush3.bf16.msra.mxu0 %v7588_v24 }
 0x135   :  { %6947 = vmatprep.subr.bf16.mxu0 %v7590_v26  ;;  %v7630_v26 = vld [vmem:[%s9581_s1 + $0xab0] sm:$0xff]  }
 0x136   :  { %6968 = vmatpush3.bf16.msra.mxu1 %v7589_v25  ;;  %v6645_v31 = vpop.f32.mrb[8].mxu0 }
 0x137   :  { %v6646_v33 = vpop.f32.mrb[9].mxu0  ;;  %6969 = vmatprep.subr.bf16.mxu1 %v7591_v27  ;;  %v7631_v27 = vld [vmem:[%s9581_s1 + $0xa78] sm:$0xff]  }
 0x138   :  { %v6667_v35 = vpop.f32.mrb[8].mxu1  ;;  %v6647_v36 = vadd.f32 %v6646_v33, %v6645_v31  ;;  %v6648_v37 = vpop.f32.mrb[10].mxu0  ;;  %6948 = vmatpush3.bf16.msra.mxu0 %v7592_v28  ;;  %v7632_v31 = vld [vmem:[%s9581_s1 + $0xaf8] sm:$0xff]  }
 0x139   :  { %v6668_v40 = vpop.f32.mrb[9].mxu1  ;;  %v6649_v42 = vpop.f32.mrb[11].mxu0  ;;  %6949 = vmatprep.subr.bf16.mxu0 %v7594_v30  ;;  %v7634_v37 = vld [vmem:[%s9581_s1 + $0xab8] sm:$0xff]  }
 0x13a   :  { %v4791_v43 = vadd.f32 %v6647_v36, %v8796_v63  ;;  %v6669_v44 = vadd.f32 %v6668_v40, %v6667_v35  ;;  %v6670_v45 = vpop.f32.mrb[10].mxu1  ;;  %6970 = vmatpush3.bf16.msra.mxu1 %v7593_v29  ;;  %v7613_v63 = vld [vmem:[%s9581_s1 + $0xa10] sm:$0xff]   ;;  %v9003_v35 = vrot.slane %v1313_v23, %v7969_v41  ;;  %v7635_v40 = vld [vmem:[%s9581_s1 + $0xb40] sm:$0xff]   ;;  %v7665_v23 = vld [vmem:[%s9581_s1 + $0xb38] sm:$0xff]  }
 0x13b   :  { %v6671_v47 = vpop.f32.mrb[11].mxu1  ;;  %6971 = vmatprep.subr.bf16.mxu1 %v7595_v32  ;;  %v1328_v32 = vcombine.high %v1320_v22, %v1320_v22  ;;  %v7637_v45 = vld [vmem:[%s9581_s1 + $0xb00] sm:$0xff]  }
 0x13c   :  { %v8897_v49 = vadd.f32 %v6669_v44, %v4791_v43  ;;  %6950 = vmatpush3.bf16.msra.mxu0 %v7596_v34  ;;  %v7633_v34 = vld [vmem:[%s9581_s1 + $0xa38] sm:$0xff]   ;;  %v1329_v42 = vcombine.high %v9003_v35, %v9003_v35  ;;  %v7636_v44 = vld [vmem:[%s9581_s1 + $0xbc0] sm:$0xff]  }
 0x13d   :  { %6951 = vmatprep.subr.bf16.mxu0 %v7598_v39  ;;  %v1336_v39 = vrot.slane %v1320_v22, %v7969_v41  ;;  %v7638_v47 = vld [vmem:[%s9581_s1 + $0xb80] sm:$0xff]  }
 0x13e   :  { %6972 = vmatpush3.bf16.msra.mxu1 %v7597_v38  ;;  %v1350_v38 = vrot.slane %v1328_v32, %v7969_v41  ;;  %v7672_v32 = vld [vmem:[%s9581_s1 + $0xc48] sm:$0xff]  }
 0x13f   :  { %6973 = vmatprep.subr.bf16.mxu1 %v7599_v46  ;;  %v1357_v46 = vrot.slane %v1329_v42, %v7969_v41  ;;  %v7681_v42 = vld [vmem:[%s9581_s1 + $0xcd8] sm:$0xff]  }
 0x140   :  { %6952 = vmatpush3.bf16.msra.mxu0 %v7600_v48  ;;  %v1360_v43 = vcombine.high %v1350_v38, %v1350_v38  ;;  %v1358_v48 = vcombine.high %v1336_v39, %v1336_v39 }
 0x141   :  { %6981 = vmatprep.subr.bf16.mxu0 %v7603_v52  ;;  %v7641_v52 = vld [vmem:[%s9581_s1 + $0xb08] sm:$0xff]  }
 0x142   :  { %6974 = vmatpush3.bf16.msra.mxu1 %v7601_v50  ;;  %v7640_v50 = vld [vmem:[%s9581_s1 + $0xbc8] sm:$0xff]  }
 0x143   :  { %5349 = vmatmul.mubr.bf16.vlgmr.msra.gmra.mrb[36].mxu0 %v1294_v51  ;;  %7003 = vmatprep.subr.bf16.mxu1 %v7604_v53  ;;  %v1361_v51 = vcombine.high %v1357_v46, %v1357_v46  ;;  %v7642_v53 = vld [vmem:[%s9581_s1 + $0xb88] sm:$0xff]  }
 0x144   :  { %6982 = vmatpush3.bf16.msra.mxu0 %v7605_v55  ;;  %5428 = vmatprep.mubr.bf16.mxu0 %v1350_v38  ;;  %v7643_v55 = vld [vmem:[%s9581_s1 + $0xb50] sm:$0xff]  }
 0x145   :  { %5389 = vmatmul.mubr.bf16.vlgmr.msra.gmra.mrb[36].mxu1 %v1310_v54  ;;  %6983 = vmatprep.subr.bf16.mxu0 %v7607_v57  ;;  %v7645_v54 = vld [vmem:[%s9581_s1 + $0xb10] sm:$0xff]  }
 0x146   :  { %7004 = vmatpush3.bf16.msra.mxu1 %v7606_v56  ;;  %5468 = vmatprep.mubr.bf16.mxu1 %v1360_v43  ;;  %v7644_v56 = vld [vmem:[%s9581_s1 + $0xbd0] sm:$0xff]   ;;  %v7682_v43 = vld [vmem:[%s9581_s1 + $0xc18] sm:$0xff]  }
 0x147   :  { %7005 = vmatprep.subr.bf16.mxu1 %v7608_v58  ;;  %v7646_v57 = vld [vmem:[%s9581_s1 + $0xb90] sm:$0xff]   ;;  %v7647_v58 = vld [vmem:[%s9581_s1 + $0xb58] sm:$0xff]  }
 0x148   :  { %6984 = vmatpush3.bf16.msra.mxu0 %v7609_v59  ;;  %v7648_v59 = vld [vmem:[%s9581_s1 + $0xbd8] sm:$0xff]   ;;  %v7678_v38 = vld [vmem:[%s9581_s1 + $0xc10] sm:$0xff]  }
 0x149   :  { %6985 = vmatprep.subr.bf16.mxu0 %v7611_v61  ;;  %v7650_v61 = vld [vmem:[%s9581_s1 + $0xb98] sm:$0xff]  }
 0x14a   :  { %7006 = vmatpush3.bf16.msra.mxu1 %v7610_v60  ;;  %v7649_v60 = vld [vmem:[%s9581_s1 + $0xb18] sm:$0xff]  }
 0x14b   :  { %7007 = vmatprep.subr.bf16.mxu1 %v7612_v62  ;;  %v7651_v62 = vld [vmem:[%s9581_s1 + $0xb60] sm:$0xff]  }
 0x14c   :  { %6986 = vmatpush3.bf16.msra.mxu0 %v7613_v63  ;;  %v7652_v63 = vld [vmem:[%s9581_s1 + $0xbe0] sm:$0xff]  }
 0x14d   :  { %6987 = vmatprep.subr.bf16.mxu0 %v7615_v1  ;;  %v7654_v1 = vld [vmem:[%s9581_s1 + $0xba0] sm:$0xff]  }
 0x14e   :  { %7008 = vmatpush3.bf16.msra.mxu1 %v7614_v0  ;;  %v7653_v0 = vld [vmem:[%s9581_s1 + $0xb20] sm:$0xff]  }
 0x14f   :  { %7009 = vmatprep.subr.bf16.mxu1 %v7616_v2  ;;  %v7655_v2 = vld [vmem:[%s9581_s1 + $0xb68] sm:$0xff]  }
 0x150   :  { %6988 = vmatpush3.bf16.msra.mxu0 %v7617_v3  ;;  %v7656_v3 = vld [vmem:[%s9581_s1 + $0xbe8] sm:$0xff]  }
 0x151   :  { %6989 = vmatprep.subr.bf16.mxu0 %v7619_v5  ;;  %v7658_v5 = vld [vmem:[%s9581_s1 + $0xba8] sm:$0xff]  }
 0x152   :  { %7010 = vmatpush3.bf16.msra.mxu1 %v7618_v4  ;;  %v7657_v4 = vld [vmem:[%s9581_s1 + $0xb28] sm:$0xff]  }
 0x153   :  { %7011 = vmatprep.subr.bf16.mxu1 %v7620_v6  ;;  %v7659_v6 = vld [vmem:[%s9581_s1 + $0xb70] sm:$0xff]  }
 0x154   :  { %6990 = vmatpush3.bf16.msra.mxu0 %v7621_v7 }
 0x155   :  { %6991 = vmatprep.subr.bf16.mxu0 %v7623_v9 }
 0x156   :  { %7012 = vmatpush3.bf16.msra.mxu1 %v7622_v8  ;;  %v6689_v14 = vpop.f32.mrb[12].mxu0  ;;  %v7660_v8 = vld [vmem:[%s9581_s1 + $0xbf0] sm:$0xff]  }
 0x157   :  { %v6690_v16 = vpop.f32.mrb[13].mxu0  ;;  %7013 = vmatprep.subr.bf16.mxu1 %v7624_v10  ;;  %v7661_v10 = vld [vmem:[%s9581_s1 + $0xb30] sm:$0xff]  }
 0x158   :  { %v6711_v19 = vpop.f32.mrb[12].mxu1  ;;  %v6691_v20 = vadd.f32 %v6690_v16, %v6689_v14  ;;  %v6692_v21 = vpop.f32.mrb[14].mxu0  ;;  %6992 = vmatpush3.bf16.msra.mxu0 %v7625_v11  ;;  %v7662_v14 = vld [vmem:[%s9581_s1 + $0xbb0] sm:$0xff]  }
 0x159   :  { %v6712_v24 = vpop.f32.mrb[13].mxu1  ;;  %v6693_v25 = vpop.f32.mrb[15].mxu0  ;;  %6993 = vmatprep.subr.bf16.mxu0 %v7627_v13  ;;  %v7664_v21 = vld [vmem:[%s9581_s1 + $0xbf8] sm:$0xff]  }
 0x15a   :  { %v4871_v28 = vadd.f32 %v6691_v20, %v8897_v49  ;;  %v6713_v29 = vadd.f32 %v6712_v24, %v6711_v19  ;;  %v6714_v30 = vpop.f32.mrb[14].mxu1  ;;  %7014 = vmatpush3.bf16.msra.mxu1 %v7626_v12  ;;  %v7639_v49 = vld [vmem:[%s9581_s1 + $0xb48] sm:$0xff]   ;;  %v7666_v25 = vld [vmem:[%s9581_s1 + $0xbb8] sm:$0xff]  }
 0x15b   :  { %v6715_v33 = vpop.f32.mrb[15].mxu1  ;;  %7015 = vmatprep.subr.bf16.mxu1 %v7628_v15  ;;  %v7663_v15 = vld [vmem:[%s9581_s1 + $0xb78] sm:$0xff]   ;;  %v7671_v30 = vld [vmem:[%s9581_s1 + $0xc80] sm:$0xff]  }
 0x15c   :  { %v9005_v36 = vadd.f32 %v6713_v29, %v4871_v28  ;;  %6994 = vmatpush3.bf16.msra.mxu0 %v7629_v17  ;;  %v7669_v28 = vld [vmem:[%s9581_s1 + $0xcc0] sm:$0xff]   ;;  %v7673_v33 = vld [vmem:[%s9581_s1 + $0xcc8] sm:$0xff]  }
 0x15d   :  { %6995 = vmatprep.subr.bf16.mxu0 %v7631_v27  ;;  %v7668_v27 = vld [vmem:[%s9581_s1 + $0xc40] sm:$0xff]  }
 0x15e   :  { %7016 = vmatpush3.bf16.msra.mxu1 %v7630_v26  ;;  %v1343_v26 = vrot.slane %v9003_v35, %v7969_v41  ;;  %v7670_v29 = vld [vmem:[%s9581_s1 + $0xc00] sm:$0xff]   ;;  %v7675_v35 = vld [vmem:[%s9581_s1 + $0xc88] sm:$0xff]  }
 0x15f   :  { %7017 = vmatprep.subr.bf16.mxu1 %v7632_v31 }
 0x160   :  { %6996 = vmatpush3.bf16.msra.mxu0 %v7633_v34  ;;  %v1359_v31 = vcombine.high %v1343_v26, %v1343_v26  ;;  %v7674_v34 = vld [vmem:[%s9581_s1 + $0xc08] sm:$0xff]  }
 0x161   :  { %7025 = vmatprep.subr.bf16.mxu0 %v7635_v40  ;;  %v7680_v40 = vld [vmem:[%s9581_s1 + $0xc58] sm:$0xff]  }
 0x162   :  { %7018 = vmatpush3.bf16.msra.mxu1 %v7634_v37  ;;  %v7677_v37 = vld [vmem:[%s9581_s1 + $0xcd0] sm:$0xff]  }
 0x163   :  { %5429 = vmatmul.mubr.bf16.vlgmr.msra.gmra.mrb[40].mxu0 %v1336_v39  ;;  %7047 = vmatprep.subr.bf16.mxu1 %v7636_v44  ;;  %v7679_v39 = vld [vmem:[%s9581_s1 + $0xc90] sm:$0xff]   ;;  %v7683_v44 = vld [vmem:[%s9581_s1 + $0xc98] sm:$0xff]  }
 0x164   :  { %7026 = vmatpush3.bf16.msra.mxu0 %v7637_v45  ;;  %5508 = vmatprep.mubr.bf16.mxu0 %v1357_v46  ;;  %v7684_v45 = vld [vmem:[%s9581_s1 + $0xc60] sm:$0xff]  }
 0x165   :  { %5469 = vmatmul.mubr.bf16.vlgmr.msra.gmra.mrb[40].mxu1 %v1358_v48  ;;  %7027 = vmatprep.subr.bf16.mxu0 %v7639_v49  ;;  %v7685_v46 = vld [vmem:[%s9581_s1 + $0xce0] sm:$0xff]   ;;  %v7688_v49 = vld [vmem:[%s9581_s1 + $0xc68] sm:$0xff]  }
 0x166   :  { %7048 = vmatpush3.bf16.msra.mxu1 %v7638_v47  ;;  %5548 = vmatprep.mubr.bf16.mxu1 %v1361_v51  ;;  %v7686_v47 = vld [vmem:[%s9581_s1 + $0xc20] sm:$0xff]   ;;  %v7690_v51 = vld [vmem:[%s9581_s1 + $0xc28] sm:$0xff]  }
 0x167   :  { %7049 = vmatprep.subr.bf16.mxu1 %v7640_v50  ;;  %v7687_v48 = vld [vmem:[%s9581_s1 + $0xca0] sm:$0xff]   ;;  %v7689_v50 = vld [vmem:[%s9581_s1 + $0xce8] sm:$0xff]  }
 0x168   :  { %7028 = vmatpush3.bf16.msra.mxu0 %v7641_v52  ;;  %v7691_v52 = vld [vmem:[%s9581_s1 + $0xca8] sm:$0xff]  }
 0x169   :  { %7029 = vmatprep.subr.bf16.mxu0 %v7643_v55 }
 0x16a   :  { %7050 = vmatpush3.bf16.msra.mxu1 %v7642_v53  ;;  %v7692_v53 = vld [vmem:[%s9581_s1 + $0xc70] sm:$0xff]  }
 0x16b   :  { %7051 = vmatprep.subr.bf16.mxu1 %v7644_v56  ;;  %v7693_v56 = vld [vmem:[%s9581_s1 + $0xcf0] sm:$0xff]  }
 0x16c   :  { %7030 = vmatpush3.bf16.msra.mxu0 %v7645_v54 }
 0x16d   :  { %7031 = vmatprep.subr.bf16.mxu0 %v7647_v58 }
 0x16e   :  { %7052 = vmatpush3.bf16.msra.mxu1 %v7646_v57  ;;  %v7694_v57 = vld [vmem:[%s9581_s1 + $0xc30] sm:$0xff]  }
 0x16f   :  { %7053 = vmatprep.subr.bf16.mxu1 %v7648_v59 }
 0x170   :  { %7032 = vmatpush3.bf16.msra.mxu0 %v7649_v60 }
 0x171   :  { %7033 = vmatprep.subr.bf16.mxu0 %v7651_v62  ;;  %v7696_v62 = vld [vmem:[%s9581_s1 + $0xc78] sm:$0xff]  }
 0x172   :  { %7054 = vmatpush3.bf16.msra.mxu1 %v7650_v61  ;;  %v7695_v61 = vld [vmem:[%s9581_s1 + $0xcb0] sm:$0xff]  }
 0x173   :  { %7055 = vmatprep.subr.bf16.mxu1 %v7652_v63  ;;  %v34_v63 = vld [vmem:[%s9580_s0 + $0x30] sm:$0xff] }
 0x174   :  { %7034 = vmatpush3.bf16.msra.mxu0 %v7653_v0 }
 0x175   :  { %7035 = vmatprep.subr.bf16.mxu0 %v7655_v2  ;;  %v1369_v2 = vrot.slane %v34_v63, %v7969_v41 }
 0x176   :  { %7056 = vmatpush3.bf16.msra.mxu1 %v7654_v1  ;;  %v6733_v7 = vpop.f32.mrb[16].mxu0 }
 0x177   :  { %v6734_v9 = vpop.f32.mrb[17].mxu0  ;;  %7057 = vmatprep.subr.bf16.mxu1 %v7656_v3  ;;  %v1362_v3 = vcombine.high %v34_v63, %v34_v63  ;;  %v7730_v63 = vld [vmem:[%s9581_s1 + $0xd38] sm:$0xff]  }
 0x178   :  { %v6755_v11 = vpop.f32.mrb[16].mxu1  ;;  %v6735_v12 = vadd.f32 %v6734_v9, %v6733_v7  ;;  %v6736_v13 = vpop.f32.mrb[18].mxu0  ;;  %7036 = vmatpush3.bf16.msra.mxu0 %v7657_v4  ;;  %v7697_v7 = vld [vmem:[%s9581_s1 + $0xcf8] sm:$0xff]  }
 0x179   :  { %v6756_v16 = vpop.f32.mrb[17].mxu1  ;;  %v6737_v17 = vpop.f32.mrb[19].mxu0  ;;  %7037 = vmatprep.subr.bf16.mxu0 %v7659_v6  ;;  %v7698_v9 = vld [vmem:[%s9581_s1 + $0xc38] sm:$0xff]  }
 0x17a   :  { %v4951_v18 = vadd.f32 %v6735_v12, %v9005_v36  ;;  %v6757_v19 = vadd.f32 %v6756_v16, %v6755_v11  ;;  %v6758_v20 = vpop.f32.mrb[18].mxu1  ;;  %7058 = vmatpush3.bf16.msra.mxu1 %v7658_v5  ;;  %v7676_v36 = vld [vmem:[%s9581_s1 + $0xc50] sm:$0xff]   ;;  %v9215_v11 = vrot.slane %v1362_v3, %v7969_v41  ;;  %v7699_v13 = vld [vmem:[%s9581_s1 + $0xcb8] sm:$0xff]   ;;  %v7700_v16 = vld [vmem:[%s9581_s1 + $0xd40] sm:$0xff]  }
 0x17b   :  { %v6759_v22 = vpop.f32.mrb[19].mxu1  ;;  %7059 = vmatprep.subr.bf16.mxu1 %v7660_v8  ;;  %v7702_v20 = vld [vmem:[%s9581_s1 + $0xd00] sm:$0xff]  }
 0x17c   :  { %v9109_v24 = vadd.f32 %v6757_v19, %v4951_v18  ;;  %7038 = vmatpush3.bf16.msra.mxu0 %v7661_v10  ;;  %v1377_v10 = vcombine.high %v1369_v2, %v1369_v2  ;;  %v1378_v17 = vcombine.high %v9215_v11, %v9215_v11  ;;  %v7701_v18 = vld [vmem:[%s9581_s1 + $0xdc0] sm:$0xff]  }
 0x17d   :  { %7039 = vmatprep.subr.bf16.mxu0 %v7663_v15  ;;  %v1385_v15 = vrot.slane %v1369_v2, %v7969_v41  ;;  %v7703_v22 = vld [vmem:[%s9581_s1 + $0xd80] sm:$0xff]   ;;  %v1392_v2 = vrot.slane %v9215_v11, %v7969_v41  ;;  %v7740_v11 = vld [vmem:[%s9581_s1 + $0xe88] sm:$0xff]  }
 0x17e   :  { %7060 = vmatpush3.bf16.msra.mxu1 %v7662_v14  ;;  %v1399_v14 = vrot.slane %v1377_v10, %v7969_v41  ;;  %v7733_v3 = vld [vmem:[%s9581_s1 + $0xe40] sm:$0xff]   ;;  %v7739_v10 = vld [vmem:[%s9581_s1 + $0xe08] sm:$0xff]  }
 0x17f   :  { %7061 = vmatprep.subr.bf16.mxu1 %v7664_v21  ;;  %v1406_v21 = vrot.slane %v1378_v17, %v7969_v41  ;;  %v7746_v17 = vld [vmem:[%s9581_s1 + $0xed8] sm:$0xff]  }
 0x180   :  { %7040 = vmatpush3.bf16.msra.mxu0 %v7665_v23  ;;  %v1409_v19 = vcombine.high %v1399_v14, %v1399_v14  ;;  %v1407_v23 = vcombine.high %v1385_v15, %v1385_v15 }
 0x181   :  { %7069 = vmatprep.subr.bf16.mxu0 %v7668_v27  ;;  %v7706_v27 = vld [vmem:[%s9581_s1 + $0xd08] sm:$0xff]  }
 0x182   :  { %7062 = vmatpush3.bf16.msra.mxu1 %v7666_v25  ;;  %v7705_v25 = vld [vmem:[%s9581_s1 + $0xdc8] sm:$0xff]  }
 0x183   :  { %5509 = vmatmul.mubr.bf16.vlgmr.msra.gmra.mrb[44].mxu0 %v1343_v26  ;;  %7091 = vmatprep.subr.bf16.mxu1 %v7669_v28  ;;  %v1410_v26 = vcombine.high %v1406_v21, %v1406_v21  ;;  %v7707_v28 = vld [vmem:[%s9581_s1 + $0xd88] sm:$0xff]  }
 0x184   :  { %7070 = vmatpush3.bf16.msra.mxu0 %v7670_v29  ;;  %5588 = vmatprep.mubr.bf16.mxu0 %v1399_v14  ;;  %v7708_v29 = vld [vmem:[%s9581_s1 + $0xd50] sm:$0xff]  }
 0x185   :  { %5549 = vmatmul.mubr.bf16.vlgmr.msra.gmra.mrb[44].mxu1 %v1359_v31  ;;  %7071 = vmatprep.subr.bf16.mxu0 %v7672_v32  ;;  %v7710_v31 = vld [vmem:[%s9581_s1 + $0xd10] sm:$0xff]  }
 0x186   :  { %7092 = vmatpush3.bf16.msra.mxu1 %v7671_v30  ;;  %5628 = vmatprep.mubr.bf16.mxu1 %v1409_v19  ;;  %v7709_v30 = vld [vmem:[%s9581_s1 + $0xdd0] sm:$0xff]   ;;  %v7748_v19 = vld [vmem:[%s9581_s1 + $0xe98] sm:$0xff]  }
 0x187   :  { %7093 = vmatprep.subr.bf16.mxu1 %v7673_v33  ;;  %v7711_v32 = vld [vmem:[%s9581_s1 + $0xd90] sm:$0xff]   ;;  %v7712_v33 = vld [vmem:[%s9581_s1 + $0xd58] sm:$0xff]  }
 0x188   :  { %7072 = vmatpush3.bf16.msra.mxu0 %v7674_v34  ;;  %v7713_v34 = vld [vmem:[%s9581_s1 + $0xdd8] sm:$0xff]   ;;  %v7743_v14 = vld [vmem:[%s9581_s1 + $0xe10] sm:$0xff]  }
 0x189   :  { %7073 = vmatprep.subr.bf16.mxu0 %v7676_v36  ;;  %v7715_v36 = vld [vmem:[%s9581_s1 + $0xd98] sm:$0xff]  }
 0x18a   :  { %7094 = vmatpush3.bf16.msra.mxu1 %v7675_v35  ;;  %v7714_v35 = vld [vmem:[%s9581_s1 + $0xd18] sm:$0xff]  }
 0x18b   :  { %7095 = vmatprep.subr.bf16.mxu1 %v7677_v37  ;;  %v7716_v37 = vld [vmem:[%s9581_s1 + $0xd60] sm:$0xff]  }
 0x18c   :  { %7074 = vmatpush3.bf16.msra.mxu0 %v7678_v38  ;;  %v7717_v38 = vld [vmem:[%s9581_s1 + $0xde0] sm:$0xff]  }
 0x18d   :  { %7075 = vmatprep.subr.bf16.mxu0 %v7680_v40  ;;  %v7719_v40 = vld [vmem:[%s9581_s1 + $0xda0] sm:$0xff]  }
 0x18e   :  { %7096 = vmatpush3.bf16.msra.mxu1 %v7679_v39  ;;  %v7718_v39 = vld [vmem:[%s9581_s1 + $0xd20] sm:$0xff]  }
 0x18f   :  { %7097 = vmatprep.subr.bf16.mxu1 %v7681_v42  ;;  %v7720_v42 = vld [vmem:[%s9581_s1 + $0xd68] sm:$0xff]  }
 0x190   :  { %7076 = vmatpush3.bf16.msra.mxu0 %v7682_v43  ;;  %v7721_v43 = vld [vmem:[%s9581_s1 + $0xde8] sm:$0xff]  }
 0x191   :  { %7077 = vmatprep.subr.bf16.mxu0 %v7684_v45  ;;  %v7723_v45 = vld [vmem:[%s9581_s1 + $0xda8] sm:$0xff]  }
 0x192   :  { %7098 = vmatpush3.bf16.msra.mxu1 %v7683_v44  ;;  %v7722_v44 = vld [vmem:[%s9581_s1 + $0xd28] sm:$0xff]  }
 0x193   :  { %7099 = vmatprep.subr.bf16.mxu1 %v7685_v46  ;;  %v7724_v46 = vld [vmem:[%s9581_s1 + $0xd70] sm:$0xff]  }
 0x194   :  { %7078 = vmatpush3.bf16.msra.mxu0 %v7686_v47 }
 0x195   :  { %7079 = vmatprep.subr.bf16.mxu0 %v7688_v49 }
 0x196   :  { %7100 = vmatpush3.bf16.msra.mxu1 %v7687_v48  ;;  %v6777_v55 = vpop.f32.mrb[20].mxu0  ;;  %v7725_v48 = vld [vmem:[%s9581_s1 + $0xdf0] sm:$0xff]  }
 0x197   :  { %v6778_v54 = vpop.f32.mrb[21].mxu0  ;;  %7101 = vmatprep.subr.bf16.mxu1 %v7689_v50  ;;  %v7726_v50 = vld [vmem:[%s9581_s1 + $0xd30] sm:$0xff]  }
 0x198   :  { %v6799_v58 = vpop.f32.mrb[20].mxu1  ;;  %v6779_v59 = vadd.f32 %v6778_v54, %v6777_v55  ;;  %v6780_v60 = vpop.f32.mrb[22].mxu0  ;;  %7080 = vmatpush3.bf16.msra.mxu0 %v7690_v51  ;;  %v7727_v55 = vld [vmem:[%s9581_s1 + $0xdb0] sm:$0xff]  }
 0x199   :  { %v6800_v0 = vpop.f32.mrb[21].mxu1  ;;  %v6781_v1 = vpop.f32.mrb[23].mxu0  ;;  %7081 = vmatprep.subr.bf16.mxu0 %v7692_v53 }
 0x19a   :  { %v5031_v4 = vadd.f32 %v6779_v59, %v9109_v24  ;;  %v6801_v5 = vadd.f32 %v6800_v0, %v6799_v58  ;;  %v6802_v6 = vpop.f32.mrb[22].mxu1  ;;  %7102 = vmatpush3.bf16.msra.mxu1 %v7691_v52  ;;  %v7704_v24 = vld [vmem:[%s9581_s1 + $0xd48] sm:$0xff]   ;;  %v7731_v1 = vld [vmem:[%s9581_s1 + $0xdb8] sm:$0xff]  }
 0x19b   :  { %v6803_v8 = vpop.f32.mrb[23].mxu1  ;;  %7103 = vmatprep.subr.bf16.mxu1 %v7693_v56  ;;  %v7728_v56 = vld [vmem:[%s9581_s1 + $0xd78] sm:$0xff]   ;;  %v7736_v6 = vld [vmem:[%s9581_s1 + $0xe80] sm:$0xff]  }
 0x19c   :  { %v9217_v12 = vadd.f32 %v6801_v5, %v5031_v4  ;;  %7082 = vmatpush3.bf16.msra.mxu0 %v7694_v57  ;;  %v7734_v4 = vld [vmem:[%s9581_s1 + $0xec0] sm:$0xff]   ;;  %v7737_v8 = vld [vmem:[%s9581_s1 + $0xe48] sm:$0xff]  }
 0x19d   :  { %7083 = vmatprep.subr.bf16.mxu0 %v7696_v62  ;;  %v7735_v5 = vld [vmem:[%s9581_s1 + $0xe00] sm:$0xff]  }
 0x19e   :  { %7104 = vmatpush3.bf16.msra.mxu1 %v7695_v61  ;;  %v7729_v61 = vld [vmem:[%s9581_s1 + $0xdf8] sm:$0xff]  }
 0x19f   :  { %7105 = vmatprep.subr.bf16.mxu1 %v7697_v7  ;;  %v1408_v7 = vcombine.high %v1392_v2, %v1392_v2 }
 0x1a0   :  { %7084 = vmatpush3.bf16.msra.mxu0 %v7698_v9  ;;  %v7738_v9 = vld [vmem:[%s9581_s1 + $0xec8] sm:$0xff]  }
 0x1a1   :  { %7113 = vmatprep.subr.bf16.mxu0 %v7700_v16  ;;  %v7745_v16 = vld [vmem:[%s9581_s1 + $0xe58] sm:$0xff]  }
 0x1a2   :  { %7106 = vmatpush3.bf16.msra.mxu1 %v7699_v13  ;;  %v7742_v13 = vld [vmem:[%s9581_s1 + $0xed0] sm:$0xff]  }
 0x1a3   :  { %5589 = vmatmul.mubr.bf16.vlgmr.msra.gmra.mrb[48].mxu0 %v1385_v15  ;;  %7135 = vmatprep.subr.bf16.mxu1 %v7701_v18  ;;  %v7744_v15 = vld [vmem:[%s9581_s1 + $0xe90] sm:$0xff]   ;;  %v7747_v18 = vld [vmem:[%s9581_s1 + $0xe18] sm:$0xff]  }
 0x1a4   :  { %7114 = vmatpush3.bf16.msra.mxu0 %v7702_v20  ;;  %5668 = vmatprep.mubr.bf16.mxu0 %v1406_v21  ;;  %v7749_v20 = vld [vmem:[%s9581_s1 + $0xe60] sm:$0xff]  }
 0x1a5   :  { %5629 = vmatmul.mubr.bf16.vlgmr.msra.gmra.mrb[48].mxu1 %v1407_v23  ;;  %7115 = vmatprep.subr.bf16.mxu0 %v7704_v24  ;;  %v7750_v21 = vld [vmem:[%s9581_s1 + $0xee0] sm:$0xff]   ;;  %v7753_v24 = vld [vmem:[%s9581_s1 + $0xe68] sm:$0xff]  }
 0x1a6   :  { %7136 = vmatpush3.bf16.msra.mxu1 %v7703_v22  ;;  %5708 = vmatprep.mubr.bf16.mxu1 %v1410_v26  ;;  %v7751_v22 = vld [vmem:[%s9581_s1 + $0xe20] sm:$0xff]   ;;  %v7755_v26 = vld [vmem:[%s9581_s1 + $0xe28] sm:$0xff]  }
 0x1a7   :  { %7137 = vmatprep.subr.bf16.mxu1 %v7705_v25  ;;  %v7752_v23 = vld [vmem:[%s9581_s1 + $0xea0] sm:$0xff]   ;;  %v7754_v25 = vld [vmem:[%s9581_s1 + $0xee8] sm:$0xff]  }
 0x1a8   :  { %7116 = vmatpush3.bf16.msra.mxu0 %v7706_v27  ;;  %v7756_v27 = vld [vmem:[%s9581_s1 + $0xea8] sm:$0xff]  }
 0x1a9   :  { %7117 = vmatprep.subr.bf16.mxu0 %v7708_v29 }
 0x1aa   :  { %7138 = vmatpush3.bf16.msra.mxu1 %v7707_v28  ;;  %v7757_v28 = vld [vmem:[%s9581_s1 + $0xe70] sm:$0xff]  }
 0x1ab   :  { %7139 = vmatprep.subr.bf16.mxu1 %v7709_v30  ;;  %v7758_v30 = vld [vmem:[%s9581_s1 + $0xef0] sm:$0xff]  }
 0x1ac   :  { %7118 = vmatpush3.bf16.msra.mxu0 %v7710_v31 }
 0x1ad   :  { %7119 = vmatprep.subr.bf16.mxu0 %v7712_v33 }
 0x1ae   :  { %7140 = vmatpush3.bf16.msra.mxu1 %v7711_v32  ;;  %v7759_v32 = vld [vmem:[%s9581_s1 + $0xe30] sm:$0xff]  }
 0x1af   :  { %7141 = vmatprep.subr.bf16.mxu1 %v7713_v34 }
 0x1b0   :  { %7120 = vmatpush3.bf16.msra.mxu0 %v7714_v35 }
 0x1b1   :  { %7121 = vmatprep.subr.bf16.mxu0 %v7716_v37  ;;  %v7761_v37 = vld [vmem:[%s9581_s1 + $0xe78] sm:$0xff]  }
 0x1b2   :  { %7142 = vmatpush3.bf16.msra.mxu1 %v7715_v36  ;;  %v7760_v36 = vld [vmem:[%s9581_s1 + $0xeb0] sm:$0xff]  }
 0x1b3   :  { %7143 = vmatprep.subr.bf16.mxu1 %v7717_v38 }
 0x1b4   :  { %7122 = vmatpush3.bf16.msra.mxu0 %v7718_v39 }
 0x1b5   :  { %7123 = vmatprep.subr.bf16.mxu0 %v7720_v42 }
 0x1b6   :  { %7144 = vmatpush3.bf16.msra.mxu1 %v7719_v40  ;;  %v6821_v47 = vpop.f32.mrb[24].mxu0  ;;  %v7762_v40 = vld [vmem:[%s9581_s1 + $0xef8] sm:$0xff]  }
 0x1b7   :  { %v6822_v49 = vpop.f32.mrb[25].mxu0  ;;  %7145 = vmatprep.subr.bf16.mxu1 %v7721_v43 }
 0x1b8   :  { %v6843_v51 = vpop.f32.mrb[24].mxu1  ;;  %v6823_v52 = vadd.f32 %v6822_v49, %v6821_v47  ;;  %v6824_v53 = vpop.f32.mrb[26].mxu0  ;;  %7124 = vmatpush3.bf16.msra.mxu0 %v7722_v44  ;;  %v7763_v47 = vld [vmem:[%s9581_s1 + $0xe38] sm:$0xff]  }
 0x1b9   :  { %v6844_v54 = vpop.f32.mrb[25].mxu1  ;;  %v6825_v57 = vpop.f32.mrb[27].mxu0  ;;  %7125 = vmatprep.subr.bf16.mxu0 %v7724_v46 }
 0x1ba   :  { %v5111_v58 = vadd.f32 %v6823_v52, %v9217_v12  ;;  %v6845_v59 = vadd.f32 %v6844_v54, %v6843_v51  ;;  %v6846_v60 = vpop.f32.mrb[26].mxu1  ;;  %7146 = vmatpush3.bf16.msra.mxu1 %v7723_v45  ;;  %v7741_v12 = vld [vmem:[%s9581_s1 + $0xe50] sm:$0xff]   ;;  %v35_v45 = vld [vmem:[%s9580_s0 + $0x38] sm:$0xff]  ;;  %v7766_v54 = vld [vmem:[%s9581_s1 + $0xfc0] sm:$0xff]  }
 0x1bb   :  { %v6847_v62 = vpop.f32.mrb[27].mxu1  ;;  %7147 = vmatprep.subr.bf16.mxu1 %v7725_v48  ;;  %v1418_v48 = vrot.slane %v35_v45, %v7969_v41  ;;  %v1411_v49 = vcombine.high %v35_v45, %v35_v45  ;;  %v7764_v51 = vld [vmem:[%s9581_s1 + $0xeb8] sm:$0xff]   ;;  %v7768_v60 = vld [vmem:[%s9581_s1 + $0xf80] sm:$0xff]  }
 0x1bc   :  { %v9321_v0 = vadd.f32 %v6845_v59, %v5111_v58  ;;  %7126 = vmatpush3.bf16.msra.mxu0 %v7726_v50  ;;  %v7767_v58 = vld [vmem:[%s9581_s1 + $0xf00] sm:$0xff]  }
 0x1bd   :  { %7127 = vmatprep.subr.bf16.mxu0 %v7728_v56  ;;  %v1426_v52 = vcombine.high %v1418_v48, %v1418_v48  ;;  %v1434_v53 = vrot.slane %v1418_v48, %v7969_v41  ;;  %v9436_v56 = vrot.slane %v1411_v49, %v7969_v41 }
 0x1be   :  { %7148 = vmatpush3.bf16.msra.mxu1 %v7727_v55  ;;  %v7765_v55 = vld [vmem:[%s9581_s1 + $0xf40] sm:$0xff]  }
 0x1bf   :  { %7149 = vmatprep.subr.bf16.mxu1 %v7729_v61  ;;  %v1448_v57 = vrot.slane %v1426_v52, %v7969_v41  ;;  %v1427_v59 = vcombine.high %v9436_v56, %v9436_v56  ;;  %v1456_v62 = vcombine.high %v1434_v53, %v1434_v53 }
 0x1c0   :  { %7128 = vmatpush3.bf16.msra.mxu0 %v7730_v63  ;;  %v7769_v63 = vld [vmem:[%s9581_s1 + $0xf48] sm:$0xff]  }
 0x1c1   :  { %7157 = vmatprep.subr.bf16.mxu0 %v7733_v3  ;;  %v1458_v61 = vcombine.high %v1448_v57, %v1448_v57 }
 0x1c2   :  { %7150 = vmatpush3.bf16.msra.mxu1 %v7731_v1  ;;  %v7770_v1 = vld [vmem:[%s9581_s1 + $0xfc8] sm:$0xff]  }
 0x1c3   :  { %5669 = vmatmul.mubr.bf16.vlgmr.msra.gmra.mrb[52].mxu0 %v1392_v2  ;;  %7179 = vmatprep.subr.bf16.mxu1 %v7734_v4  ;;  %v7771_v2 = vld [vmem:[%s9581_s1 + $0xf08] sm:$0xff]  }
 0x1c4   :  { %7158 = vmatpush3.bf16.msra.mxu0 %v7735_v5  ;;  %5748 = vmatprep.mubr.bf16.mxu0 %v1448_v57  ;;  %v7772_v4 = vld [vmem:[%s9581_s1 + $0xf88] sm:$0xff]   ;;  %v7773_v5 = vld [vmem:[%s9581_s1 + $0xf50] sm:$0xff]  }
 0x1c5   :  { %5709 = vmatmul.mubr.bf16.vlgmr.msra.gmra.mrb[52].mxu1 %v1408_v7  ;;  %7159 = vmatprep.subr.bf16.mxu0 %v7737_v8  ;;  %v7775_v7 = vld [vmem:[%s9581_s1 + $0xf10] sm:$0xff]  }
 0x1c6   :  { %7180 = vmatpush3.bf16.msra.mxu1 %v7736_v6  ;;  %5788 = vmatprep.mubr.bf16.mxu1 %v1458_v61  ;;  %v7774_v6 = vld [vmem:[%s9581_s1 + $0xfd0] sm:$0xff]  }
 0x1c7   :  { %7181 = vmatprep.subr.bf16.mxu1 %v7738_v9  ;;  %v7776_v8 = vld [vmem:[%s9581_s1 + $0xf90] sm:$0xff]   ;;  %v7777_v9 = vld [vmem:[%s9581_s1 + $0xf58] sm:$0xff]  }
 0x1c8   :  { %7160 = vmatpush3.bf16.msra.mxu0 %v7739_v10  ;;  %v7778_v10 = vld [vmem:[%s9581_s1 + $0xfd8] sm:$0xff]  }
 0x1c9   :  { %7161 = vmatprep.subr.bf16.mxu0 %v7741_v12  ;;  %v7780_v12 = vld [vmem:[%s9581_s1 + $0xf98] sm:$0xff]  }
 0x1ca   :  { %7182 = vmatpush3.bf16.msra.mxu1 %v7740_v11  ;;  %v7779_v11 = vld [vmem:[%s9581_s1 + $0xf18] sm:$0xff]  }
 0x1cb   :  { %7183 = vmatprep.subr.bf16.mxu1 %v7742_v13  ;;  %v7781_v13 = vld [vmem:[%s9581_s1 + $0xf60] sm:$0xff]  }
 0x1cc   :  { %7162 = vmatpush3.bf16.msra.mxu0 %v7743_v14  ;;  %v7782_v14 = vld [vmem:[%s9581_s1 + $0xfe0] sm:$0xff]  }
 0x1cd   :  { %7163 = vmatprep.subr.bf16.mxu0 %v7745_v16  ;;  %v7784_v16 = vld [vmem:[%s9581_s1 + $0xfa0] sm:$0xff]  }
 0x1ce   :  { %7184 = vmatpush3.bf16.msra.mxu1 %v7744_v15  ;;  %v7783_v15 = vld [vmem:[%s9581_s1 + $0xf20] sm:$0xff]  }
 0x1cf   :  { %7185 = vmatprep.subr.bf16.mxu1 %v7746_v17  ;;  %v7785_v17 = vld [vmem:[%s9581_s1 + $0xf68] sm:$0xff]  }
 0x1d0   :  { %7164 = vmatpush3.bf16.msra.mxu0 %v7747_v18  ;;  %v7786_v18 = vld [vmem:[%s9581_s1 + $0xfe8] sm:$0xff]  }
 0x1d1   :  { %7165 = vmatprep.subr.bf16.mxu0 %v7749_v20  ;;  %v7788_v20 = vld [vmem:[%s9581_s1 + $0xfa8] sm:$0xff]  }
 0x1d2   :  { %7186 = vmatpush3.bf16.msra.mxu1 %v7748_v19  ;;  %v7787_v19 = vld [vmem:[%s9581_s1 + $0xf28] sm:$0xff]  }
 0x1d3   :  { %7187 = vmatprep.subr.bf16.mxu1 %v7750_v21  ;;  %v7789_v21 = vld [vmem:[%s9581_s1 + $0xf70] sm:$0xff]  }
 0x1d4   :  { %7166 = vmatpush3.bf16.msra.mxu0 %v7751_v22 }
 0x1d5   :  { %7167 = vmatprep.subr.bf16.mxu0 %v7753_v24 }
 0x1d6   :  { %7188 = vmatpush3.bf16.msra.mxu1 %v7752_v23  ;;  %v6865_v29 = vpop.f32.mrb[28].mxu0  ;;  %v7790_v23 = vld [vmem:[%s9581_s1 + $0xff0] sm:$0xff]  }
 0x1d7   :  { %v6866_v31 = vpop.f32.mrb[29].mxu0  ;;  %7189 = vmatprep.subr.bf16.mxu1 %v7754_v25  ;;  %v7791_v25 = vld [vmem:[%s9581_s1 + $0xf30] sm:$0xff]  }
 0x1d8   :  { %v6887_v33 = vpop.f32.mrb[28].mxu1  ;;  %v6867_v34 = vadd.f32 %v6866_v31, %v6865_v29  ;;  %v6868_v35 = vpop.f32.mrb[30].mxu0  ;;  %7168 = vmatpush3.bf16.msra.mxu0 %v7755_v26  ;;  %v7792_v29 = vld [vmem:[%s9581_s1 + $0xfb0] sm:$0xff]  }
 0x1d9   :  { %v6888_v38 = vpop.f32.mrb[29].mxu1  ;;  %v6869_v39 = vpop.f32.mrb[31].mxu0  ;;  %7169 = vmatprep.subr.bf16.mxu0 %v7757_v28 }
 0x1da   :  { %v5191_v42 = vadd.f32 %v6867_v34, %v9321_v0  ;;  %v6889_v43 = vadd.f32 %v6888_v38, %v6887_v33  ;;  %v6890_v44 = vpop.f32.mrb[30].mxu1  ;;  %7190 = vmatpush3.bf16.msra.mxu1 %v7756_v27  ;;  %v1455_v0 = vrot.slane %v1427_v59, %v7969_v41  ;;  %v7795_v38 = vld [vmem:[%s9581_s1 + $0xf38] sm:$0xff]  }
 0x1db   :  { %v6891_v46 = vpop.f32.mrb[31].mxu1  ;;  %7191 = vmatprep.subr.bf16.mxu1 %v7758_v30  ;;  %v7793_v30 = vld [vmem:[%s9581_s1 + $0xf78] sm:$0xff]  }
 0x1dc   :  { %v9426_v50 = vadd.f32 %v6889_v43, %v5191_v42  ;;  %7170 = vmatpush3.bf16.msra.mxu0 %v7759_v32  ;;  %v1459_v3 = vcombine.high %v1455_v0, %v1455_v0  ;;  %v1441_v42 = vrot.slane %v9436_v56, %v7969_v41 }
 0x1dd   :  { %7171 = vmatprep.subr.bf16.mxu0 %v7761_v37 }
 0x1de   :  { %7192 = vmatpush3.bf16.msra.mxu1 %v7760_v36  ;;  %v7794_v36 = vld [vmem:[%s9581_s1 + $0xff8] sm:$0xff]  }
 0x1df   :  { %7193 = vmatprep.subr.bf16.mxu1 %v7762_v40  ;;  %v7796_v40 = vld [vmem:[%s9581_s1 + $0xfb8] sm:$0xff]  }
 0x1e0   :  { %7172 = vmatpush3.bf16.msra.mxu0 %v7763_v47 }
 0x1e1   :  { %7201 = vmatprep.subr.bf16.mxu0 %v7765_v55 }
 0x1e2   :  { %7194 = vmatpush3.bf16.msra.mxu1 %v7764_v51 }
 0x1e3   :  { %5749 = vmatmul.mubr.bf16.vlgmr.msra.gmra.mrb[56].mxu0 %v1434_v53  ;;  %7223 = vmatprep.subr.bf16.mxu1 %v7766_v54 }
 0x1e4   :  { %7202 = vmatpush3.bf16.msra.mxu0 %v7767_v58  ;;  %5828 = vmatprep.mubr.bf16.mxu0 %v1455_v0 }
 0x1e5   :  { %5789 = vmatmul.mubr.bf16.vlgmr.msra.gmra.mrb[56].mxu1 %v1456_v62  ;;  %7203 = vmatprep.subr.bf16.mxu0 %v7769_v63 }
 0x1e6   :  { %7224 = vmatpush3.bf16.msra.mxu1 %v7768_v60  ;;  %5868 = vmatprep.mubr.bf16.mxu1 %v1459_v3 }
 0x1e7   :  { %7225 = vmatprep.subr.bf16.mxu1 %v7770_v1 }
 0x1e8   :  { %7204 = vmatpush3.bf16.msra.mxu0 %v7771_v2 }
 0x1e9   :  { %7205 = vmatprep.subr.bf16.mxu0 %v7773_v5 }
 0x1ea   :  { %7226 = vmatpush3.bf16.msra.mxu1 %v7772_v4 }
 0x1eb   :  { %7227 = vmatprep.subr.bf16.mxu1 %v7774_v6 }
 0x1ec   :  { %7206 = vmatpush3.bf16.msra.mxu0 %v7775_v7 }
 0x1ed   :  { %7207 = vmatprep.subr.bf16.mxu0 %v7777_v9 }
 0x1ee   :  { %7228 = vmatpush3.bf16.msra.mxu1 %v7776_v8 }
 0x1ef   :  { %7229 = vmatprep.subr.bf16.mxu1 %v7778_v10 }
 0x1f0   :  { %7208 = vmatpush3.bf16.msra.mxu0 %v7779_v11 }
 0x1f1   :  { %7209 = vmatprep.subr.bf16.mxu0 %v7781_v13 }
 0x1f2   :  { %7230 = vmatpush3.bf16.msra.mxu1 %v7780_v12 }
 0x1f3   :  { %7231 = vmatprep.subr.bf16.mxu1 %v7782_v14 }
 0x1f4   :  { %7210 = vmatpush3.bf16.msra.mxu0 %v7783_v15 }
 0x1f5   :  { %7211 = vmatprep.subr.bf16.mxu0 %v7785_v17 }
 0x1f6   :  { %7232 = vmatpush3.bf16.msra.mxu1 %v7784_v16  ;;  %v6909_v22 = vpop.f32.mrb[32].mxu0 }
 0x1f7   :  { %v6910_v24 = vpop.f32.mrb[33].mxu0  ;;  %7233 = vmatprep.subr.bf16.mxu1 %v7786_v18 }
 0x1f8   :  { %v6931_v26 = vpop.f32.mrb[32].mxu1  ;;  %v6911_v27 = vadd.f32 %v6910_v24, %v6909_v22  ;;  %v6912_v28 = vpop.f32.mrb[34].mxu0  ;;  %7212 = vmatpush3.bf16.msra.mxu0 %v7787_v19 }
 0x1f9   :  { %v6932_v31 = vpop.f32.mrb[33].mxu1  ;;  %v6913_v32 = vpop.f32.mrb[35].mxu0  ;;  %7213 = vmatprep.subr.bf16.mxu0 %v7789_v21 }
 0x1fa   :  { %v5271_v33 = vadd.f32 %v6911_v27, %v9426_v50  ;;  %v6933_v34 = vadd.f32 %v6932_v31, %v6931_v26  ;;  %v6934_v35 = vpop.f32.mrb[34].mxu1  ;;  %7234 = vmatpush3.bf16.msra.mxu1 %v7788_v20 }
 0x1fb   :  { %v6935_v37 = vpop.f32.mrb[35].mxu1  ;;  %7235 = vmatprep.subr.bf16.mxu1 %v7790_v23 }
 0x1fc   :  { %v5311_v39 = vadd.f32 %v6933_v34, %v5271_v33  ;;  %7214 = vmatpush3.bf16.msra.mxu0 %v7791_v25 }
 0x1fd   :  { %7215 = vmatprep.subr.bf16.mxu0 %v7793_v30 }
 0x1fe   :  { %7236 = vmatpush3.bf16.msra.mxu1 %v7792_v29 }
 0x1ff   :  { %7237 = vmatprep.subr.bf16.mxu1 %v7794_v36 }
 0x200   :  { %7216 = vmatpush3.bf16.msra.mxu0 %v7795_v38 }
 0x201   :  { %10 = vsyncpa [#allocation4], 0  ;;  %v1457_v43 = vcombine.high %v1441_v42, %v1441_v42  ;;  %v7798_v3 = vld [vmem:[%s9583_s3] sm:$0xff]   ;;  %v7831_v4 = vmov 0.0   ;;  %v7799_v5 = vld [vmem:[%s9583_s3 + $0x8] sm:$0xff]   ;;  %vm7832_vm0 = vmmov 0  }
 0x202   :  { %7238 = vmatpush3.bf16.msra.mxu1 %v7796_v40  ;;  %7254 = vmatprep.subr.bf16.mxu0 %v7831_v4  ;;  %26 = vst [vmem:[#allocation2] sm:$0x3] %v7831_v4  ;;  %v7800_v8 = vld [vmem:[%s9583_s3 + $0x10] sm:$0xff]   ;;  %v7801_v18 = vld [vmem:[%s9583_s3 + $0x18] sm:$0xff]   ;;  %v7802_v20 = vld [vmem:[%s9583_s3 + $0x20] sm:$0xff]   ;;  %s7833_s22 = smov [#allocation3]  }
 0x203   :  { %5829 = vmatmul.mubr.bf16.vlgmr.msra.gmra.mrb[60].mxu0 %v1441_v42  ;;  %v7803_v21 = vld [vmem:[%s9583_s3 + $0x28] sm:$0xff]   ;;  %v7804_v22 = vld [vmem:[%s9583_s3 + $0x30] sm:$0xff]   ;;  %v7805_v23 = vld [vmem:[%s9583_s3 + $0x38] sm:$0xff]   ;;  %s6011_s23 = sshll.u32 %s7833_s22, 4  ;;  %vm6003_vm1 = vcmask 74752   ;;  %s6012_s23 = int_to_ptr.vmem [resolvable:$true] %s6011_s23 }
 0x204   :  { %7255 = vmatpush3.bf16.msra.mxu0 %v7798_v3  ;;  %7270 = vmatprep.mubr.msk.bf16.mxu0 %vm7832_vm0, %v7831_v4  ;;  %p7811_p1 = scmp.lt.s32.totalorder %s6012_s23, %s6012_s23 }
 0x205   :  { %5869 = vmatmul.mubr.bf16.vlgmr.msra.gmra.mrb[60].mxu1 %v1457_v43  ;;  %7256 = vmatprep.subr.bf16.mxu0 %v7831_v4 }
 0x208   :  { %7257 = vmatpush3.bf16.msra.mxu0 %v7799_v5 }
 0x209   :  { %7258 = vmatprep.subr.bf16.mxu0 %v7831_v4 }
 0x20c   :  { %7259 = vmatpush3.bf16.msra.mxu0 %v7800_v8 }
 0x20d   :  { %7260 = vmatprep.subr.bf16.mxu0 %v7831_v4 }
 0x210   :  { %7261 = vmatpush3.bf16.msra.mxu0 %v7801_v18 }
 0x211   :  { %7262 = vmatprep.subr.bf16.mxu0 %v7831_v4 }
 0x214   :  { %7263 = vmatpush3.bf16.msra.mxu0 %v7802_v20 }
 0x215   :  { %7264 = vmatprep.subr.bf16.mxu0 %v7831_v4 }
 0x216   :  { %v6953_v44 = vpop.f32.mrb[36].mxu0 }
 0x217   :  { %v6954_v45 = vpop.f32.mrb[37].mxu0 }
 0x218   :  { %v6975_v46 = vpop.f32.mrb[36].mxu1  ;;  %v6955_v47 = vadd.f32 %v6954_v45, %v6953_v44  ;;  %v6956_v48 = vpop.f32.mrb[38].mxu0  ;;  %7265 = vmatpush3.bf16.msra.mxu0 %v7803_v21 }
 0x219   :  { %v6976_v49 = vpop.f32.mrb[37].mxu1  ;;  %v6957_v50 = vpop.f32.mrb[39].mxu0  ;;  %7266 = vmatprep.subr.bf16.mxu0 %v7831_v4 }
 0x21a   :  { %v5351_v51 = vadd.f32 %v6955_v47, %v5311_v39  ;;  %v6977_v52 = vadd.f32 %v6976_v49, %v6975_v46  ;;  %v6978_v53 = vpop.f32.mrb[38].mxu1 }
 0x21b   :  { %v6979_v55 = vpop.f32.mrb[39].mxu1 }
 0x21c   :  { %v5391_v41 = vadd.f32 %v6977_v52, %v5351_v51  ;;  %7267 = vmatpush3.bf16.msra.mxu0 %v7804_v22 }
 0x21d   :  { %7268 = vmatprep.subr.bf16.mxu0 %v7831_v4 }
 0x220   :  { %7269 = vmatpush3.bf16.msra.mxu0 %v7805_v23 }
 0x236   :  { %v6997_v56 = vpop.f32.mrb[40].mxu0 }
 0x237   :  { %v6998_v54 = vpop.f32.mrb[41].mxu0 }
 0x238   :  { %v7019_v57 = vpop.f32.mrb[40].mxu1  ;;  %v6999_v58 = vadd.f32 %v6998_v54, %v6997_v56  ;;  %v7000_v59 = vpop.f32.mrb[42].mxu0 }
 0x239   :  { %v7020_v60 = vpop.f32.mrb[41].mxu1  ;;  %v7001_v61 = vpop.f32.mrb[43].mxu0 }
 0x23a   :  { %v5431_v62 = vadd.f32 %v6999_v58, %v5391_v41  ;;  %v7021_v63 = vadd.f32 %v7020_v60, %v7019_v57  ;;  %v7022_v0 = vpop.f32.mrb[42].mxu1 }
 0x23b   :  { %v7023_v1 = vpop.f32.mrb[43].mxu1 }
 0x23c   :  { %v5471_v2 = vadd.f32 %v7021_v63, %v5431_v62 }
 0x256   :  { %v7041_v6 = vpop.f32.mrb[44].mxu0 }
 0x257   :  { %v7042_v7 = vpop.f32.mrb[45].mxu0 }
 0x258   :  { %v7063_v9 = vpop.f32.mrb[44].mxu1  ;;  %v7043_v10 = vadd.f32 %v7042_v7, %v7041_v6  ;;  %v7044_v11 = vpop.f32.mrb[46].mxu0  ;;  %v27_v6 = vld [vmem:[#allocation2] sm:$0x3] }
 0x259   :  { %v7064_v12 = vpop.f32.mrb[45].mxu1  ;;  %v7045_v13 = vpop.f32.mrb[47].mxu0 }
 0x25a   :  { %v5511_v14 = vadd.f32 %v7043_v10, %v5471_v2  ;;  %v7065_v15 = vadd.f32 %v7064_v12, %v7063_v9  ;;  %v7066_v16 = vpop.f32.mrb[46].mxu1  ;;  %v6531_v10 = vld [vmem:[%s9582_s2] ss:$0 sm:$0xff]  ;;  %s7806_s2 = scalar_lea.vmem %s6012_s23, 32 }
 0x25b   :  { %v7067_v17 = vpop.f32.mrb[47].mxu1  ;;  %p7807_p0 = scmp.ne.s32.totalorder %s6012_s23, %s7806_s2  ;;  %p7812_p2 = scmp.lt.s32.totalorder %s7806_s2, %s7806_s2 }
 0x25c   :  { %v5551_v19 = vadd.f32 %v7065_v15, %v5511_v14  ;;  %v6532_v15 = vld [vmem:[%s9584_s4] ss:$0 sm:$0xff] }
 0x25d   :  { %p7813_p3 = por %p7812_p2, %p7811_p1 }
 0x25f   :  { %p7814_p4 = pnand %p7813_p3, %p7807_p0 }
 0x276   :  { %v7085_v24 = vpop.f32.mrb[48].mxu0 }
 0x277   :  { %v7086_v25 = vpop.f32.mrb[49].mxu0 }
 0x278   :  { %v7107_v26 = vpop.f32.mrb[48].mxu1  ;;  %v7087_v27 = vadd.f32 %v7086_v25, %v7085_v24  ;;  %v7088_v28 = vpop.f32.mrb[50].mxu0 }
 0x279   :  { %v7108_v29 = vpop.f32.mrb[49].mxu1  ;;  %v7089_v30 = vpop.f32.mrb[51].mxu0 }
 0x27a   :  { %v5591_v31 = vadd.f32 %v7087_v27, %v5551_v19  ;;  %v7109_v32 = vadd.f32 %v7108_v29, %v7107_v26  ;;  %v7110_v33 = vpop.f32.mrb[50].mxu1 }
 0x27b   :  { %v7111_v34 = vpop.f32.mrb[51].mxu1 }
 0x27c   :  { %v5631_v35 = vadd.f32 %v7109_v32, %v5591_v31 }
 0x296   :  { %v7129_v36 = vpop.f32.mrb[52].mxu0 }
 0x297   :  { %v7130_v37 = vpop.f32.mrb[53].mxu0 }
 0x298   :  { %v7151_v38 = vpop.f32.mrb[52].mxu1  ;;  %v7131_v39 = vadd.f32 %v7130_v37, %v7129_v36  ;;  %v7132_v40 = vpop.f32.mrb[54].mxu0 }
 0x299   :  { %v7152_v42 = vpop.f32.mrb[53].mxu1  ;;  %v7133_v43 = vpop.f32.mrb[55].mxu0 }
 0x29a   :  { %v5671_v44 = vadd.f32 %v7131_v39, %v5631_v35  ;;  %v7153_v45 = vadd.f32 %v7152_v42, %v7151_v38  ;;  %v7154_v46 = vpop.f32.mrb[54].mxu1 }
 0x29b   :  { %v7155_v47 = vpop.f32.mrb[55].mxu1 }
 0x29c   :  { %v5711_v48 = vadd.f32 %v7153_v45, %v5671_v44 }
 0x2b6   :  { %v7173_v49 = vpop.f32.mrb[56].mxu0 }
 0x2b7   :  { %v7174_v50 = vpop.f32.mrb[57].mxu0 }
 0x2b8   :  { %v7195_v51 = vpop.f32.mrb[56].mxu1  ;;  %v7175_v52 = vadd.f32 %v7174_v50, %v7173_v49  ;;  %v7176_v53 = vpop.f32.mrb[58].mxu0 }
 0x2b9   :  { %v7196_v55 = vpop.f32.mrb[57].mxu1  ;;  %v7177_v41 = vpop.f32.mrb[59].mxu0 }
 0x2ba   :  { %v5751_v56 = vadd.f32 %v7175_v52, %v5711_v48  ;;  %v7197_v54 = vadd.f32 %v7196_v55, %v7195_v51  ;;  %v7198_v57 = vpop.f32.mrb[58].mxu1 }
 0x2bb   :  { %v7199_v58 = vpop.f32.mrb[59].mxu1 }
 0x2bc   :  { %v5791_v59 = vadd.f32 %v7197_v54, %v5751_v56 }
 0x2d6   :  { %v7217_v60 = vpop.f32.mrb[60].mxu0 }
 0x2d7   :  { %v7218_v61 = vpop.f32.mrb[61].mxu0 }
 0x2d8   :  { %v7239_v62 = vpop.f32.mrb[60].mxu1  ;;  %v7219_v63 = vadd.f32 %v7218_v61, %v7217_v60  ;;  %v7220_v0 = vpop.f32.mrb[62].mxu0 }
 0x2d9   :  { %v7240_v1 = vpop.f32.mrb[61].mxu1  ;;  %v7221_v2 = vpop.f32.mrb[63].mxu0 }
 0x2da   :  { %v5831_v3 = vadd.f32 %v7219_v63, %v5791_v59  ;;  %v7241_v4 = vadd.f32 %v7240_v1, %v7239_v62  ;;  %v7242_v5 = vpop.f32.mrb[62].mxu1 }
 0x2db   :  { %v7243_v7 = vpop.f32.mrb[63].mxu1 }
 0x2dc   :  { %v5871_v8 = vadd.f32 %v7241_v4, %v5831_v3 }
 0x2de   :  { %v5876_v9 = vadd.f32 %v5871_v8, %v27_v6 }
 0x2e0   :  { %5877 = vst [vmem:[#allocation2] sm:$0x3] %v5876_v9 }
 0x2e7   :  { %v5881_v11 = vld [vmem:[#allocation2] sm:$0x3] }
 0x2e8   :  { %v5889_v12 = vadd.f32 %v6531_v10, %v5881_v11 }
 0x2ea   :  { %v5890_v13 = vmax.f32 %v5889_v12, 0.0 }
 0x2ec   :  { %v5891_v14 = vpack.c.bf16 %v5890_v13, %v5890_v13 }
 0x2ee   :  { %7271 = vmatmul.mubr.bf16.vlgmr.msra.gmra.mrb[64].mxu0 %v5891_v14 }
 0x3c1   :  { %v5997_v16 = vpop.f32.mrb[64].mxu0 }
 0x3c2   :  { %v5998_v17 = vadd.f32 %v6532_v15, %v5997_v16  ;;  %v7272_v18 = vpop.f32.mrb[65].mxu0 }
 0x3c3   :  { %v6000_v19 = vpop.f32.mrb[66].mxu0 }
 0x3c4   :  { %v7273_v20 = vpop.f32.mrb[67].mxu0  ;;  %6004 = vst.msk [vmem:[#allocation3] sm:$0x3] %vm6003_vm1, %v5998_v17 }
 0x3c5   :  { %7817 = shalt.err (!%p7814_p4)
}
 0x3c6   :  { %s7818_s4 = scalar_lea.hbm %s9585_s5, 32 }
 0x3c7   :  { %p7819_p5 = scmp.ne.s32.totalorder %s9585_s5, %s7818_s4  ;;  %p7822_p6 = scmp.lt.u32.totalorder %s7818_s4, %s9585_s5 }
 0x3c9   :  { %p7824_p7 = pnand %p7822_p6, %p7819_p5 }
 0x3cb   :  { %7827 = shalt.err (!%p7824_p7)
}
 0x3cc   :  { %6014 = dma.vmem_to_hbm [thread:$0]  %s6012_s23, 32, %s9585_s5, [#allocation4]  }
 0x3cd   :  { %7828 = dma.done.wait [#allocation4], 32  }
 0x3ce   :  { %7829 = vsyncadd [#allocation4], 4294967264 }
 0x3cf   :  { %6018 = vsyncpa [#allocation4], 1 }

</bundles_post_ra>
